<compile_context>
chip_gen: v7x
topology: tpu7x:2x2x1
jax: 0.10.0
libtpu: 0.0.40
codegen_flags: <defaults>
</compile_context>

<pallas_src>
import functools

import jax
import jax.numpy as jnp
from jax.experimental import pallas as pl
from jax.experimental.pallas import tpu as pltpu

LEAKY_SLOPE = 0.01   # nn.LeakyReLU() default negative_slope
BN_EPS = 1e-5        # nn.BatchNorm2d default eps


def _round_up(x, m):
    return (x + m - 1) // m * m


def _vmem_limit_bytes():
    # ~3/4 of physical VMEM: 96 MiB on v5e/v6e (128 MiB/TC), 48 MiB on v7x (64 MiB).
    try:
        cap = pltpu.get_tpu_info().vmem_capacity_bytes
    except Exception:
        cap = 64 * 1024 * 1024
    return int(min(100 * 1024 * 1024, (cap * 3) // 4))


_VMEM_LIMIT = _vmem_limit_bytes()


# ---------------------------------------------------------------------------
# Kernel: 4 tap-GEMMs (H taps gathered in-kernel) + optional bias/activation
#         + optional BatchNorm partial statistics, all in one grid step.
# ---------------------------------------------------------------------------
def _conv_tap_kernel(*refs, taps, ho, wop, has_bias, post_act, want_stats):
    x_ref, w_ref = refs[0], refs[1]
    pos = 2
    bias_ref = None
    if has_bias:
        bias_ref = refs[pos]
        pos += 1
    out_ref = refs[pos]
    pos += 1
    if want_stats:
        sum_ref, sq_ref = refs[pos], refs[pos + 1]

    acc = None
    for t, (p, a) in enumerate(taps):
        # Static, sublane-aligned slice of the VMEM-resident tap-expanded block
        # (rows are flattened (output_row, output_col_padded); wop % 8 == 0).
        lhs = x_ref[0, p, a * wop:(a + ho) * wop, :]
        part = jnp.dot(lhs, w_ref[t], preferred_element_type=jnp.float32)
        acc = part if acc is None else acc + part

    if want_stats:
        # Padded output columns / filters are exactly 0 in the f32 accumulator
        # (zero LHS rows, no bias on BN layers), so no masking is required.
        s1 = jnp.sum(acc, axis=0, keepdims=True)          # (1, tn)
        s2 = jnp.sum(acc * acc, axis=0, keepdims=True)
        sum_ref[...] = jnp.broadcast_to(s1[None], (1, 8, s1.shape[-1]))
        sq_ref[...] = jnp.broadcast_to(s2[None], (1, 8, s2.shape[-1]))

    y = acc
    if has_bias:
        y = y + bias_ref[...]
    if post_act == "leaky":
        y = jnp.where(y > 0, y, LEAKY_SLOPE * y)
    elif post_act == "sigmoid":
        # Exact form: guarantees output <= 1.0 (approx reciprocal can overshoot).
        y = 1.0 / (1.0 + jnp.exp(-y))
    out_ref[0] = y.astype(out_ref.dtype)


# ---------------------------------------------------------------------------
# JAX-side input prep (fused by XLA into one gather/pad/cast pass).
# ---------------------------------------------------------------------------
def _tap_expand(x_act, k, stride, wo, wo_pad):
    """XW[n, h, j, dj*C + c] = x_zero_pad1[n, h, stride*j + dj, c]."""
    xp = jnp.pad(x_act, ((0, 0), (1, 1), (1, 1), (0, 0)))
    cols = [xp[:, :, dj:dj + stride * wo:stride, :] for dj in range(k)]
    xw = jnp.concatenate(cols, axis=-1)                   # [N, Hp, Wo, k*C]
    if wo_pad > wo:
        xw = jnp.pad(xw, ((0, 0), (0, 0), (0, wo_pad - wo), (0, 0)))
    return xw


def _phase_flatten(xw, stride):
    """Split H into `stride` phases and flatten (Hq, Wo_pad) -> rows."""
    n, hp, wo_pad, kc = xw.shape
    if hp % stride:
        xw = jnp.pad(xw, ((0, 0), (0, stride - hp % stride), (0, 0), (0, 0)))
        hp = xw.shape[1]
    hq = hp // stride
    if stride == 1:
        xwp = xw[:, None]                                  # [N, 1, Hp, Wo_pad, kC]
    else:
        xwp = xw.reshape(n, hq, stride, wo_pad, kc).transpose(0, 2, 1, 3, 4)
    return xwp.reshape(n, stride, hq * wo_pad, kc)


# ---------------------------------------------------------------------------
# One conv layer = one pallas_call.
# ---------------------------------------------------------------------------
def _conv_layer(x_act, w_hwio, *, stride, bias=None, post_act=None,
                want_stats=False, out_dtype=jnp.bfloat16):
    x_act = x_act.astype(jnp.bfloat16)
    n, h, w, cin = x_act.shape
    k = w_hwio.shape[0]
    cout = w_hwio.shape[3]
    ho = (h + 2 - k) // stride + 1
    wo = (w + 2 - k) // stride + 1
    wo_pad = _round_up(wo, 8)
    cout_p = _round_up(cout, 128)       # lane-dense MXU + stores
    kc = k * cin
    m = ho * wo_pad

    xwp = _phase_flatten(_tap_expand(x_act, k, stride, wo, wo_pad), stride)
    hq_wop = xwp.shape[2]

    # Tap order t <-> (phase p, in-kernel row offset a), di = stride*a + p.
    taps = tuple((p, a) for p in range(stride) for a in range(k // stride))
    wk = jnp.stack(
        [w_hwio[stride * a + p].reshape(kc, cout) for (p, a) in taps], axis=0)
    if cout_p > cout:
        wk = jnp.pad(wk, ((0, 0), (0, 0), (0, cout_p - cout)))
    wk = wk.astype(jnp.bfloat16)

    tn = cout_p if cout_p <= 256 else 256
    num_ct = cout_p // tn

    in_specs = [
        pl.BlockSpec((1, stride, hq_wop, kc), lambda ct, b: (b, 0, 0, 0)),
        pl.BlockSpec((k, kc, tn), lambda ct, b: (0, 0, ct)),   # W resident per ct
    ]
    inputs = [xwp, wk]
    has_bias = bias is not None
    if has_bias:
        bpad = jnp.pad(bias.astype(jnp.float32), (0, cout_p - cout))
        in_specs.append(pl.BlockSpec((1, tn), lambda ct, b: (0, ct)))
        inputs.append(bpad.reshape(1, cout_p))

    out_shape = [jax.ShapeDtypeStruct((n, m, cout_p), out_dtype)]
    out_specs = [pl.BlockSpec((1, m, tn), lambda ct, b: (b, 0, ct))]
    if want_stats:
        out_shape += [jax.ShapeDtypeStruct((n, 8, cout_p), jnp.float32)] * 2
        out_specs += [pl.BlockSpec((1, 8, tn), lambda ct, b: (b, 0, ct))] * 2

    kernel = functools.partial(
        _conv_tap_kernel, taps=taps, ho=ho, wop=wo_pad,
        has_bias=has_bias, post_act=post_act, want_stats=want_stats)

    res = pl.pallas_call(
        kernel,
        grid=(num_ct, n),
        in_specs=in_specs,
        out_specs=out_specs,
        out_shape=out_shape,
        compiler_params=pltpu.CompilerParams(
            dimension_semantics=("parallel", "parallel"),
            vmem_limit_bytes=_VMEM_LIMIT),
    )(*inputs)

    y = res[0].reshape(n, ho, wo_pad, cout_p)[:, :, :wo, :cout]
    stats = (res[1], res[2]) if want_stats else None
    return y, stats


# ---------------------------------------------------------------------------
# BatchNorm fold (training-mode batch stats) + element-wise apply in JAX.
# ---------------------------------------------------------------------------
def _bn_fold(stats, m_real, gamma, beta):
    sum_p, sq_p = stats
    c = gamma.shape[0]
    s = jnp.sum(sum_p[:, 0, :c], axis=0)
    q = jnp.sum(sq_p[:, 0, :c], axis=0)
    mean = s / m_real
    # Biased (training-mode) variance; E[x^2]-E[x]^2 in f32 is adequate here.
    var = jnp.maximum(q / m_real - mean * mean, 0.0)
    inv_std = jax.lax.rsqrt(var + BN_EPS)
    scale = gamma * inv_std
    shift = beta - mean * scale
    return scale, shift


def _bn_leaky(y, scale, shift):
    # One element-wise pass; XLA fuses it into the next layer's tap expansion,
    # so it is never redone in the k*k-duplicated domain.
    z = y.astype(jnp.float32) * scale + shift
    return jnp.where(z > 0, z, LEAKY_SLOPE * z)


# ---------------------------------------------------------------------------
# Parameters (deterministic synthetic init; HWIO weight layout)
# ---------------------------------------------------------------------------
def init_params(key):
    ks = jax.random.split(key, 6)
    std = 0.02
    return {
        "w1": std * jax.random.normal(ks[0], (4, 4, 6, 64), jnp.float32),
        "w2": std * jax.random.normal(ks[1], (4, 4, 64, 128), jnp.float32),
        "g2": jnp.ones((128,), jnp.float32), "b2": jnp.zeros((128,), jnp.float32),
        "w3": std * jax.random.normal(ks[2], (4, 4, 128, 256), jnp.float32),
        "g3": jnp.ones((256,), jnp.float32), "b3": jnp.zeros((256,), jnp.float32),
        "w4": std * jax.random.normal(ks[3], (4, 4, 256, 512), jnp.float32),
        "g4": jnp.ones((512,), jnp.float32), "b4": jnp.zeros((512,), jnp.float32),
        "w5": std * jax.random.normal(ks[4], (4, 4, 512, 1), jnp.float32),
        "bias5": std * jax.random.normal(ks[5], (1,), jnp.float32),
    }


# ---------------------------------------------------------------------------
# Forward pass (mirrors Discriminator.forward)
# ---------------------------------------------------------------------------
def discriminator_forward(params, inp, tar):
    # inp, tar: NCHW [N, 3, H, W]
    x = jnp.concatenate([inp, tar], axis=1)                     # [N, 6, H, W]
    x = jnp.transpose(x, (0, 2, 3, 1)).astype(jnp.float32)      # NHWC

    # L1: downsample(6, 64, 4, apply_batchnorm=False): conv s2 + LeakyReLU.
    a1, _ = _conv_layer(x, params["w1"], stride=2, post_act="leaky")

    # L2: downsample(64, 128, 4): conv s2 (raw) + in-kernel BN stats;
    #     affine + LeakyReLU applied once per element while building L3 input.
    y2, st2 = _conv_layer(a1, params["w2"], stride=2, want_stats=True)
    n, h2, w2_, _ = y2.shape
    sc2, sh2 = _bn_fold(st2, n * h2 * w2_, params["g2"], params["b2"])
    a2 = _bn_leaky(y2, sc2, sh2)

    # L3: downsample(128, 256, 4)
    y3, st3 = _conv_layer(a2, params["w3"], stride=2, want_stats=True)
    n, h3, w3_, _ = y3.shape
    sc3, sh3 = _bn_fold(st3, n * h3 * w3_, params["g3"], params["b3"])
    a3 = _bn_leaky(y3, sc3, sh3)

    # L4: ZeroPad2d(1) + Conv2d(256, 512, 4, s1, bias=False) + BN + LeakyReLU
    y4, st4 = _conv_layer(a3, params["w4"], stride=1, want_stats=True)
    n, h4, w4_, _ = y4.shape
    sc4, sh4 = _bn_fold(st4, n * h4 * w4_, params["g4"], params["b4"])
    a4 = _bn_leaky(y4, sc4, sh4)

    # L5: ZeroPad2d(1) + Conv2d(512, 1, 4, s1) + Sigmoid (Cout padded 1->128
    # inside _conv_layer for lane-dense stores, sliced back to 1).
    y5, _ = _conv_layer(a4, params["w5"], stride=1, bias=params["bias5"],
                        post_act="sigmoid", out_dtype=jnp.float32)
    return jnp.transpose(y5, (0, 3, 1, 2))                      # back to NCHW


if __name__ == "__main__":
    key = jax.random.PRNGKey(0)
    kp, ki, kt = jax.random.split(key, 3)
    params = init_params(kp)

    inp = jax.random.normal(ki, (2, 3, 32, 32), jnp.float32)
    tar = jax.random.normal(kt, (2, 3, 32, 32), jnp.float32)

    out = jax.jit(discriminator_forward)(params, inp, tar)
    out = jax.block_until_ready(out)

    assert out.shape == (2, 1, 2, 2), out.shape          # PatchGAN output for 32x32
    assert bool(jnp.all(jnp.isfinite(out)))
    assert bool(jnp.all((out >= 0.0) & (out <= 1.0)))    # sigmoid range
    print("KERNEL_OK")
</pallas_src>

<mosaic_0001>
module attributes {stable_mosaic.version = 11 : i64} {
  func.func @_conv_tap_kernel(%arg0: i32, %arg1: i32, %arg2: memref<1x2x272x24xbf16, #tpu.memory_space<vmem>>, %arg3: memref<4x24x128xbf16, #tpu.memory_space<vmem>>, %arg4: memref<1x256x128xbf16, #tpu.memory_space<vmem>>) attributes {dimension_semantics = [#tpu.dimension_semantics<parallel>, #tpu.dimension_semantics<parallel>], iteration_bounds = array<i64: 1, 2>, scalar_prefetch = 0 : i64, scratch_operands = 0 : i64, tpu.core_type = #tpu.core_type<tc>, window_params = [{transform_indices = @transform_0, window_bounds = array<i64: 1, 2, 272, 24>}, {transform_indices = @transform_1, window_bounds = array<i64: 4, 24, 128>}, {transform_indices = @transform_2, window_bounds = array<i64: 1, 256, 128>}]} {
    %c0 = arith.constant 0 : index
    %c0_0 = arith.constant 0 : index
    %c0_1 = arith.constant 0 : index
    %c0_2 = arith.constant 0 : index
    %0 = vector.load %arg2[%c0, %c0_0, %c0_1, %c0_2] : memref<1x2x272x24xbf16, #tpu.memory_space<vmem>>, vector<1x1x256x24xbf16>
    %1 = vector.shape_cast %0 : vector<1x1x256x24xbf16> to vector<256x24xbf16>
    %c0_3 = arith.constant 0 : index
    %c0_4 = arith.constant 0 : index
    %c0_5 = arith.constant 0 : index
    %2 = vector.load %arg3[%c0_3, %c0_4, %c0_5] : memref<4x24x128xbf16, #tpu.memory_space<vmem>>, vector<1x24x128xbf16>
    %3 = vector.shape_cast %2 : vector<1x24x128xbf16> to vector<24x128xbf16>
    %cst = arith.constant dense<0.000000e+00> : vector<256x128xf32>
    %4 = tpu.matmul %1, %3, %cst {dimension_numbers = #tpu.dot_dimension_numbers<[1], [0], [0], [1], [0, 0, 1, 1], [], []>} : vector<256x24xbf16>, vector<24x128xbf16>, vector<256x128xf32> -> vector<256x128xf32>
    %c0_6 = arith.constant 0 : index
    %c0_7 = arith.constant 0 : index
    %c16 = arith.constant 16 : index
    %c0_8 = arith.constant 0 : index
    %5 = vector.load %arg2[%c0_6, %c0_7, %c16, %c0_8] : memref<1x2x272x24xbf16, #tpu.memory_space<vmem>>, vector<1x1x256x24xbf16>
    %6 = vector.shape_cast %5 : vector<1x1x256x24xbf16> to vector<256x24xbf16>
    %c1 = arith.constant 1 : index
    %c0_9 = arith.constant 0 : index
    %c0_10 = arith.constant 0 : index
    %7 = vector.load %arg3[%c1, %c0_9, %c0_10] : memref<4x24x128xbf16, #tpu.memory_space<vmem>>, vector<1x24x128xbf16>
    %8 = vector.shape_cast %7 : vector<1x24x128xbf16> to vector<24x128xbf16>
    %cst_11 = arith.constant dense<0.000000e+00> : vector<256x128xf32>
    %9 = tpu.matmul %6, %8, %cst_11 {dimension_numbers = #tpu.dot_dimension_numbers<[1], [0], [0], [1], [0, 0, 1, 1], [], []>} : vector<256x24xbf16>, vector<24x128xbf16>, vector<256x128xf32> -> vector<256x128xf32>
    %10 = arith.addf %4, %9 : vector<256x128xf32>
    %c0_12 = arith.constant 0 : index
    %c1_13 = arith.constant 1 : index
    %c0_14 = arith.constant 0 : index
    %c0_15 = arith.constant 0 : index
    %11 = vector.load %arg2[%c0_12, %c1_13, %c0_14, %c0_15] : memref<1x2x272x24xbf16, #tpu.memory_space<vmem>>, vector<1x1x256x24xbf16>
    %12 = vector.shape_cast %11 : vector<1x1x256x24xbf16> to vector<256x24xbf16>
    %c2 = arith.constant 2 : index
    %c0_16 = arith.constant 0 : index
    %c0_17 = arith.constant 0 : index
    %13 = vector.load %arg3[%c2, %c0_16, %c0_17] : memref<4x24x128xbf16, #tpu.memory_space<vmem>>, vector<1x24x128xbf16>
    %14 = vector.shape_cast %13 : vector<1x24x128xbf16> to vector<24x128xbf16>
    %cst_18 = arith.constant dense<0.000000e+00> : vector<256x128xf32>
    %15 = tpu.matmul %12, %14, %cst_18 {dimension_numbers = #tpu.dot_dimension_numbers<[1], [0], [0], [1], [0, 0, 1, 1], [], []>} : vector<256x24xbf16>, vector<24x128xbf16>, vector<256x128xf32> -> vector<256x128xf32>
    %16 = arith.addf %10, %15 : vector<256x128xf32>
    %c0_19 = arith.constant 0 : index
    %c1_20 = arith.constant 1 : index
    %c16_21 = arith.constant 16 : index
    %c0_22 = arith.constant 0 : index
    %17 = vector.load %arg2[%c0_19, %c1_20, %c16_21, %c0_22] : memref<1x2x272x24xbf16, #tpu.memory_space<vmem>>, vector<1x1x256x24xbf16>
    %18 = vector.shape_cast %17 : vector<1x1x256x24xbf16> to vector<256x24xbf16>
    %c3 = arith.constant 3 : index
    %c0_23 = arith.constant 0 : index
    %c0_24 = arith.constant 0 : index
    %19 = vector.load %arg3[%c3, %c0_23, %c0_24] : memref<4x24x128xbf16, #tpu.memory_space<vmem>>, vector<1x24x128xbf16>
    %20 = vector.shape_cast %19 : vector<1x24x128xbf16> to vector<24x128xbf16>
    %cst_25 = arith.constant dense<0.000000e+00> : vector<256x128xf32>
    %21 = tpu.matmul %18, %20, %cst_25 {dimension_numbers = #tpu.dot_dimension_numbers<[1], [0], [0], [1], [0, 0, 1, 1], [], []>} : vector<256x24xbf16>, vector<24x128xbf16>, vector<256x128xf32> -> vector<256x128xf32>
    %22 = arith.addf %16, %21 : vector<256x128xf32>
    %cst_26 = arith.constant 0.000000e+00 : f32
    %23 = vector.broadcast %cst_26 : f32 to vector<256x128xf32>
    %24 = arith.cmpf ogt, %22, %23 : vector<256x128xf32>
    %cst_27 = arith.constant 0.00999999977 : f32
    %25 = vector.broadcast %cst_27 : f32 to vector<256x128xf32>
    %26 = arith.mulf %25, %22 : vector<256x128xf32>
    %27 = arith.select %24, %22, %26 : vector<256x128xi1>, vector<256x128xf32>
    %28 = arith.truncf %27 : vector<256x128xf32> to vector<256x128xbf16>
    %c0_28 = arith.constant 0 : index
    %c0_29 = arith.constant 0 : index
    %c0_30 = arith.constant 0 : index
    %29 = vector.load %arg4[%c0_28, %c0_29, %c0_30] : memref<1x256x128xbf16, #tpu.memory_space<vmem>>, vector<1x256x128xbf16>
    %30 = vector.shape_cast %29 : vector<1x256x128xbf16> to vector<256x128xbf16>
    %31 = vector.shape_cast %28 : vector<256x128xbf16> to vector<1x256x128xbf16>
    tpu.vector_store %arg4[%c0_28, %c0_29, %c0_30], %31 {strides = array<i32>} : memref<1x256x128xbf16, #tpu.memory_space<vmem>>, vector<1x256x128xbf16>,
    return
  }
  func.func @transform_0(%arg0: i32, %arg1: i32) -> (i32, i32, i32, i32) {
    %c0_i32 = arith.constant 0 : i32
    %c0_i32_0 = arith.constant 0 : i32
    %c0_i32_1 = arith.constant 0 : i32
    %c0_i32_2 = arith.constant 0 : i32
    return %arg1, %c0_i32, %c0_i32_0, %c0_i32_1 : i32, i32, i32, i32
  }
  func.func @transform_1(%arg0: i32, %arg1: i32) -> (i32, i32, i32) {
    %c0_i32 = arith.constant 0 : i32
    %c0_i32_0 = arith.constant 0 : i32
    %c0_i32_1 = arith.constant 0 : i32
    return %c0_i32, %c0_i32_0, %arg0 : i32, i32, i32
  }
  func.func @transform_2(%arg0: i32, %arg1: i32) -> (i32, i32, i32) {
    %c0_i32 = arith.constant 0 : i32
    %c0_i32_0 = arith.constant 0 : i32
    return %arg1, %c0_i32, %arg0 : i32, i32, i32
  }
}

module attributes {stable_mosaic.version = 11 : i64} {
  func.func @_conv_tap_kernel(%arg0: i32, %arg1: i32, %arg2: memref<1x2x72x256xbf16, #tpu.memory_space<vmem>>, %arg3: memref<4x256x128xbf16, #tpu.memory_space<vmem>>, %arg4: memref<1x64x128xbf16, #tpu.memory_space<vmem>>, %arg5: memref<1x8x128xf32, #tpu.memory_space<vmem>>, %arg6: memref<1x8x128xf32, #tpu.memory_space<vmem>>) attributes {dimension_semantics = [#tpu.dimension_semantics<parallel>, #tpu.dimension_semantics<parallel>], iteration_bounds = array<i64: 1, 2>, scalar_prefetch = 0 : i64, scratch_operands = 0 : i64, tpu.core_type = #tpu.core_type<tc>, window_params = [{transform_indices = @transform_0, window_bounds = array<i64: 1, 2, 72, 256>}, {transform_indices = @transform_1, window_bounds = array<i64: 4, 256, 128>}, {transform_indices = @transform_2, window_bounds = array<i64: 1, 64, 128>}, {transform_indices = @transform_3, window_bounds = array<i64: 1, 8, 128>}, {transform_indices = @transform_4, window_bounds = array<i64: 1, 8, 128>}]} {
    %c0 = arith.constant 0 : index
    %c0_0 = arith.constant 0 : index
    %c0_1 = arith.constant 0 : index
    %c0_2 = arith.constant 0 : index
    %0 = vector.load %arg2[%c0, %c0_0, %c0_1, %c0_2] : memref<1x2x72x256xbf16, #tpu.memory_space<vmem>>, vector<1x1x64x256xbf16>
    %1 = vector.shape_cast %0 : vector<1x1x64x256xbf16> to vector<64x256xbf16>
    %c0_3 = arith.constant 0 : index
    %c0_4 = arith.constant 0 : index
    %c0_5 = arith.constant 0 : index
    %2 = vector.load %arg3[%c0_3, %c0_4, %c0_5] : memref<4x256x128xbf16, #tpu.memory_space<vmem>>, vector<1x256x128xbf16>
    %3 = vector.shape_cast %2 : vector<1x256x128xbf16> to vector<256x128xbf16>
    %cst = arith.constant dense<0.000000e+00> : vector<64x128xf32>
    %4 = tpu.matmul %1, %3, %cst {dimension_numbers = #tpu.dot_dimension_numbers<[1], [0], [0], [1], [0, 0, 1, 1], [], []>} : vector<64x256xbf16>, vector<256x128xbf16>, vector<64x128xf32> -> vector<64x128xf32>
    %c0_6 = arith.constant 0 : index
    %c0_7 = arith.constant 0 : index
    %c8 = arith.constant 8 : index
    %c0_8 = arith.constant 0 : index
    %5 = vector.load %arg2[%c0_6, %c0_7, %c8, %c0_8] : memref<1x2x72x256xbf16, #tpu.memory_space<vmem>>, vector<1x1x64x256xbf16>
    %6 = vector.shape_cast %5 : vector<1x1x64x256xbf16> to vector<64x256xbf16>
    %c1 = arith.constant 1 : index
    %c0_9 = arith.constant 0 : index
    %c0_10 = arith.constant 0 : index
    %7 = vector.load %arg3[%c1, %c0_9, %c0_10] : memref<4x256x128xbf16, #tpu.memory_space<vmem>>, vector<1x256x128xbf16>
    %8 = vector.shape_cast %7 : vector<1x256x128xbf16> to vector<256x128xbf16>
    %cst_11 = arith.constant dense<0.000000e+00> : vector<64x128xf32>
    %9 = tpu.matmul %6, %8, %cst_11 {dimension_numbers = #tpu.dot_dimension_numbers<[1], [0], [0], [1], [0, 0, 1, 1], [], []>} : vector<64x256xbf16>, vector<256x128xbf16>, vector<64x128xf32> -> vector<64x128xf32>
    %10 = arith.addf %4, %9 : vector<64x128xf32>
    %c0_12 = arith.constant 0 : index
    %c1_13 = arith.constant 1 : index
    %c0_14 = arith.constant 0 : index
    %c0_15 = arith.constant 0 : index
    %11 = vector.load %arg2[%c0_12, %c1_13, %c0_14, %c0_15] : memref<1x2x72x256xbf16, #tpu.memory_space<vmem>>, vector<1x1x64x256xbf16>
    %12 = vector.shape_cast %11 : vector<1x1x64x256xbf16> to vector<64x256xbf16>
    %c2 = arith.constant 2 : index
    %c0_16 = arith.constant 0 : index
    %c0_17 = arith.constant 0 : index
    %13 = vector.load %arg3[%c2, %c0_16, %c0_17] : memref<4x256x128xbf16, #tpu.memory_space<vmem>>, vector<1x256x128xbf16>
    %14 = vector.shape_cast %13 : vector<1x256x128xbf16> to vector<256x128xbf16>
    %cst_18 = arith.constant dense<0.000000e+00> : vector<64x128xf32>
    %15 = tpu.matmul %12, %14, %cst_18 {dimension_numbers = #tpu.dot_dimension_numbers<[1], [0], [0], [1], [0, 0, 1, 1], [], []>} : vector<64x256xbf16>, vector<256x128xbf16>, vector<64x128xf32> -> vector<64x128xf32>
    %16 = arith.addf %10, %15 : vector<64x128xf32>
    %c0_19 = arith.constant 0 : index
    %c1_20 = arith.constant 1 : index
    %c8_21 = arith.constant 8 : index
    %c0_22 = arith.constant 0 : index
    %17 = vector.load %arg2[%c0_19, %c1_20, %c8_21, %c0_22] : memref<1x2x72x256xbf16, #tpu.memory_space<vmem>>, vector<1x1x64x256xbf16>
    %18 = vector.shape_cast %17 : vector<1x1x64x256xbf16> to vector<64x256xbf16>
    %c3 = arith.constant 3 : index
    %c0_23 = arith.constant 0 : index
    %c0_24 = arith.constant 0 : index
    %19 = vector.load %arg3[%c3, %c0_23, %c0_24] : memref<4x256x128xbf16, #tpu.memory_space<vmem>>, vector<1x256x128xbf16>
    %20 = vector.shape_cast %19 : vector<1x256x128xbf16> to vector<256x128xbf16>
    %cst_25 = arith.constant dense<0.000000e+00> : vector<64x128xf32>
    %21 = tpu.matmul %18, %20, %cst_25 {dimension_numbers = #tpu.dot_dimension_numbers<[1], [0], [0], [1], [0, 0, 1, 1], [], []>} : vector<64x256xbf16>, vector<256x128xbf16>, vector<64x128xf32> -> vector<64x128xf32>
    %22 = arith.addf %16, %21 : vector<64x128xf32>
    %cst_26 = arith.constant dense<0.000000e+00> : vector<128xf32>
    %23 = vector.multi_reduction <add>, %22, %cst_26 [0] : vector<64x128xf32> to vector<128xf32>
    %24 = vector.shape_cast %23 : vector<128xf32> to vector<1x128xf32>
    %25 = arith.mulf %22, %22 : vector<64x128xf32>
    %cst_27 = arith.constant dense<0.000000e+00> : vector<128xf32>
    %26 = vector.multi_reduction <add>, %25, %cst_27 [0] : vector<64x128xf32> to vector<128xf32>
    %27 = vector.shape_cast %26 : vector<128xf32> to vector<1x128xf32>
    %28 = vector.shape_cast %24 : vector<1x128xf32> to vector<1x1x128xf32>
    %29 = vector.shape_cast %28 : vector<1x1x128xf32> to vector<1x1x128xf32>
    %30 = vector.broadcast %29 : vector<1x1x128xf32> to vector<1x8x128xf32>
    %c0_28 = arith.constant 0 : index
    %c0_29 = arith.constant 0 : index
    %c0_30 = arith.constant 0 : index
    %31 = vector.load %arg5[%c0_28, %c0_29, %c0_30] : memref<1x8x128xf32, #tpu.memory_space<vmem>>, vector<1x8x128xf32>
    tpu.vector_store %arg5[%c0_28, %c0_29, %c0_30], %30 {strides = array<i32>} : memref<1x8x128xf32, #tpu.memory_space<vmem>>, vector<1x8x128xf32>,
    %32 = vector.shape_cast %27 : vector<1x128xf32> to vector<1x1x128xf32>
    %33 = vector.shape_cast %32 : vector<1x1x128xf32> to vector<1x1x128xf32>
    %34 = vector.broadcast %33 : vector<1x1x128xf32> to vector<1x8x128xf32>
    %c0_31 = arith.constant 0 : index
    %c0_32 = arith.constant 0 : index
    %c0_33 = arith.constant 0 : index
    %35 = vector.load %arg6[%c0_31, %c0_32, %c0_33] : memref<1x8x128xf32, #tpu.memory_space<vmem>>, vector<1x8x128xf32>
    tpu.vector_store %arg6[%c0_31, %c0_32, %c0_33], %34 {strides = array<i32>} : memref<1x8x128xf32, #tpu.memory_space<vmem>>, vector<1x8x128xf32>,
    %36 = arith.truncf %22 : vector<64x128xf32> to vector<64x128xbf16>
    %c0_34 = arith.constant 0 : index
    %c0_35 = arith.constant 0 : index
    %c0_36 = arith.constant 0 : index
    %37 = vector.load %arg4[%c0_34, %c0_35, %c0_36] : memref<1x64x128xbf16, #tpu.memory_space<vmem>>, vector<1x64x128xbf16>
    %38 = vector.shape_cast %37 : vector<1x64x128xbf16> to vector<64x128xbf16>
    %39 = vector.shape_cast %36 : vector<64x128xbf16> to vector<1x64x128xbf16>
    tpu.vector_store %arg4[%c0_34, %c0_35, %c0_36], %39 {strides = array<i32>} : memref<1x64x128xbf16, #tpu.memory_space<vmem>>, vector<1x64x128xbf16>,
    return
  }
  func.func @transform_0(%arg0: i32, %arg1: i32) -> (i32, i32, i32, i32) {
    %c0_i32 = arith.constant 0 : i32
    %c0_i32_0 = arith.constant 0 : i32
    %c0_i32_1 = arith.constant 0 : i32
    %c0_i32_2 = arith.constant 0 : i32
    return %arg1, %c0_i32, %c0_i32_0, %c0_i32_1 : i32, i32, i32, i32
  }
  func.func @transform_1(%arg0: i32, %arg1: i32) -> (i32, i32, i32) {
    %c0_i32 = arith.constant 0 : i32
    %c0_i32_0 = arith.constant 0 : i32
    %c0_i32_1 = arith.constant 0 : i32
    return %c0_i32, %c0_i32_0, %arg0 : i32, i32, i32
  }
  func.func @transform_2(%arg0: i32, %arg1: i32) -> (i32, i32, i32) {
    %c0_i32 = arith.constant 0 : i32
    %c0_i32_0 = arith.constant 0 : i32
    return %arg1, %c0_i32, %arg0 : i32, i32, i32
  }
  func.func @transform_3(%arg0: i32, %arg1: i32) -> (i32, i32, i32) {
    %c0_i32 = arith.constant 0 : i32
    %c0_i32_0 = arith.constant 0 : i32
    return %arg1, %c0_i32, %arg0 : i32, i32, i32
  }
  func.func @transform_4(%arg0: i32, %arg1: i32) -> (i32, i32, i32) {
    %c0_i32 = arith.constant 0 : i32
    %c0_i32_0 = arith.constant 0 : i32
    return %arg1, %c0_i32, %arg0 : i32, i32, i32
  }
}

module attributes {stable_mosaic.version = 11 : i64} {
  func.func @_conv_tap_kernel(%arg0: i32, %arg1: i32, %arg2: memref<1x2x40x512xbf16, #tpu.memory_space<vmem>>, %arg3: memref<4x512x256xbf16, #tpu.memory_space<vmem>>, %arg4: memref<1x32x256xbf16, #tpu.memory_space<vmem>>, %arg5: memref<1x8x256xf32, #tpu.memory_space<vmem>>, %arg6: memref<1x8x256xf32, #tpu.memory_space<vmem>>) attributes {dimension_semantics = [#tpu.dimension_semantics<parallel>, #tpu.dimension_semantics<parallel>], iteration_bounds = array<i64: 1, 2>, scalar_prefetch = 0 : i64, scratch_operands = 0 : i64, tpu.core_type = #tpu.core_type<tc>, window_params = [{transform_indices = @transform_0, window_bounds = array<i64: 1, 2, 40, 512>}, {transform_indices = @transform_1, window_bounds = array<i64: 4, 512, 256>}, {transform_indices = @transform_2, window_bounds = array<i64: 1, 32, 256>}, {transform_indices = @transform_3, window_bounds = array<i64: 1, 8, 256>}, {transform_indices = @transform_4, window_bounds = array<i64: 1, 8, 256>}]} {
    %c0 = arith.constant 0 : index
    %c0_0 = arith.constant 0 : index
    %c0_1 = arith.constant 0 : index
    %c0_2 = arith.constant 0 : index
    %0 = vector.load %arg2[%c0, %c0_0, %c0_1, %c0_2] : memref<1x2x40x512xbf16, #tpu.memory_space<vmem>>, vector<1x1x32x512xbf16>
    %1 = vector.shape_cast %0 : vector<1x1x32x512xbf16> to vector<32x512xbf16>
    %c0_3 = arith.constant 0 : index
    %c0_4 = arith.constant 0 : index
    %c0_5 = arith.constant 0 : index
    %2 = vector.load %arg3[%c0_3, %c0_4, %c0_5] : memref<4x512x256xbf16, #tpu.memory_space<vmem>>, vector<1x512x256xbf16>
    %3 = vector.shape_cast %2 : vector<1x512x256xbf16> to vector<512x256xbf16>
    %cst = arith.constant dense<0.000000e+00> : vector<32x256xf32>
    %4 = tpu.matmul %1, %3, %cst {dimension_numbers = #tpu.dot_dimension_numbers<[1], [0], [0], [1], [0, 0, 1, 1], [], []>} : vector<32x512xbf16>, vector<512x256xbf16>, vector<32x256xf32> -> vector<32x256xf32>
    %c0_6 = arith.constant 0 : index
    %c0_7 = arith.constant 0 : index
    %c8 = arith.constant 8 : index
    %c0_8 = arith.constant 0 : index
    %5 = vector.load %arg2[%c0_6, %c0_7, %c8, %c0_8] : memref<1x2x40x512xbf16, #tpu.memory_space<vmem>>, vector<1x1x32x512xbf16>
    %6 = vector.shape_cast %5 : vector<1x1x32x512xbf16> to vector<32x512xbf16>
    %c1 = arith.constant 1 : index
    %c0_9 = arith.constant 0 : index
    %c0_10 = arith.constant 0 : index
    %7 = vector.load %arg3[%c1, %c0_9, %c0_10] : memref<4x512x256xbf16, #tpu.memory_space<vmem>>, vector<1x512x256xbf16>
    %8 = vector.shape_cast %7 : vector<1x512x256xbf16> to vector<512x256xbf16>
    %cst_11 = arith.constant dense<0.000000e+00> : vector<32x256xf32>
    %9 = tpu.matmul %6, %8, %cst_11 {dimension_numbers = #tpu.dot_dimension_numbers<[1], [0], [0], [1], [0, 0, 1, 1], [], []>} : vector<32x512xbf16>, vector<512x256xbf16>, vector<32x256xf32> -> vector<32x256xf32>
    %10 = arith.addf %4, %9 : vector<32x256xf32>
    %c0_12 = arith.constant 0 : index
    %c1_13 = arith.constant 1 : index
    %c0_14 = arith.constant 0 : index
    %c0_15 = arith.constant 0 : index
    %11 = vector.load %arg2[%c0_12, %c1_13, %c0_14, %c0_15] : memref<1x2x40x512xbf16, #tpu.memory_space<vmem>>, vector<1x1x32x512xbf16>
    %12 = vector.shape_cast %11 : vector<1x1x32x512xbf16> to vector<32x512xbf16>
    %c2 = arith.constant 2 : index
    %c0_16 = arith.constant 0 : index
    %c0_17 = arith.constant 0 : index
    %13 = vector.load %arg3[%c2, %c0_16, %c0_17] : memref<4x512x256xbf16, #tpu.memory_space<vmem>>, vector<1x512x256xbf16>
    %14 = vector.shape_cast %13 : vector<1x512x256xbf16> to vector<512x256xbf16>
    %cst_18 = arith.constant dense<0.000000e+00> : vector<32x256xf32>
    %15 = tpu.matmul %12, %14, %cst_18 {dimension_numbers = #tpu.dot_dimension_numbers<[1], [0], [0], [1], [0, 0, 1, 1], [], []>} : vector<32x512xbf16>, vector<512x256xbf16>, vector<32x256xf32> -> vector<32x256xf32>
    %16 = arith.addf %10, %15 : vector<32x256xf32>
    %c0_19 = arith.constant 0 : index
    %c1_20 = arith.constant 1 : index
    %c8_21 = arith.constant 8 : index
    %c0_22 = arith.constant 0 : index
    %17 = vector.load %arg2[%c0_19, %c1_20, %c8_21, %c0_22] : memref<1x2x40x512xbf16, #tpu.memory_space<vmem>>, vector<1x1x32x512xbf16>
    %18 = vector.shape_cast %17 : vector<1x1x32x512xbf16> to vector<32x512xbf16>
    %c3 = arith.constant 3 : index
    %c0_23 = arith.constant 0 : index
    %c0_24 = arith.constant 0 : index
    %19 = vector.load %arg3[%c3, %c0_23, %c0_24] : memref<4x512x256xbf16, #tpu.memory_space<vmem>>, vector<1x512x256xbf16>
    %20 = vector.shape_cast %19 : vector<1x512x256xbf16> to vector<512x256xbf16>
    %cst_25 = arith.constant dense<0.000000e+00> : vector<32x256xf32>
    %21 = tpu.matmul %18, %20, %cst_25 {dimension_numbers = #tpu.dot_dimension_numbers<[1], [0], [0], [1], [0, 0, 1, 1], [], []>} : vector<32x512xbf16>, vector<512x256xbf16>, vector<32x256xf32> -> vector<32x256xf32>
    %22 = arith.addf %16, %21 : vector<32x256xf32>
    %cst_26 = arith.constant dense<0.000000e+00> : vector<256xf32>
    %23 = vector.multi_reduction <add>, %22, %cst_26 [0] : vector<32x256xf32> to vector<256xf32>
    %24 = vector.shape_cast %23 : vector<256xf32> to vector<1x256xf32>
    %25 = arith.mulf %22, %22 : vector<32x256xf32>
    %cst_27 = arith.constant dense<0.000000e+00> : vector<256xf32>
    %26 = vector.multi_reduction <add>, %25, %cst_27 [0] : vector<32x256xf32> to vector<256xf32>
    %27 = vector.shape_cast %26 : vector<256xf32> to vector<1x256xf32>
    %28 = vector.shape_cast %24 : vector<1x256xf32> to vector<1x1x256xf32>
    %29 = vector.shape_cast %28 : vector<1x1x256xf32> to vector<1x1x256xf32>
    %30 = vector.broadcast %29 : vector<1x1x256xf32> to vector<1x8x256xf32>
    %c0_28 = arith.constant 0 : index
    %c0_29 = arith.constant 0 : index
    %c0_30 = arith.constant 0 : index
    %31 = vector.load %arg5[%c0_28, %c0_29, %c0_30] : memref<1x8x256xf32, #tpu.memory_space<vmem>>, vector<1x8x256xf32>
    tpu.vector_store %arg5[%c0_28, %c0_29, %c0_30], %30 {strides = array<i32>} : memref<1x8x256xf32, #tpu.memory_space<vmem>>, vector<1x8x256xf32>,
    %32 = vector.shape_cast %27 : vector<1x256xf32> to vector<1x1x256xf32>
    %33 = vector.shape_cast %32 : vector<1x1x256xf32> to vector<1x1x256xf32>
    %34 = vector.broadcast %33 : vector<1x1x256xf32> to vector<1x8x256xf32>
    %c0_31 = arith.constant 0 : index
    %c0_32 = arith.constant 0 : index
    %c0_33 = arith.constant 0 : index
    %35 = vector.load %arg6[%c0_31, %c0_32, %c0_33] : memref<1x8x256xf32, #tpu.memory_space<vmem>>, vector<1x8x256xf32>
    tpu.vector_store %arg6[%c0_31, %c0_32, %c0_33], %34 {strides = array<i32>} : memref<1x8x256xf32, #tpu.memory_space<vmem>>, vector<1x8x256xf32>,
    %36 = arith.truncf %22 : vector<32x256xf32> to vector<32x256xbf16>
    %c0_34 = arith.constant 0 : index
    %c0_35 = arith.constant 0 : index
    %c0_36 = arith.constant 0 : index
    %37 = vector.load %arg4[%c0_34, %c0_35, %c0_36] : memref<1x32x256xbf16, #tpu.memory_space<vmem>>, vector<1x32x256xbf16>
    %38 = vector.shape_cast %37 : vector<1x32x256xbf16> to vector<32x256xbf16>
    %39 = vector.shape_cast %36 : vector<32x256xbf16> to vector<1x32x256xbf16>
    tpu.vector_store %arg4[%c0_34, %c0_35, %c0_36], %39 {strides = array<i32>} : memref<1x32x256xbf16, #tpu.memory_space<vmem>>, vector<1x32x256xbf16>,
    return
  }
  func.func @transform_0(%arg0: i32, %arg1: i32) -> (i32, i32, i32, i32) {
    %c0_i32 = arith.constant 0 : i32
    %c0_i32_0 = arith.constant 0 : i32
    %c0_i32_1 = arith.constant 0 : i32
    %c0_i32_2 = arith.constant 0 : i32
    return %arg1, %c0_i32, %c0_i32_0, %c0_i32_1 : i32, i32, i32, i32
  }
  func.func @transform_1(%arg0: i32, %arg1: i32) -> (i32, i32, i32) {
    %c0_i32 = arith.constant 0 : i32
    %c0_i32_0 = arith.constant 0 : i32
    %c0_i32_1 = arith.constant 0 : i32
    return %c0_i32, %c0_i32_0, %arg0 : i32, i32, i32
  }
  func.func @transform_2(%arg0: i32, %arg1: i32) -> (i32, i32, i32) {
    %c0_i32 = arith.constant 0 : i32
    %c0_i32_0 = arith.constant 0 : i32
    return %arg1, %c0_i32, %arg0 : i32, i32, i32
  }
  func.func @transform_3(%arg0: i32, %arg1: i32) -> (i32, i32, i32) {
    %c0_i32 = arith.constant 0 : i32
    %c0_i32_0 = arith.constant 0 : i32
    return %arg1, %c0_i32, %arg0 : i32, i32, i32
  }
  func.func @transform_4(%arg0: i32, %arg1: i32) -> (i32, i32, i32) {
    %c0_i32 = arith.constant 0 : i32
    %c0_i32_0 = arith.constant 0 : i32
    return %arg1, %c0_i32, %arg0 : i32, i32, i32
  }
}

module attributes {stable_mosaic.version = 11 : i64} {
  func.func @_conv_tap_kernel(%arg0: i32, %arg1: i32, %arg2: memref<1x1x48x1024xbf16, #tpu.memory_space<vmem>>, %arg3: memref<4x1024x256xbf16, #tpu.memory_space<vmem>>, %arg4: memref<1x24x256xbf16, #tpu.memory_space<vmem>>, %arg5: memref<1x8x256xf32, #tpu.memory_space<vmem>>, %arg6: memref<1x8x256xf32, #tpu.memory_space<vmem>>) attributes {dimension_semantics = [#tpu.dimension_semantics<parallel>, #tpu.dimension_semantics<parallel>], iteration_bounds = array<i64: 2, 2>, scalar_prefetch = 0 : i64, scratch_operands = 0 : i64, tpu.core_type = #tpu.core_type<tc>, window_params = [{transform_indices = @transform_0, window_bounds = array<i64: 1, 1, 48, 1024>}, {transform_indices = @transform_1, window_bounds = array<i64: 4, 1024, 256>}, {transform_indices = @transform_2, window_bounds = array<i64: 1, 24, 256>}, {transform_indices = @transform_3, window_bounds = array<i64: 1, 8, 256>}, {transform_indices = @transform_4, window_bounds = array<i64: 1, 8, 256>}]} {
    %c0 = arith.constant 0 : index
    %c0_0 = arith.constant 0 : index
    %c0_1 = arith.constant 0 : index
    %c0_2 = arith.constant 0 : index
    %0 = vector.load %arg2[%c0, %c0_0, %c0_1, %c0_2] : memref<1x1x48x1024xbf16, #tpu.memory_space<vmem>>, vector<1x1x24x1024xbf16>
    %1 = vector.shape_cast %0 : vector<1x1x24x1024xbf16> to vector<24x1024xbf16>
    %c0_3 = arith.constant 0 : index
    %c0_4 = arith.constant 0 : index
    %c0_5 = arith.constant 0 : index
    %2 = vector.load %arg3[%c0_3, %c0_4, %c0_5] : memref<4x1024x256xbf16, #tpu.memory_space<vmem>>, vector<1x1024x256xbf16>
    %3 = vector.shape_cast %2 : vector<1x1024x256xbf16> to vector<1024x256xbf16>
    %cst = arith.constant dense<0.000000e+00> : vector<24x256xf32>
    %4 = tpu.matmul %1, %3, %cst {dimension_numbers = #tpu.dot_dimension_numbers<[1], [0], [0], [1], [0, 0, 1, 1], [], []>} : vector<24x1024xbf16>, vector<1024x256xbf16>, vector<24x256xf32> -> vector<24x256xf32>
    %c0_6 = arith.constant 0 : index
    %c0_7 = arith.constant 0 : index
    %c8 = arith.constant 8 : index
    %c0_8 = arith.constant 0 : index
    %5 = vector.load %arg2[%c0_6, %c0_7, %c8, %c0_8] : memref<1x1x48x1024xbf16, #tpu.memory_space<vmem>>, vector<1x1x24x1024xbf16>
    %6 = vector.shape_cast %5 : vector<1x1x24x1024xbf16> to vector<24x1024xbf16>
    %c1 = arith.constant 1 : index
    %c0_9 = arith.constant 0 : index
    %c0_10 = arith.constant 0 : index
    %7 = vector.load %arg3[%c1, %c0_9, %c0_10] : memref<4x1024x256xbf16, #tpu.memory_space<vmem>>, vector<1x1024x256xbf16>
    %8 = vector.shape_cast %7 : vector<1x1024x256xbf16> to vector<1024x256xbf16>
    %cst_11 = arith.constant dense<0.000000e+00> : vector<24x256xf32>
    %9 = tpu.matmul %6, %8, %cst_11 {dimension_numbers = #tpu.dot_dimension_numbers<[1], [0], [0], [1], [0, 0, 1, 1], [], []>} : vector<24x1024xbf16>, vector<1024x256xbf16>, vector<24x256xf32> -> vector<24x256xf32>
    %10 = arith.addf %4, %9 : vector<24x256xf32>
    %c0_12 = arith.constant 0 : index
    %c0_13 = arith.constant 0 : index
    %c16 = arith.constant 16 : index
    %c0_14 = arith.constant 0 : index
    %11 = vector.load %arg2[%c0_12, %c0_13, %c16, %c0_14] : memref<1x1x48x1024xbf16, #tpu.memory_space<vmem>>, vector<1x1x24x1024xbf16>
    %12 = vector.shape_cast %11 : vector<1x1x24x1024xbf16> to vector<24x1024xbf16>
    %c2 = arith.constant 2 : index
    %c0_15 = arith.constant 0 : index
    %c0_16 = arith.constant 0 : index
    %13 = vector.load %arg3[%c2, %c0_15, %c0_16] : memref<4x1024x256xbf16, #tpu.memory_space<vmem>>, vector<1x1024x256xbf16>
    %14 = vector.shape_cast %13 : vector<1x1024x256xbf16> to vector<1024x256xbf16>
    %cst_17 = arith.constant dense<0.000000e+00> : vector<24x256xf32>
    %15 = tpu.matmul %12, %14, %cst_17 {dimension_numbers = #tpu.dot_dimension_numbers<[1], [0], [0], [1], [0, 0, 1, 1], [], []>} : vector<24x1024xbf16>, vector<1024x256xbf16>, vector<24x256xf32> -> vector<24x256xf32>
    %16 = arith.addf %10, %15 : vector<24x256xf32>
    %c0_18 = arith.constant 0 : index
    %c0_19 = arith.constant 0 : index
    %c24 = arith.constant 24 : index
    %c0_20 = arith.constant 0 : index
    %17 = vector.load %arg2[%c0_18, %c0_19, %c24, %c0_20] : memref<1x1x48x1024xbf16, #tpu.memory_space<vmem>>, vector<1x1x24x1024xbf16>
    %18 = vector.shape_cast %17 : vector<1x1x24x1024xbf16> to vector<24x1024xbf16>
    %c3 = arith.constant 3 : index
    %c0_21 = arith.constant 0 : index
    %c0_22 = arith.constant 0 : index
    %19 = vector.load %arg3[%c3, %c0_21, %c0_22] : memref<4x1024x256xbf16, #tpu.memory_space<vmem>>, vector<1x1024x256xbf16>
    %20 = vector.shape_cast %19 : vector<1x1024x256xbf16> to vector<1024x256xbf16>
    %cst_23 = arith.constant dense<0.000000e+00> : vector<24x256xf32>
    %21 = tpu.matmul %18, %20, %cst_23 {dimension_numbers = #tpu.dot_dimension_numbers<[1], [0], [0], [1], [0, 0, 1, 1], [], []>} : vector<24x1024xbf16>, vector<1024x256xbf16>, vector<24x256xf32> -> vector<24x256xf32>
    %22 = arith.addf %16, %21 : vector<24x256xf32>
    %cst_24 = arith.constant dense<0.000000e+00> : vector<256xf32>
    %23 = vector.multi_reduction <add>, %22, %cst_24 [0] : vector<24x256xf32> to vector<256xf32>
    %24 = vector.shape_cast %23 : vector<256xf32> to vector<1x256xf32>
    %25 = arith.mulf %22, %22 : vector<24x256xf32>
    %cst_25 = arith.constant dense<0.000000e+00> : vector<256xf32>
    %26 = vector.multi_reduction <add>, %25, %cst_25 [0] : vector<24x256xf32> to vector<256xf32>
    %27 = vector.shape_cast %26 : vector<256xf32> to vector<1x256xf32>
    %28 = vector.shape_cast %24 : vector<1x256xf32> to vector<1x1x256xf32>
    %29 = vector.shape_cast %28 : vector<1x1x256xf32> to vector<1x1x256xf32>
    %30 = vector.broadcast %29 : vector<1x1x256xf32> to vector<1x8x256xf32>
    %c0_26 = arith.constant 0 : index
    %c0_27 = arith.constant 0 : index
    %c0_28 = arith.constant 0 : index
    %31 = vector.load %arg5[%c0_26, %c0_27, %c0_28] : memref<1x8x256xf32, #tpu.memory_space<vmem>>, vector<1x8x256xf32>
    tpu.vector_store %arg5[%c0_26, %c0_27, %c0_28], %30 {strides = array<i32>} : memref<1x8x256xf32, #tpu.memory_space<vmem>>, vector<1x8x256xf32>,
    %32 = vector.shape_cast %27 : vector<1x256xf32> to vector<1x1x256xf32>
    %33 = vector.shape_cast %32 : vector<1x1x256xf32> to vector<1x1x256xf32>
    %34 = vector.broadcast %33 : vector<1x1x256xf32> to vector<1x8x256xf32>
    %c0_29 = arith.constant 0 : index
    %c0_30 = arith.constant 0 : index
    %c0_31 = arith.constant 0 : index
    %35 = vector.load %arg6[%c0_29, %c0_30, %c0_31] : memref<1x8x256xf32, #tpu.memory_space<vmem>>, vector<1x8x256xf32>
    tpu.vector_store %arg6[%c0_29, %c0_30, %c0_31], %34 {strides = array<i32>} : memref<1x8x256xf32, #tpu.memory_space<vmem>>, vector<1x8x256xf32>,
    %36 = arith.truncf %22 : vector<24x256xf32> to vector<24x256xbf16>
    %c0_32 = arith.constant 0 : index
    %c0_33 = arith.constant 0 : index
    %c0_34 = arith.constant 0 : index
    %37 = vector.load %arg4[%c0_32, %c0_33, %c0_34] : memref<1x24x256xbf16, #tpu.memory_space<vmem>>, vector<1x24x256xbf16>
    %38 = vector.shape_cast %37 : vector<1x24x256xbf16> to vector<24x256xbf16>
    %39 = vector.shape_cast %36 : vector<24x256xbf16> to vector<1x24x256xbf16>
    tpu.vector_store %arg4[%c0_32, %c0_33, %c0_34], %39 {strides = array<i32>} : memref<1x24x256xbf16, #tpu.memory_space<vmem>>, vector<1x24x256xbf16>,
    return
  }
  func.func @transform_0(%arg0: i32, %arg1: i32) -> (i32, i32, i32, i32) {
    %c0_i32 = arith.constant 0 : i32
    %c0_i32_0 = arith.constant 0 : i32
    %c0_i32_1 = arith.constant 0 : i32
    %c0_i32_2 = arith.constant 0 : i32
    return %arg1, %c0_i32, %c0_i32_0, %c0_i32_1 : i32, i32, i32, i32
  }
  func.func @transform_1(%arg0: i32, %arg1: i32) -> (i32, i32, i32) {
    %c0_i32 = arith.constant 0 : i32
    %c0_i32_0 = arith.constant 0 : i32
    %c0_i32_1 = arith.constant 0 : i32
    return %c0_i32, %c0_i32_0, %arg0 : i32, i32, i32
  }
  func.func @transform_2(%arg0: i32, %arg1: i32) -> (i32, i32, i32) {
    %c0_i32 = arith.constant 0 : i32
    %c0_i32_0 = arith.constant 0 : i32
    return %arg1, %c0_i32, %arg0 : i32, i32, i32
  }
  func.func @transform_3(%arg0: i32, %arg1: i32) -> (i32, i32, i32) {
    %c0_i32 = arith.constant 0 : i32
    %c0_i32_0 = arith.constant 0 : i32
    return %arg1, %c0_i32, %arg0 : i32, i32, i32
  }
  func.func @transform_4(%arg0: i32, %arg1: i32) -> (i32, i32, i32) {
    %c0_i32 = arith.constant 0 : i32
    %c0_i32_0 = arith.constant 0 : i32
    return %arg1, %c0_i32, %arg0 : i32, i32, i32
  }
}

module attributes {stable_mosaic.version = 11 : i64} {
  func.func @_conv_tap_kernel(%arg0: i32, %arg1: i32, %arg2: memref<1x1x40x2048xbf16, #tpu.memory_space<vmem>>, %arg3: memref<4x2048x128xbf16, #tpu.memory_space<vmem>>, %arg4: memref<1x128xf32, #tpu.memory_space<vmem>>, %arg5: memref<1x16x128xf32, #tpu.memory_space<vmem>>) attributes {dimension_semantics = [#tpu.dimension_semantics<parallel>, #tpu.dimension_semantics<parallel>], iteration_bounds = array<i64: 1, 2>, scalar_prefetch = 0 : i64, scratch_operands = 0 : i64, tpu.core_type = #tpu.core_type<tc>, window_params = [{transform_indices = @transform_0, window_bounds = array<i64: 1, 1, 40, 2048>}, {transform_indices = @transform_1, window_bounds = array<i64: 4, 2048, 128>}, {transform_indices = @transform_2, window_bounds = array<i64: 1, 128>}, {transform_indices = @transform_3, window_bounds = array<i64: 1, 16, 128>}]} {
    %c0 = arith.constant 0 : index
    %c0_0 = arith.constant 0 : index
    %c0_1 = arith.constant 0 : index
    %c0_2 = arith.constant 0 : index
    %0 = vector.load %arg2[%c0, %c0_0, %c0_1, %c0_2] : memref<1x1x40x2048xbf16, #tpu.memory_space<vmem>>, vector<1x1x16x2048xbf16>
    %1 = vector.shape_cast %0 : vector<1x1x16x2048xbf16> to vector<16x2048xbf16>
    %c0_3 = arith.constant 0 : index
    %c0_4 = arith.constant 0 : index
    %c0_5 = arith.constant 0 : index
    %2 = vector.load %arg3[%c0_3, %c0_4, %c0_5] : memref<4x2048x128xbf16, #tpu.memory_space<vmem>>, vector<1x2048x128xbf16>
    %3 = vector.shape_cast %2 : vector<1x2048x128xbf16> to vector<2048x128xbf16>
    %cst = arith.constant dense<0.000000e+00> : vector<16x128xf32>
    %4 = tpu.matmul %1, %3, %cst {dimension_numbers = #tpu.dot_dimension_numbers<[1], [0], [0], [1], [0, 0, 1, 1], [], []>} : vector<16x2048xbf16>, vector<2048x128xbf16>, vector<16x128xf32> -> vector<16x128xf32>
    %c0_6 = arith.constant 0 : index
    %c0_7 = arith.constant 0 : index
    %c8 = arith.constant 8 : index
    %c0_8 = arith.constant 0 : index
    %5 = vector.load %arg2[%c0_6, %c0_7, %c8, %c0_8] : memref<1x1x40x2048xbf16, #tpu.memory_space<vmem>>, vector<1x1x16x2048xbf16>
    %6 = vector.shape_cast %5 : vector<1x1x16x2048xbf16> to vector<16x2048xbf16>
    %c1 = arith.constant 1 : index
    %c0_9 = arith.constant 0 : index
    %c0_10 = arith.constant 0 : index
    %7 = vector.load %arg3[%c1, %c0_9, %c0_10] : memref<4x2048x128xbf16, #tpu.memory_space<vmem>>, vector<1x2048x128xbf16>
    %8 = vector.shape_cast %7 : vector<1x2048x128xbf16> to vector<2048x128xbf16>
    %cst_11 = arith.constant dense<0.000000e+00> : vector<16x128xf32>
    %9 = tpu.matmul %6, %8, %cst_11 {dimension_numbers = #tpu.dot_dimension_numbers<[1], [0], [0], [1], [0, 0, 1, 1], [], []>} : vector<16x2048xbf16>, vector<2048x128xbf16>, vector<16x128xf32> -> vector<16x128xf32>
    %10 = arith.addf %4, %9 : vector<16x128xf32>
    %c0_12 = arith.constant 0 : index
    %c0_13 = arith.constant 0 : index
    %c16 = arith.constant 16 : index
    %c0_14 = arith.constant 0 : index
    %11 = vector.load %arg2[%c0_12, %c0_13, %c16, %c0_14] : memref<1x1x40x2048xbf16, #tpu.memory_space<vmem>>, vector<1x1x16x2048xbf16>
    %12 = vector.shape_cast %11 : vector<1x1x16x2048xbf16> to vector<16x2048xbf16>
    %c2 = arith.constant 2 : index
    %c0_15 = arith.constant 0 : index
    %c0_16 = arith.constant 0 : index
    %13 = vector.load %arg3[%c2, %c0_15, %c0_16] : memref<4x2048x128xbf16, #tpu.memory_space<vmem>>, vector<1x2048x128xbf16>
    %14 = vector.shape_cast %13 : vector<1x2048x128xbf16> to vector<2048x128xbf16>
    %cst_17 = arith.constant dense<0.000000e+00> : vector<16x128xf32>
    %15 = tpu.matmul %12, %14, %cst_17 {dimension_numbers = #tpu.dot_dimension_numbers<[1], [0], [0], [1], [0, 0, 1, 1], [], []>} : vector<16x2048xbf16>, vector<2048x128xbf16>, vector<16x128xf32> -> vector<16x128xf32>
    %16 = arith.addf %10, %15 : vector<16x128xf32>
    %c0_18 = arith.constant 0 : index
    %c0_19 = arith.constant 0 : index
    %c24 = arith.constant 24 : index
    %c0_20 = arith.constant 0 : index
    %17 = vector.load %arg2[%c0_18, %c0_19, %c24, %c0_20] : memref<1x1x40x2048xbf16, #tpu.memory_space<vmem>>, vector<1x1x16x2048xbf16>
    %18 = vector.shape_cast %17 : vector<1x1x16x2048xbf16> to vector<16x2048xbf16>
    %c3 = arith.constant 3 : index
    %c0_21 = arith.constant 0 : index
    %c0_22 = arith.constant 0 : index
    %19 = vector.load %arg3[%c3, %c0_21, %c0_22] : memref<4x2048x128xbf16, #tpu.memory_space<vmem>>, vector<1x2048x128xbf16>
    %20 = vector.shape_cast %19 : vector<1x2048x128xbf16> to vector<2048x128xbf16>
    %cst_23 = arith.constant dense<0.000000e+00> : vector<16x128xf32>
    %21 = tpu.matmul %18, %20, %cst_23 {dimension_numbers = #tpu.dot_dimension_numbers<[1], [0], [0], [1], [0, 0, 1, 1], [], []>} : vector<16x2048xbf16>, vector<2048x128xbf16>, vector<16x128xf32> -> vector<16x128xf32>
    %22 = arith.addf %16, %21 : vector<16x128xf32>
    %c0_24 = arith.constant 0 : index
    %c0_25 = arith.constant 0 : index
    %23 = vector.load %arg4[%c0_24, %c0_25] : memref<1x128xf32, #tpu.memory_space<vmem>>, vector<1x128xf32>
    %24 = vector.broadcast %23 : vector<1x128xf32> to vector<16x128xf32>
    %25 = arith.addf %22, %24 : vector<16x128xf32>
    %cst_26 = arith.constant 0.000000e+00 : f32
    %26 = vector.broadcast %cst_26 : f32 to vector<16x128xf32>
    %27 = arith.subf %26, %25 : vector<16x128xf32>
    %28 = math.exp %27 : vector<16x128xf32>
    %cst_27 = arith.constant 1.000000e+00 : f32
    %29 = vector.broadcast %cst_27 : f32 to vector<16x128xf32>
    %30 = arith.addf %29, %28 : vector<16x128xf32>
    %cst_28 = arith.constant 1.000000e+00 : f32
    %31 = vector.broadcast %cst_28 : f32 to vector<16x128xf32>
    %32 = arith.divf %31, %30 : vector<16x128xf32>
    %c0_29 = arith.constant 0 : index
    %c0_30 = arith.constant 0 : index
    %c0_31 = arith.constant 0 : index
    %33 = vector.load %arg5[%c0_29, %c0_30, %c0_31] : memref<1x16x128xf32, #tpu.memory_space<vmem>>, vector<1x16x128xf32>
    %34 = vector.shape_cast %33 : vector<1x16x128xf32> to vector<16x128xf32>
    %35 = vector.shape_cast %32 : vector<16x128xf32> to vector<1x16x128xf32>
    tpu.vector_store %arg5[%c0_29, %c0_30, %c0_31], %35 {strides = array<i32>} : memref<1x16x128xf32, #tpu.memory_space<vmem>>, vector<1x16x128xf32>,
    return
  }
  func.func @transform_0(%arg0: i32, %arg1: i32) -> (i32, i32, i32, i32) {
    %c0_i32 = arith.constant 0 : i32
    %c0_i32_0 = arith.constant 0 : i32
    %c0_i32_1 = arith.constant 0 : i32
    %c0_i32_2 = arith.constant 0 : i32
    return %arg1, %c0_i32, %c0_i32_0, %c0_i32_1 : i32, i32, i32, i32
  }
  func.func @transform_1(%arg0: i32, %arg1: i32) -> (i32, i32, i32) {
    %c0_i32 = arith.constant 0 : i32
    %c0_i32_0 = arith.constant 0 : i32
    %c0_i32_1 = arith.constant 0 : i32
    return %c0_i32, %c0_i32_0, %arg0 : i32, i32, i32
  }
  func.func @transform_2(%arg0: i32, %arg1: i32) -> (i32, i32) {
    %c0_i32 = arith.constant 0 : i32
    %c0_i32_0 = arith.constant 0 : i32
    return %c0_i32, %arg0 : i32, i32
  }
  func.func @transform_3(%arg0: i32, %arg1: i32) -> (i32, i32, i32) {
    %c0_i32 = arith.constant 0 : i32
    %c0_i32_0 = arith.constant 0 : i32
    return %arg1, %c0_i32, %arg0 : i32, i32, i32
  }
}

</mosaic_0001>

<bundles_post_ra>
// kernel: squeeze.16
= control target key start
LH: loop header
LB: loop body
LE: loop exit
PB: predicated region body
PF: predicated region fallthrough
CT: control target
= control target key end

     0   :  { %vm66_vm0 = vcmask 523264   ;;  %v127_v14 = vmov 0.0   ;;  %s150_s0 = inlined_call_operand.vmem [shape: bf16[1,4,6,64], index: 0, kind: input, shape index: {}]   ;;  %s151_s1 = inlined_call_operand.vmem [shape: bf16[1,24,64], index: 1, kind: output, shape index: {}]  }
   0x1   :  { %v125_v0 = vld [vmem:[%s150_s0 + $0x8] sm:$0xff]   ;;  %v117_v1 = vld [vmem:[%s150_s0] sm:$0xff]  }
   0x2   :  { %v114_v2 = vunpack.c.l.bf16 %v125_v0  ;;  %v115_v3 = vunpack.c.h.bf16 %v125_v0  ;;  %v118_v4 = vunpack.c.l.bf16 %v117_v1  ;;  %v119_v5 = vunpack.c.h.bf16 %v117_v1 }
   0x4   :  { %20 = vst [vmem:[#allocation1 + $0x18] sm:$0xff] %v115_v3  ;;  %36 = vst [vmem:[#allocation1 + $0x10] sm:$0xff] %v114_v2 }
   0x5   :  { %51 = vst [vmem:[#allocation1 + $0x8] sm:$0xff] %v119_v5  ;;  %64 = vst [vmem:[#allocation1] sm:$0xff] %v118_v4 }
   0xb   :  { %v74_v8 = vld [vmem:[#allocation1 + $0x10] sm:$0x3f]   ;;  %v79_v9 = vld [vmem:[#allocation1 + $0x18] sm:$0x3f]  }
   0xc   :  { %v65_v6 = vld [vmem:[#allocation1] sm:$0x3f]   ;;  %v69_v7 = vld [vmem:[#allocation1 + $0x8] sm:$0x3f]   ;;  %77 = vst.msk [vmem:[#allocation0 + $0xc] sm:$0x3f] %vm66_vm0, %v74_v8  }
   0xd   :  { %67 = vst.msk [vmem:[#allocation0] sm:$0x3f] %vm66_vm0, %v65_v6   ;;  %72 = vst.msk [vmem:[#allocation0 + $0x6] sm:$0x3f] %vm66_vm0, %v69_v7  }
   0xe   :  { %82 = vst.msk [vmem:[#allocation0 + $0x12] sm:$0x3f] %vm66_vm0, %v79_v9  }
  0x14   :  { %v87_v10 = vld [vmem:[#allocation0] sm:$0xff]  ;;  %v92_v11 = vld [vmem:[#allocation0 + $0x8] sm:$0xff] }
  0x15   :  { %v123_v12 = vpack.c.bf16 %v92_v11, %v87_v10  ;;  %v98_v13 = vld [vmem:[#allocation0 + $0x10] sm:$0xff] }
  0x16   :  { %v99_v15 = vpack.c.bf16 %v127_v14, %v98_v13 }
  0x17   :  { %124 = vst [vmem:[%s151_s1] sm:$0xff] %v123_v12  }
  0x18   :  { %111 = vst [vmem:[%s151_s1 + $0x8] sm:$0xf] %v99_v15 }

// kernel: discriminator_forward.5
= control target key start
LH: loop header
LB: loop body
LE: loop exit
PB: predicated region body
PF: predicated region fallthrough
CT: control target
= control target key end

     0   :  { %s2597_s9 = smov 0   ;;  %s2599_s10 = smov 0   ;;  %s2831_s0 = inlined_call_operand.vmem [shape: bf16[2,2,272,24], index: 0, kind: input, shape index: {}]   ;;  %s2832_s1 = inlined_call_operand.vmem [shape: bf16[4,24,128], index: 1, kind: input, shape index: {}]   ;;  %s2833_s2 = inlined_call_operand.vmem [shape: bf16[2,256,128], index: 2, kind: output, shape index: {}]  }
   0x1   :  { %s2601_s11 = smov 0  }
   0x2 LB: > { %s21_s12 = sadd.s32 1, %s2576_s10  ;;  %p1800_p0 = scmp.ge.s32.totalorder %s2580_s11, 1  ;;  %s2580_s11 = sphi %s2601_s11, %s12_s11   ;;  %s2576_s10 = sphi %s2599_s10, %s2835_s10   ;;  %s2572_s9 = sphi %s2597_s9, %s2834_s9  }
   0x3   : > { %p22_p1 = scmp.ge.s32.totalorder %s21_s12, 2  ;;  %p135_p2 = scmp.lt.s32.totalorder %s2580_s11, 3 }
   0x5   : > { %s2837_s12 = smov (%p22_p1, %s21_s12), 0  ;;  %p136_p3 = pnand %p1800_p0, %p135_p2 }
   0x6   : > { %v2501_v0 = vld [vmem:[%s2832_s1 + $0xc] sm:$0xff] (!%p136_p3)   ;;  %vm361_vm0 = vcmask (!%p136_p3), 1043456   ;;  %v2502_v1 = vld [vmem:[%s2832_s1 + $0x18] sm:$0xff] (!%p136_p3)   ;;  %p164_p4 = scmp.lt.s32.totalorder (!%p136_p3), %s2572_s9, 1  ;;  %v2503_v2 = vld [vmem:[%s2832_s1 + $0x14] ss:$0 sps:$4 sm:$0xff] (!%p136_p3)  }
   0x7   : > { %139 = sbr.rel (%p136_p3) target bundleno = 364 (0x16c), region = 28  ;;  %2232 = vmatprep.subr.bf16.mxu1 (!%p136_p3), %v2501_v0  ;;  %2304 = vmatprep.subr.bf16.mxu0 (!%p136_p3), %v2502_v1  ;;  %v2504_v3 = vld [vmem:[%s2832_s1 + $0x20] ss:$0 sps:$4 sm:$0xff] (!%p136_p3)   ;;  %v363_v4 = vsel (!%p136_p3), %vm361_vm0, %v2503_v2, 0  ;;  %v2510_v7 = vld [vmem:[%s2832_s1 + $0x24] sm:$0xff] (!%p136_p3)   ;;  %vm312_vm1 = vcmask (!%p136_p3), 195584  }
   0x8   : > { %2233 = vmatpush3.bf16.msra.mxu1 (!%p136_p3), %v2501_v0  ;;  %2305 = vmatpush3.bf16.msra.mxu0 (!%p136_p3), %v2502_v1  ;;  %v2508_v5 = vld [vmem:[%s2832_s1] sm:$0xff] (!%p136_p3)   ;;  %v882_v6 = vsel (!%p136_p3), %vm361_vm0, %v2504_v3, 0  ;;  %v2526_v9 = vld [vmem:[%s2832_s1 + $0x8] ss:$0 sps:$4 sm:$0xff] (!%p136_p3)   ;;  %v2528_v11 = vld [vmem:[%s2832_s1 + $0x2c] ss:$0 sps:$4 sm:$0xff] (!%p136_p3)  }
   0x9   : > { %2472 = vmatprep.subr.msk.bf16.mxu1 (!%p136_p3), %vm361_vm0, %v2503_v2  ;;  %2474 = vmatprep.subr.msk.bf16.mxu0 (!%p136_p3), %vm361_vm0, %v2504_v3  ;;  %v544_v16 = vsel (!%p136_p3), %vm361_vm0, %v2526_v9, 0  ;;  %v1251_v18 = vsel (!%p136_p3), %vm361_vm0, %v2528_v11, 0 }
   0xc   : > { %2235 = vmatpush3.bf16.msra.mxu1 (!%p136_p3), %v363_v4  ;;  %2307 = vmatpush3.bf16.msra.mxu0 (!%p136_p3), %v882_v6 }
   0xd   : > { %2268 = vmatprep.subr.bf16.mxu1 (!%p136_p3), %v2508_v5  ;;  %2340 = vmatprep.subr.bf16.mxu0 (!%p136_p3), %v2510_v7 }
   0xe   : > { %s2839_s9 = smov (!%p164_p4, %s2572_s9), 1 }
   0xf   : > { %s2476_s23 = smul.u32 272, %s2839_s9  ;;  %s2032_s5 = sshll.u32 %s2839_s9, 7 }
  0x10   : > { %s2804_s8 = scalar_lea.vmem %s2833_s2, %s2032_s5 }
  0x11   : > { %s2643_s28 = scalar_lea.vmem %s2831_s0, %s2476_s23 }
  0x12   : > { %v2646_v8 = vld [vmem:[%s2643_s28 + $0x8] sm:$0xff]   ;;  %v2658_v12 = vld [vmem:[%s2643_s28 + $0x10] sm:$0xff]   ;;  %v2665_v14 = vld [vmem:[%s2643_s28 + $0x18] sm:$0xff]  }
  0x13   : > { %v2506_v10 = vld [vmem:[%s2643_s28 + $0x88] sm:$0xff]   ;;  %2236 = vmatprep.mubr.msk.bf16.mxu1 %vm312_vm1, %v2646_v8  ;;  %v2509_v13 = vld [vmem:[%s2643_s28 + $0x90] sm:$0xff]   ;;  %v2512_v15 = vld [vmem:[%s2643_s28 + $0x98] sm:$0xff]  }
  0x14   : > { %2308 = vmatprep.mubr.msk.bf16.mxu0 %vm312_vm1, %v2506_v10  ;;  %2237 = vmatmul.mubr.msk.bf16.vlgmr.msra.gmra.mrb[0].mxu1 %vm312_vm1, %v2658_v12  ;;  %v2674_v17 = vld [vmem:[%s2643_s28 + $0x20] sm:$0xff]   ;;  %v2681_v20 = vld [vmem:[%s2643_s28 + $0x28] sm:$0xff]   ;;  %v2691_v22 = vld [vmem:[%s2643_s28 + $0x30] sm:$0xff]  }
  0x15   : > { %2309 = vmatmul.mubr.msk.bf16.vlgmr.msra.gmra.mrb[0].mxu0 %vm312_vm1, %v2509_v13  ;;  %2269 = vmatpush3.bf16.msra.mxu1 %v2508_v5  ;;  %v2514_v19 = vld [vmem:[%s2643_s28 + $0xa0] sm:$0xff]   ;;  %v2516_v21 = vld [vmem:[%s2643_s28 + $0xa8] sm:$0xff]   ;;  %v2518_v23 = vld [vmem:[%s2643_s28 + $0xb0] sm:$0xff]  }
  0x16   : > { %2341 = vmatpush3.bf16.msra.mxu0 %v2510_v7  ;;  %2240 = vmatprep.mubr.msk.bf16.mxu1 %vm312_vm1, %v2665_v14  ;;  %v2695_v24 = vld [vmem:[%s2643_s28 + $0x38] sm:$0xff]   ;;  %v2521_v26 = vld [vmem:[%s2643_s28 + $0x40] sm:$0xff]   ;;  %v2707_v28 = vld [vmem:[%s2643_s28 + $0x48] sm:$0xff]  }
  0x17   : > { %2312 = vmatprep.mubr.msk.bf16.mxu0 %vm312_vm1, %v2512_v15  ;;  %2473 = vmatprep.subr.msk.bf16.mxu1 %vm361_vm0, %v2526_v9  ;;  %v2520_v25 = vld [vmem:[%s2643_s28 + $0xb8] sm:$0xff]   ;;  %v2522_v27 = vld [vmem:[%s2643_s28 + $0xc0] sm:$0xff]   ;;  %v2524_v29 = vld [vmem:[%s2643_s28 + $0xc8] sm:$0xff]  }
  0x18   : > { %2475 = vmatprep.subr.msk.bf16.mxu0 %vm361_vm0, %v2528_v11  ;;  %v2525_v30 = vld [vmem:[%s2643_s28 + $0x50] sm:$0xff]   ;;  %v2529_v32 = vld [vmem:[%s2643_s28 + $0x58] sm:$0xff]   ;;  %v2531_v34 = vld [vmem:[%s2643_s28 + $0x60] sm:$0xff]  }
  0x19   : > { %2271 = vmatpush3.bf16.msra.mxu1 %v544_v16  ;;  %v2527_v31 = vld [vmem:[%s2643_s28 + $0xd0] sm:$0xff]   ;;  %v2530_v33 = vld [vmem:[%s2643_s28 + $0xd8] sm:$0xff]   ;;  %v2532_v35 = vld [vmem:[%s2643_s28 + $0xe0] sm:$0xff]  }
  0x1a   : > { %2343 = vmatpush3.bf16.msra.mxu0 %v1251_v18  ;;  %v2533_v36 = vld [vmem:[%s2643_s28 + $0x68] sm:$0xff]   ;;  %v2535_v38 = vld [vmem:[%s2643_s28 + $0x70] sm:$0xff]   ;;  %v2537_v40 = vld [vmem:[%s2643_s28 + $0x78] sm:$0xff]  }
  0x1b   : > { %v2534_v37 = vld [vmem:[%s2643_s28 + $0xe8] sm:$0xff]   ;;  %v2536_v39 = vld [vmem:[%s2643_s28 + $0xf0] sm:$0xff]   ;;  %v2538_v41 = vld [vmem:[%s2643_s28 + $0xf8] sm:$0xff]  }
  0x1c   : > { %2241 = vmatmul.mubr.msk.bf16.gmra.mrb[4].mxu1 %vm312_vm1, %v2674_v17  ;;  %v2539_v42 = vld [vmem:[%s2643_s28 + $0x80] sm:$0xff]   ;;  %v2542_v45 = vld [vmem:[%s2643_s28 + $0x90] sm:$0xff]   ;;  %v2543_v46 = vld [vmem:[%s2643_s28 + $0x98] sm:$0xff]  }
  0x1d   : > { %2313 = vmatmul.mubr.msk.bf16.gmra.mrb[4].mxu0 %vm312_vm1, %v2514_v19  ;;  %2244 = vmatprep.mubr.msk.bf16.mxu1 %vm312_vm1, %v2681_v20  ;;  %v2540_v43 = vld [vmem:[%s2643_s28 + $0x100] sm:$0xff]   ;;  %v2545_v48 = vld [vmem:[%s2643_s28 + $0xa8] sm:$0xff]   ;;  %v2546_v49 = vld [vmem:[%s2643_s28 + $0xb0] sm:$0xff]  }
  0x1e   : > { %2316 = vmatprep.mubr.msk.bf16.mxu0 %vm312_vm1, %v2516_v21  ;;  %v2541_v44 = vld [vmem:[%s2643_s28] sm:$0xff]   ;;  %v2547_v50 = vld [vmem:[%s2643_s28 + $0xb8] sm:$0xff]   ;;  %v2549_v52 = vld [vmem:[%s2643_s28 + $0xc8] sm:$0xff]  }
  0x1f   : > { %v2544_v47 = vld [vmem:[%s2643_s28 + $0xa0] sm:$0xff]   ;;  %v2550_v53 = vld [vmem:[%s2643_s28 + $0xd0] sm:$0xff]   ;;  %v2551_v54 = vld [vmem:[%s2643_s28 + $0xd8] sm:$0xff]  }
  0x20   : > { %v2548_v51 = vld [vmem:[%s2643_s28 + $0xc0] sm:$0xff]   ;;  %v2553_v56 = vld [vmem:[%s2643_s28 + $0xe8] sm:$0xff]   ;;  %v2554_v57 = vld [vmem:[%s2643_s28 + $0xf0] sm:$0xff]  }
  0x21   : > { %v2552_v55 = vld [vmem:[%s2643_s28 + $0xe0] sm:$0xff]   ;;  %v2555_v58 = vld [vmem:[%s2643_s28 + $0xf8] sm:$0xff]   ;;  %v2557_v60 = vld [vmem:[%s2643_s28 + $0x108] sm:$0xff]  }
  0x22   : > { %v2556_v59 = vld [vmem:[%s2643_s28 + $0x100] sm:$0xff]  }
  0x24   : > { %2245 = vmatmul.mubr.msk.bf16.gmra.mrb[8].mxu1 %vm312_vm1, %v2691_v22 }
  0x25   : > { %2317 = vmatmul.mubr.msk.bf16.gmra.mrb[8].mxu0 %vm312_vm1, %v2518_v23  ;;  %2248 = vmatprep.mubr.msk.bf16.mxu1 %vm312_vm1, %v2695_v24 }
  0x26   : > { %2320 = vmatprep.mubr.msk.bf16.mxu0 %vm312_vm1, %v2520_v25 }
  0x2c   : > { %2249 = vmatmul.mubr.msk.bf16.gmra.mrb[12].mxu1 %vm312_vm1, %v2521_v26 }
  0x2d   : > { %2321 = vmatmul.mubr.msk.bf16.gmra.mrb[12].mxu0 %vm312_vm1, %v2522_v27  ;;  %2252 = vmatprep.mubr.msk.bf16.mxu1 %vm312_vm1, %v2707_v28 }
  0x2e   : > { %2324 = vmatprep.mubr.msk.bf16.mxu0 %vm312_vm1, %v2524_v29 }
  0x34   : > { %2253 = vmatmul.mubr.msk.bf16.gmra.mrb[16].mxu1 %vm312_vm1, %v2525_v30 }
  0x35   : > { %2325 = vmatmul.mubr.msk.bf16.gmra.mrb[16].mxu0 %vm312_vm1, %v2527_v31  ;;  %2256 = vmatprep.mubr.msk.bf16.mxu1 %vm312_vm1, %v2529_v32 }
  0x36   : > { %2328 = vmatprep.mubr.msk.bf16.mxu0 %vm312_vm1, %v2530_v33 }
  0x3c   : > { %2257 = vmatmul.mubr.msk.bf16.gmra.mrb[20].mxu1 %vm312_vm1, %v2531_v34 }
  0x3d   : > { %2329 = vmatmul.mubr.msk.bf16.gmra.mrb[20].mxu0 %vm312_vm1, %v2532_v35  ;;  %2260 = vmatprep.mubr.msk.bf16.mxu1 %vm312_vm1, %v2533_v36 }
  0x3e   : > { %2332 = vmatprep.mubr.msk.bf16.mxu0 %vm312_vm1, %v2534_v37 }
  0x44   : > { %2261 = vmatmul.mubr.msk.bf16.gmra.mrb[24].mxu1 %vm312_vm1, %v2535_v38 }
  0x45   : > { %2333 = vmatmul.mubr.msk.bf16.gmra.mrb[24].mxu0 %vm312_vm1, %v2536_v39  ;;  %2264 = vmatprep.mubr.msk.bf16.mxu1 %vm312_vm1, %v2537_v40 }
  0x46   : > { %2336 = vmatprep.mubr.msk.bf16.mxu0 %vm312_vm1, %v2538_v41 }
  0x4c   : > { %2265 = vmatmul.mubr.msk.bf16.gmra.mrb[28].mxu1 %vm312_vm1, %v2539_v42 }
  0x4d   : > { %2337 = vmatmul.mubr.msk.bf16.gmra.mrb[28].mxu0 %vm312_vm1, %v2540_v43  ;;  %2272 = vmatprep.mubr.msk.bf16.mxu1 %vm312_vm1, %v2541_v44 }
  0x4e   : > { %2344 = vmatprep.mubr.msk.bf16.mxu0 %vm312_vm1, %v2542_v45 }
  0x54   : > { %2273 = vmatmul.mubr.msk.bf16.vlgmr.msra.gmra.mrb[0].mxu1 %vm312_vm1, %v2646_v8 }
  0x55   : > { %2345 = vmatmul.mubr.msk.bf16.vlgmr.msra.gmra.mrb[0].mxu0 %vm312_vm1, %v2543_v46  ;;  %2276 = vmatprep.mubr.msk.bf16.mxu1 %vm312_vm1, %v2658_v12 }
  0x56   : > { %2348 = vmatprep.mubr.msk.bf16.mxu0 %vm312_vm1, %v2544_v47 }
  0x5c   : > { %2277 = vmatmul.mubr.msk.bf16.gmra.mrb[4].mxu1 %vm312_vm1, %v2665_v14 }
  0x5d   : > { %2349 = vmatmul.mubr.msk.bf16.gmra.mrb[4].mxu0 %vm312_vm1, %v2545_v48  ;;  %2280 = vmatprep.mubr.msk.bf16.mxu1 %vm312_vm1, %v2674_v17 }
  0x5e   : > { %2352 = vmatprep.mubr.msk.bf16.mxu0 %vm312_vm1, %v2546_v49 }
  0x64   : > { %2281 = vmatmul.mubr.msk.bf16.gmra.mrb[8].mxu1 %vm312_vm1, %v2681_v20 }
  0x65   : > { %2353 = vmatmul.mubr.msk.bf16.gmra.mrb[8].mxu0 %vm312_vm1, %v2547_v50  ;;  %2284 = vmatprep.mubr.msk.bf16.mxu1 %vm312_vm1, %v2691_v22 }
  0x66   : > { %2356 = vmatprep.mubr.msk.bf16.mxu0 %vm312_vm1, %v2548_v51 }
  0x6c   : > { %2285 = vmatmul.mubr.msk.bf16.gmra.mrb[12].mxu1 %vm312_vm1, %v2695_v24 }
  0x6d   : > { %2357 = vmatmul.mubr.msk.bf16.gmra.mrb[12].mxu0 %vm312_vm1, %v2549_v52  ;;  %2288 = vmatprep.mubr.msk.bf16.mxu1 %vm312_vm1, %v2521_v26 }
  0x6e   : > { %2360 = vmatprep.mubr.msk.bf16.mxu0 %vm312_vm1, %v2550_v53 }
  0x74   : > { %2289 = vmatmul.mubr.msk.bf16.gmra.mrb[16].mxu1 %vm312_vm1, %v2707_v28 }
  0x75   : > { %2361 = vmatmul.mubr.msk.bf16.gmra.mrb[16].mxu0 %vm312_vm1, %v2551_v54  ;;  %2292 = vmatprep.mubr.msk.bf16.mxu1 %vm312_vm1, %v2525_v30 }
  0x76   : > { %2364 = vmatprep.mubr.msk.bf16.mxu0 %vm312_vm1, %v2552_v55 }
  0x7c   : > { %2293 = vmatmul.mubr.msk.bf16.gmra.mrb[20].mxu1 %vm312_vm1, %v2529_v32 }
  0x7d   : > { %2365 = vmatmul.mubr.msk.bf16.gmra.mrb[20].mxu0 %vm312_vm1, %v2553_v56  ;;  %2296 = vmatprep.mubr.msk.bf16.mxu1 %vm312_vm1, %v2531_v34 }
  0x7e   : > { %2368 = vmatprep.mubr.msk.bf16.mxu0 %vm312_vm1, %v2554_v57 }
  0x84   : > { %2297 = vmatmul.mubr.msk.bf16.gmra.mrb[24].mxu1 %vm312_vm1, %v2533_v36 }
  0x85   : > { %2369 = vmatmul.mubr.msk.bf16.gmra.mrb[24].mxu0 %vm312_vm1, %v2555_v58  ;;  %2300 = vmatprep.mubr.msk.bf16.mxu1 %vm312_vm1, %v2535_v38 }
  0x86   : > { %2372 = vmatprep.mubr.msk.bf16.mxu0 %vm312_vm1, %v2556_v59 }
  0x8c   : > { %2301 = vmatmul.mubr.msk.bf16.gmra.mrb[28].mxu1 %vm312_vm1, %v2537_v40 }
  0x8d   : > { %2373 = vmatmul.mubr.msk.bf16.gmra.mrb[28].mxu0 %vm312_vm1, %v2557_v60 }
 0x127   : > { %v2274_v61 = vpop.f32.mrb[0].mxu1 }
 0x128   : > { %v2346_v62 = vpop.f32.mrb[0].mxu0  ;;  %v580_v63 = vpop.f32.mrb[1].mxu1 }
 0x129   : > { %v2376_v0 = vadd.f32 %v2346_v62, %v2274_v61  ;;  %v1287_v1 = vpop.f32.mrb[1].mxu0  ;;  %v2275_v2 = vpop.f32.mrb[2].mxu1 }
 0x12a   : > { %v2377_v3 = vadd.f32 %v1287_v1, %v580_v63  ;;  %v2347_v4 = vpop.f32.mrb[2].mxu0  ;;  %v583_v5 = vpop.f32.mrb[3].mxu1 }
 0x12b   : > { %v1480_v6 = vmul.f32 0.01, %v2376_v0  ;;  %v2378_v7 = vadd.f32 %v2347_v4, %v2275_v2  ;;  %v1290_v8 = vpop.f32.mrb[3].mxu0  ;;  %vm1448_vm2 = vcmp.gt.f32.partialorder %v2376_v0, 0.0 }
 0x12c   : > { %v1478_v9 = vmul.f32 0.01, %v2377_v3  ;;  %v2379_v10 = vadd.f32 %v1290_v8, %v583_v5  ;;  %vm1446_vm3 = vcmp.gt.f32.partialorder %v2377_v3, 0.0 }
 0x12d   : > { %vm1449_vm4 = vcmp.gt.f32.partialorder %v2378_v7, 0.0  ;;  %v1481_v11 = vmul.f32 0.01, %v2378_v7  ;;  %v1512_v13 = vsel %vm1448_vm2, %v2376_v0, %v1480_v6 }
 0x12e   : > { %vm1447_vm5 = vcmp.gt.f32.partialorder %v2379_v10, 0.0  ;;  %v1479_v12 = vmul.f32 0.01, %v2379_v10  ;;  %v1510_v16 = vsel %vm1446_vm3, %v2377_v3, %v1478_v9 }
 0x12f   : > { %v1513_v14 = vsel %vm1449_vm4, %v2378_v7, %v1481_v11  ;;  %v2278_v15 = vpop.f32.mrb[4].mxu1 }
 0x130   : > { %v2073_v17 = vpack.c.bf16 %v1513_v14, %v1512_v13  ;;  %v1511_v18 = vsel %vm1447_vm5, %v2379_v10, %v1479_v12  ;;  %v2350_v19 = vpop.f32.mrb[4].mxu0  ;;  %v596_v20 = vpop.f32.mrb[5].mxu1 }
 0x131   : > { %v2068_v21 = vpack.c.bf16 %v1511_v18, %v1510_v16  ;;  %v2380_v22 = vadd.f32 %v2350_v19, %v2278_v15  ;;  %v1303_v23 = vpop.f32.mrb[5].mxu0  ;;  %v2279_v24 = vpop.f32.mrb[6].mxu1 }
 0x132   : > { %2145 = vst [vmem:[%s2804_s8 + $0x8] sm:$0xff] %v2073_v17   ;;  %v2381_v25 = vadd.f32 %v1303_v23, %v596_v20  ;;  %v2351_v26 = vpop.f32.mrb[6].mxu0  ;;  %v599_v27 = vpop.f32.mrb[7].mxu1 }
 0x133   : > { %2069 = vst [vmem:[%s2804_s8] sm:$0xff] %v2068_v21   ;;  %v1484_v28 = vmul.f32 0.01, %v2380_v22  ;;  %v2382_v29 = vadd.f32 %v2351_v26, %v2279_v24  ;;  %v1306_v30 = vpop.f32.mrb[7].mxu0  ;;  %vm1452_vm6 = vcmp.gt.f32.partialorder %v2380_v22, 0.0 }
 0x134   : > { %v1482_v31 = vmul.f32 0.01, %v2381_v25  ;;  %v2383_v32 = vadd.f32 %v1306_v30, %v599_v27  ;;  %vm1450_vm7 = vcmp.gt.f32.partialorder %v2381_v25, 0.0 }
 0x135   : > { %vm1453_vm8 = vcmp.gt.f32.partialorder %v2382_v29, 0.0  ;;  %v1485_v33 = vmul.f32 0.01, %v2382_v29  ;;  %v1516_v35 = vsel %vm1452_vm6, %v2380_v22, %v1484_v28 }
 0x136   : > { %vm1451_vm9 = vcmp.gt.f32.partialorder %v2383_v32, 0.0  ;;  %v1483_v34 = vmul.f32 0.01, %v2383_v32  ;;  %v1514_v38 = vsel %vm1450_vm7, %v2381_v25, %v1482_v31 }
 0x137   : > { %v1517_v36 = vsel %vm1453_vm8, %v2382_v29, %v1485_v33  ;;  %v2282_v37 = vpop.f32.mrb[8].mxu1 }
 0x138   : > { %v2083_v39 = vpack.c.bf16 %v1517_v36, %v1516_v35  ;;  %v1515_v40 = vsel %vm1451_vm9, %v2383_v32, %v1483_v34  ;;  %v2354_v41 = vpop.f32.mrb[8].mxu0  ;;  %v612_v42 = vpop.f32.mrb[9].mxu1 }
 0x139   : > { %v2078_v43 = vpack.c.bf16 %v1515_v40, %v1514_v38  ;;  %v2384_v44 = vadd.f32 %v2354_v41, %v2282_v37  ;;  %v1319_v45 = vpop.f32.mrb[9].mxu0  ;;  %v2283_v46 = vpop.f32.mrb[10].mxu1 }
 0x13a   : > { %2147 = vst [vmem:[%s2804_s8 + $0x18] sm:$0xff] %v2083_v39   ;;  %v2385_v47 = vadd.f32 %v1319_v45, %v612_v42  ;;  %v2355_v48 = vpop.f32.mrb[10].mxu0  ;;  %v615_v49 = vpop.f32.mrb[11].mxu1 }
 0x13b   : > { %2146 = vst [vmem:[%s2804_s8 + $0x10] sm:$0xff] %v2078_v43   ;;  %v1488_v50 = vmul.f32 0.01, %v2384_v44  ;;  %v2386_v51 = vadd.f32 %v2355_v48, %v2283_v46  ;;  %v1322_v52 = vpop.f32.mrb[11].mxu0  ;;  %vm1456_vm10 = vcmp.gt.f32.partialorder %v2384_v44, 0.0 }
 0x13c   : > { %v1486_v53 = vmul.f32 0.01, %v2385_v47  ;;  %v2387_v54 = vadd.f32 %v1322_v52, %v615_v49  ;;  %vm1454_vm11 = vcmp.gt.f32.partialorder %v2385_v47, 0.0 }
 0x13d   : > { %vm1457_vm12 = vcmp.gt.f32.partialorder %v2386_v51, 0.0  ;;  %v1489_v55 = vmul.f32 0.01, %v2386_v51  ;;  %v1520_v57 = vsel %vm1456_vm10, %v2384_v44, %v1488_v50 }
 0x13e   : > { %vm1455_vm13 = vcmp.gt.f32.partialorder %v2387_v54, 0.0  ;;  %v1487_v56 = vmul.f32 0.01, %v2387_v54  ;;  %v1518_v60 = vsel %vm1454_vm11, %v2385_v47, %v1486_v53 }
 0x13f   : > { %v1521_v58 = vsel %vm1457_vm12, %v2386_v51, %v1489_v55  ;;  %v2286_v59 = vpop.f32.mrb[12].mxu1 }
 0x140   : > { %v2093_v61 = vpack.c.bf16 %v1521_v58, %v1520_v57  ;;  %v1519_v62 = vsel %vm1455_vm13, %v2387_v54, %v1487_v56  ;;  %v2358_v63 = vpop.f32.mrb[12].mxu0  ;;  %v628_v0 = vpop.f32.mrb[13].mxu1 }
 0x141   : > { %v2088_v1 = vpack.c.bf16 %v1519_v62, %v1518_v60  ;;  %v2388_v2 = vadd.f32 %v2358_v63, %v2286_v59  ;;  %v1335_v3 = vpop.f32.mrb[13].mxu0  ;;  %v2287_v4 = vpop.f32.mrb[14].mxu1 }
 0x142   : > { %2149 = vst [vmem:[%s2804_s8 + $0x28] sm:$0xff] %v2093_v61   ;;  %v2389_v5 = vadd.f32 %v1335_v3, %v628_v0  ;;  %v2359_v6 = vpop.f32.mrb[14].mxu0  ;;  %v631_v7 = vpop.f32.mrb[15].mxu1 }
 0x143   : > { %2148 = vst [vmem:[%s2804_s8 + $0x20] sm:$0xff] %v2088_v1   ;;  %v1492_v8 = vmul.f32 0.01, %v2388_v2  ;;  %v2390_v9 = vadd.f32 %v2359_v6, %v2287_v4  ;;  %v1338_v10 = vpop.f32.mrb[15].mxu0  ;;  %vm1460_vm14 = vcmp.gt.f32.partialorder %v2388_v2, 0.0 }
 0x144   : > { %v1490_v11 = vmul.f32 0.01, %v2389_v5  ;;  %v2391_v12 = vadd.f32 %v1338_v10, %v631_v7  ;;  %vm1458_vm15 = vcmp.gt.f32.partialorder %v2389_v5, 0.0 }
 0x145   : > { %vm1461_vm0 = vcmp.gt.f32.partialorder %v2390_v9, 0.0  ;;  %v1493_v13 = vmul.f32 0.01, %v2390_v9  ;;  %v1524_v15 = vsel %vm1460_vm14, %v2388_v2, %v1492_v8 }
 0x146   : > { %vm1459_vm1 = vcmp.gt.f32.partialorder %v2391_v12, 0.0  ;;  %v1491_v14 = vmul.f32 0.01, %v2391_v12  ;;  %v1522_v18 = vsel %vm1458_vm15, %v2389_v5, %v1490_v11 }
 0x147   : > { %v1525_v16 = vsel %vm1461_vm0, %v2390_v9, %v1493_v13  ;;  %v2290_v17 = vpop.f32.mrb[16].mxu1 }
 0x148   : > { %v2103_v19 = vpack.c.bf16 %v1525_v16, %v1524_v15  ;;  %v1523_v20 = vsel %vm1459_vm1, %v2391_v12, %v1491_v14  ;;  %v2362_v21 = vpop.f32.mrb[16].mxu0  ;;  %v644_v22 = vpop.f32.mrb[17].mxu1 }
 0x149   : > { %v2098_v23 = vpack.c.bf16 %v1523_v20, %v1522_v18  ;;  %v2392_v24 = vadd.f32 %v2362_v21, %v2290_v17  ;;  %v1351_v25 = vpop.f32.mrb[17].mxu0  ;;  %v2291_v26 = vpop.f32.mrb[18].mxu1 }
 0x14a   : > { %2151 = vst [vmem:[%s2804_s8 + $0x38] sm:$0xff] %v2103_v19   ;;  %v2393_v27 = vadd.f32 %v1351_v25, %v644_v22  ;;  %v2363_v28 = vpop.f32.mrb[18].mxu0  ;;  %v647_v29 = vpop.f32.mrb[19].mxu1 }
 0x14b   : > { %2150 = vst [vmem:[%s2804_s8 + $0x30] sm:$0xff] %v2098_v23   ;;  %v1496_v30 = vmul.f32 0.01, %v2392_v24  ;;  %v2394_v31 = vadd.f32 %v2363_v28, %v2291_v26  ;;  %v1354_v32 = vpop.f32.mrb[19].mxu0  ;;  %vm1464_vm2 = vcmp.gt.f32.partialorder %v2392_v24, 0.0 }
 0x14c   : > { %v1494_v33 = vmul.f32 0.01, %v2393_v27  ;;  %v2395_v34 = vadd.f32 %v1354_v32, %v647_v29  ;;  %vm1462_vm3 = vcmp.gt.f32.partialorder %v2393_v27, 0.0 }
 0x14d   : > { %vm1465_vm4 = vcmp.gt.f32.partialorder %v2394_v31, 0.0  ;;  %v1497_v35 = vmul.f32 0.01, %v2394_v31  ;;  %v1528_v37 = vsel %vm1464_vm2, %v2392_v24, %v1496_v30 }
 0x14e   : > { %vm1463_vm5 = vcmp.gt.f32.partialorder %v2395_v34, 0.0  ;;  %v1495_v36 = vmul.f32 0.01, %v2395_v34  ;;  %v1526_v40 = vsel %vm1462_vm3, %v2393_v27, %v1494_v33 }
 0x14f   : > { %v1529_v38 = vsel %vm1465_vm4, %v2394_v31, %v1497_v35  ;;  %v2294_v39 = vpop.f32.mrb[20].mxu1 }
 0x150   : > { %v2113_v41 = vpack.c.bf16 %v1529_v38, %v1528_v37  ;;  %v1527_v42 = vsel %vm1463_vm5, %v2395_v34, %v1495_v36  ;;  %v2366_v43 = vpop.f32.mrb[20].mxu0  ;;  %v660_v44 = vpop.f32.mrb[21].mxu1 }
 0x151   : > { %v2108_v45 = vpack.c.bf16 %v1527_v42, %v1526_v40  ;;  %v2396_v46 = vadd.f32 %v2366_v43, %v2294_v39  ;;  %v1367_v47 = vpop.f32.mrb[21].mxu0  ;;  %v2295_v48 = vpop.f32.mrb[22].mxu1 }
 0x152   : > { %2153 = vst [vmem:[%s2804_s8 + $0x48] sm:$0xff] %v2113_v41   ;;  %v2397_v49 = vadd.f32 %v1367_v47, %v660_v44  ;;  %v2367_v50 = vpop.f32.mrb[22].mxu0  ;;  %v663_v51 = vpop.f32.mrb[23].mxu1 }
 0x153   : > { %2152 = vst [vmem:[%s2804_s8 + $0x40] sm:$0xff] %v2108_v45   ;;  %v1500_v52 = vmul.f32 0.01, %v2396_v46  ;;  %v2398_v53 = vadd.f32 %v2367_v50, %v2295_v48  ;;  %v1370_v54 = vpop.f32.mrb[23].mxu0  ;;  %vm1468_vm6 = vcmp.gt.f32.partialorder %v2396_v46, 0.0 }
 0x154   : > { %v1498_v55 = vmul.f32 0.01, %v2397_v49  ;;  %v2399_v56 = vadd.f32 %v1370_v54, %v663_v51  ;;  %vm1466_vm7 = vcmp.gt.f32.partialorder %v2397_v49, 0.0 }
 0x155   : > { %vm1469_vm8 = vcmp.gt.f32.partialorder %v2398_v53, 0.0  ;;  %v1501_v57 = vmul.f32 0.01, %v2398_v53  ;;  %v1532_v59 = vsel %vm1468_vm6, %v2396_v46, %v1500_v52 }
 0x156   : > { %vm1467_vm9 = vcmp.gt.f32.partialorder %v2399_v56, 0.0  ;;  %v1499_v58 = vmul.f32 0.01, %v2399_v56  ;;  %v1530_v62 = vsel %vm1466_vm7, %v2397_v49, %v1498_v55 }
 0x157   : > { %v1533_v60 = vsel %vm1469_vm8, %v2398_v53, %v1501_v57  ;;  %v2298_v61 = vpop.f32.mrb[24].mxu1 }
 0x158   : > { %v2123_v63 = vpack.c.bf16 %v1533_v60, %v1532_v59  ;;  %v1531_v0 = vsel %vm1467_vm9, %v2399_v56, %v1499_v58  ;;  %v2370_v1 = vpop.f32.mrb[24].mxu0  ;;  %v676_v2 = vpop.f32.mrb[25].mxu1 }
 0x159   : > { %v2118_v3 = vpack.c.bf16 %v1531_v0, %v1530_v62  ;;  %v2400_v4 = vadd.f32 %v2370_v1, %v2298_v61  ;;  %v1383_v5 = vpop.f32.mrb[25].mxu0  ;;  %v2299_v6 = vpop.f32.mrb[26].mxu1 }
 0x15a   : > { %2155 = vst [vmem:[%s2804_s8 + $0x58] sm:$0xff] %v2123_v63   ;;  %v2401_v7 = vadd.f32 %v1383_v5, %v676_v2  ;;  %v2371_v8 = vpop.f32.mrb[26].mxu0  ;;  %v679_v9 = vpop.f32.mrb[27].mxu1 }
 0x15b   : > { %2154 = vst [vmem:[%s2804_s8 + $0x50] sm:$0xff] %v2118_v3   ;;  %v1504_v10 = vmul.f32 0.01, %v2400_v4  ;;  %v2402_v11 = vadd.f32 %v2371_v8, %v2299_v6  ;;  %v1386_v12 = vpop.f32.mrb[27].mxu0  ;;  %vm1472_vm10 = vcmp.gt.f32.partialorder %v2400_v4, 0.0 }
 0x15c   : > { %v1502_v13 = vmul.f32 0.01, %v2401_v7  ;;  %v2403_v14 = vadd.f32 %v1386_v12, %v679_v9  ;;  %vm1470_vm11 = vcmp.gt.f32.partialorder %v2401_v7, 0.0 }
 0x15d   : > { %vm1473_vm12 = vcmp.gt.f32.partialorder %v2402_v11, 0.0  ;;  %v1505_v15 = vmul.f32 0.01, %v2402_v11  ;;  %v1536_v17 = vsel %vm1472_vm10, %v2400_v4, %v1504_v10 }
 0x15e   : > { %vm1471_vm13 = vcmp.gt.f32.partialorder %v2403_v14, 0.0  ;;  %v1503_v16 = vmul.f32 0.01, %v2403_v14  ;;  %v1534_v20 = vsel %vm1470_vm11, %v2401_v7, %v1502_v13 }
 0x15f   : > { %v1537_v18 = vsel %vm1473_vm12, %v2402_v11, %v1505_v15  ;;  %v2302_v19 = vpop.f32.mrb[28].mxu1 }
 0x160   : > { %v2133_v21 = vpack.c.bf16 %v1537_v18, %v1536_v17  ;;  %v1535_v22 = vsel %vm1471_vm13, %v2403_v14, %v1503_v16  ;;  %v2374_v23 = vpop.f32.mrb[28].mxu0  ;;  %v692_v24 = vpop.f32.mrb[29].mxu1 }
 0x161   : > { %v2128_v25 = vpack.c.bf16 %v1535_v22, %v1534_v20  ;;  %v2404_v26 = vadd.f32 %v2374_v23, %v2302_v19  ;;  %v1399_v27 = vpop.f32.mrb[29].mxu0  ;;  %v2303_v28 = vpop.f32.mrb[30].mxu1 }
 0x162   : > { %2157 = vst [vmem:[%s2804_s8 + $0x68] sm:$0xff] %v2133_v21   ;;  %v2405_v29 = vadd.f32 %v1399_v27, %v692_v24  ;;  %v2375_v30 = vpop.f32.mrb[30].mxu0  ;;  %v695_v31 = vpop.f32.mrb[31].mxu1 }
 0x163   : > { %2156 = vst [vmem:[%s2804_s8 + $0x60] sm:$0xff] %v2128_v25   ;;  %v1508_v32 = vmul.f32 0.01, %v2404_v26  ;;  %v2406_v33 = vadd.f32 %v2375_v30, %v2303_v28  ;;  %v1402_v34 = vpop.f32.mrb[31].mxu0  ;;  %vm1476_vm14 = vcmp.gt.f32.partialorder %v2404_v26, 0.0 }
 0x164   : > { %v1506_v35 = vmul.f32 0.01, %v2405_v29  ;;  %v2407_v36 = vadd.f32 %v1402_v34, %v695_v31  ;;  %vm1474_vm15 = vcmp.gt.f32.partialorder %v2405_v29, 0.0 }
 0x165   : > { %vm1477_vm0 = vcmp.gt.f32.partialorder %v2406_v33, 0.0  ;;  %v1509_v37 = vmul.f32 0.01, %v2406_v33  ;;  %v1540_v39 = vsel %vm1476_vm14, %v2404_v26, %v1508_v32 }
 0x166   : > { %vm1475_vm1 = vcmp.gt.f32.partialorder %v2407_v36, 0.0  ;;  %v1507_v38 = vmul.f32 0.01, %v2407_v36  ;;  %v1538_v41 = vsel %vm1474_vm15, %v2405_v29, %v1506_v35 }
 0x167   : > { %v1541_v40 = vsel %vm1477_vm0, %v2406_v33, %v1509_v37 }
 0x168   : > { %v2143_v42 = vpack.c.bf16 %v1541_v40, %v1540_v39  ;;  %v1539_v43 = vsel %vm1475_vm1, %v2407_v36, %v1507_v38 }
 0x169   : > { %v2138_v44 = vpack.c.bf16 %v1539_v43, %v1538_v41 }
 0x16a   : > { %2159 = vst [vmem:[%s2804_s8 + $0x78] sm:$0xff] %v2143_v42  }
 0x16b   : > { %2158 = vst [vmem:[%s2804_s8 + $0x70] sm:$0xff] %v2138_v44  }
 0x16c PF: > { %s12_s11 = sadd.s32 1, %s2580_s11   ;;  %s2834_s9 = smov %s2576_s10 }
 0x16d   : > { %p9_p5 = scmp.ge.s32.totalorder %s12_s11, 4   ;;  %s2835_s10 = smov %s2837_s12 }
 0x16f   :  { %11 = sbr.rel (!%p9_p5) target bundleno = 2 (0x2), region = 65 }

// kernel: discriminator_forward.6
= control target key start
LH: loop header
LB: loop body
LE: loop exit
PB: predicated region body
PF: predicated region fallthrough
CT: control target
= control target key end

     0   :  { %s2071_s15 = smov 0   ;;  %s2073_s16 = smov 0   ;;  %s2355_s0 = inlined_call_operand.vmem [shape: bf16[2,2,72,256], index: 0, kind: input, shape index: {}]   ;;  %s2356_s1 = inlined_call_operand.vmem [shape: bf16[4,256,128], index: 1, kind: input, shape index: {}]   ;;  %s2357_s2 = inlined_call_operand.vmem [shape: bf16[2,64,128], index: 2, kind: output, shape index: {0}]   ;;  %s2358_s3 = inlined_call_operand.vmem [shape: f32[2,8,128], index: 3, kind: output, shape index: {1}]   ;;  %s2359_s4 = inlined_call_operand.vmem [shape: f32[2,8,128], index: 4, kind: output, shape index: {2}]  }
   0x1   :  { %s2075_s17 = smov 0  }
   0x2 LB: > { %s24_s18 = sadd.s32 1, %s2040_s16  ;;  %p1485_p0 = scmp.ge.s32.totalorder %s2044_s17, 1  ;;  %s2044_s17 = sphi %s2075_s17, %s15_s17   ;;  %s2040_s16 = sphi %s2073_s16, %s2361_s16   ;;  %s2036_s15 = sphi %s2071_s15, %s2360_s15  }
   0x3   : > { %p25_p1 = scmp.ge.s32.totalorder %s24_s18, 2  ;;  %p194_p2 = scmp.lt.s32.totalorder %s2044_s17, 3 }
   0x5   : > { %s2363_s18 = smov (%p25_p1, %s24_s18), 0  ;;  %p195_p3 = pnand %p1485_p0, %p194_p2 }
   0x6   : > { %v1926_v0 = vld [vmem:[%s2356_s1 + $0xc0] sm:$0xff] (!%p195_p3)   ;;  %v1930_v4 = vld [vmem:[%s2356_s1 + $0xc8] sm:$0xff] (!%p195_p3)   ;;  %v1934_v8 = vld [vmem:[%s2356_s1 + $0xd0] sm:$0xff] (!%p195_p3)   ;;  %p241_p4 = scmp.lt.s32.totalorder (!%p195_p3), %s2036_s15, 1 }
   0x7   : > { %198 = sbr.rel (%p195_p3) target bundleno = 334 (0x14e), region = 28  ;;  %v1927_v1 = vld [vmem:[%s2356_s1 + $0x40] sm:$0xff] (!%p195_p3)   ;;  %1741 = vmatprep.subr.bf16.mxu0 (!%p195_p3), %v1926_v0  ;;  %v1931_v5 = vld [vmem:[%s2356_s1 + $0x48] sm:$0xff] (!%p195_p3)   ;;  %v1935_v9 = vld [vmem:[%s2356_s1 + $0x50] sm:$0xff] (!%p195_p3)  }
   0x8   : > { %v1928_v2 = vld [vmem:[%s2356_s1 + $0x80] sm:$0xff] (!%p195_p3)   ;;  %1781 = vmatprep.subr.bf16.mxu1 (!%p195_p3), %v1927_v1  ;;  %v1932_v6 = vld [vmem:[%s2356_s1 + $0x88] sm:$0xff] (!%p195_p3)   ;;  %v1936_v10 = vld [vmem:[%s2356_s1 + $0x90] sm:$0xff] (!%p195_p3)  }
   0x9   : > { %v1929_v3 = vld [vmem:[%s2356_s1] sm:$0xff] (!%p195_p3)   ;;  %1742 = vmatpush3.bf16.msra.mxu0 (!%p195_p3), %v1928_v2  ;;  %v1933_v7 = vld [vmem:[%s2356_s1 + $0x8] sm:$0xff] (!%p195_p3)   ;;  %v1937_v11 = vld [vmem:[%s2356_s1 + $0x10] sm:$0xff] (!%p195_p3)  }
   0xa   : > { %1782 = vmatpush3.bf16.msra.mxu1 (!%p195_p3), %v1929_v3  ;;  %1743 = vmatprep.subr.bf16.mxu0 (!%p195_p3), %v1930_v4  ;;  %v1938_v12 = vld [vmem:[%s2356_s1 + $0xd8] sm:$0xff] (!%p195_p3)   ;;  %v1942_v16 = vld [vmem:[%s2356_s1 + $0xe0] sm:$0xff] (!%p195_p3)   ;;  %v1946_v20 = vld [vmem:[%s2356_s1 + $0xe8] sm:$0xff] (!%p195_p3)  }
   0xb   : > { %1783 = vmatprep.subr.bf16.mxu1 (!%p195_p3), %v1931_v5  ;;  %v1939_v13 = vld [vmem:[%s2356_s1 + $0x58] sm:$0xff] (!%p195_p3)   ;;  %v1943_v17 = vld [vmem:[%s2356_s1 + $0x60] sm:$0xff] (!%p195_p3)   ;;  %v1947_v21 = vld [vmem:[%s2356_s1 + $0x68] sm:$0xff] (!%p195_p3)  }
   0xc   : > { %v1940_v14 = vld [vmem:[%s2356_s1 + $0x98] sm:$0xff] (!%p195_p3)   ;;  %v1944_v18 = vld [vmem:[%s2356_s1 + $0xa0] sm:$0xff] (!%p195_p3)   ;;  %v1948_v22 = vld [vmem:[%s2356_s1 + $0xa8] sm:$0xff] (!%p195_p3)  }
   0xd   : > { %1744 = vmatpush3.bf16.msra.mxu0 (!%p195_p3), %v1932_v6  ;;  %v1941_v15 = vld [vmem:[%s2356_s1 + $0x18] sm:$0xff] (!%p195_p3)   ;;  %v1945_v19 = vld [vmem:[%s2356_s1 + $0x20] sm:$0xff] (!%p195_p3)   ;;  %v1949_v23 = vld [vmem:[%s2356_s1 + $0x28] sm:$0xff] (!%p195_p3)  }
   0xe   : > { %1784 = vmatpush3.bf16.msra.mxu1 %v1933_v7  ;;  %1745 = vmatprep.subr.bf16.mxu0 %v1934_v8  ;;  %s2365_s15 = smov (!%p241_p4, %s2036_s15), 1  ;;  %v1950_v24 = vld [vmem:[%s2356_s1 + $0xf0] sm:$0xff]   ;;  %v1954_v28 = vld [vmem:[%s2356_s1 + $0xf8] sm:$0xff]   ;;  %v1962_v39 = vld [vmem:[%s2356_s1 + $0x140] sm:$0xff]  }
   0xf   : > { %1785 = vmatprep.subr.bf16.mxu1 %v1935_v9  ;;  %v1951_v25 = vld [vmem:[%s2356_s1 + $0x70] sm:$0xff]   ;;  %s1901_s27 = smul.u32 144, %s2365_s15  ;;  %v1955_v29 = vld [vmem:[%s2356_s1 + $0x78] sm:$0xff]   ;;  %v1963_v40 = vld [vmem:[%s2356_s1 + $0x1c0] sm:$0xff]   ;;  %s1489_s25 = sshll.u32 %s2365_s15, 3 }
  0x10   : > { %v1952_v26 = vld [vmem:[%s2356_s1 + $0xb0] sm:$0xff]   ;;  %v1956_v30 = vld [vmem:[%s2356_s1 + $0xb8] sm:$0xff]   ;;  %v1964_v41 = vld [vmem:[%s2356_s1 + $0x100] sm:$0xff]   ;;  %s264_s28 = scalar_lea.vmem %s2358_s3, %s1489_s25  ;;  %s271_s5 = scalar_lea.vmem %s2359_s4, %s1489_s25 }
  0x11   : > { %1746 = vmatpush3.bf16.msra.mxu0 %v1936_v10  ;;  %v1953_v27 = vld [vmem:[%s2356_s1 + $0x30] sm:$0xff]   ;;  %s2189_s12 = scalar_lea.vmem %s2355_s0, %s1901_s27  ;;  %v1957_v31 = vld [vmem:[%s2356_s1 + $0x38] sm:$0xff]   ;;  %v1965_v42 = vld [vmem:[%s2356_s1 + $0x180] sm:$0xff]  }
  0x12   : > { %1786 = vmatpush3.bf16.msra.mxu1 %v1937_v11  ;;  %1747 = vmatprep.subr.bf16.mxu0 %v1938_v12  ;;  %v274_v32 = vld [vmem:[%s2189_s12 + $0x8] sm:$0xff]  ;;  %v275_v33 = vld [vmem:[%s2189_s12 + $0x10] sm:$0xff]  ;;  %v273_v34 = vld [vmem:[%s2189_s12] sm:$0xff] }
  0x13   : > { %1787 = vmatprep.subr.bf16.mxu1 %v1939_v13  ;;  %v1524_v35 = vcombine.high %v274_v32, %v275_v33  ;;  %v1547_v36 = vcombine.low %v273_v34, %v274_v32  ;;  %v1548_v37 = vcombine.high %v273_v34, %v274_v32  ;;  %v1523_v38 = vcombine.low %v274_v32, %v275_v33  ;;  %v1966_v43 = vld [vmem:[%s2356_s1 + $0x148] sm:$0xff]   ;;  %v276_v47 = vld [vmem:[%s2189_s12 + $0x18] sm:$0xff]  ;;  %v277_v48 = vld [vmem:[%s2189_s12 + $0x20] sm:$0xff] }
  0x14   : > { %v1967_v44 = vld [vmem:[%s2356_s1 + $0x1c8] sm:$0xff]   ;;  %v1526_v49 = vcombine.high %v276_v47, %v277_v48  ;;  %v1550_v50 = vcombine.high %v275_v33, %v276_v47  ;;  %v1525_v51 = vcombine.low %v276_v47, %v277_v48  ;;  %v1974_v52 = vld [vmem:[%s2356_s1 + $0x150] sm:$0xff]   ;;  %v1549_v53 = vcombine.low %v275_v33, %v276_v47  ;;  %v1978_v57 = vld [vmem:[%s2356_s1 + $0x158] sm:$0xff]  }
  0x15   : > { %1748 = vmatpush3.bf16.msra.mxu0 %v1940_v14  ;;  %515 = vmatprep.mubr.bf16.mxu0 %v1524_v35  ;;  %v1968_v45 = vld [vmem:[%s2356_s1 + $0x108] sm:$0xff]   ;;  %v1975_v54 = vld [vmem:[%s2356_s1 + $0x1d0] sm:$0xff]   ;;  %v1979_v58 = vld [vmem:[%s2356_s1 + $0x1d8] sm:$0xff]  }
  0x16   : > { %1788 = vmatpush3.bf16.msra.mxu1 %v1941_v15  ;;  %1749 = vmatprep.subr.bf16.mxu0 %v1942_v16  ;;  %v1969_v46 = vld [vmem:[%s2356_s1 + $0x188] sm:$0xff]   ;;  %v1976_v55 = vld [vmem:[%s2356_s1 + $0x110] sm:$0xff]   ;;  %v1980_v59 = vld [vmem:[%s2356_s1 + $0x118] sm:$0xff]  }
  0x17   : > { %1789 = vmatprep.subr.bf16.mxu1 %v1943_v17  ;;  %695 = vmatprep.mubr.bf16.mxu1 %v1548_v37  ;;  %v1977_v56 = vld [vmem:[%s2356_s1 + $0x190] sm:$0xff]   ;;  %v1981_v60 = vld [vmem:[%s2356_s1 + $0x198] sm:$0xff]   ;;  %v278_v61 = vld [vmem:[%s2189_s12 + $0x28] sm:$0xff] }
  0x18   : > { %v279_v62 = vld [vmem:[%s2189_s12 + $0x30] sm:$0xff]  ;;  %v1552_v63 = vcombine.high %v277_v48, %v278_v61  ;;  %v1551_v0 = vcombine.low %v277_v48, %v278_v61  ;;  %v1986_v3 = vld [vmem:[%s2356_s1 + $0x160] sm:$0xff]   ;;  %v1990_v7 = vld [vmem:[%s2356_s1 + $0x168] sm:$0xff]  }
  0x19   : > { %1750 = vmatpush3.bf16.msra.mxu0 %v1944_v18  ;;  %v1528_v1 = vcombine.high %v278_v61, %v279_v62  ;;  %v1527_v2 = vcombine.low %v278_v61, %v279_v62  ;;  %v1987_v4 = vld [vmem:[%s2356_s1 + $0x1e0] sm:$0xff]   ;;  %v1991_v8 = vld [vmem:[%s2356_s1 + $0x1e8] sm:$0xff]   ;;  %v280_v11 = vld [vmem:[%s2189_s12 + $0x38] sm:$0xff] }
  0x1a   : > { %1790 = vmatpush3.bf16.msra.mxu1 %v1945_v19  ;;  %1751 = vmatprep.subr.bf16.mxu0 %v1946_v20  ;;  %v1988_v5 = vld [vmem:[%s2356_s1 + $0x120] sm:$0xff]   ;;  %v1992_v9 = vld [vmem:[%s2356_s1 + $0x128] sm:$0xff]   ;;  %v1554_v14 = vcombine.high %v279_v62, %v280_v11  ;;  %v1553_v16 = vcombine.low %v279_v62, %v280_v11  ;;  %v1998_v17 = vld [vmem:[%s2356_s1 + $0x170] sm:$0xff]  }
  0x1b   : > { %1791 = vmatprep.subr.bf16.mxu1 %v1947_v21  ;;  %v1989_v6 = vld [vmem:[%s2356_s1 + $0x1a0] sm:$0xff]   ;;  %v1993_v10 = vld [vmem:[%s2356_s1 + $0x1a8] sm:$0xff]   ;;  %v1999_v18 = vld [vmem:[%s2356_s1 + $0x1f0] sm:$0xff]  }
  0x1c   : > { %v313_v12 = vld [vmem:[%s2189_s12 + $0x40] sm:$0xff]  ;;  %v2000_v19 = vld [vmem:[%s2356_s1 + $0x130] sm:$0xff]   ;;  %v2002_v21 = vld [vmem:[%s2356_s1 + $0x178] sm:$0xff]  }
  0x1d   : > { %1752 = vmatpush3.bf16.msra.mxu0 %v1948_v22  ;;  %v1530_v13 = vcombine.high %v280_v11, %v313_v12  ;;  %v1529_v15 = vcombine.low %v280_v11, %v313_v12  ;;  %v2001_v20 = vld [vmem:[%s2356_s1 + $0x1b0] sm:$0xff]   ;;  %v2003_v22 = vld [vmem:[%s2356_s1 + $0x1f8] sm:$0xff]   ;;  %v1638_v32 = vld [vmem:[%s2189_s12 + $0x68] sm:$0xff] }
  0x1e   : > { %1792 = vmatpush3.bf16.msra.mxu1 %v1949_v23  ;;  %1753 = vmatprep.subr.bf16.mxu0 %v1950_v24  ;;  %v2004_v23 = vld [vmem:[%s2356_s1 + $0x138] sm:$0xff]  }
  0x1f   : > { %1793 = vmatprep.subr.bf16.mxu1 %v1951_v25  ;;  %v2005_v24 = vld [vmem:[%s2356_s1 + $0x1b8] sm:$0xff]   ;;  %v1571_v25 = vld [vmem:[%s2189_s12 + $0x48] sm:$0xff] }
  0x20   : > { %v1640_v37 = vld [vmem:[%s2189_s12 + $0x78] sm:$0xff] }
  0x21   : > { %1754 = vmatpush3.bf16.msra.mxu0 %v1952_v26  ;;  %v1572_v26 = vld [vmem:[%s2189_s12 + $0x50] sm:$0xff] }
  0x22   : > { %1794 = vmatpush3.bf16.msra.mxu1 %v1953_v27  ;;  %1755 = vmatprep.subr.bf16.mxu0 %v1954_v28  ;;  %v1636_v27 = vld [vmem:[%s2189_s12 + $0x58] sm:$0xff]  ;;  %v1611_v28 = vcombine.low %v1571_v25, %v1572_v26 }
  0x23   : > { %1795 = vmatprep.subr.bf16.mxu1 %v1955_v29  ;;  %v1612_v29 = vcombine.high %v1571_v25, %v1572_v26  ;;  %v1676_v33 = vcombine.high %v1572_v26, %v1636_v27 }
  0x25   : > { %1756 = vmatpush3.bf16.msra.mxu0 %v1956_v30  ;;  %v1675_v30 = vcombine.low %v1572_v26, %v1636_v27 }
  0x26   : > { %1796 = vmatpush3.bf16.msra.mxu1 %v1957_v31  ;;  %1821 = vmatprep.subr.bf16.mxu0 %v1962_v39  ;;  %v1574_v31 = vld [vmem:[%s2189_s12 + $0x60] sm:$0xff] }
  0x27   : > { %1861 = vmatprep.subr.bf16.mxu1 %v1963_v40  ;;  %v1614_v34 = vcombine.high %v1636_v27, %v1574_v31  ;;  %v1678_v35 = vcombine.high %v1574_v31, %v1638_v32  ;;  %v1677_v39 = vcombine.low %v1574_v31, %v1638_v32 }
  0x28   : > { %516 = vmatmul.mubr.bf16.vlgmr.msra.gmra.mrb[0].mxu0 %v1523_v38  ;;  %v1613_v38 = vcombine.low %v1636_v27, %v1574_v31 }
  0x29   : > { %696 = vmatmul.mubr.bf16.vlgmr.msra.gmra.mrb[0].mxu1 %v1547_v36  ;;  %1822 = vmatpush3.bf16.msra.mxu0 %v1964_v41  ;;  %v1576_v36 = vld [vmem:[%s2189_s12 + $0x70] sm:$0xff] }
  0x2a   : > { %1862 = vmatpush3.bf16.msra.mxu1 %v1965_v42  ;;  %1823 = vmatprep.subr.bf16.mxu0 %v1966_v43  ;;  %v1616_v40 = vcombine.high %v1638_v32, %v1576_v36  ;;  %v1680_v41 = vcombine.high %v1576_v36, %v1640_v37  ;;  %v1578_v42 = vld [vmem:[%s2189_s12 + $0x80] sm:$0xff]  ;;  %v1642_v43 = vld [vmem:[%s2189_s12 + $0x88] sm:$0xff]  ;;  %s1709_s12 = sshll.u32 %s2365_s15, 5 }
  0x2b   : > { %1863 = vmatprep.subr.bf16.mxu1 %v1967_v44  ;;  %523 = vmatprep.mubr.bf16.mxu0 %v1526_v49  ;;  %v1615_v44 = vcombine.low %v1638_v32, %v1576_v36  ;;  %v1682_v47 = vcombine.high %v1578_v42, %v1642_v43  ;;  %v1617_v48 = vcombine.low %v1640_v37, %v1578_v42  ;;  %s2327_s24 = scalar_lea.vmem %s2357_s2, %s1709_s12 }
  0x2c   : > { %703 = vmatprep.mubr.bf16.mxu1 %v1550_v50  ;;  %v1681_v49 = vcombine.low %v1578_v42, %v1642_v43 }
  0x2d   : > { %1824 = vmatpush3.bf16.msra.mxu0 %v1968_v45  ;;  %v1679_v45 = vcombine.low %v1576_v36, %v1640_v37 }
  0x2e   : > { %1864 = vmatpush3.bf16.msra.mxu1 %v1969_v46  ;;  %1825 = vmatprep.subr.bf16.mxu0 %v1974_v52  ;;  %v1618_v46 = vcombine.high %v1640_v37, %v1578_v42 }
  0x2f   : > { %1865 = vmatprep.subr.bf16.mxu1 %v1975_v54 }
  0x30   : > { %524 = vmatmul.mubr.bf16.gmra.mrb[4].mxu0 %v1525_v51 }
  0x31   : > { %704 = vmatmul.mubr.bf16.gmra.mrb[4].mxu1 %v1549_v53  ;;  %1826 = vmatpush3.bf16.msra.mxu0 %v1976_v55 }
  0x32   : > { %1866 = vmatpush3.bf16.msra.mxu1 %v1977_v56  ;;  %1827 = vmatprep.subr.bf16.mxu0 %v1978_v57 }
  0x33   : > { %1867 = vmatprep.subr.bf16.mxu1 %v1979_v58  ;;  %711 = vmatprep.mubr.bf16.mxu1 %v1552_v63 }
  0x34   : > { %531 = vmatprep.mubr.bf16.mxu0 %v1528_v1 }
  0x35   : > { %1828 = vmatpush3.bf16.msra.mxu0 %v1980_v59 }
  0x36   : > { %1868 = vmatpush3.bf16.msra.mxu1 %v1981_v60  ;;  %1829 = vmatprep.subr.bf16.mxu0 %v1986_v3 }
  0x37   : > { %1869 = vmatprep.subr.bf16.mxu1 %v1987_v4 }
  0x38   : > { %532 = vmatmul.mubr.bf16.gmra.mrb[8].mxu0 %v1527_v2 }
  0x39   : > { %712 = vmatmul.mubr.bf16.gmra.mrb[8].mxu1 %v1551_v0  ;;  %1830 = vmatpush3.bf16.msra.mxu0 %v1988_v5 }
  0x3a   : > { %1870 = vmatpush3.bf16.msra.mxu1 %v1989_v6  ;;  %1831 = vmatprep.subr.bf16.mxu0 %v1990_v7 }
  0x3b   : > { %1871 = vmatprep.subr.bf16.mxu1 %v1991_v8  ;;  %539 = vmatprep.mubr.bf16.mxu0 %v1530_v13 }
  0x3c   : > { %719 = vmatprep.mubr.bf16.mxu1 %v1554_v14 }
  0x3d   : > { %1832 = vmatpush3.bf16.msra.mxu0 %v1992_v9 }
  0x3e   : > { %1872 = vmatpush3.bf16.msra.mxu1 %v1993_v10  ;;  %1833 = vmatprep.subr.bf16.mxu0 %v1998_v17 }
  0x3f   : > { %1873 = vmatprep.subr.bf16.mxu1 %v1999_v18 }
  0x40   : > { %540 = vmatmul.mubr.bf16.gmra.mrb[12].mxu0 %v1529_v15 }
  0x41   : > { %720 = vmatmul.mubr.bf16.gmra.mrb[12].mxu1 %v1553_v16  ;;  %1834 = vmatpush3.bf16.msra.mxu0 %v2000_v19 }
  0x42   : > { %1874 = vmatpush3.bf16.msra.mxu1 %v2001_v20  ;;  %1835 = vmatprep.subr.bf16.mxu0 %v2002_v21 }
  0x43   : > { %1875 = vmatprep.subr.bf16.mxu1 %v2003_v22  ;;  %938 = vmatprep.mubr.bf16.mxu0 %v1612_v29 }
  0x44   : > { %1188 = vmatprep.mubr.bf16.mxu1 %v1676_v33 }
  0x45   : > { %1836 = vmatpush3.bf16.msra.mxu0 %v2004_v23 }
  0x46   : > { %1876 = vmatpush3.bf16.msra.mxu1 %v2005_v24 }
  0x48   : > { %939 = vmatmul.mubr.bf16.vlgmr.msra.gmra.mrb[16].mxu0 %v1611_v28 }
  0x49   : > { %1189 = vmatmul.mubr.bf16.vlgmr.msra.gmra.mrb[16].mxu1 %v1675_v30  ;;  %946 = vmatprep.mubr.bf16.mxu0 %v1614_v34 }
  0x4a   : > { %1196 = vmatprep.mubr.bf16.mxu1 %v1678_v35 }
  0x50   : > { %947 = vmatmul.mubr.bf16.gmra.mrb[20].mxu0 %v1613_v38 }
  0x51   : > { %1197 = vmatmul.mubr.bf16.gmra.mrb[20].mxu1 %v1677_v39  ;;  %954 = vmatprep.mubr.bf16.mxu0 %v1616_v40 }
  0x52   : > { %1204 = vmatprep.mubr.bf16.mxu1 %v1680_v41 }
  0x58   : > { %955 = vmatmul.mubr.bf16.gmra.mrb[24].mxu0 %v1615_v44 }
  0x59   : > { %1205 = vmatmul.mubr.bf16.gmra.mrb[24].mxu1 %v1679_v45  ;;  %962 = vmatprep.mubr.bf16.mxu0 %v1618_v46 }
  0x5a   : > { %1212 = vmatprep.mubr.bf16.mxu1 %v1682_v47 }
  0x60   : > { %963 = vmatmul.mubr.bf16.gmra.mrb[28].mxu0 %v1617_v48 }
  0x61   : > { %1213 = vmatmul.mubr.bf16.gmra.mrb[28].mxu1 %v1681_v49 }
  0xfb   : > { %v1757_v50 = vpop.f32.mrb[0].mxu0 }
  0xfc   : > { %v1797_v51 = vpop.f32.mrb[0].mxu1  ;;  %v1758_v52 = vpop.f32.mrb[1].mxu0 }
  0xfd   : > { %v1798_v53 = vpop.f32.mrb[1].mxu1  ;;  %v1759_v54 = vadd.f32 %v1758_v52, %v1757_v50  ;;  %v1760_v56 = vpop.f32.mrb[2].mxu0 }
  0xfe   : > { %v1799_v55 = vadd.f32 %v1798_v53, %v1797_v51  ;;  %v1800_v57 = vpop.f32.mrb[2].mxu1  ;;  %v1761_v58 = vpop.f32.mrb[3].mxu0 }
  0xff   : > { %v1801_v59 = vpop.f32.mrb[3].mxu1  ;;  %v1762_v61 = vadd.f32 %v1761_v58, %v1760_v56 }
 0x100   : > { %v698_v60 = vadd.f32 %v1799_v55, %v1759_v54  ;;  %v1802_v62 = vadd.f32 %v1801_v59, %v1800_v57 }
 0x102   : > { %v701_v63 = vadd.f32 %v1802_v62, %v1762_v61 }
 0x103   : > { %v1763_v0 = vpop.f32.mrb[4].mxu0 }
 0x104   : > { %v1803_v1 = vpop.f32.mrb[4].mxu1  ;;  %v1764_v2 = vpop.f32.mrb[5].mxu0 }
 0x105   : > { %v1804_v3 = vpop.f32.mrb[5].mxu1  ;;  %v1765_v4 = vadd.f32 %v1764_v2, %v1763_v0  ;;  %v1766_v6 = vpop.f32.mrb[6].mxu0 }
 0x106   : > { %v1805_v5 = vadd.f32 %v1804_v3, %v1803_v1  ;;  %v1806_v7 = vpop.f32.mrb[6].mxu1  ;;  %v1767_v8 = vpop.f32.mrb[7].mxu0 }
 0x107   : > { %v1807_v9 = vpop.f32.mrb[7].mxu1  ;;  %v1768_v11 = vadd.f32 %v1767_v8, %v1766_v6 }
 0x108   : > { %v2311_v10 = vadd.f32 %v1805_v5, %v1765_v4  ;;  %v1808_v12 = vadd.f32 %v1807_v9, %v1806_v7 }
 0x10a   : > { %v2313_v13 = vadd.f32 %v1808_v12, %v1768_v11 }
 0x10b   : > { %v1769_v15 = vpop.f32.mrb[8].mxu0 }
 0x10c   : > { %v1809_v14 = vpop.f32.mrb[8].mxu1  ;;  %v1770_v17 = vpop.f32.mrb[9].mxu0 }
 0x10d   : > { %v1810_v16 = vpop.f32.mrb[9].mxu1  ;;  %v1771_v20 = vadd.f32 %v1770_v17, %v1769_v15  ;;  %v1772_v21 = vpop.f32.mrb[10].mxu0 }
 0x10e   : > { %v1811_v18 = vadd.f32 %v1810_v16, %v1809_v14  ;;  %v1812_v19 = vpop.f32.mrb[10].mxu1  ;;  %v1773_v23 = vpop.f32.mrb[11].mxu0 }
 0x10f   : > { %v1813_v22 = vpop.f32.mrb[11].mxu1  ;;  %v1774_v26 = vadd.f32 %v1773_v23, %v1772_v21 }
 0x110   : > { %v1814_v24 = vadd.f32 %v1813_v22, %v1812_v19  ;;  %v2315_v25 = vadd.f32 %v1811_v18, %v1771_v20 }
 0x112   : > { %v2317_v27 = vadd.f32 %v1814_v24, %v1774_v26 }
 0x113   : > { %v1775_v28 = vpop.f32.mrb[12].mxu0 }
 0x114   : > { %v1815_v29 = vpop.f32.mrb[12].mxu1  ;;  %v1776_v30 = vpop.f32.mrb[13].mxu0 }
 0x115   : > { %v1816_v31 = vpop.f32.mrb[13].mxu1  ;;  %v1777_v32 = vadd.f32 %v1776_v30, %v1775_v28  ;;  %v1778_v34 = vpop.f32.mrb[14].mxu0 }
 0x116   : > { %v1817_v33 = vadd.f32 %v1816_v31, %v1815_v29  ;;  %v1818_v35 = vpop.f32.mrb[14].mxu1  ;;  %v1779_v36 = vpop.f32.mrb[15].mxu0 }
 0x117   : > { %v1819_v37 = vpop.f32.mrb[15].mxu1  ;;  %v1780_v39 = vadd.f32 %v1779_v36, %v1778_v34 }
 0x118   : > { %v2319_v38 = vadd.f32 %v1817_v33, %v1777_v32  ;;  %v1820_v40 = vadd.f32 %v1819_v37, %v1818_v35 }
 0x11a   : > { %v2321_v41 = vadd.f32 %v1820_v40, %v1780_v39 }
 0x11b   : > { %v1837_v42 = vpop.f32.mrb[16].mxu0 }
 0x11c   : > { %v1877_v43 = vpop.f32.mrb[16].mxu1  ;;  %v1838_v44 = vpop.f32.mrb[17].mxu0 }
 0x11d   : > { %v1839_v45 = vadd.f32 %v1838_v44, %v1837_v42  ;;  %v1878_v46 = vpop.f32.mrb[17].mxu1  ;;  %v1840_v47 = vpop.f32.mrb[18].mxu0 }
 0x11e   : > { %v1879_v48 = vadd.f32 %v1878_v46, %v1877_v43  ;;  %v1880_v49 = vpop.f32.mrb[18].mxu1  ;;  %v1841_v50 = vpop.f32.mrb[19].mxu0 }
 0x11f   : > { %v971_v51 = vadd.f32 %v1839_v45, %v698_v60  ;;  %v1842_v52 = vadd.f32 %v1841_v50, %v1840_v47  ;;  %v1881_v53 = vpop.f32.mrb[19].mxu1 }
 0x120   : > { %v1882_v54 = vadd.f32 %v1881_v53, %v1880_v49 }
 0x121   : > { %v1221_v55 = vadd.f32 %v1879_v48, %v971_v51  ;;  %v972_v56 = vadd.f32 %v1842_v52, %v701_v63 }
 0x123   : > { %v1222_v57 = vadd.f32 %v1882_v54, %v972_v56  ;;  %v1843_v58 = vpop.f32.mrb[20].mxu0  ;;  %v1242_v59 = vmul.f32 %v1221_v55, %v1221_v55 }
 0x124   : > { %v1883_v61 = vpop.f32.mrb[20].mxu1  ;;  %v1844_v62 = vpop.f32.mrb[21].mxu0 }
 0x125   : > { %v1229_v0 = vadd.f32 %v1222_v57, %v1221_v55  ;;  %v1243_v1 = vmul.f32 %v1222_v57, %v1222_v57  ;;  %v1721_v60 = vpack.c.bf16 %v1222_v57, %v1221_v55  ;;  %v1845_v2 = vadd.f32 %v1844_v62, %v1843_v58  ;;  %v1884_v3 = vpop.f32.mrb[21].mxu1  ;;  %v1846_v4 = vpop.f32.mrb[22].mxu0 }
 0x126   : > { %v1885_v5 = vadd.f32 %v1884_v3, %v1883_v61  ;;  %v1886_v63 = vpop.f32.mrb[22].mxu1  ;;  %v1847_v6 = vpop.f32.mrb[23].mxu0 }
 0x127   : > { %v1250_v7 = vadd.f32 %v1243_v1, %v1242_v59  ;;  %1722 = vst [vmem:[%s2327_s24] sm:$0xff] %v1721_v60   ;;  %v973_v8 = vadd.f32 %v1845_v2, %v2311_v10  ;;  %v1848_v9 = vadd.f32 %v1847_v6, %v1846_v4  ;;  %v1887_v11 = vpop.f32.mrb[23].mxu1 }
 0x128   : > { %v1888_v12 = vadd.f32 %v1887_v11, %v1886_v63 }
 0x129   : > { %v1223_v14 = vadd.f32 %v1885_v5, %v973_v8  ;;  %v974_v15 = vadd.f32 %v1848_v9, %v2313_v13 }
 0x12b   : > { %v1230_v16 = vadd.f32 %v1229_v0, %v1223_v14  ;;  %v1244_v17 = vmul.f32 %v1223_v14, %v1223_v14  ;;  %v1224_v18 = vadd.f32 %v1888_v12, %v974_v15  ;;  %v1849_v19 = vpop.f32.mrb[24].mxu0 }
 0x12c   : > { %v1889_v20 = vpop.f32.mrb[24].mxu1  ;;  %v1850_v21 = vpop.f32.mrb[25].mxu0 }
 0x12d   : > { %v1251_v22 = vadd.f32 %v1250_v7, %v1244_v17  ;;  %v1231_v23 = vadd.f32 %v1230_v16, %v1224_v18  ;;  %v1245_v24 = vmul.f32 %v1224_v18, %v1224_v18  ;;  %v1726_v26 = vpack.c.bf16 %v1224_v18, %v1223_v14  ;;  %v1890_v28 = vpop.f32.mrb[25].mxu1  ;;  %v1852_v29 = vpop.f32.mrb[26].mxu0 }
 0x12e   : > { %v1851_v10 = vadd.f32 %v1850_v21, %v1849_v19  ;;  %v1891_v30 = vadd.f32 %v1890_v28, %v1889_v20  ;;  %v1892_v31 = vpop.f32.mrb[26].mxu1  ;;  %v1853_v32 = vpop.f32.mrb[27].mxu0 }
 0x12f   : > { %v1252_v33 = vadd.f32 %v1251_v22, %v1245_v24  ;;  %1738 = vst [vmem:[%s2327_s24 + $0x8] sm:$0xff] %v1726_v26   ;;  %v1854_v13 = vadd.f32 %v1853_v32, %v1852_v29  ;;  %v1893_v34 = vpop.f32.mrb[27].mxu1 }
 0x130   : > { %v975_v35 = vadd.f32 %v1851_v10, %v2315_v25  ;;  %v1894_v36 = vadd.f32 %v1893_v34, %v1892_v31 }
 0x131   : > { %v976_v37 = vadd.f32 %v1854_v13, %v2317_v27 }
 0x132   : > { %v1225_v39 = vadd.f32 %v1891_v30, %v975_v35 }
 0x133   : > { %v1226_v40 = vadd.f32 %v1894_v36, %v976_v37  ;;  %v1855_v42 = vpop.f32.mrb[28].mxu0 }
 0x134   : > { %v1232_v43 = vadd.f32 %v1231_v23, %v1225_v39  ;;  %v1246_v44 = vmul.f32 %v1225_v39, %v1225_v39  ;;  %v1895_v45 = vpop.f32.mrb[28].mxu1  ;;  %v1856_v46 = vpop.f32.mrb[29].mxu0 }
 0x135   : > { %v1247_v47 = vmul.f32 %v1226_v40, %v1226_v40  ;;  %v1731_v48 = vpack.c.bf16 %v1226_v40, %v1225_v39  ;;  %v1857_v49 = vadd.f32 %v1856_v46, %v1855_v42  ;;  %v1896_v50 = vpop.f32.mrb[29].mxu1  ;;  %v1858_v51 = vpop.f32.mrb[30].mxu0 }
 0x136   : > { %v1253_v52 = vadd.f32 %v1252_v33, %v1246_v44  ;;  %v1233_v53 = vadd.f32 %v1232_v43, %v1226_v40  ;;  %v1897_v54 = vadd.f32 %v1896_v50, %v1895_v45  ;;  %v1898_v25 = vpop.f32.mrb[30].mxu1  ;;  %v1859_v55 = vpop.f32.mrb[31].mxu0 }
 0x137   : > { %1739 = vst [vmem:[%s2327_s24 + $0x10] sm:$0xff] %v1731_v48   ;;  %v977_v27 = vadd.f32 %v1857_v49, %v2319_v38  ;;  %v1860_v56 = vadd.f32 %v1859_v55, %v1858_v51  ;;  %v1899_v57 = vpop.f32.mrb[31].mxu1 }
 0x138   : > { %v1254_v58 = vadd.f32 %v1253_v52, %v1247_v47  ;;  %v1900_v59 = vadd.f32 %v1899_v57, %v1898_v25 }
 0x139   : > { %v1227_v61 = vadd.f32 %v1897_v54, %v977_v27  ;;  %v978_v62 = vadd.f32 %v1860_v56, %v2321_v41 }
 0x13b   : > { %v1234_v0 = vadd.f32 %v1233_v53, %v1227_v61  ;;  %v1248_v1 = vmul.f32 %v1227_v61, %v1227_v61  ;;  %v1228_v60 = vadd.f32 %v1900_v59, %v978_v62 }
 0x13d   : > { %v1255_v2 = vadd.f32 %v1254_v58, %v1248_v1  ;;  %v1235_v3 = vadd.f32 %v1234_v0, %v1228_v60  ;;  %v1249_v4 = vmul.f32 %v1228_v60, %v1228_v60  ;;  %v1736_v5 = vpack.c.bf16 %v1228_v60, %v1227_v61 }
 0x13f   : > { %v1236_v63 = vrot.slane %v1235_v3, 4  ;;  %v1256_v6 = vadd.f32 %v1255_v2, %v1249_v4  ;;  %1740 = vst [vmem:[%s2327_s24 + $0x18] sm:$0xff] %v1736_v5  }
 0x141   : > { %v1237_v38 = vadd.f32 %v1236_v63, %v1235_v3  ;;  %v1257_v7 = vrot.slane %v1256_v6, 4 }
 0x143   : > { %v1238_v8 = vrot.slane %v1237_v38, 2  ;;  %v1258_v9 = vadd.f32 %v1257_v7, %v1256_v6 }
 0x145   : > { %v1239_v11 = vadd.f32 %v1238_v8, %v1237_v38  ;;  %v1259_v12 = vrot.slane %v1258_v9, 2 }
 0x147   : > { %v1240_v14 = vrot.slane %v1239_v11, 1  ;;  %v1260_v15 = vadd.f32 %v1259_v12, %v1258_v9 }
 0x149   : > { %v1241_v41 = vadd.f32 %v1240_v14, %v1239_v11  ;;  %v1261_v16 = vrot.slane %v1260_v15, 1 }
 0x14b   : > { %v1262_v17 = vadd.f32 %v1261_v16, %v1260_v15  ;;  %1263 = vst [vmem:[%s264_s28] sm:$0xff] %v1241_v41 }
 0x14d   : > { %1264 = vst [vmem:[%s271_s5] sm:$0xff] %v1262_v17 }
 0x14e PF: > { %s15_s17 = sadd.s32 1, %s2044_s17   ;;  %s2360_s15 = smov %s2040_s16 }
 0x14f   : > { %p12_p5 = scmp.ge.s32.totalorder %s15_s17, 4   ;;  %s2361_s16 = smov %s2363_s18 }
 0x151   :  { %14 = sbr.rel (!%p12_p5) target bundleno = 2 (0x2), region = 89 }

// kernel: discriminator_forward.7
= control target key start
LH: loop header
LB: loop body
LE: loop exit
PB: predicated region body
PF: predicated region fallthrough
CT: control target
= control target key end

     0   :  { %s3780_s15 = smov 0   ;;  %s3782_s16 = smov 0   ;;  %s4718_s0 = inlined_call_operand.vmem [shape: bf16[2,2,40,512], index: 0, kind: input, shape index: {}]   ;;  %s4719_s1 = inlined_call_operand.vmem [shape: bf16[4,512,256], index: 1, kind: input, shape index: {}]   ;;  %s4720_s2 = inlined_call_operand.vmem [shape: bf16[2,32,256], index: 2, kind: output, shape index: {0}]   ;;  %s4721_s3 = inlined_call_operand.vmem [shape: f32[2,8,256], index: 3, kind: output, shape index: {1}]   ;;  %s4722_s4 = inlined_call_operand.vmem [shape: f32[2,8,256], index: 4, kind: output, shape index: {2}]  }
   0x1   :  { %s3784_s17 = smov 0  }
   0x2 LB: > { %s24_s18 = sadd.s32 1, %s3749_s16  ;;  %p2715_p0 = scmp.ge.s32.totalorder %s3753_s17, 1  ;;  %s3753_s17 = sphi %s3784_s17, %s15_s17   ;;  %s3749_s16 = sphi %s3782_s16, %s4724_s16   ;;  %s3745_s15 = sphi %s3780_s15, %s4723_s15  }
   0x3   : > { %p25_p1 = scmp.ge.s32.totalorder %s24_s18, 2  ;;  %p196_p2 = scmp.lt.s32.totalorder %s3753_s17, 3 }
   0x5   : > { %s4726_s18 = smov (%p25_p1, %s24_s18), 0  ;;  %p197_p3 = pnand %p2715_p0, %p196_p2 }
   0x6   : > { %v3313_v0 = vld [vmem:[%s4719_s1 + $0x204] ss:$8 sps:$4 sm:$0xff] (!%p197_p3)   ;;  %v3317_v2 = vld [vmem:[%s4719_s1 + $0x200] ss:$8 sps:$4 sm:$0xff] (!%p197_p3)   ;;  %v3319_v4 = vld [vmem:[%s4719_s1 + $0x214] ss:$8 sps:$4 sm:$0xff] (!%p197_p3)  }
   0x7   : > { %200 = sbr.rel (%p197_p3) target bundleno = 506 (0x1fa), region = 28  ;;  %v3315_v1 = vld [vmem:[%s4719_s1 + $0x404] ss:$8 sps:$4 sm:$0xff] (!%p197_p3)   ;;  %789 = vmatprep.subr.bf16.mxu1 (!%p197_p3), %v3313_v0  ;;  %v3318_v3 = vld [vmem:[%s4719_s1 + $0x400] ss:$8 sps:$4 sm:$0xff] (!%p197_p3)   ;;  %p249_p4 = scmp.lt.s32.totalorder (!%p197_p3), %s3745_s15, 1 }
   0x8   : > { %1777 = vmatprep.subr.bf16.mxu0 (!%p197_p3), %v3315_v1  ;;  %790 = vmatpush1.bf16.msra.mxu1 (!%p197_p3), %v3317_v2  ;;  %v3321_v5 = vld [vmem:[%s4719_s1 + $0x414] ss:$8 sps:$4 sm:$0xff] (!%p197_p3)   ;;  %v3323_v6 = vld [vmem:[%s4719_s1 + $0x210] ss:$8 sps:$4 sm:$0xff] (!%p197_p3)   ;;  %v3325_v8 = vld [vmem:[%s4719_s1 + $0x224] ss:$8 sps:$4 sm:$0xff] (!%p197_p3)  }
   0x9   : > { %1778 = vmatpush1.bf16.msra.mxu0 (!%p197_p3), %v3318_v3  ;;  %791 = vmatprep.subr.bf16.mxu1 (!%p197_p3), %v3319_v4  ;;  %v3324_v7 = vld [vmem:[%s4719_s1 + $0x410] ss:$8 sps:$4 sm:$0xff] (!%p197_p3)   ;;  %v3327_v9 = vld [vmem:[%s4719_s1 + $0x424] ss:$8 sps:$4 sm:$0xff] (!%p197_p3)   ;;  %v3329_v10 = vld [vmem:[%s4719_s1 + $0x220] ss:$8 sps:$4 sm:$0xff] (!%p197_p3)  }
   0xa   : > { %1779 = vmatprep.subr.bf16.mxu0 (!%p197_p3), %v3321_v5  ;;  %v3330_v11 = vld [vmem:[%s4719_s1 + $0x420] ss:$8 sps:$4 sm:$0xff] (!%p197_p3)   ;;  %v3331_v12 = vld [vmem:[%s4719_s1 + $0x234] ss:$8 sps:$4 sm:$0xff] (!%p197_p3)   ;;  %v3335_v14 = vld [vmem:[%s4719_s1 + $0x230] ss:$8 sps:$4 sm:$0xff] (!%p197_p3)  }
   0xb   : > { %v3333_v13 = vld [vmem:[%s4719_s1 + $0x434] ss:$8 sps:$4 sm:$0xff] (!%p197_p3)   ;;  %v3336_v15 = vld [vmem:[%s4719_s1 + $0x430] ss:$8 sps:$4 sm:$0xff] (!%p197_p3)   ;;  %v3337_v16 = vld [vmem:[%s4719_s1 + $0x244] ss:$8 sps:$4 sm:$0xff] (!%p197_p3)  }
   0xc   : > { %792 = vmatpush1.bf16.msra.mxu1 (!%p197_p3), %v3323_v6  ;;  %v3339_v17 = vld [vmem:[%s4719_s1 + $0x444] ss:$8 sps:$4 sm:$0xff] (!%p197_p3)   ;;  %v3341_v18 = vld [vmem:[%s4719_s1 + $0x240] ss:$8 sps:$4 sm:$0xff] (!%p197_p3)   ;;  %v3343_v20 = vld [vmem:[%s4719_s1 + $0x254] ss:$8 sps:$4 sm:$0xff] (!%p197_p3)  }
   0xd   : > { %1780 = vmatpush1.bf16.msra.mxu0 (!%p197_p3), %v3324_v7  ;;  %793 = vmatprep.subr.bf16.mxu1 (!%p197_p3), %v3325_v8  ;;  %v3342_v19 = vld [vmem:[%s4719_s1 + $0x440] ss:$8 sps:$4 sm:$0xff] (!%p197_p3)   ;;  %v3345_v21 = vld [vmem:[%s4719_s1 + $0x454] ss:$8 sps:$4 sm:$0xff] (!%p197_p3)   ;;  %v3347_v22 = vld [vmem:[%s4719_s1 + $0x250] ss:$8 sps:$4 sm:$0xff] (!%p197_p3)  }
   0xe   : > { %1781 = vmatprep.subr.bf16.mxu0 %v3327_v9  ;;  %v3348_v23 = vld [vmem:[%s4719_s1 + $0x450] ss:$8 sps:$4 sm:$0xff]   ;;  %v3349_v24 = vld [vmem:[%s4719_s1 + $0x264] ss:$8 sps:$4 sm:$0xff]   ;;  %v3353_v26 = vld [vmem:[%s4719_s1 + $0x260] ss:$8 sps:$4 sm:$0xff]  }
   0xf   : > { %v3351_v25 = vld [vmem:[%s4719_s1 + $0x464] ss:$8 sps:$4 sm:$0xff]   ;;  %v3354_v27 = vld [vmem:[%s4719_s1 + $0x460] ss:$8 sps:$4 sm:$0xff]   ;;  %v3355_v28 = vld [vmem:[%s4719_s1 + $0x274] ss:$8 sps:$4 sm:$0xff]  }
  0x10   : > { %794 = vmatpush1.bf16.msra.mxu1 %v3329_v10  ;;  %v3357_v29 = vld [vmem:[%s4719_s1 + $0x474] ss:$8 sps:$4 sm:$0xff]   ;;  %v3359_v30 = vld [vmem:[%s4719_s1 + $0x270] ss:$8 sps:$4 sm:$0xff]   ;;  %v3361_v32 = vld [vmem:[%s4719_s1 + $0x284] ss:$8 sps:$4 sm:$0xff]  }
  0x11   : > { %1782 = vmatpush1.bf16.msra.mxu0 %v3330_v11  ;;  %795 = vmatprep.subr.bf16.mxu1 %v3331_v12  ;;  %v3360_v31 = vld [vmem:[%s4719_s1 + $0x470] ss:$8 sps:$4 sm:$0xff]   ;;  %v3363_v33 = vld [vmem:[%s4719_s1 + $0x484] ss:$8 sps:$4 sm:$0xff]   ;;  %v3365_v34 = vld [vmem:[%s4719_s1 + $0x280] ss:$8 sps:$4 sm:$0xff]  }
  0x12   : > { %1783 = vmatprep.subr.bf16.mxu0 %v3333_v13  ;;  %v3366_v35 = vld [vmem:[%s4719_s1 + $0x480] ss:$8 sps:$4 sm:$0xff]   ;;  %s4728_s15 = smov (!%p249_p4, %s3745_s15), 1  ;;  %v3367_v36 = vld [vmem:[%s4719_s1 + $0x294] ss:$8 sps:$4 sm:$0xff]  }
  0x13   : > { %v3369_v37 = vld [vmem:[%s4719_s1 + $0x494] ss:$8 sps:$4 sm:$0xff]   ;;  %v3371_v38 = vld [vmem:[%s4719_s1 + $0x290] ss:$8 sps:$4 sm:$0xff]   ;;  %s3288_s5 = smul.u32 160, %s4728_s15  ;;  %s3226_s30 = sshll.u32 %s4728_s15, 4 }
  0x14   : > { %796 = vmatpush1.bf16.msra.mxu1 %v3335_v14  ;;  %v3372_v39 = vld [vmem:[%s4719_s1 + $0x490] ss:$8 sps:$4 sm:$0xff]   ;;  %v3373_v40 = vld [vmem:[%s4719_s1 + $0x2a4] ss:$8 sps:$4 sm:$0xff]   ;;  %v3377_v42 = vld [vmem:[%s4719_s1 + $0x2a0] ss:$8 sps:$4 sm:$0xff]   ;;  %s278_s7 = scalar_lea.vmem %s4721_s3, %s3226_s30  ;;  %s288_s10 = scalar_lea.vmem %s4722_s4, %s3226_s30 }
  0x15   : > { %1784 = vmatpush1.bf16.msra.mxu0 %v3336_v15  ;;  %797 = vmatprep.subr.bf16.mxu1 %v3337_v16  ;;  %v3375_v41 = vld [vmem:[%s4719_s1 + $0x4a4] ss:$8 sps:$4 sm:$0xff]   ;;  %v3378_v43 = vld [vmem:[%s4719_s1 + $0x4a0] ss:$8 sps:$4 sm:$0xff]   ;;  %s3940_s22 = scalar_lea.vmem %s4718_s0, %s3288_s5  ;;  %v3379_v44 = vld [vmem:[%s4719_s1 + $0x2b4] ss:$8 sps:$4 sm:$0xff]  }
  0x16   : > { %1785 = vmatprep.subr.bf16.mxu0 %v3339_v17  ;;  %v3381_v45 = vld [vmem:[%s4719_s1 + $0x4b4] ss:$8 sps:$4 sm:$0xff]   ;;  %v3383_v46 = vld [vmem:[%s4719_s1 + $0x2b0] ss:$8 sps:$4 sm:$0xff]   ;;  %v294_v49 = vld [vmem:[%s3940_s22 + $0x20] sm:$0xff] }
  0x17   : > { %v3384_v47 = vld [vmem:[%s4719_s1 + $0x4b0] ss:$8 sps:$4 sm:$0xff]   ;;  %v3385_v50 = vld [vmem:[%s4719_s1 + $0x2c4] ss:$8 sps:$4 sm:$0xff]   ;;  %v3389_v56 = vld [vmem:[%s4719_s1 + $0x2c0] ss:$8 sps:$4 sm:$0xff]  }
  0x18   : > { %798 = vmatpush1.bf16.msra.mxu1 %v3341_v18  ;;  %v3955_v48 = vld [vmem:[%s3940_s22 + $0x10] sm:$0xff]  ;;  %v3387_v51 = vld [vmem:[%s4719_s1 + $0x4c4] ss:$8 sps:$4 sm:$0xff]   ;;  %v3390_v57 = vld [vmem:[%s4719_s1 + $0x4c0] ss:$8 sps:$4 sm:$0xff]  }
  0x19   : > { %1786 = vmatpush1.bf16.msra.mxu0 %v3342_v19  ;;  %799 = vmatprep.subr.bf16.mxu1 %v3343_v20  ;;  %v2788_v52 = vcombine.high %v3955_v48, %v294_v49  ;;  %v2931_v53 = vld [vmem:[%s3940_s22 + $0x50] sm:$0xff]  ;;  %v3967_v54 = vld [vmem:[%s3940_s22 + $0x60] sm:$0xff]  ;;  %v2787_v11 = vcombine.low %v3955_v48, %v294_v49 }
  0x1a   : > { %1787 = vmatprep.subr.bf16.mxu0 %v3345_v21  ;;  %v3004_v55 = vcombine.high %v2931_v53, %v3967_v54  ;;  %v3391_v58 = vld [vmem:[%s4719_s1 + $0x2d4] ss:$8 sps:$4 sm:$0xff]   ;;  %v3395_v60 = vld [vmem:[%s4719_s1 + $0x2d0] ss:$8 sps:$4 sm:$0xff]   ;;  %v3397_v62 = vld [vmem:[%s4719_s1 + $0x2e4] ss:$8 sps:$4 sm:$0xff]   ;;  %v3003_v9 = vcombine.low %v2931_v53, %v3967_v54 }
  0x1b   : > { %821 = vmatprep.mubr.bf16.mxu1 %v2788_v52  ;;  %v3393_v59 = vld [vmem:[%s4719_s1 + $0x4d4] ss:$8 sps:$4 sm:$0xff]   ;;  %v3396_v61 = vld [vmem:[%s4719_s1 + $0x4d0] ss:$8 sps:$4 sm:$0xff]   ;;  %v3399_v63 = vld [vmem:[%s4719_s1 + $0x4e4] ss:$8 sps:$4 sm:$0xff]  }
  0x1c   : > { %800 = vmatpush1.bf16.msra.mxu1 %v3347_v22  ;;  %1809 = vmatprep.mubr.bf16.mxu0 %v3004_v55  ;;  %v3401_v0 = vld [vmem:[%s4719_s1 + $0x2e0] ss:$8 sps:$4 sm:$0xff]   ;;  %v3403_v2 = vld [vmem:[%s4719_s1 + $0x2f4] ss:$8 sps:$4 sm:$0xff]   ;;  %v3407_v4 = vld [vmem:[%s4719_s1 + $0x2f0] ss:$8 sps:$4 sm:$0xff]  }
  0x1d   : > { %1788 = vmatpush1.bf16.msra.mxu0 %v3348_v23  ;;  %801 = vmatprep.subr.bf16.mxu1 %v3349_v24  ;;  %v3402_v1 = vld [vmem:[%s4719_s1 + $0x4e0] ss:$8 sps:$4 sm:$0xff]   ;;  %v3405_v3 = vld [vmem:[%s4719_s1 + $0x4f4] ss:$8 sps:$4 sm:$0xff]   ;;  %v3408_v5 = vld [vmem:[%s4719_s1 + $0x4f0] ss:$8 sps:$4 sm:$0xff]  }
  0x1e   : > { %1789 = vmatprep.subr.bf16.mxu0 %v3351_v25  ;;  %v3412_v6 = vld [vmem:[%s4719_s1 + $0x304] ss:$8 sps:$4 sm:$0xff]   ;;  %v3410_v8 = vld [vmem:[%s4719_s1 + $0x300] ss:$8 sps:$4 sm:$0xff]   ;;  %v3421_v12 = vld [vmem:[%s4719_s1 + $0x314] ss:$8 sps:$4 sm:$0xff]  }
  0x1f   : > { %v3417_v7 = vld [vmem:[%s4719_s1 + $0x504] ss:$8 sps:$4 sm:$0xff]   ;;  %v3415_v10 = vld [vmem:[%s4719_s1 + $0x500] ss:$8 sps:$4 sm:$0xff]   ;;  %v3424_v13 = vld [vmem:[%s4719_s1 + $0x514] ss:$8 sps:$4 sm:$0xff]  }
  0x20   : > { %802 = vmatpush1.bf16.msra.mxu1 %v3353_v26  ;;  %v3419_v14 = vld [vmem:[%s4719_s1 + $0x310] ss:$8 sps:$4 sm:$0xff]   ;;  %v3427_v16 = vld [vmem:[%s4719_s1 + $0x324] ss:$8 sps:$4 sm:$0xff]   ;;  %v3425_v18 = vld [vmem:[%s4719_s1 + $0x320] ss:$8 sps:$4 sm:$0xff]  }
  0x21   : > { %1790 = vmatpush1.bf16.msra.mxu0 %v3354_v27  ;;  %803 = vmatprep.subr.bf16.mxu1 %v3355_v28  ;;  %v3422_v15 = vld [vmem:[%s4719_s1 + $0x510] ss:$8 sps:$4 sm:$0xff]   ;;  %v3430_v17 = vld [vmem:[%s4719_s1 + $0x524] ss:$8 sps:$4 sm:$0xff]   ;;  %v3428_v19 = vld [vmem:[%s4719_s1 + $0x520] ss:$8 sps:$4 sm:$0xff]  }
  0x22   : > { %1791 = vmatprep.subr.bf16.mxu0 %v3357_v29  ;;  %v3433_v20 = vld [vmem:[%s4719_s1 + $0x334] ss:$8 sps:$4 sm:$0xff]   ;;  %v3431_v22 = vld [vmem:[%s4719_s1 + $0x330] ss:$8 sps:$4 sm:$0xff]   ;;  %v3439_v24 = vld [vmem:[%s4719_s1 + $0x344] ss:$8 sps:$4 sm:$0xff]  }
  0x23   : > { %v3436_v21 = vld [vmem:[%s4719_s1 + $0x534] ss:$8 sps:$4 sm:$0xff]   ;;  %v3434_v23 = vld [vmem:[%s4719_s1 + $0x530] ss:$8 sps:$4 sm:$0xff]   ;;  %v3442_v25 = vld [vmem:[%s4719_s1 + $0x544] ss:$8 sps:$4 sm:$0xff]  }
  0x24   : > { %804 = vmatpush1.bf16.msra.mxu1 %v3359_v30  ;;  %v3437_v26 = vld [vmem:[%s4719_s1 + $0x340] ss:$8 sps:$4 sm:$0xff]   ;;  %v3445_v28 = vld [vmem:[%s4719_s1 + $0x354] ss:$8 sps:$4 sm:$0xff]   ;;  %v3455_v53 = vld [vmem:[%s4719_s1 + $0x370] ss:$8 sps:$4 sm:$0xff]  }
  0x25   : > { %1792 = vmatpush1.bf16.msra.mxu0 %v3360_v31  ;;  %805 = vmatprep.subr.bf16.mxu1 %v3361_v32  ;;  %v3440_v27 = vld [vmem:[%s4719_s1 + $0x540] ss:$8 sps:$4 sm:$0xff]   ;;  %v3448_v29 = vld [vmem:[%s4719_s1 + $0x554] ss:$8 sps:$4 sm:$0xff]   ;;  %v3443_v32 = vld [vmem:[%s4719_s1 + $0x350] ss:$8 sps:$4 sm:$0xff]  }
  0x26   : > { %1793 = vmatprep.subr.bf16.mxu0 %v3363_v33  ;;  %v4081_v30 = vld [vmem:[%s3940_s22 + $0x30] sm:$0xff]  ;;  %v362_v31 = vld [vmem:[%s3940_s22 + $0x40] sm:$0xff]  ;;  %v4134_v52 = vld [vmem:[%s3940_s22 + $0x68] sm:$0xff] }
  0x27   : > { %v2792_v33 = vcombine.high %v4081_v30, %v362_v31  ;;  %v3460_v49 = vld [vmem:[%s4719_s1 + $0x574] ss:$8 sps:$4 sm:$0xff]   ;;  %v3458_v55 = vld [vmem:[%s4719_s1 + $0x570] ss:$8 sps:$4 sm:$0xff]  }
  0x28   : > { %806 = vmatpush1.bf16.msra.mxu1 %v3365_v34  ;;  %v3446_v34 = vld [vmem:[%s4719_s1 + $0x550] ss:$8 sps:$4 sm:$0xff]  }
  0x29   : > { %1794 = vmatpush1.bf16.msra.mxu0 %v3366_v35  ;;  %807 = vmatprep.subr.bf16.mxu1 %v3367_v36  ;;  %v4092_v35 = vld [vmem:[%s3940_s22 + $0x70] sm:$0xff]  ;;  %v4095_v36 = vld [vmem:[%s3940_s22 + $0x80] sm:$0xff] }
  0x2a   : > { %1795 = vmatprep.subr.bf16.mxu0 %v3369_v37  ;;  %v2791_v37 = vcombine.low %v4081_v30, %v362_v31 }
  0x2c   : > { %808 = vmatpush1.bf16.msra.mxu1 %v3371_v38  ;;  %v3451_v38 = vld [vmem:[%s4719_s1 + $0x364] ss:$8 sps:$4 sm:$0xff]  }
  0x2d   : > { %1796 = vmatpush1.bf16.msra.mxu0 %v3372_v39  ;;  %809 = vmatprep.subr.bf16.mxu1 %v3373_v40  ;;  %v3008_v39 = vcombine.high %v4092_v35, %v4095_v36  ;;  %v3007_v40 = vcombine.low %v4092_v35, %v4095_v36 }
  0x2e   : > { %1797 = vmatprep.subr.bf16.mxu0 %v3375_v41  ;;  %v3147_v41 = vcombine.low %v3967_v54, %v4092_v35 }
  0x30   : > { %810 = vmatpush1.bf16.msra.mxu1 %v3377_v42  ;;  %v3454_v42 = vld [vmem:[%s4719_s1 + $0x564] ss:$8 sps:$4 sm:$0xff]  }
  0x31   : > { %1798 = vmatpush1.bf16.msra.mxu0 %v3378_v43  ;;  %811 = vmatprep.subr.bf16.mxu1 %v3379_v44  ;;  %v3449_v43 = vld [vmem:[%s4719_s1 + $0x360] ss:$8 sps:$4 sm:$0xff]  }
  0x32   : > { %1799 = vmatprep.subr.bf16.mxu0 %v3381_v45  ;;  %v3452_v44 = vld [vmem:[%s4719_s1 + $0x560] ss:$8 sps:$4 sm:$0xff]   ;;  %v4117_v45 = vld [vmem:[%s3940_s22 + $0x18] sm:$0xff] }
  0x34   : > { %812 = vmatpush1.bf16.msra.mxu1 %v3383_v46  ;;  %v4120_v46 = vld [vmem:[%s3940_s22 + $0x28] sm:$0xff] }
  0x35   : > { %1800 = vmatpush1.bf16.msra.mxu0 %v3384_v47  ;;  %813 = vmatprep.subr.bf16.mxu1 %v3385_v50  ;;  %v3457_v47 = vld [vmem:[%s4719_s1 + $0x374] ss:$8 sps:$4 sm:$0xff]   ;;  %v2790_v50 = vcombine.high %v4117_v45, %v4120_v46 }
  0x36   : > { %1801 = vmatprep.subr.bf16.mxu0 %v3387_v51  ;;  %v4131_v51 = vld [vmem:[%s3940_s22 + $0x58] sm:$0xff] }
  0x37   : > { %v3005_v31 = vcombine.low %v4131_v51, %v4134_v52 }
  0x38   : > { %814 = vmatpush1.bf16.msra.mxu1 %v3389_v56  ;;  %v3006_v56 = vcombine.high %v4131_v51, %v4134_v52 }
  0x39   : > { %1802 = vmatpush1.bf16.msra.mxu0 %v3390_v57  ;;  %815 = vmatprep.subr.bf16.mxu1 %v3391_v58  ;;  %v3463_v57 = vld [vmem:[%s4719_s1 + $0x384] ss:$8 sps:$4 sm:$0xff]  }
  0x3a   : > { %1803 = vmatprep.subr.bf16.mxu0 %v3393_v59  ;;  %v3466_v58 = vld [vmem:[%s4719_s1 + $0x584] ss:$8 sps:$4 sm:$0xff]   ;;  %v3461_v59 = vld [vmem:[%s4719_s1 + $0x380] ss:$8 sps:$4 sm:$0xff]  }
  0x3c   : > { %816 = vmatpush1.bf16.msra.mxu1 %v3395_v60  ;;  %v3464_v60 = vld [vmem:[%s4719_s1 + $0x580] ss:$8 sps:$4 sm:$0xff]  }
  0x3d   : > { %1804 = vmatpush1.bf16.msra.mxu0 %v3396_v61  ;;  %817 = vmatprep.subr.bf16.mxu1 %v3397_v62  ;;  %v3469_v61 = vld [vmem:[%s4719_s1 + $0x394] ss:$8 sps:$4 sm:$0xff]  }
  0x3e   : > { %1805 = vmatprep.subr.bf16.mxu0 %v3399_v63  ;;  %v3472_v62 = vld [vmem:[%s4719_s1 + $0x594] ss:$8 sps:$4 sm:$0xff]   ;;  %v3467_v63 = vld [vmem:[%s4719_s1 + $0x390] ss:$8 sps:$4 sm:$0xff]  }
  0x40   : > { %818 = vmatpush1.bf16.msra.mxu1 %v3401_v0  ;;  %v3470_v0 = vld [vmem:[%s4719_s1 + $0x590] ss:$8 sps:$4 sm:$0xff]  }
  0x41   : > { %1806 = vmatpush1.bf16.msra.mxu0 %v3402_v1  ;;  %819 = vmatprep.subr.bf16.mxu1 %v3403_v2  ;;  %v3475_v1 = vld [vmem:[%s4719_s1 + $0x3a4] ss:$8 sps:$4 sm:$0xff]  }
  0x42   : > { %1807 = vmatprep.subr.bf16.mxu0 %v3405_v3  ;;  %v3478_v2 = vld [vmem:[%s4719_s1 + $0x5a4] ss:$8 sps:$4 sm:$0xff]   ;;  %v3473_v3 = vld [vmem:[%s4719_s1 + $0x3a0] ss:$8 sps:$4 sm:$0xff]  }
  0x44   : > { %820 = vmatpush1.bf16.msra.mxu1 %v3407_v4  ;;  %v3476_v4 = vld [vmem:[%s4719_s1 + $0x5a0] ss:$8 sps:$4 sm:$0xff]  }
  0x45   : > { %1808 = vmatpush1.bf16.msra.mxu0 %v3408_v5  ;;  %842 = vmatprep.subr.bf16.mxu1 %v3412_v6  ;;  %v3481_v5 = vld [vmem:[%s4719_s1 + $0x3b4] ss:$8 sps:$4 sm:$0xff]  }
  0x46   : > { %1830 = vmatprep.subr.bf16.mxu0 %v3417_v7  ;;  %v3484_v6 = vld [vmem:[%s4719_s1 + $0x5b4] ss:$8 sps:$4 sm:$0xff]   ;;  %v3479_v7 = vld [vmem:[%s4719_s1 + $0x3b0] ss:$8 sps:$4 sm:$0xff]  }
  0x47   : > { %822 = vmatmul.mubr.bf16.vlgmr.msra.gmra.mrb[0].mxu1 %v2787_v11  ;;  %v3485_v11 = vld [vmem:[%s4719_s1 + $0x3c0] ss:$8 sps:$4 sm:$0xff]  }
  0x48   : > { %1810 = vmatmul.mubr.bf16.vlgmr.msra.gmra.mrb[0].mxu0 %v3003_v9  ;;  %843 = vmatpush1.bf16.msra.mxu1 %v3410_v8  ;;  %v3482_v8 = vld [vmem:[%s4719_s1 + $0x5b0] ss:$8 sps:$4 sm:$0xff]   ;;  %v3487_v9 = vld [vmem:[%s4719_s1 + $0x3c4] ss:$8 sps:$4 sm:$0xff]  }
  0x49   : > { %1831 = vmatpush1.bf16.msra.mxu0 %v3415_v10  ;;  %844 = vmatprep.subr.bf16.mxu1 %v3421_v12  ;;  %v3490_v10 = vld [vmem:[%s4719_s1 + $0x5c4] ss:$8 sps:$4 sm:$0xff]   ;;  %v3488_v12 = vld [vmem:[%s4719_s1 + $0x5c0] ss:$8 sps:$4 sm:$0xff]  }
  0x4a   : > { %1832 = vmatprep.subr.bf16.mxu0 %v3424_v13  ;;  %831 = vmatprep.mubr.bf16.mxu1 %v2792_v33  ;;  %v3493_v13 = vld [vmem:[%s4719_s1 + $0x3d4] ss:$8 sps:$4 sm:$0xff]   ;;  %v363_v33 = vld [vmem:[%s3940_s22 + $0x48] sm:$0xff] }
  0x4b   : > { %1819 = vmatprep.mubr.bf16.mxu0 %v3008_v39  ;;  %v4270_v39 = vld [vmem:[%s3940_s22 + $0x88] sm:$0xff] }
  0x4c   : > { %845 = vmatpush1.bf16.msra.mxu1 %v3419_v14  ;;  %v3496_v14 = vld [vmem:[%s4719_s1 + $0x5d4] ss:$8 sps:$4 sm:$0xff]  }
  0x4d   : > { %1833 = vmatpush1.bf16.msra.mxu0 %v3422_v15  ;;  %846 = vmatprep.subr.bf16.mxu1 %v3427_v16  ;;  %v3491_v15 = vld [vmem:[%s4719_s1 + $0x3d0] ss:$8 sps:$4 sm:$0xff]  }
  0x4e   : > { %1834 = vmatprep.subr.bf16.mxu0 %v3430_v17  ;;  %v3494_v16 = vld [vmem:[%s4719_s1 + $0x5d0] ss:$8 sps:$4 sm:$0xff]   ;;  %v3500_v17 = vld [vmem:[%s4719_s1 + $0x3e4] ss:$8 sps:$4 sm:$0xff]  }
  0x4f   : > { %832 = vmatmul.mubr.bf16.gmra.mrb[4].mxu1 %v2791_v37  ;;  %v3528_v37 = vld [vmem:[%s4719_s1 + $0x614] ss:$8 sps:$4 sm:$0xff]  }
  0x50   : > { %847 = vmatpush1.bf16.msra.mxu1 %v3425_v18  ;;  %1820 = vmatmul.mubr.bf16.gmra.mrb[4].mxu0 %v3007_v40  ;;  %v3504_v18 = vld [vmem:[%s4719_s1 + $0x5e4] ss:$8 sps:$4 sm:$0xff]  }
  0x51   : > { %1835 = vmatpush1.bf16.msra.mxu0 %v3428_v19  ;;  %848 = vmatprep.subr.bf16.mxu1 %v3433_v20  ;;  %v3498_v19 = vld [vmem:[%s4719_s1 + $0x3e0] ss:$8 sps:$4 sm:$0xff]  }
  0x52   : > { %1836 = vmatprep.subr.bf16.mxu0 %v3436_v21  ;;  %874 = vmatprep.mubr.bf16.mxu1 %v2790_v50  ;;  %v3502_v20 = vld [vmem:[%s4719_s1 + $0x5e0] ss:$8 sps:$4 sm:$0xff]   ;;  %v3509_v21 = vld [vmem:[%s4719_s1 + $0x3f4] ss:$8 sps:$4 sm:$0xff]   ;;  %v3526_v50 = vld [vmem:[%s4719_s1 + $0x610] ss:$8 sps:$4 sm:$0xff]  }
  0x53   : > { %1862 = vmatprep.mubr.bf16.mxu0 %v3006_v56  ;;  %v3529_v56 = vld [vmem:[%s4719_s1 + $0x20] ss:$8 sps:$4 sm:$0xff]  }
  0x54   : > { %849 = vmatpush1.bf16.msra.mxu1 %v3431_v22  ;;  %v3512_v22 = vld [vmem:[%s4719_s1 + $0x5f4] ss:$8 sps:$4 sm:$0xff]  }
  0x55   : > { %1837 = vmatpush1.bf16.msra.mxu0 %v3434_v23  ;;  %850 = vmatprep.subr.bf16.mxu1 %v3439_v24  ;;  %v3507_v23 = vld [vmem:[%s4719_s1 + $0x3f0] ss:$8 sps:$4 sm:$0xff]  }
  0x56   : > { %1838 = vmatprep.subr.bf16.mxu0 %v3442_v25  ;;  %v3510_v24 = vld [vmem:[%s4719_s1 + $0x5f0] ss:$8 sps:$4 sm:$0xff]   ;;  %v3516_v25 = vld [vmem:[%s4719_s1 + $0x4] ss:$8 sps:$4 sm:$0xff]  }
  0x58   : > { %851 = vmatpush1.bf16.msra.mxu1 %v3437_v26  ;;  %v3521_v26 = vld [vmem:[%s4719_s1 + $0x604] ss:$8 sps:$4 sm:$0xff]  }
  0x59   : > { %1839 = vmatpush1.bf16.msra.mxu0 %v3440_v27  ;;  %852 = vmatprep.subr.bf16.mxu1 %v3445_v28  ;;  %v3514_v27 = vld [vmem:[%s4719_s1] ss:$8 sps:$4 sm:$0xff]  }
  0x5a   : > { %1840 = vmatprep.subr.bf16.mxu0 %v3448_v29  ;;  %v3519_v28 = vld [vmem:[%s4719_s1 + $0x600] ss:$8 sps:$4 sm:$0xff]   ;;  %v4253_v29 = vld [vmem:[%s3940_s22 + $0x38] sm:$0xff] }
  0x5b   : > { %v2865_v51 = vcombine.low %v4120_v46, %v4253_v29 }
  0x5c   : > { %853 = vmatpush1.bf16.msra.mxu1 %v3443_v32  ;;  %v2789_v32 = vcombine.low %v4117_v45, %v4120_v46 }
  0x5d   : > { %1841 = vmatpush1.bf16.msra.mxu0 %v3446_v34  ;;  %854 = vmatprep.subr.bf16.mxu1 %v3451_v38  ;;  %v3525_v34 = vld [vmem:[%s4719_s1 + $0x14] ss:$8 sps:$4 sm:$0xff]  }
  0x5e   : > { %1842 = vmatprep.subr.bf16.mxu0 %v3454_v42  ;;  %v4267_v38 = vld [vmem:[%s3940_s22 + $0x78] sm:$0xff] }
  0x5f   : > { %v3149_v40 = vcombine.low %v4134_v52, %v4267_v38  ;;  %v3150_v42 = vcombine.high %v4134_v52, %v4267_v38 }
  0x60   : > { %855 = vmatpush1.bf16.msra.mxu1 %v3449_v43  ;;  %v2794_v43 = vcombine.high %v4253_v29, %v363_v33 }
  0x61   : > { %1843 = vmatpush1.bf16.msra.mxu0 %v3452_v44  ;;  %856 = vmatprep.subr.bf16.mxu1 %v3457_v47  ;;  %v3010_v44 = vcombine.high %v4267_v38, %v4270_v39  ;;  %v3523_v47 = vld [vmem:[%s4719_s1 + $0x10] ss:$8 sps:$4 sm:$0xff]  }
  0x62   : > { %1844 = vmatprep.subr.bf16.mxu0 %v3460_v49  ;;  %v2866_v49 = vcombine.high %v4120_v46, %v4253_v29 }
  0x64   : > { %857 = vmatpush1.bf16.msra.mxu1 %v3455_v53  ;;  %v3531_v53 = vld [vmem:[%s4719_s1 + $0x24] ss:$8 sps:$4 sm:$0xff]  }
  0x65   : > { %1845 = vmatpush1.bf16.msra.mxu0 %v3458_v55  ;;  %858 = vmatprep.subr.bf16.mxu1 %v3463_v57  ;;  %v3534_v55 = vld [vmem:[%s4719_s1 + $0x624] ss:$8 sps:$4 sm:$0xff]   ;;  %v2793_v57 = vcombine.low %v4253_v29, %v363_v33  ;;  %v3588_v33 = vld [vmem:[%s4719_s1 + $0x6b4] ss:$8 sps:$4 sm:$0xff]  }
  0x66   : > { %1846 = vmatprep.subr.bf16.mxu0 %v3466_v58  ;;  %v3009_v58 = vcombine.low %v4267_v38, %v4270_v39 }
  0x68   : > { %859 = vmatpush1.bf16.msra.mxu1 %v3461_v59  ;;  %v4302_v59 = vld [vmem:[%s3940_s22] sm:$0xff] }
  0x69   : > { %1847 = vmatpush1.bf16.msra.mxu0 %v3464_v60  ;;  %860 = vmatprep.subr.bf16.mxu1 %v3469_v61  ;;  %v3532_v60 = vld [vmem:[%s4719_s1 + $0x620] ss:$8 sps:$4 sm:$0xff]   ;;  %v3537_v61 = vld [vmem:[%s4719_s1 + $0x34] ss:$8 sps:$4 sm:$0xff]  }
  0x6a   : > { %1848 = vmatprep.subr.bf16.mxu0 %v3472_v62  ;;  %v3540_v62 = vld [vmem:[%s4719_s1 + $0x634] ss:$8 sps:$4 sm:$0xff]  }
  0x6c   : > { %861 = vmatpush1.bf16.msra.mxu1 %v3467_v63  ;;  %v2860_v63 = vcombine.high %v4302_v59, %v3955_v48  ;;  %v3543_v48 = vld [vmem:[%s4719_s1 + $0x44] ss:$8 sps:$4 sm:$0xff]  }
  0x6d   : > { %1849 = vmatpush1.bf16.msra.mxu0 %v3470_v0  ;;  %862 = vmatprep.subr.bf16.mxu1 %v3475_v1  ;;  %v3148_v0 = vcombine.high %v3967_v54, %v4092_v35  ;;  %v3535_v1 = vld [vmem:[%s4719_s1 + $0x30] ss:$8 sps:$4 sm:$0xff]   ;;  %v3638_v54 = vld [vmem:[%s4719_s1 + $0x724] ss:$8 sps:$4 sm:$0xff]  }
  0x6e   : > { %1850 = vmatprep.subr.bf16.mxu0 %v3478_v2  ;;  %v3538_v2 = vld [vmem:[%s4719_s1 + $0x630] ss:$8 sps:$4 sm:$0xff]  }
  0x70   : > { %863 = vmatpush1.bf16.msra.mxu1 %v3473_v3  ;;  %v3546_v3 = vld [vmem:[%s4719_s1 + $0x644] ss:$8 sps:$4 sm:$0xff]  }
  0x71   : > { %1851 = vmatpush1.bf16.msra.mxu0 %v3476_v4  ;;  %864 = vmatprep.subr.bf16.mxu1 %v3481_v5  ;;  %v3541_v4 = vld [vmem:[%s4719_s1 + $0x40] ss:$8 sps:$4 sm:$0xff]  }
  0x72   : > { %1852 = vmatprep.subr.bf16.mxu0 %v3484_v6  ;;  %v3544_v5 = vld [vmem:[%s4719_s1 + $0x640] ss:$8 sps:$4 sm:$0xff]   ;;  %v3549_v6 = vld [vmem:[%s4719_s1 + $0x54] ss:$8 sps:$4 sm:$0xff]  }
  0x74   : > { %865 = vmatpush1.bf16.msra.mxu1 %v3479_v7  ;;  %v3552_v7 = vld [vmem:[%s4719_s1 + $0x654] ss:$8 sps:$4 sm:$0xff]  }
  0x75   : > { %1853 = vmatpush1.bf16.msra.mxu0 %v3482_v8  ;;  %866 = vmatprep.subr.bf16.mxu1 %v3487_v9  ;;  %v3547_v8 = vld [vmem:[%s4719_s1 + $0x50] ss:$8 sps:$4 sm:$0xff]  }
  0x76   : > { %1854 = vmatprep.subr.bf16.mxu0 %v3490_v10  ;;  %v3550_v9 = vld [vmem:[%s4719_s1 + $0x650] ss:$8 sps:$4 sm:$0xff]   ;;  %v3555_v10 = vld [vmem:[%s4719_s1 + $0x64] ss:$8 sps:$4 sm:$0xff]  }
  0x78   : > { %867 = vmatpush1.bf16.msra.mxu1 %v3485_v11  ;;  %v3558_v11 = vld [vmem:[%s4719_s1 + $0x664] ss:$8 sps:$4 sm:$0xff]  }
  0x79   : > { %1855 = vmatpush1.bf16.msra.mxu0 %v3488_v12  ;;  %868 = vmatprep.subr.bf16.mxu1 %v3493_v13  ;;  %v3553_v12 = vld [vmem:[%s4719_s1 + $0x60] ss:$8 sps:$4 sm:$0xff]  }
  0x7a   : > { %1856 = vmatprep.subr.bf16.mxu0 %v3496_v14  ;;  %v3556_v13 = vld [vmem:[%s4719_s1 + $0x660] ss:$8 sps:$4 sm:$0xff]   ;;  %v3561_v14 = vld [vmem:[%s4719_s1 + $0x74] ss:$8 sps:$4 sm:$0xff]  }
  0x7c   : > { %869 = vmatpush1.bf16.msra.mxu1 %v3491_v15  ;;  %v3564_v15 = vld [vmem:[%s4719_s1 + $0x674] ss:$8 sps:$4 sm:$0xff]  }
  0x7d   : > { %1857 = vmatpush1.bf16.msra.mxu0 %v3494_v16  ;;  %870 = vmatprep.subr.bf16.mxu1 %v3500_v17  ;;  %v3559_v16 = vld [vmem:[%s4719_s1 + $0x70] ss:$8 sps:$4 sm:$0xff]  }
  0x7e   : > { %1858 = vmatprep.subr.bf16.mxu0 %v3504_v18  ;;  %v3562_v17 = vld [vmem:[%s4719_s1 + $0x670] ss:$8 sps:$4 sm:$0xff]   ;;  %v3567_v18 = vld [vmem:[%s4719_s1 + $0x84] ss:$8 sps:$4 sm:$0xff]  }
  0x80   : > { %871 = vmatpush1.bf16.msra.mxu1 %v3498_v19  ;;  %v3570_v19 = vld [vmem:[%s4719_s1 + $0x684] ss:$8 sps:$4 sm:$0xff]  }
  0x81   : > { %1859 = vmatpush1.bf16.msra.mxu0 %v3502_v20  ;;  %872 = vmatprep.subr.bf16.mxu1 %v3509_v21  ;;  %v3565_v20 = vld [vmem:[%s4719_s1 + $0x80] ss:$8 sps:$4 sm:$0xff]  }
  0x82   : > { %1860 = vmatprep.subr.bf16.mxu0 %v3512_v22  ;;  %v3568_v21 = vld [vmem:[%s4719_s1 + $0x680] ss:$8 sps:$4 sm:$0xff]   ;;  %v3573_v22 = vld [vmem:[%s4719_s1 + $0x94] ss:$8 sps:$4 sm:$0xff]  }
  0x84   : > { %873 = vmatpush1.bf16.msra.mxu1 %v3507_v23  ;;  %v3576_v23 = vld [vmem:[%s4719_s1 + $0x694] ss:$8 sps:$4 sm:$0xff]  }
  0x85   : > { %1861 = vmatpush1.bf16.msra.mxu0 %v3510_v24  ;;  %1237 = vmatprep.subr.bf16.mxu1 %v3516_v25  ;;  %v3571_v24 = vld [vmem:[%s4719_s1 + $0x90] ss:$8 sps:$4 sm:$0xff]  }
  0x86   : > { %2324 = vmatprep.subr.bf16.mxu0 %v3521_v26  ;;  %v3574_v25 = vld [vmem:[%s4719_s1 + $0x690] ss:$8 sps:$4 sm:$0xff]   ;;  %v3579_v26 = vld [vmem:[%s4719_s1 + $0xa4] ss:$8 sps:$4 sm:$0xff]  }
  0x87   : > { %875 = vmatmul.mubr.bf16.vlgmr.msra.gmra.mrb[0].mxu1 %v2789_v32  ;;  %v3585_v32 = vld [vmem:[%s4719_s1 + $0xb4] ss:$8 sps:$4 sm:$0xff]  }
  0x88   : > { %1863 = vmatmul.mubr.bf16.vlgmr.msra.gmra.mrb[0].mxu0 %v3005_v31  ;;  %1238 = vmatpush1.bf16.msra.mxu1 %v3514_v27  ;;  %v3582_v27 = vld [vmem:[%s4719_s1 + $0x6a4] ss:$8 sps:$4 sm:$0xff]   ;;  %v3580_v31 = vld [vmem:[%s4719_s1 + $0x6a0] ss:$8 sps:$4 sm:$0xff]  }
  0x89   : > { %2325 = vmatpush1.bf16.msra.mxu0 %v3519_v28  ;;  %1239 = vmatprep.subr.bf16.mxu1 %v3525_v34  ;;  %v3577_v28 = vld [vmem:[%s4719_s1 + $0xa0] ss:$8 sps:$4 sm:$0xff]   ;;  %v3583_v34 = vld [vmem:[%s4719_s1 + $0xb0] ss:$8 sps:$4 sm:$0xff]  }
  0x8a   : > { %2326 = vmatprep.subr.bf16.mxu0 %v3528_v37  ;;  %884 = vmatprep.mubr.bf16.mxu1 %v2794_v43  ;;  %v3586_v37 = vld [vmem:[%s4719_s1 + $0x6b0] ss:$8 sps:$4 sm:$0xff]   ;;  %v3591_v43 = vld [vmem:[%s4719_s1 + $0xc4] ss:$8 sps:$4 sm:$0xff]  }
  0x8b   : > { %1872 = vmatprep.mubr.bf16.mxu0 %v3010_v44  ;;  %v3594_v44 = vld [vmem:[%s4719_s1 + $0x6c4] ss:$8 sps:$4 sm:$0xff]  }
  0x8c   : > { %1240 = vmatpush1.bf16.msra.mxu1 %v3523_v47  ;;  %v3589_v47 = vld [vmem:[%s4719_s1 + $0xc0] ss:$8 sps:$4 sm:$0xff]  }
  0x8d   : > { %2327 = vmatpush1.bf16.msra.mxu0 %v3526_v50  ;;  %1241 = vmatprep.subr.bf16.mxu1 %v3531_v53  ;;  %v3592_v50 = vld [vmem:[%s4719_s1 + $0x6c0] ss:$8 sps:$4 sm:$0xff]   ;;  %v3597_v53 = vld [vmem:[%s4719_s1 + $0xd4] ss:$8 sps:$4 sm:$0xff]  }
  0x8e   : > { %2328 = vmatprep.subr.bf16.mxu0 %v3534_v55  ;;  %v3600_v55 = vld [vmem:[%s4719_s1 + $0x6d4] ss:$8 sps:$4 sm:$0xff]  }
  0x8f   : > { %885 = vmatmul.mubr.bf16.gmra.mrb[4].mxu1 %v2793_v57  ;;  %v3598_v57 = vld [vmem:[%s4719_s1 + $0x6d0] ss:$8 sps:$4 sm:$0xff]  }
  0x90   : > { %1873 = vmatmul.mubr.bf16.gmra.mrb[4].mxu0 %v3009_v58  ;;  %1242 = vmatpush1.bf16.msra.mxu1 %v3529_v56  ;;  %v3595_v56 = vld [vmem:[%s4719_s1 + $0xd0] ss:$8 sps:$4 sm:$0xff]   ;;  %v3604_v58 = vld [vmem:[%s4719_s1 + $0xe4] ss:$8 sps:$4 sm:$0xff]  }
  0x91   : > { %2329 = vmatpush1.bf16.msra.mxu0 %v3532_v60  ;;  %1243 = vmatprep.subr.bf16.mxu1 %v3537_v61  ;;  %v3608_v60 = vld [vmem:[%s4719_s1 + $0x6e4] ss:$8 sps:$4 sm:$0xff]   ;;  %v3602_v61 = vld [vmem:[%s4719_s1 + $0xe0] ss:$8 sps:$4 sm:$0xff]  }
  0x92   : > { %2330 = vmatprep.subr.bf16.mxu0 %v3540_v62  ;;  %1269 = vmatprep.mubr.bf16.mxu1 %v2860_v63  ;;  %v3606_v62 = vld [vmem:[%s4719_s1 + $0x6e0] ss:$8 sps:$4 sm:$0xff]   ;;  %v3613_v63 = vld [vmem:[%s4719_s1 + $0xf4] ss:$8 sps:$4 sm:$0xff]  }
  0x93   : > { %2356 = vmatprep.mubr.bf16.mxu0 %v3148_v0  ;;  %v3616_v0 = vld [vmem:[%s4719_s1 + $0x6f4] ss:$8 sps:$4 sm:$0xff]  }
  0x94   : > { %1244 = vmatpush1.bf16.msra.mxu1 %v3535_v1  ;;  %v3611_v1 = vld [vmem:[%s4719_s1 + $0xf0] ss:$8 sps:$4 sm:$0xff]  }
  0x95   : > { %2331 = vmatpush1.bf16.msra.mxu0 %v3538_v2  ;;  %1245 = vmatprep.subr.bf16.mxu1 %v3543_v48  ;;  %v3614_v2 = vld [vmem:[%s4719_s1 + $0x6f0] ss:$8 sps:$4 sm:$0xff]   ;;  %v3621_v48 = vld [vmem:[%s4719_s1 + $0x104] ss:$8 sps:$4 sm:$0xff]  }
  0x96   : > { %2332 = vmatprep.subr.bf16.mxu0 %v3546_v3  ;;  %v3626_v3 = vld [vmem:[%s4719_s1 + $0x704] ss:$8 sps:$4 sm:$0xff]  }
  0x98   : > { %1246 = vmatpush1.bf16.msra.mxu1 %v3541_v4  ;;  %v3729_v4 = vld [vmem:[%s3940_s22 + $0x10] sm:$0xff] }
  0x99   : > { %2333 = vmatpush1.bf16.msra.mxu0 %v3544_v5  ;;  %1247 = vmatprep.subr.bf16.mxu1 %v3549_v6  ;;  %v2859_v5 = vcombine.low %v4302_v59, %v3729_v4  ;;  %v3081_v6 = vld [vmem:[%s3940_s22 + $0x90] sm:$0xff] }
  0x9a   : > { %2334 = vmatprep.subr.bf16.mxu0 %v3552_v7  ;;  %v3619_v7 = vld [vmem:[%s4719_s1 + $0x100] ss:$8 sps:$4 sm:$0xff]   ;;  %v3632_v59 = vld [vmem:[%s4719_s1 + $0x714] ss:$8 sps:$4 sm:$0xff]   ;;  %v3690_v4 = vld [vmem:[%s4719_s1 + $0x7b0] ss:$8 sps:$4 sm:$0xff]  }
  0x9c   : > { %1248 = vmatpush1.bf16.msra.mxu1 %v3547_v8  ;;  %v3624_v8 = vld [vmem:[%s4719_s1 + $0x700] ss:$8 sps:$4 sm:$0xff]  }
  0x9d   : > { %2335 = vmatpush1.bf16.msra.mxu0 %v3550_v9  ;;  %1249 = vmatprep.subr.bf16.mxu1 %v3555_v10  ;;  %v3629_v9 = vld [vmem:[%s4719_s1 + $0x114] ss:$8 sps:$4 sm:$0xff]   ;;  %v3730_v10 = vld [vmem:[%s3940_s22 + $0x20] sm:$0xff] }
  0x9e   : > { %2336 = vmatprep.subr.bf16.mxu0 %v3558_v11  ;;  %v2864_v11 = vcombine.high %v3730_v10, %v4081_v30  ;;  %v2863_v35 = vcombine.low %v3730_v10, %v4081_v30  ;;  %v3641_v30 = vld [vmem:[%s4719_s1 + $0x134] ss:$8 sps:$4 sm:$0xff]   ;;  %v3699_v10 = vld [vmem:[%s4719_s1 + $0x1d0] ss:$8 sps:$4 sm:$0xff]  }
  0xa0   : > { %1250 = vmatpush1.bf16.msra.mxu1 %v3553_v12  ;;  %v3152_v12 = vcombine.high %v4095_v36, %v3081_v6 }
  0xa1   : > { %2337 = vmatpush1.bf16.msra.mxu0 %v3556_v13  ;;  %1251 = vmatprep.subr.bf16.mxu1 %v3561_v14  ;;  %v3627_v13 = vld [vmem:[%s4719_s1 + $0x110] ss:$8 sps:$4 sm:$0xff]  }
  0xa2   : > { %2338 = vmatprep.subr.bf16.mxu0 %v3564_v15  ;;  %v3630_v14 = vld [vmem:[%s4719_s1 + $0x710] ss:$8 sps:$4 sm:$0xff]   ;;  %v3635_v15 = vld [vmem:[%s4719_s1 + $0x124] ss:$8 sps:$4 sm:$0xff]  }
  0xa4   : > { %1252 = vmatpush1.bf16.msra.mxu1 %v3559_v16  ;;  %v4509_v16 = vld [vmem:[%s3940_s22 + $0x8] sm:$0xff] }
  0xa5   : > { %2339 = vmatpush1.bf16.msra.mxu0 %v3562_v17  ;;  %1253 = vmatprep.subr.bf16.mxu1 %v3567_v18  ;;  %v3633_v17 = vld [vmem:[%s4719_s1 + $0x120] ss:$8 sps:$4 sm:$0xff]  }
  0xa6   : > { %2340 = vmatprep.subr.bf16.mxu0 %v3570_v19  ;;  %v3636_v18 = vld [vmem:[%s4719_s1 + $0x720] ss:$8 sps:$4 sm:$0xff]   ;;  %v2862_v19 = vcombine.high %v4509_v16, %v4117_v45 }
  0xa8   : > { %1254 = vmatpush1.bf16.msra.mxu1 %v3565_v20  ;;  %v3639_v20 = vld [vmem:[%s4719_s1 + $0x130] ss:$8 sps:$4 sm:$0xff]  }
  0xa9   : > { %2341 = vmatpush1.bf16.msra.mxu0 %v3568_v21  ;;  %1255 = vmatprep.subr.bf16.mxu1 %v3573_v22  ;;  %v3642_v21 = vld [vmem:[%s4719_s1 + $0x730] ss:$8 sps:$4 sm:$0xff]   ;;  %v3647_v22 = vld [vmem:[%s4719_s1 + $0x144] ss:$8 sps:$4 sm:$0xff]  }
  0xaa   : > { %2342 = vmatprep.subr.bf16.mxu0 %v3576_v23  ;;  %v3650_v23 = vld [vmem:[%s4719_s1 + $0x744] ss:$8 sps:$4 sm:$0xff]  }
  0xac   : > { %1256 = vmatpush1.bf16.msra.mxu1 %v3571_v24  ;;  %v3645_v24 = vld [vmem:[%s4719_s1 + $0x140] ss:$8 sps:$4 sm:$0xff]  }
  0xad   : > { %2343 = vmatpush1.bf16.msra.mxu0 %v3574_v25  ;;  %1257 = vmatprep.subr.bf16.mxu1 %v3579_v26  ;;  %v3648_v25 = vld [vmem:[%s4719_s1 + $0x740] ss:$8 sps:$4 sm:$0xff]   ;;  %v3653_v26 = vld [vmem:[%s4719_s1 + $0x154] ss:$8 sps:$4 sm:$0xff]  }
  0xae   : > { %2344 = vmatprep.subr.bf16.mxu0 %v3582_v27  ;;  %v3651_v27 = vld [vmem:[%s4719_s1 + $0x150] ss:$8 sps:$4 sm:$0xff]  }
  0xb0   : > { %1258 = vmatpush1.bf16.msra.mxu1 %v3577_v28  ;;  %v3654_v28 = vld [vmem:[%s4719_s1 + $0x750] ss:$8 sps:$4 sm:$0xff]  }
  0xb1   : > { %2345 = vmatpush1.bf16.msra.mxu0 %v3580_v31  ;;  %1259 = vmatprep.subr.bf16.mxu1 %v3585_v32  ;;  %v3659_v31 = vld [vmem:[%s4719_s1 + $0x164] ss:$8 sps:$4 sm:$0xff]  }
  0xb2   : > { %2346 = vmatprep.subr.bf16.mxu0 %v3588_v33  ;;  %v3662_v32 = vld [vmem:[%s4719_s1 + $0x764] ss:$8 sps:$4 sm:$0xff]   ;;  %v3657_v33 = vld [vmem:[%s4719_s1 + $0x160] ss:$8 sps:$4 sm:$0xff]  }
  0xb4   : > { %1260 = vmatpush1.bf16.msra.mxu1 %v3583_v34  ;;  %v3660_v34 = vld [vmem:[%s4719_s1 + $0x760] ss:$8 sps:$4 sm:$0xff]  }
  0xb5   : > { %2347 = vmatpush1.bf16.msra.mxu0 %v3586_v37  ;;  %1261 = vmatprep.subr.bf16.mxu1 %v3591_v43  ;;  %v3665_v37 = vld [vmem:[%s4719_s1 + $0x174] ss:$8 sps:$4 sm:$0xff]  }
  0xb6   : > { %2348 = vmatprep.subr.bf16.mxu0 %v3594_v44  ;;  %v3668_v43 = vld [vmem:[%s4719_s1 + $0x774] ss:$8 sps:$4 sm:$0xff]   ;;  %v3663_v44 = vld [vmem:[%s4719_s1 + $0x170] ss:$8 sps:$4 sm:$0xff]  }
  0xb8   : > { %1262 = vmatpush1.bf16.msra.mxu1 %v3589_v47  ;;  %v3666_v47 = vld [vmem:[%s4719_s1 + $0x770] ss:$8 sps:$4 sm:$0xff]  }
  0xb9   : > { %2349 = vmatpush1.bf16.msra.mxu0 %v3592_v50  ;;  %1263 = vmatprep.subr.bf16.mxu1 %v3597_v53  ;;  %v3671_v50 = vld [vmem:[%s4719_s1 + $0x184] ss:$8 sps:$4 sm:$0xff]  }
  0xba   : > { %2350 = vmatprep.subr.bf16.mxu0 %v3600_v55  ;;  %v3674_v53 = vld [vmem:[%s4719_s1 + $0x784] ss:$8 sps:$4 sm:$0xff]   ;;  %v3669_v55 = vld [vmem:[%s4719_s1 + $0x180] ss:$8 sps:$4 sm:$0xff]  }
  0xbc   : > { %1264 = vmatpush1.bf16.msra.mxu1 %v3595_v56  ;;  %v3672_v56 = vld [vmem:[%s4719_s1 + $0x780] ss:$8 sps:$4 sm:$0xff]  }
  0xbd   : > { %2351 = vmatpush1.bf16.msra.mxu0 %v3598_v57  ;;  %1265 = vmatprep.subr.bf16.mxu1 %v3604_v58  ;;  %v3677_v57 = vld [vmem:[%s4719_s1 + $0x194] ss:$8 sps:$4 sm:$0xff]  }
  0xbe   : > { %2352 = vmatprep.subr.bf16.mxu0 %v3608_v60  ;;  %v3680_v58 = vld [vmem:[%s4719_s1 + $0x794] ss:$8 sps:$4 sm:$0xff]   ;;  %v3675_v60 = vld [vmem:[%s4719_s1 + $0x190] ss:$8 sps:$4 sm:$0xff]  }
  0xc0   : > { %1266 = vmatpush1.bf16.msra.mxu1 %v3602_v61  ;;  %v3678_v61 = vld [vmem:[%s4719_s1 + $0x790] ss:$8 sps:$4 sm:$0xff]  }
  0xc1   : > { %2353 = vmatpush1.bf16.msra.mxu0 %v3606_v62  ;;  %1267 = vmatprep.subr.bf16.mxu1 %v3613_v63  ;;  %v3683_v62 = vld [vmem:[%s4719_s1 + $0x1a4] ss:$8 sps:$4 sm:$0xff]  }
  0xc2   : > { %2354 = vmatprep.subr.bf16.mxu0 %v3616_v0  ;;  %v3686_v63 = vld [vmem:[%s4719_s1 + $0x7a4] ss:$8 sps:$4 sm:$0xff]   ;;  %v3681_v0 = vld [vmem:[%s4719_s1 + $0x1a0] ss:$8 sps:$4 sm:$0xff]  }
  0xc4   : > { %1268 = vmatpush1.bf16.msra.mxu1 %v3611_v1  ;;  %v3684_v1 = vld [vmem:[%s4719_s1 + $0x7a0] ss:$8 sps:$4 sm:$0xff]  }
  0xc5   : > { %2355 = vmatpush1.bf16.msra.mxu0 %v3614_v2  ;;  %1290 = vmatprep.subr.bf16.mxu1 %v3621_v48  ;;  %v3689_v2 = vld [vmem:[%s4719_s1 + $0x1b4] ss:$8 sps:$4 sm:$0xff]  }
  0xc6   : > { %2377 = vmatprep.subr.bf16.mxu0 %v3626_v3  ;;  %v3692_v48 = vld [vmem:[%s4719_s1 + $0x7b4] ss:$8 sps:$4 sm:$0xff]   ;;  %v3687_v3 = vld [vmem:[%s4719_s1 + $0x1b0] ss:$8 sps:$4 sm:$0xff]  }
  0xc7   : > { %1270 = vmatmul.mubr.bf16.vlgmr.msra.gmra.mrb[0].mxu1 %v2859_v5  ;;  %v3695_v5 = vld [vmem:[%s4719_s1 + $0x1c4] ss:$8 sps:$4 sm:$0xff]  }
  0xc8   : > { %2357 = vmatmul.mubr.bf16.vlgmr.msra.gmra.mrb[0].mxu0 %v3147_v41  ;;  %1291 = vmatpush1.bf16.msra.mxu1 %v3619_v7  ;;  %v3151_v41 = vcombine.low %v4095_v36, %v3081_v6  ;;  %v3644_v36 = vld [vmem:[%s4719_s1 + $0x734] ss:$8 sps:$4 sm:$0xff]   ;;  %v3698_v6 = vld [vmem:[%s4719_s1 + $0x7c4] ss:$8 sps:$4 sm:$0xff]   ;;  %v3693_v7 = vld [vmem:[%s4719_s1 + $0x1c0] ss:$8 sps:$4 sm:$0xff]  }
  0xc9   : > { %2378 = vmatpush1.bf16.msra.mxu0 %v3624_v8  ;;  %1292 = vmatprep.subr.bf16.mxu1 %v3629_v9  ;;  %v3696_v8 = vld [vmem:[%s4719_s1 + $0x7c0] ss:$8 sps:$4 sm:$0xff]   ;;  %v3701_v9 = vld [vmem:[%s4719_s1 + $0x1d4] ss:$8 sps:$4 sm:$0xff]  }
  0xca   : > { %2379 = vmatprep.subr.bf16.mxu0 %v3632_v59  ;;  %1279 = vmatprep.mubr.bf16.mxu1 %v2864_v11  ;;  %v3704_v59 = vld [vmem:[%s4719_s1 + $0x7d4] ss:$8 sps:$4 sm:$0xff]   ;;  %v3702_v11 = vld [vmem:[%s4719_s1 + $0x7d0] ss:$8 sps:$4 sm:$0xff]  }
  0xcb   : > { %2366 = vmatprep.mubr.bf16.mxu0 %v3152_v12  ;;  %v3710_v12 = vld [vmem:[%s4719_s1 + $0x1e4] ss:$8 sps:$4 sm:$0xff]  }
  0xcc   : > { %1293 = vmatpush1.bf16.msra.mxu1 %v3627_v13  ;;  %v3714_v13 = vld [vmem:[%s4719_s1 + $0x7e4] ss:$8 sps:$4 sm:$0xff]  }
  0xcd   : > { %2380 = vmatpush1.bf16.msra.mxu0 %v3630_v14  ;;  %1294 = vmatprep.subr.bf16.mxu1 %v3635_v15  ;;  %v3708_v14 = vld [vmem:[%s4719_s1 + $0x1e0] ss:$8 sps:$4 sm:$0xff]  }
  0xce   : > { %2381 = vmatprep.subr.bf16.mxu0 %v3638_v54  ;;  %v3712_v15 = vld [vmem:[%s4719_s1 + $0x7e0] ss:$8 sps:$4 sm:$0xff]   ;;  %v3717_v54 = vld [vmem:[%s4719_s1 + $0x1f4] ss:$8 sps:$4 sm:$0xff]  }
  0xcf   : > { %1280 = vmatmul.mubr.bf16.gmra.mrb[4].mxu1 %v2863_v35  ;;  %v3720_v35 = vld [vmem:[%s4719_s1 + $0x7f4] ss:$8 sps:$4 sm:$0xff]  }
  0xd0   : > { %2367 = vmatmul.mubr.bf16.gmra.mrb[4].mxu0 %v3151_v41  ;;  %1295 = vmatpush1.bf16.msra.mxu1 %v3633_v17  ;;  %v3715_v41 = vld [vmem:[%s4719_s1 + $0x1f0] ss:$8 sps:$4 sm:$0xff]  }
  0xd1   : > { %2382 = vmatpush1.bf16.msra.mxu0 %v3636_v18  ;;  %1296 = vmatprep.subr.bf16.mxu1 %v3641_v30  ;;  %v3718_v17 = vld [vmem:[%s4719_s1 + $0x7f0] ss:$8 sps:$4 sm:$0xff]   ;;  %v2861_v30 = vcombine.low %v4509_v16, %v4117_v45 }
  0xd2   : > { %2383 = vmatprep.subr.bf16.mxu0 %v3644_v36  ;;  %1322 = vmatprep.mubr.bf16.mxu1 %v2862_v19  ;;  %v3082_v18 = vld [vmem:[%s3940_s22 + $0x98] sm:$0xff]  ;;  %s3225_s22 = sshll.u32 %s4728_s15, 5 }
  0xd3   : > { %2409 = vmatprep.mubr.bf16.mxu0 %v3150_v42  ;;  %v3656_v42 = vld [vmem:[%s4719_s1 + $0x754] ss:$8 sps:$4 sm:$0xff]   ;;  %v3154_v36 = vcombine.high %v4270_v39, %v3082_v18  ;;  %v3153_v19 = vcombine.low %v4270_v39, %v3082_v18  ;;  %s4696_s29 = scalar_lea.vmem %s4720_s2, %s3225_s22 }
  0xd4   : > { %1297 = vmatpush1.bf16.msra.mxu1 %v3639_v20 }
  0xd5   : > { %2384 = vmatpush1.bf16.msra.mxu0 %v3642_v21  ;;  %1298 = vmatprep.subr.bf16.mxu1 %v3647_v22 }
  0xd6   : > { %2385 = vmatprep.subr.bf16.mxu0 %v3650_v23 }
  0xd8   : > { %1299 = vmatpush1.bf16.msra.mxu1 %v3645_v24 }
  0xd9   : > { %2386 = vmatpush1.bf16.msra.mxu0 %v3648_v25  ;;  %1300 = vmatprep.subr.bf16.mxu1 %v3653_v26 }
  0xda   : > { %2387 = vmatprep.subr.bf16.mxu0 %v3656_v42 }
  0xdc   : > { %1301 = vmatpush1.bf16.msra.mxu1 %v3651_v27 }
  0xdd   : > { %2388 = vmatpush1.bf16.msra.mxu0 %v3654_v28  ;;  %1302 = vmatprep.subr.bf16.mxu1 %v3659_v31 }
  0xde   : > { %2389 = vmatprep.subr.bf16.mxu0 %v3662_v32 }
  0xe0   : > { %1303 = vmatpush1.bf16.msra.mxu1 %v3657_v33 }
  0xe1   : > { %2390 = vmatpush1.bf16.msra.mxu0 %v3660_v34  ;;  %1304 = vmatprep.subr.bf16.mxu1 %v3665_v37 }
  0xe2   : > { %2391 = vmatprep.subr.bf16.mxu0 %v3668_v43 }
  0xe4   : > { %1305 = vmatpush1.bf16.msra.mxu1 %v3663_v44 }
  0xe5   : > { %2392 = vmatpush1.bf16.msra.mxu0 %v3666_v47  ;;  %1306 = vmatprep.subr.bf16.mxu1 %v3671_v50 }
  0xe6   : > { %2393 = vmatprep.subr.bf16.mxu0 %v3674_v53 }
  0xe8   : > { %1307 = vmatpush1.bf16.msra.mxu1 %v3669_v55 }
  0xe9   : > { %2394 = vmatpush1.bf16.msra.mxu0 %v3672_v56  ;;  %1308 = vmatprep.subr.bf16.mxu1 %v3677_v57 }
  0xea   : > { %2395 = vmatprep.subr.bf16.mxu0 %v3680_v58 }
  0xec   : > { %1309 = vmatpush1.bf16.msra.mxu1 %v3675_v60 }
  0xed   : > { %2396 = vmatpush1.bf16.msra.mxu0 %v3678_v61  ;;  %1310 = vmatprep.subr.bf16.mxu1 %v3683_v62 }
  0xee   : > { %2397 = vmatprep.subr.bf16.mxu0 %v3686_v63 }
  0xf0   : > { %1311 = vmatpush1.bf16.msra.mxu1 %v3681_v0 }
  0xf1   : > { %2398 = vmatpush1.bf16.msra.mxu0 %v3684_v1  ;;  %1312 = vmatprep.subr.bf16.mxu1 %v3689_v2 }
  0xf2   : > { %2399 = vmatprep.subr.bf16.mxu0 %v3692_v48 }
  0xf4   : > { %1313 = vmatpush1.bf16.msra.mxu1 %v3687_v3 }
  0xf5   : > { %2400 = vmatpush1.bf16.msra.mxu0 %v3690_v4  ;;  %1314 = vmatprep.subr.bf16.mxu1 %v3695_v5 }
  0xf6   : > { %2401 = vmatprep.subr.bf16.mxu0 %v3698_v6 }
  0xf8   : > { %1315 = vmatpush1.bf16.msra.mxu1 %v3693_v7 }
  0xf9   : > { %2402 = vmatpush1.bf16.msra.mxu0 %v3696_v8  ;;  %1316 = vmatprep.subr.bf16.mxu1 %v3701_v9 }
  0xfa   : > { %2403 = vmatprep.subr.bf16.mxu0 %v3704_v59 }
  0xfc   : > { %1317 = vmatpush1.bf16.msra.mxu1 %v3699_v10 }
  0xfd   : > { %2404 = vmatpush1.bf16.msra.mxu0 %v3702_v11  ;;  %1318 = vmatprep.subr.bf16.mxu1 %v3710_v12 }
  0xfe   : > { %2405 = vmatprep.subr.bf16.mxu0 %v3714_v13 }
 0x100   : > { %1319 = vmatpush1.bf16.msra.mxu1 %v3708_v14 }
 0x101   : > { %2406 = vmatpush1.bf16.msra.mxu0 %v3712_v15  ;;  %1320 = vmatprep.subr.bf16.mxu1 %v3717_v54 }
 0x102   : > { %2407 = vmatprep.subr.bf16.mxu0 %v3720_v35 }
 0x104   : > { %1321 = vmatpush1.bf16.msra.mxu1 %v3715_v41 }
 0x105   : > { %2408 = vmatpush1.bf16.msra.mxu0 %v3718_v17 }
 0x107   : > { %1323 = vmatmul.mubr.bf16.vlgmr.msra.gmra.mrb[0].mxu1 %v2861_v30 }
 0x108   : > { %2410 = vmatmul.mubr.bf16.vlgmr.msra.gmra.mrb[0].mxu0 %v3149_v40  ;;  %1332 = vmatprep.mubr.bf16.mxu1 %v2866_v49 }
 0x109   : > { %2419 = vmatprep.mubr.bf16.mxu0 %v3154_v36 }
 0x10f   : > { %1333 = vmatmul.mubr.bf16.gmra.mrb[4].mxu1 %v2865_v51 }
 0x110   : > { %2420 = vmatmul.mubr.bf16.gmra.mrb[4].mxu0 %v3153_v19 }
 0x1da   : > { %v1324_v45 = vpop.f32.mrb[0].mxu1 }
 0x1db   : > { %v2411_v16 = vpop.f32.mrb[0].mxu0  ;;  %v1326_v21 = vpop.f32.mrb[1].mxu1 }
 0x1dc   : > { %v3232_v20 = vadd.f32 %v2411_v16, %v1324_v45  ;;  %v2413_v22 = vpop.f32.mrb[1].mxu0  ;;  %v1328_v38 = vpop.f32.mrb[2].mxu1 }
 0x1dd   : > { %v3233_v52 = vadd.f32 %v2413_v22, %v1326_v21  ;;  %v2415_v40 = vpop.f32.mrb[2].mxu0  ;;  %v1330_v46 = vpop.f32.mrb[3].mxu1 }
 0x1de   : > { %v3234_v39 = vadd.f32 %v2415_v40, %v1328_v38  ;;  %v2417_v29 = vpop.f32.mrb[3].mxu0  ;;  %v2456_v23 = vmul.f32 %v3232_v20, %v3232_v20 }
 0x1df   : > { %v3228_v49 = vpack.c.bf16 %v3233_v52, %v3232_v20  ;;  %v3235_v51 = vadd.f32 %v2417_v29, %v1330_v46  ;;  %v2457_v26 = vmul.f32 %v3233_v52, %v3233_v52 }
 0x1e0   : > { %v2438_v24 = vadd.f32 %v3234_v39, %v3232_v20  ;;  %v2458_v25 = vmul.f32 %v3234_v39, %v3234_v39 }
 0x1e1   : > { %2510 = vst [vmem:[%s4696_s29] sm:$0xff] %v3228_v49  ;;  %v2447_v42 = vadd.f32 %v3235_v51, %v3233_v52  ;;  %v2459_v27 = vmul.f32 %v3235_v51, %v3235_v51  ;;  %v3229_v28 = vpack.c.bf16 %v3235_v51, %v3234_v39 }
 0x1e2   : > { %v2464_v31 = vadd.f32 %v2458_v25, %v2456_v23  ;;  %v1334_v33 = vpop.f32.mrb[4].mxu1 }
 0x1e3   : > { %v2473_v32 = vadd.f32 %v2459_v27, %v2457_v26  ;;  %2511 = vst [vmem:[%s4696_s29 + $0x8] sm:$0xff] %v3229_v28  ;;  %v2421_v34 = vpop.f32.mrb[4].mxu0  ;;  %v1336_v43 = vpop.f32.mrb[5].mxu1 }
 0x1e4   : > { %v3236_v37 = vadd.f32 %v2421_v34, %v1334_v33  ;;  %v2423_v44 = vpop.f32.mrb[5].mxu0  ;;  %v1338_v50 = vpop.f32.mrb[6].mxu1 }
 0x1e5   : > { %v3237_v47 = vadd.f32 %v2423_v44, %v1336_v43  ;;  %v2425_v53 = vpop.f32.mrb[6].mxu0  ;;  %v1340_v58 = vpop.f32.mrb[7].mxu1 }
 0x1e6   : > { %v2439_v55 = vadd.f32 %v3236_v37, %v2438_v24  ;;  %v2460_v56 = vmul.f32 %v3236_v37, %v3236_v37  ;;  %v3238_v57 = vadd.f32 %v2425_v53, %v1338_v50  ;;  %v2427_v60 = vpop.f32.mrb[7].mxu0 }
 0x1e7   : > { %v2448_v61 = vadd.f32 %v3237_v47, %v2447_v42  ;;  %v2461_v62 = vmul.f32 %v3237_v47, %v3237_v47  ;;  %v3230_v63 = vpack.c.bf16 %v3237_v47, %v3236_v37  ;;  %v3239_v0 = vadd.f32 %v2427_v60, %v1340_v58 }
 0x1e8   : > { %v2465_v1 = vadd.f32 %v2464_v31, %v2460_v56  ;;  %v2440_v2 = vadd.f32 %v3238_v57, %v2439_v55  ;;  %v2462_v48 = vmul.f32 %v3238_v57, %v3238_v57 }
 0x1e9   : > { %v2474_v3 = vadd.f32 %v2473_v32, %v2461_v62  ;;  %2512 = vst [vmem:[%s4696_s29 + $0x10] sm:$0xff] %v3230_v63  ;;  %v2449_v4 = vadd.f32 %v3239_v0, %v2448_v61  ;;  %v2463_v5 = vmul.f32 %v3239_v0, %v3239_v0  ;;  %v3231_v6 = vpack.c.bf16 %v3239_v0, %v3238_v57 }
 0x1ea   : > { %v2441_v7 = vrot.slane %v2440_v2, 4  ;;  %v2466_v8 = vadd.f32 %v2465_v1, %v2462_v48 }
 0x1eb   : > { %v2450_v9 = vrot.slane %v2449_v4, 4  ;;  %v2475_v59 = vadd.f32 %v2474_v3, %v2463_v5  ;;  %2513 = vst [vmem:[%s4696_s29 + $0x18] sm:$0xff] %v3231_v6 }
 0x1ec   : > { %v2442_v10 = vadd.f32 %v2441_v7, %v2440_v2  ;;  %v2467_v11 = vrot.slane %v2466_v8, 4 }
 0x1ed   : > { %v2451_v12 = vadd.f32 %v2450_v9, %v2449_v4  ;;  %v2476_v13 = vrot.slane %v2475_v59, 4 }
 0x1ee   : > { %v2443_v14 = vrot.slane %v2442_v10, 2  ;;  %v2468_v15 = vadd.f32 %v2467_v11, %v2466_v8 }
 0x1ef   : > { %v2452_v54 = vrot.slane %v2451_v12, 2  ;;  %v2477_v35 = vadd.f32 %v2476_v13, %v2475_v59 }
 0x1f0   : > { %v2444_v41 = vadd.f32 %v2443_v14, %v2442_v10  ;;  %v2469_v17 = vrot.slane %v2468_v15, 2 }
 0x1f1   : > { %v2453_v18 = vadd.f32 %v2452_v54, %v2451_v12  ;;  %v2478_v30 = vrot.slane %v2477_v35, 2 }
 0x1f2   : > { %v2445_v36 = vrot.slane %v2444_v41, 1  ;;  %v2470_v19 = vadd.f32 %v2469_v17, %v2468_v15 }
 0x1f3   : > { %v2454_v45 = vrot.slane %v2453_v18, 1  ;;  %v2479_v16 = vadd.f32 %v2478_v30, %v2477_v35 }
 0x1f4   : > { %v2446_v20 = vadd.f32 %v2445_v36, %v2444_v41  ;;  %v2471_v21 = vrot.slane %v2470_v19, 1 }
 0x1f5   : > { %v2455_v22 = vadd.f32 %v2454_v45, %v2453_v18  ;;  %v2480_v52 = vrot.slane %v2479_v16, 1 }
 0x1f6   : > { %v2472_v38 = vadd.f32 %v2471_v21, %v2470_v19  ;;  %2482 = vst [vmem:[%s278_s7] sm:$0xff] %v2446_v20 }
 0x1f7   : > { %v2481_v40 = vadd.f32 %v2480_v52, %v2479_v16  ;;  %2483 = vst [vmem:[%s278_s7 + $0x8] sm:$0xff] %v2455_v22 }
 0x1f8   : > { %2484 = vst [vmem:[%s288_s10] sm:$0xff] %v2472_v38 }
 0x1f9   : > { %2485 = vst [vmem:[%s288_s10 + $0x8] sm:$0xff] %v2481_v40 }
 0x1fa PF: > { %s15_s17 = sadd.s32 1, %s3753_s17   ;;  %s4723_s15 = smov %s3749_s16 }
 0x1fb   : > { %p12_p5 = scmp.ge.s32.totalorder %s15_s17, 4   ;;  %s4724_s16 = smov %s4726_s18 }
 0x1fd   :  { %14 = sbr.rel (!%p12_p5) target bundleno = 2 (0x2), region = 89 }

// kernel: discriminator_forward.8
= control target key start
LH: loop header
LB: loop body
LE: loop exit
PB: predicated region body
PF: predicated region fallthrough
CT: control target
= control target key end

     0   :  { %s11026_s15 = smov 0   ;;  %s11028_s16 = smov 0   ;;  %s12888_s0 = inlined_call_operand.vmem [shape: bf16[2,1,48,1024], index: 0, kind: input, shape index: {}]   ;;  %s12889_s1 = inlined_call_operand.vmem [shape: bf16[4,1024,512], index: 1, kind: input, shape index: {}]   ;;  %s12890_s2 = inlined_call_operand.vmem [shape: bf16[2,24,512], index: 2, kind: output, shape index: {0}]   ;;  %s12891_s3 = inlined_call_operand.vmem [shape: f32[2,8,512], index: 3, kind: output, shape index: {1}]   ;;  %s12892_s4 = inlined_call_operand.vmem [shape: f32[2,8,512], index: 4, kind: output, shape index: {2}]  }
   0x1   :  { %s11030_s17 = smov 0   ;;  %s11032_s18 = smov 0  }
   0x2   :  { %s11034_s19 = smov 0   ;;  %s11036_s20 = smov 0  }
   0x3   :  { %s11038_s21 = smov 0   ;;  %s11040_s22 = smov 0  }
   0x4   :  { %s11042_s23 = smov 0  }
   0x5 LB: > { %s24_s24 = sadd.s32 1, %s10991_s21  ;;  %s27_s25 = sadd.s32 1, %s10995_s22  ;;  %s10999_s23 = sphi %s11042_s23, %s15_s23   ;;  %s10995_s22 = sphi %s11040_s22, %s12902_s22   ;;  %s10991_s21 = sphi %s11038_s21, %s12901_s21   ;;  %s10987_s20 = sphi %s11036_s20, %s12900_s20   ;;  %s10983_s19 = sphi %s11034_s19, %s12899_s19   ;;  %s10979_s18 = sphi %s11032_s18, %s12898_s18   ;;  %s10975_s17 = sphi %s11030_s17, %s12897_s17   ;;  %s10971_s16 = sphi %s11028_s16, %s12896_s16   ;;  %s10967_s15 = sphi %s11026_s15, %s12895_s15  }
   0x6   : > { %p25_p0 = scmp.ge.s32.totalorder %s24_s24, 2  ;;  %p67_p1 = scmp.ne.s32.totalorder %s10979_s18, %s10975_s17 }
   0x7   : > { %s8941_s26 = sadd.s32 4294967295, %s10999_s23   ;;  %p68_p2 = scmp.eq.s32.totalorder %s10999_s23, 0 }
   0x8   : > { %s12904_s24 = smov (%p25_p0, %s24_s24), 0  ;;  %s12906_s25 = smov (!%p25_p0, %s27_s25), %s10995_s22 }
   0x9   : > { %p29_p3 = scmp.ge.s32.totalorder %s12906_s25, 2  ;;  %s83_s27 = ssub.s32 %s10991_s21, %s12904_s24 }
   0xa   : > { %p11082_p4 = por %p68_p2, %p67_p1  ;;  %p98_p5 = scmp.ne.s32.totalorder %s10971_s16, %s10967_s15 }
   0xb   : > { %s12908_s25 = smov (%p29_p3, %s12906_s25), 0  ;;  %s60_s29 = sadd.s32 1, %s10979_s18 }
   0xc   : > { %p99_p6 = scmp.eq.s32.totalorder %s8941_s26, 3  ;;  %s57_s30 = ssub.s32 %s10995_s22, %s12908_s25 }
   0xd   : > { %s88_s5 = sadd.s32 1, %s10971_s16  ;;  %p58_p7 = scmp.eq.s32.totalorder %s57_s30, 0 }
   0xe   : > { %s85_s6 = sor.u32 %s83_s27, %s57_s30  ;;  %p11094_p9 = por %p99_p6, %p98_p5 }
   0xf   : > { %p86_p8 = scmp.eq.s32.totalorder %s85_s6, 0  ;;  %p8944_p10 = scmp.ge.s32.totalorder %s10999_s23, 4 }
  0x10   : > { %s11099_s8 = scalar_select %p58_p7, %s10979_s18, %s60_s29  }
  0x11   : > { %s11102_s9 = scalar_select %p86_p8, %s10971_s16, %s88_s5  }
  0x12   : > { %177 = sbr.rel (%p8944_p10) target bundleno = 285 (0x11d), region = 16 }
  0x19   : > { %188 = sbr.rel (!%p11082_p4) target bundleno = 285 (0x11d), region = 24  ;;  %s190_s10 = sand.u32 (%p11082_p4), 1, %s10979_s18  }
  0x1a   : > { %s9924_s11 = sshll.u32 (%p11082_p4), %s10995_s22, 3  ;;  %s8945_s12 = sshll.u32 (%p11082_p4), %s190_s10, 12 }
  0x1b   : > { %s11112_s26 = scalar_lea.vmem (%p11082_p4), %s12889_s1, %s9924_s11  ;;  %s11117_s27 = scalar_lea.vmem (%p11082_p4), [#allocation2], %s8945_s12 }
  0x1c   : > { %v1248_v0 = vld [vmem:[%s11112_s26] sm:$0xff] (%p11082_p4)  ;;  %v1250_v1 = vld [vmem:[%s11112_s26 + $0x10] sm:$0xff] (%p11082_p4) }
  0x1d   : > { %v1252_v2 = vld [vmem:[%s11112_s26 + $0x20] sm:$0xff] (%p11082_p4)  ;;  %1249 = vst [vmem:[%s11117_s27] sm:$0xff] (%p11082_p4), %v1248_v0  ;;  %1251 = vst [vmem:[%s11117_s27 + $0x8] sm:$0xff] (%p11082_p4), %v1250_v1  ;;  %v1254_v3 = vld [vmem:[%s11112_s26 + $0x30] sm:$0xff] (%p11082_p4) }
  0x1e   : > { %1253 = vst [vmem:[%s11117_s27 + $0x10] sm:$0xff] (%p11082_p4), %v1252_v2  ;;  %v1256_v4 = vld [vmem:[%s11112_s26 + $0x40] sm:$0xff] (%p11082_p4)  ;;  %v1258_v5 = vld [vmem:[%s11112_s26 + $0x50] sm:$0xff] (%p11082_p4)  ;;  %1255 = vst [vmem:[%s11117_s27 + $0x18] sm:$0xff] (%p11082_p4), %v1254_v3 }
  0x1f   : > { %1257 = vst [vmem:[%s11117_s27 + $0x20] sm:$0xff] (%p11082_p4), %v1256_v4  ;;  %1259 = vst [vmem:[%s11117_s27 + $0x28] sm:$0xff] (%p11082_p4), %v1258_v5  ;;  %v1260_v6 = vld [vmem:[%s11112_s26 + $0x60] sm:$0xff] (%p11082_p4)  ;;  %v1262_v7 = vld [vmem:[%s11112_s26 + $0x70] sm:$0xff] (%p11082_p4) }
  0x20   : > { %v1264_v8 = vld [vmem:[%s11112_s26 + $0x80] sm:$0xff]  ;;  %1261 = vst [vmem:[%s11117_s27 + $0x30] sm:$0xff] %v1260_v6  ;;  %1263 = vst [vmem:[%s11117_s27 + $0x38] sm:$0xff] %v1262_v7  ;;  %v1266_v9 = vld [vmem:[%s11112_s26 + $0x90] sm:$0xff] }
  0x21   : > { %1265 = vst [vmem:[%s11117_s27 + $0x40] sm:$0xff] %v1264_v8  ;;  %v1268_v10 = vld [vmem:[%s11112_s26 + $0xa0] sm:$0xff]  ;;  %v1270_v11 = vld [vmem:[%s11112_s26 + $0xb0] sm:$0xff]  ;;  %1267 = vst [vmem:[%s11117_s27 + $0x48] sm:$0xff] %v1266_v9 }
  0x22   : > { %1269 = vst [vmem:[%s11117_s27 + $0x50] sm:$0xff] %v1268_v10  ;;  %1271 = vst [vmem:[%s11117_s27 + $0x58] sm:$0xff] %v1270_v11  ;;  %v1272_v12 = vld [vmem:[%s11112_s26 + $0xc0] sm:$0xff]  ;;  %v1274_v13 = vld [vmem:[%s11112_s26 + $0xd0] sm:$0xff] }
  0x23   : > { %v1276_v14 = vld [vmem:[%s11112_s26 + $0xe0] sm:$0xff]  ;;  %1273 = vst [vmem:[%s11117_s27 + $0x60] sm:$0xff] %v1272_v12  ;;  %1275 = vst [vmem:[%s11117_s27 + $0x68] sm:$0xff] %v1274_v13  ;;  %v1278_v15 = vld [vmem:[%s11112_s26 + $0xf0] sm:$0xff] }
  0x24   : > { %1277 = vst [vmem:[%s11117_s27 + $0x70] sm:$0xff] %v1276_v14  ;;  %v1280_v16 = vld [vmem:[%s11112_s26 + $0x100] sm:$0xff]  ;;  %v1282_v17 = vld [vmem:[%s11112_s26 + $0x110] sm:$0xff]  ;;  %1279 = vst [vmem:[%s11117_s27 + $0x78] sm:$0xff] %v1278_v15 }
  0x25   : > { %1281 = vst [vmem:[%s11117_s27 + $0x80] sm:$0xff] %v1280_v16  ;;  %1283 = vst [vmem:[%s11117_s27 + $0x88] sm:$0xff] %v1282_v17  ;;  %v1284_v18 = vld [vmem:[%s11112_s26 + $0x120] sm:$0xff]  ;;  %v1286_v19 = vld [vmem:[%s11112_s26 + $0x130] sm:$0xff] }
  0x26   : > { %v1288_v20 = vld [vmem:[%s11112_s26 + $0x140] sm:$0xff]  ;;  %1285 = vst [vmem:[%s11117_s27 + $0x90] sm:$0xff] %v1284_v18  ;;  %1287 = vst [vmem:[%s11117_s27 + $0x98] sm:$0xff] %v1286_v19  ;;  %v1290_v21 = vld [vmem:[%s11112_s26 + $0x150] sm:$0xff] }
  0x27   : > { %1289 = vst [vmem:[%s11117_s27 + $0xa0] sm:$0xff] %v1288_v20  ;;  %v1292_v22 = vld [vmem:[%s11112_s26 + $0x160] sm:$0xff]  ;;  %v1294_v23 = vld [vmem:[%s11112_s26 + $0x170] sm:$0xff]  ;;  %1291 = vst [vmem:[%s11117_s27 + $0xa8] sm:$0xff] %v1290_v21 }
  0x28   : > { %1293 = vst [vmem:[%s11117_s27 + $0xb0] sm:$0xff] %v1292_v22  ;;  %1295 = vst [vmem:[%s11117_s27 + $0xb8] sm:$0xff] %v1294_v23  ;;  %v1296_v24 = vld [vmem:[%s11112_s26 + $0x180] sm:$0xff]  ;;  %v1298_v25 = vld [vmem:[%s11112_s26 + $0x190] sm:$0xff] }
  0x29   : > { %v1300_v26 = vld [vmem:[%s11112_s26 + $0x1a0] sm:$0xff]  ;;  %1297 = vst [vmem:[%s11117_s27 + $0xc0] sm:$0xff] %v1296_v24  ;;  %1299 = vst [vmem:[%s11117_s27 + $0xc8] sm:$0xff] %v1298_v25  ;;  %v1302_v27 = vld [vmem:[%s11112_s26 + $0x1b0] sm:$0xff] }
  0x2a   : > { %1301 = vst [vmem:[%s11117_s27 + $0xd0] sm:$0xff] %v1300_v26  ;;  %v1304_v28 = vld [vmem:[%s11112_s26 + $0x1c0] sm:$0xff]  ;;  %v1306_v29 = vld [vmem:[%s11112_s26 + $0x1d0] sm:$0xff]  ;;  %1303 = vst [vmem:[%s11117_s27 + $0xd8] sm:$0xff] %v1302_v27 }
  0x2b   : > { %1305 = vst [vmem:[%s11117_s27 + $0xe0] sm:$0xff] %v1304_v28  ;;  %1307 = vst [vmem:[%s11117_s27 + $0xe8] sm:$0xff] %v1306_v29  ;;  %v1308_v30 = vld [vmem:[%s11112_s26 + $0x1e0] sm:$0xff]  ;;  %v1310_v31 = vld [vmem:[%s11112_s26 + $0x1f0] sm:$0xff] }
  0x2c   : > { %v1312_v32 = vld [vmem:[%s11112_s26 + $0x200] sm:$0xff]  ;;  %1309 = vst [vmem:[%s11117_s27 + $0xf0] sm:$0xff] %v1308_v30  ;;  %1311 = vst [vmem:[%s11117_s27 + $0xf8] sm:$0xff] %v1310_v31  ;;  %v1314_v33 = vld [vmem:[%s11112_s26 + $0x210] sm:$0xff] }
  0x2d   : > { %1313 = vst [vmem:[%s11117_s27 + $0x100] sm:$0xff] %v1312_v32  ;;  %v1316_v34 = vld [vmem:[%s11112_s26 + $0x220] sm:$0xff]  ;;  %v1318_v35 = vld [vmem:[%s11112_s26 + $0x230] sm:$0xff]  ;;  %1315 = vst [vmem:[%s11117_s27 + $0x108] sm:$0xff] %v1314_v33 }
  0x2e   : > { %1317 = vst [vmem:[%s11117_s27 + $0x110] sm:$0xff] %v1316_v34  ;;  %1319 = vst [vmem:[%s11117_s27 + $0x118] sm:$0xff] %v1318_v35  ;;  %v1320_v36 = vld [vmem:[%s11112_s26 + $0x240] sm:$0xff]  ;;  %v1322_v37 = vld [vmem:[%s11112_s26 + $0x250] sm:$0xff] }
  0x2f   : > { %v1324_v38 = vld [vmem:[%s11112_s26 + $0x260] sm:$0xff]  ;;  %1321 = vst [vmem:[%s11117_s27 + $0x120] sm:$0xff] %v1320_v36  ;;  %1323 = vst [vmem:[%s11117_s27 + $0x128] sm:$0xff] %v1322_v37  ;;  %v1326_v39 = vld [vmem:[%s11112_s26 + $0x270] sm:$0xff] }
  0x30   : > { %1325 = vst [vmem:[%s11117_s27 + $0x130] sm:$0xff] %v1324_v38  ;;  %v1328_v40 = vld [vmem:[%s11112_s26 + $0x280] sm:$0xff]  ;;  %v1330_v41 = vld [vmem:[%s11112_s26 + $0x290] sm:$0xff]  ;;  %1327 = vst [vmem:[%s11117_s27 + $0x138] sm:$0xff] %v1326_v39 }
  0x31   : > { %1329 = vst [vmem:[%s11117_s27 + $0x140] sm:$0xff] %v1328_v40  ;;  %1331 = vst [vmem:[%s11117_s27 + $0x148] sm:$0xff] %v1330_v41  ;;  %v1332_v42 = vld [vmem:[%s11112_s26 + $0x2a0] sm:$0xff]  ;;  %v1334_v43 = vld [vmem:[%s11112_s26 + $0x2b0] sm:$0xff] }
  0x32   : > { %v1336_v44 = vld [vmem:[%s11112_s26 + $0x2c0] sm:$0xff]  ;;  %1333 = vst [vmem:[%s11117_s27 + $0x150] sm:$0xff] %v1332_v42  ;;  %1335 = vst [vmem:[%s11117_s27 + $0x158] sm:$0xff] %v1334_v43  ;;  %v1338_v45 = vld [vmem:[%s11112_s26 + $0x2d0] sm:$0xff] }
  0x33   : > { %1337 = vst [vmem:[%s11117_s27 + $0x160] sm:$0xff] %v1336_v44  ;;  %v1340_v46 = vld [vmem:[%s11112_s26 + $0x2e0] sm:$0xff]  ;;  %v1342_v47 = vld [vmem:[%s11112_s26 + $0x2f0] sm:$0xff]  ;;  %1339 = vst [vmem:[%s11117_s27 + $0x168] sm:$0xff] %v1338_v45 }
  0x34   : > { %1341 = vst [vmem:[%s11117_s27 + $0x170] sm:$0xff] %v1340_v46  ;;  %1343 = vst [vmem:[%s11117_s27 + $0x178] sm:$0xff] %v1342_v47  ;;  %v1344_v48 = vld [vmem:[%s11112_s26 + $0x300] sm:$0xff]  ;;  %v1346_v49 = vld [vmem:[%s11112_s26 + $0x310] sm:$0xff] }
  0x35   : > { %v1348_v50 = vld [vmem:[%s11112_s26 + $0x320] sm:$0xff]  ;;  %1345 = vst [vmem:[%s11117_s27 + $0x180] sm:$0xff] %v1344_v48  ;;  %1347 = vst [vmem:[%s11117_s27 + $0x188] sm:$0xff] %v1346_v49  ;;  %v1350_v51 = vld [vmem:[%s11112_s26 + $0x330] sm:$0xff] }
  0x36   : > { %1349 = vst [vmem:[%s11117_s27 + $0x190] sm:$0xff] %v1348_v50  ;;  %v1352_v52 = vld [vmem:[%s11112_s26 + $0x340] sm:$0xff]  ;;  %v1354_v53 = vld [vmem:[%s11112_s26 + $0x350] sm:$0xff]  ;;  %1351 = vst [vmem:[%s11117_s27 + $0x198] sm:$0xff] %v1350_v51 }
  0x37   : > { %1353 = vst [vmem:[%s11117_s27 + $0x1a0] sm:$0xff] %v1352_v52  ;;  %1355 = vst [vmem:[%s11117_s27 + $0x1a8] sm:$0xff] %v1354_v53  ;;  %v1356_v54 = vld [vmem:[%s11112_s26 + $0x360] sm:$0xff]  ;;  %v1358_v55 = vld [vmem:[%s11112_s26 + $0x370] sm:$0xff] }
  0x38   : > { %v1360_v56 = vld [vmem:[%s11112_s26 + $0x380] sm:$0xff]  ;;  %1357 = vst [vmem:[%s11117_s27 + $0x1b0] sm:$0xff] %v1356_v54  ;;  %1359 = vst [vmem:[%s11117_s27 + $0x1b8] sm:$0xff] %v1358_v55  ;;  %v1362_v57 = vld [vmem:[%s11112_s26 + $0x390] sm:$0xff] }
  0x39   : > { %1361 = vst [vmem:[%s11117_s27 + $0x1c0] sm:$0xff] %v1360_v56  ;;  %v1364_v58 = vld [vmem:[%s11112_s26 + $0x3a0] sm:$0xff]  ;;  %v1366_v59 = vld [vmem:[%s11112_s26 + $0x3b0] sm:$0xff]  ;;  %1363 = vst [vmem:[%s11117_s27 + $0x1c8] sm:$0xff] %v1362_v57 }
  0x3a   : > { %1365 = vst [vmem:[%s11117_s27 + $0x1d0] sm:$0xff] %v1364_v58  ;;  %1367 = vst [vmem:[%s11117_s27 + $0x1d8] sm:$0xff] %v1366_v59  ;;  %v1368_v60 = vld [vmem:[%s11112_s26 + $0x3c0] sm:$0xff]  ;;  %v1370_v61 = vld [vmem:[%s11112_s26 + $0x3d0] sm:$0xff] }
  0x3b   : > { %v1372_v62 = vld [vmem:[%s11112_s26 + $0x3e0] sm:$0xff]  ;;  %1369 = vst [vmem:[%s11117_s27 + $0x1e0] sm:$0xff] %v1368_v60  ;;  %1371 = vst [vmem:[%s11117_s27 + $0x1e8] sm:$0xff] %v1370_v61  ;;  %v1374_v63 = vld [vmem:[%s11112_s26 + $0x3f0] sm:$0xff] }
  0x3c   : > { %1373 = vst [vmem:[%s11117_s27 + $0x1f0] sm:$0xff] %v1372_v62  ;;  %v1376_v0 = vld [vmem:[%s11112_s26 + $0x400] sm:$0xff]  ;;  %v1378_v1 = vld [vmem:[%s11112_s26 + $0x410] sm:$0xff]  ;;  %1375 = vst [vmem:[%s11117_s27 + $0x1f8] sm:$0xff] %v1374_v63 }
  0x3d   : > { %1377 = vst [vmem:[%s11117_s27 + $0x200] sm:$0xff] %v1376_v0  ;;  %1379 = vst [vmem:[%s11117_s27 + $0x208] sm:$0xff] %v1378_v1  ;;  %v1380_v2 = vld [vmem:[%s11112_s26 + $0x420] sm:$0xff]  ;;  %v1382_v3 = vld [vmem:[%s11112_s26 + $0x430] sm:$0xff] }
  0x3e   : > { %v1384_v4 = vld [vmem:[%s11112_s26 + $0x440] sm:$0xff]  ;;  %1381 = vst [vmem:[%s11117_s27 + $0x210] sm:$0xff] %v1380_v2  ;;  %1383 = vst [vmem:[%s11117_s27 + $0x218] sm:$0xff] %v1382_v3  ;;  %v1386_v5 = vld [vmem:[%s11112_s26 + $0x450] sm:$0xff] }
  0x3f   : > { %1385 = vst [vmem:[%s11117_s27 + $0x220] sm:$0xff] %v1384_v4  ;;  %v1388_v6 = vld [vmem:[%s11112_s26 + $0x460] sm:$0xff]  ;;  %v1390_v7 = vld [vmem:[%s11112_s26 + $0x470] sm:$0xff]  ;;  %1387 = vst [vmem:[%s11117_s27 + $0x228] sm:$0xff] %v1386_v5 }
  0x40   : > { %1389 = vst [vmem:[%s11117_s27 + $0x230] sm:$0xff] %v1388_v6  ;;  %1391 = vst [vmem:[%s11117_s27 + $0x238] sm:$0xff] %v1390_v7  ;;  %v1392_v8 = vld [vmem:[%s11112_s26 + $0x480] sm:$0xff]  ;;  %v1394_v9 = vld [vmem:[%s11112_s26 + $0x490] sm:$0xff] }
  0x41   : > { %v1396_v10 = vld [vmem:[%s11112_s26 + $0x4a0] sm:$0xff]  ;;  %1393 = vst [vmem:[%s11117_s27 + $0x240] sm:$0xff] %v1392_v8  ;;  %1395 = vst [vmem:[%s11117_s27 + $0x248] sm:$0xff] %v1394_v9  ;;  %v1398_v11 = vld [vmem:[%s11112_s26 + $0x4b0] sm:$0xff] }
  0x42   : > { %1397 = vst [vmem:[%s11117_s27 + $0x250] sm:$0xff] %v1396_v10  ;;  %v1400_v12 = vld [vmem:[%s11112_s26 + $0x4c0] sm:$0xff]  ;;  %v1402_v13 = vld [vmem:[%s11112_s26 + $0x4d0] sm:$0xff]  ;;  %1399 = vst [vmem:[%s11117_s27 + $0x258] sm:$0xff] %v1398_v11 }
  0x43   : > { %1401 = vst [vmem:[%s11117_s27 + $0x260] sm:$0xff] %v1400_v12  ;;  %1403 = vst [vmem:[%s11117_s27 + $0x268] sm:$0xff] %v1402_v13  ;;  %v1404_v14 = vld [vmem:[%s11112_s26 + $0x4e0] sm:$0xff]  ;;  %v1406_v15 = vld [vmem:[%s11112_s26 + $0x4f0] sm:$0xff] }
  0x44   : > { %v1408_v16 = vld [vmem:[%s11112_s26 + $0x500] sm:$0xff]  ;;  %1405 = vst [vmem:[%s11117_s27 + $0x270] sm:$0xff] %v1404_v14  ;;  %1407 = vst [vmem:[%s11117_s27 + $0x278] sm:$0xff] %v1406_v15  ;;  %v1410_v17 = vld [vmem:[%s11112_s26 + $0x510] sm:$0xff] }
  0x45   : > { %1409 = vst [vmem:[%s11117_s27 + $0x280] sm:$0xff] %v1408_v16  ;;  %v1412_v18 = vld [vmem:[%s11112_s26 + $0x520] sm:$0xff]  ;;  %v1414_v19 = vld [vmem:[%s11112_s26 + $0x530] sm:$0xff]  ;;  %1411 = vst [vmem:[%s11117_s27 + $0x288] sm:$0xff] %v1410_v17 }
  0x46   : > { %1413 = vst [vmem:[%s11117_s27 + $0x290] sm:$0xff] %v1412_v18  ;;  %1415 = vst [vmem:[%s11117_s27 + $0x298] sm:$0xff] %v1414_v19  ;;  %v1416_v20 = vld [vmem:[%s11112_s26 + $0x540] sm:$0xff]  ;;  %v1418_v21 = vld [vmem:[%s11112_s26 + $0x550] sm:$0xff] }
  0x47   : > { %v1420_v22 = vld [vmem:[%s11112_s26 + $0x560] sm:$0xff]  ;;  %1417 = vst [vmem:[%s11117_s27 + $0x2a0] sm:$0xff] %v1416_v20  ;;  %1419 = vst [vmem:[%s11117_s27 + $0x2a8] sm:$0xff] %v1418_v21  ;;  %v1422_v23 = vld [vmem:[%s11112_s26 + $0x570] sm:$0xff] }
  0x48   : > { %1421 = vst [vmem:[%s11117_s27 + $0x2b0] sm:$0xff] %v1420_v22  ;;  %v1424_v24 = vld [vmem:[%s11112_s26 + $0x580] sm:$0xff]  ;;  %v1426_v25 = vld [vmem:[%s11112_s26 + $0x590] sm:$0xff]  ;;  %1423 = vst [vmem:[%s11117_s27 + $0x2b8] sm:$0xff] %v1422_v23 }
  0x49   : > { %1425 = vst [vmem:[%s11117_s27 + $0x2c0] sm:$0xff] %v1424_v24  ;;  %1427 = vst [vmem:[%s11117_s27 + $0x2c8] sm:$0xff] %v1426_v25  ;;  %v1428_v26 = vld [vmem:[%s11112_s26 + $0x5a0] sm:$0xff]  ;;  %v1430_v27 = vld [vmem:[%s11112_s26 + $0x5b0] sm:$0xff] }
  0x4a   : > { %v1432_v28 = vld [vmem:[%s11112_s26 + $0x5c0] sm:$0xff]  ;;  %1429 = vst [vmem:[%s11117_s27 + $0x2d0] sm:$0xff] %v1428_v26  ;;  %1431 = vst [vmem:[%s11117_s27 + $0x2d8] sm:$0xff] %v1430_v27  ;;  %v1434_v29 = vld [vmem:[%s11112_s26 + $0x5d0] sm:$0xff] }
  0x4b   : > { %1433 = vst [vmem:[%s11117_s27 + $0x2e0] sm:$0xff] %v1432_v28  ;;  %v1436_v30 = vld [vmem:[%s11112_s26 + $0x5e0] sm:$0xff]  ;;  %v1438_v31 = vld [vmem:[%s11112_s26 + $0x5f0] sm:$0xff]  ;;  %1435 = vst [vmem:[%s11117_s27 + $0x2e8] sm:$0xff] %v1434_v29 }
  0x4c   : > { %1437 = vst [vmem:[%s11117_s27 + $0x2f0] sm:$0xff] %v1436_v30  ;;  %1439 = vst [vmem:[%s11117_s27 + $0x2f8] sm:$0xff] %v1438_v31  ;;  %v1440_v32 = vld [vmem:[%s11112_s26 + $0x600] sm:$0xff]  ;;  %v1442_v33 = vld [vmem:[%s11112_s26 + $0x610] sm:$0xff] }
  0x4d   : > { %v1444_v34 = vld [vmem:[%s11112_s26 + $0x620] sm:$0xff]  ;;  %1441 = vst [vmem:[%s11117_s27 + $0x300] sm:$0xff] %v1440_v32  ;;  %1443 = vst [vmem:[%s11117_s27 + $0x308] sm:$0xff] %v1442_v33  ;;  %v1446_v35 = vld [vmem:[%s11112_s26 + $0x630] sm:$0xff] }
  0x4e   : > { %1445 = vst [vmem:[%s11117_s27 + $0x310] sm:$0xff] %v1444_v34  ;;  %v1448_v36 = vld [vmem:[%s11112_s26 + $0x640] sm:$0xff]  ;;  %v1450_v37 = vld [vmem:[%s11112_s26 + $0x650] sm:$0xff]  ;;  %1447 = vst [vmem:[%s11117_s27 + $0x318] sm:$0xff] %v1446_v35 }
  0x4f   : > { %1449 = vst [vmem:[%s11117_s27 + $0x320] sm:$0xff] %v1448_v36  ;;  %1451 = vst [vmem:[%s11117_s27 + $0x328] sm:$0xff] %v1450_v37  ;;  %v1452_v38 = vld [vmem:[%s11112_s26 + $0x660] sm:$0xff]  ;;  %v1454_v39 = vld [vmem:[%s11112_s26 + $0x670] sm:$0xff] }
  0x50   : > { %v1456_v40 = vld [vmem:[%s11112_s26 + $0x680] sm:$0xff]  ;;  %1453 = vst [vmem:[%s11117_s27 + $0x330] sm:$0xff] %v1452_v38  ;;  %1455 = vst [vmem:[%s11117_s27 + $0x338] sm:$0xff] %v1454_v39  ;;  %v1458_v41 = vld [vmem:[%s11112_s26 + $0x690] sm:$0xff] }
  0x51   : > { %1457 = vst [vmem:[%s11117_s27 + $0x340] sm:$0xff] %v1456_v40  ;;  %v1460_v42 = vld [vmem:[%s11112_s26 + $0x6a0] sm:$0xff]  ;;  %v1462_v43 = vld [vmem:[%s11112_s26 + $0x6b0] sm:$0xff]  ;;  %1459 = vst [vmem:[%s11117_s27 + $0x348] sm:$0xff] %v1458_v41 }
  0x52   : > { %1461 = vst [vmem:[%s11117_s27 + $0x350] sm:$0xff] %v1460_v42  ;;  %1463 = vst [vmem:[%s11117_s27 + $0x358] sm:$0xff] %v1462_v43  ;;  %v1464_v44 = vld [vmem:[%s11112_s26 + $0x6c0] sm:$0xff]  ;;  %v1466_v45 = vld [vmem:[%s11112_s26 + $0x6d0] sm:$0xff] }
  0x53   : > { %v1468_v46 = vld [vmem:[%s11112_s26 + $0x6e0] sm:$0xff]  ;;  %1465 = vst [vmem:[%s11117_s27 + $0x360] sm:$0xff] %v1464_v44  ;;  %1467 = vst [vmem:[%s11117_s27 + $0x368] sm:$0xff] %v1466_v45  ;;  %v1470_v47 = vld [vmem:[%s11112_s26 + $0x6f0] sm:$0xff] }
  0x54   : > { %1469 = vst [vmem:[%s11117_s27 + $0x370] sm:$0xff] %v1468_v46  ;;  %v1472_v48 = vld [vmem:[%s11112_s26 + $0x700] sm:$0xff]  ;;  %v1474_v49 = vld [vmem:[%s11112_s26 + $0x710] sm:$0xff]  ;;  %1471 = vst [vmem:[%s11117_s27 + $0x378] sm:$0xff] %v1470_v47 }
  0x55   : > { %1473 = vst [vmem:[%s11117_s27 + $0x380] sm:$0xff] %v1472_v48  ;;  %1475 = vst [vmem:[%s11117_s27 + $0x388] sm:$0xff] %v1474_v49  ;;  %v1476_v50 = vld [vmem:[%s11112_s26 + $0x720] sm:$0xff]  ;;  %v1478_v51 = vld [vmem:[%s11112_s26 + $0x730] sm:$0xff] }
  0x56   : > { %v1480_v52 = vld [vmem:[%s11112_s26 + $0x740] sm:$0xff]  ;;  %1477 = vst [vmem:[%s11117_s27 + $0x390] sm:$0xff] %v1476_v50  ;;  %1479 = vst [vmem:[%s11117_s27 + $0x398] sm:$0xff] %v1478_v51  ;;  %v1482_v53 = vld [vmem:[%s11112_s26 + $0x750] sm:$0xff] }
  0x57   : > { %1481 = vst [vmem:[%s11117_s27 + $0x3a0] sm:$0xff] %v1480_v52  ;;  %v1484_v54 = vld [vmem:[%s11112_s26 + $0x760] sm:$0xff]  ;;  %v1486_v55 = vld [vmem:[%s11112_s26 + $0x770] sm:$0xff]  ;;  %1483 = vst [vmem:[%s11117_s27 + $0x3a8] sm:$0xff] %v1482_v53 }
  0x58   : > { %1485 = vst [vmem:[%s11117_s27 + $0x3b0] sm:$0xff] %v1484_v54  ;;  %1487 = vst [vmem:[%s11117_s27 + $0x3b8] sm:$0xff] %v1486_v55  ;;  %v1488_v56 = vld [vmem:[%s11112_s26 + $0x780] sm:$0xff]  ;;  %v1490_v57 = vld [vmem:[%s11112_s26 + $0x790] sm:$0xff] }
  0x59   : > { %v1492_v58 = vld [vmem:[%s11112_s26 + $0x7a0] sm:$0xff]  ;;  %1489 = vst [vmem:[%s11117_s27 + $0x3c0] sm:$0xff] %v1488_v56  ;;  %1491 = vst [vmem:[%s11117_s27 + $0x3c8] sm:$0xff] %v1490_v57  ;;  %v1494_v59 = vld [vmem:[%s11112_s26 + $0x7b0] sm:$0xff] }
  0x5a   : > { %1493 = vst [vmem:[%s11117_s27 + $0x3d0] sm:$0xff] %v1492_v58  ;;  %v1496_v60 = vld [vmem:[%s11112_s26 + $0x7c0] sm:$0xff]  ;;  %v1498_v61 = vld [vmem:[%s11112_s26 + $0x7d0] sm:$0xff]  ;;  %1495 = vst [vmem:[%s11117_s27 + $0x3d8] sm:$0xff] %v1494_v59 }
  0x5b   : > { %1497 = vst [vmem:[%s11117_s27 + $0x3e0] sm:$0xff] %v1496_v60  ;;  %1499 = vst [vmem:[%s11117_s27 + $0x3e8] sm:$0xff] %v1498_v61  ;;  %v1500_v62 = vld [vmem:[%s11112_s26 + $0x7e0] sm:$0xff]  ;;  %v1502_v63 = vld [vmem:[%s11112_s26 + $0x7f0] sm:$0xff] }
  0x5c   : > { %v1504_v0 = vld [vmem:[%s11112_s26 + $0x800] sm:$0xff]  ;;  %1501 = vst [vmem:[%s11117_s27 + $0x3f0] sm:$0xff] %v1500_v62  ;;  %1503 = vst [vmem:[%s11117_s27 + $0x3f8] sm:$0xff] %v1502_v63  ;;  %v1506_v1 = vld [vmem:[%s11112_s26 + $0x810] sm:$0xff] }
  0x5d   : > { %1505 = vst [vmem:[%s11117_s27 + $0x400] sm:$0xff] %v1504_v0  ;;  %v1508_v2 = vld [vmem:[%s11112_s26 + $0x820] sm:$0xff]  ;;  %v1510_v3 = vld [vmem:[%s11112_s26 + $0x830] sm:$0xff]  ;;  %1507 = vst [vmem:[%s11117_s27 + $0x408] sm:$0xff] %v1506_v1 }
  0x5e   : > { %1509 = vst [vmem:[%s11117_s27 + $0x410] sm:$0xff] %v1508_v2  ;;  %1511 = vst [vmem:[%s11117_s27 + $0x418] sm:$0xff] %v1510_v3  ;;  %v1512_v4 = vld [vmem:[%s11112_s26 + $0x840] sm:$0xff]  ;;  %v1514_v5 = vld [vmem:[%s11112_s26 + $0x850] sm:$0xff] }
  0x5f   : > { %v1516_v6 = vld [vmem:[%s11112_s26 + $0x860] sm:$0xff]  ;;  %1513 = vst [vmem:[%s11117_s27 + $0x420] sm:$0xff] %v1512_v4  ;;  %1515 = vst [vmem:[%s11117_s27 + $0x428] sm:$0xff] %v1514_v5  ;;  %v1518_v7 = vld [vmem:[%s11112_s26 + $0x870] sm:$0xff] }
  0x60   : > { %1517 = vst [vmem:[%s11117_s27 + $0x430] sm:$0xff] %v1516_v6  ;;  %v1520_v8 = vld [vmem:[%s11112_s26 + $0x880] sm:$0xff]  ;;  %v1522_v9 = vld [vmem:[%s11112_s26 + $0x890] sm:$0xff]  ;;  %1519 = vst [vmem:[%s11117_s27 + $0x438] sm:$0xff] %v1518_v7 }
  0x61   : > { %1521 = vst [vmem:[%s11117_s27 + $0x440] sm:$0xff] %v1520_v8  ;;  %1523 = vst [vmem:[%s11117_s27 + $0x448] sm:$0xff] %v1522_v9  ;;  %v1524_v10 = vld [vmem:[%s11112_s26 + $0x8a0] sm:$0xff]  ;;  %v1526_v11 = vld [vmem:[%s11112_s26 + $0x8b0] sm:$0xff] }
  0x62   : > { %v1528_v12 = vld [vmem:[%s11112_s26 + $0x8c0] sm:$0xff]  ;;  %1525 = vst [vmem:[%s11117_s27 + $0x450] sm:$0xff] %v1524_v10  ;;  %1527 = vst [vmem:[%s11117_s27 + $0x458] sm:$0xff] %v1526_v11  ;;  %v1530_v13 = vld [vmem:[%s11112_s26 + $0x8d0] sm:$0xff] }
  0x63   : > { %1529 = vst [vmem:[%s11117_s27 + $0x460] sm:$0xff] %v1528_v12  ;;  %v1532_v14 = vld [vmem:[%s11112_s26 + $0x8e0] sm:$0xff]  ;;  %v1534_v15 = vld [vmem:[%s11112_s26 + $0x8f0] sm:$0xff]  ;;  %1531 = vst [vmem:[%s11117_s27 + $0x468] sm:$0xff] %v1530_v13 }
  0x64   : > { %1533 = vst [vmem:[%s11117_s27 + $0x470] sm:$0xff] %v1532_v14  ;;  %1535 = vst [vmem:[%s11117_s27 + $0x478] sm:$0xff] %v1534_v15  ;;  %v1536_v16 = vld [vmem:[%s11112_s26 + $0x900] sm:$0xff]  ;;  %v1538_v17 = vld [vmem:[%s11112_s26 + $0x910] sm:$0xff] }
  0x65   : > { %v1540_v18 = vld [vmem:[%s11112_s26 + $0x920] sm:$0xff]  ;;  %1537 = vst [vmem:[%s11117_s27 + $0x480] sm:$0xff] %v1536_v16  ;;  %1539 = vst [vmem:[%s11117_s27 + $0x488] sm:$0xff] %v1538_v17  ;;  %v1542_v19 = vld [vmem:[%s11112_s26 + $0x930] sm:$0xff] }
  0x66   : > { %1541 = vst [vmem:[%s11117_s27 + $0x490] sm:$0xff] %v1540_v18  ;;  %v1544_v20 = vld [vmem:[%s11112_s26 + $0x940] sm:$0xff]  ;;  %v1546_v21 = vld [vmem:[%s11112_s26 + $0x950] sm:$0xff]  ;;  %1543 = vst [vmem:[%s11117_s27 + $0x498] sm:$0xff] %v1542_v19 }
  0x67   : > { %1545 = vst [vmem:[%s11117_s27 + $0x4a0] sm:$0xff] %v1544_v20  ;;  %1547 = vst [vmem:[%s11117_s27 + $0x4a8] sm:$0xff] %v1546_v21  ;;  %v1548_v22 = vld [vmem:[%s11112_s26 + $0x960] sm:$0xff]  ;;  %v1550_v23 = vld [vmem:[%s11112_s26 + $0x970] sm:$0xff] }
  0x68   : > { %v1552_v24 = vld [vmem:[%s11112_s26 + $0x980] sm:$0xff]  ;;  %1549 = vst [vmem:[%s11117_s27 + $0x4b0] sm:$0xff] %v1548_v22  ;;  %1551 = vst [vmem:[%s11117_s27 + $0x4b8] sm:$0xff] %v1550_v23  ;;  %v1554_v25 = vld [vmem:[%s11112_s26 + $0x990] sm:$0xff] }
  0x69   : > { %1553 = vst [vmem:[%s11117_s27 + $0x4c0] sm:$0xff] %v1552_v24  ;;  %v1556_v26 = vld [vmem:[%s11112_s26 + $0x9a0] sm:$0xff]  ;;  %v1558_v27 = vld [vmem:[%s11112_s26 + $0x9b0] sm:$0xff]  ;;  %1555 = vst [vmem:[%s11117_s27 + $0x4c8] sm:$0xff] %v1554_v25 }
  0x6a   : > { %1557 = vst [vmem:[%s11117_s27 + $0x4d0] sm:$0xff] %v1556_v26  ;;  %1559 = vst [vmem:[%s11117_s27 + $0x4d8] sm:$0xff] %v1558_v27  ;;  %v1560_v28 = vld [vmem:[%s11112_s26 + $0x9c0] sm:$0xff]  ;;  %v1562_v29 = vld [vmem:[%s11112_s26 + $0x9d0] sm:$0xff] }
  0x6b   : > { %v1564_v30 = vld [vmem:[%s11112_s26 + $0x9e0] sm:$0xff]  ;;  %1561 = vst [vmem:[%s11117_s27 + $0x4e0] sm:$0xff] %v1560_v28  ;;  %1563 = vst [vmem:[%s11117_s27 + $0x4e8] sm:$0xff] %v1562_v29  ;;  %v1566_v31 = vld [vmem:[%s11112_s26 + $0x9f0] sm:$0xff] }
  0x6c   : > { %1565 = vst [vmem:[%s11117_s27 + $0x4f0] sm:$0xff] %v1564_v30  ;;  %v1568_v32 = vld [vmem:[%s11112_s26 + $0xa00] sm:$0xff]  ;;  %v1570_v33 = vld [vmem:[%s11112_s26 + $0xa10] sm:$0xff]  ;;  %1567 = vst [vmem:[%s11117_s27 + $0x4f8] sm:$0xff] %v1566_v31 }
  0x6d   : > { %1569 = vst [vmem:[%s11117_s27 + $0x500] sm:$0xff] %v1568_v32  ;;  %1571 = vst [vmem:[%s11117_s27 + $0x508] sm:$0xff] %v1570_v33  ;;  %v1572_v34 = vld [vmem:[%s11112_s26 + $0xa20] sm:$0xff]  ;;  %v1574_v35 = vld [vmem:[%s11112_s26 + $0xa30] sm:$0xff] }
  0x6e   : > { %v1576_v36 = vld [vmem:[%s11112_s26 + $0xa40] sm:$0xff]  ;;  %1573 = vst [vmem:[%s11117_s27 + $0x510] sm:$0xff] %v1572_v34  ;;  %1575 = vst [vmem:[%s11117_s27 + $0x518] sm:$0xff] %v1574_v35  ;;  %v1578_v37 = vld [vmem:[%s11112_s26 + $0xa50] sm:$0xff] }
  0x6f   : > { %1577 = vst [vmem:[%s11117_s27 + $0x520] sm:$0xff] %v1576_v36  ;;  %v1580_v38 = vld [vmem:[%s11112_s26 + $0xa60] sm:$0xff]  ;;  %v1582_v39 = vld [vmem:[%s11112_s26 + $0xa70] sm:$0xff]  ;;  %1579 = vst [vmem:[%s11117_s27 + $0x528] sm:$0xff] %v1578_v37 }
  0x70   : > { %1581 = vst [vmem:[%s11117_s27 + $0x530] sm:$0xff] %v1580_v38  ;;  %1583 = vst [vmem:[%s11117_s27 + $0x538] sm:$0xff] %v1582_v39  ;;  %v1584_v40 = vld [vmem:[%s11112_s26 + $0xa80] sm:$0xff]  ;;  %v1586_v41 = vld [vmem:[%s11112_s26 + $0xa90] sm:$0xff] }
  0x71   : > { %v1588_v42 = vld [vmem:[%s11112_s26 + $0xaa0] sm:$0xff]  ;;  %1585 = vst [vmem:[%s11117_s27 + $0x540] sm:$0xff] %v1584_v40  ;;  %1587 = vst [vmem:[%s11117_s27 + $0x548] sm:$0xff] %v1586_v41  ;;  %v1590_v43 = vld [vmem:[%s11112_s26 + $0xab0] sm:$0xff] }
  0x72   : > { %1589 = vst [vmem:[%s11117_s27 + $0x550] sm:$0xff] %v1588_v42  ;;  %v1592_v44 = vld [vmem:[%s11112_s26 + $0xac0] sm:$0xff]  ;;  %v1594_v45 = vld [vmem:[%s11112_s26 + $0xad0] sm:$0xff]  ;;  %1591 = vst [vmem:[%s11117_s27 + $0x558] sm:$0xff] %v1590_v43 }
  0x73   : > { %1593 = vst [vmem:[%s11117_s27 + $0x560] sm:$0xff] %v1592_v44  ;;  %1595 = vst [vmem:[%s11117_s27 + $0x568] sm:$0xff] %v1594_v45  ;;  %v1596_v46 = vld [vmem:[%s11112_s26 + $0xae0] sm:$0xff]  ;;  %v1598_v47 = vld [vmem:[%s11112_s26 + $0xaf0] sm:$0xff] }
  0x74   : > { %v1600_v48 = vld [vmem:[%s11112_s26 + $0xb00] sm:$0xff]  ;;  %1597 = vst [vmem:[%s11117_s27 + $0x570] sm:$0xff] %v1596_v46  ;;  %1599 = vst [vmem:[%s11117_s27 + $0x578] sm:$0xff] %v1598_v47  ;;  %v1602_v49 = vld [vmem:[%s11112_s26 + $0xb10] sm:$0xff] }
  0x75   : > { %1601 = vst [vmem:[%s11117_s27 + $0x580] sm:$0xff] %v1600_v48  ;;  %v1604_v50 = vld [vmem:[%s11112_s26 + $0xb20] sm:$0xff]  ;;  %v1606_v51 = vld [vmem:[%s11112_s26 + $0xb30] sm:$0xff]  ;;  %1603 = vst [vmem:[%s11117_s27 + $0x588] sm:$0xff] %v1602_v49 }
  0x76   : > { %1605 = vst [vmem:[%s11117_s27 + $0x590] sm:$0xff] %v1604_v50  ;;  %1607 = vst [vmem:[%s11117_s27 + $0x598] sm:$0xff] %v1606_v51  ;;  %v1608_v52 = vld [vmem:[%s11112_s26 + $0xb40] sm:$0xff]  ;;  %v1610_v53 = vld [vmem:[%s11112_s26 + $0xb50] sm:$0xff] }
  0x77   : > { %v1612_v54 = vld [vmem:[%s11112_s26 + $0xb60] sm:$0xff]  ;;  %1609 = vst [vmem:[%s11117_s27 + $0x5a0] sm:$0xff] %v1608_v52  ;;  %1611 = vst [vmem:[%s11117_s27 + $0x5a8] sm:$0xff] %v1610_v53  ;;  %v1614_v55 = vld [vmem:[%s11112_s26 + $0xb70] sm:$0xff] }
  0x78   : > { %1613 = vst [vmem:[%s11117_s27 + $0x5b0] sm:$0xff] %v1612_v54  ;;  %v1616_v56 = vld [vmem:[%s11112_s26 + $0xb80] sm:$0xff]  ;;  %v1618_v57 = vld [vmem:[%s11112_s26 + $0xb90] sm:$0xff]  ;;  %1615 = vst [vmem:[%s11117_s27 + $0x5b8] sm:$0xff] %v1614_v55 }
  0x79   : > { %1617 = vst [vmem:[%s11117_s27 + $0x5c0] sm:$0xff] %v1616_v56  ;;  %1619 = vst [vmem:[%s11117_s27 + $0x5c8] sm:$0xff] %v1618_v57  ;;  %v1620_v58 = vld [vmem:[%s11112_s26 + $0xba0] sm:$0xff]  ;;  %v1622_v59 = vld [vmem:[%s11112_s26 + $0xbb0] sm:$0xff] }
  0x7a   : > { %v1624_v60 = vld [vmem:[%s11112_s26 + $0xbc0] sm:$0xff]  ;;  %1621 = vst [vmem:[%s11117_s27 + $0x5d0] sm:$0xff] %v1620_v58  ;;  %1623 = vst [vmem:[%s11117_s27 + $0x5d8] sm:$0xff] %v1622_v59  ;;  %v1626_v61 = vld [vmem:[%s11112_s26 + $0xbd0] sm:$0xff] }
  0x7b   : > { %1625 = vst [vmem:[%s11117_s27 + $0x5e0] sm:$0xff] %v1624_v60  ;;  %v1628_v62 = vld [vmem:[%s11112_s26 + $0xbe0] sm:$0xff]  ;;  %v1630_v63 = vld [vmem:[%s11112_s26 + $0xbf0] sm:$0xff]  ;;  %1627 = vst [vmem:[%s11117_s27 + $0x5e8] sm:$0xff] %v1626_v61 }
  0x7c   : > { %1629 = vst [vmem:[%s11117_s27 + $0x5f0] sm:$0xff] %v1628_v62  ;;  %1631 = vst [vmem:[%s11117_s27 + $0x5f8] sm:$0xff] %v1630_v63  ;;  %v1632_v0 = vld [vmem:[%s11112_s26 + $0xc00] sm:$0xff]  ;;  %v1634_v1 = vld [vmem:[%s11112_s26 + $0xc10] sm:$0xff] }
  0x7d   : > { %v1636_v2 = vld [vmem:[%s11112_s26 + $0xc20] sm:$0xff]  ;;  %1633 = vst [vmem:[%s11117_s27 + $0x600] sm:$0xff] %v1632_v0  ;;  %1635 = vst [vmem:[%s11117_s27 + $0x608] sm:$0xff] %v1634_v1  ;;  %v1638_v3 = vld [vmem:[%s11112_s26 + $0xc30] sm:$0xff] }
  0x7e   : > { %1637 = vst [vmem:[%s11117_s27 + $0x610] sm:$0xff] %v1636_v2  ;;  %v1640_v4 = vld [vmem:[%s11112_s26 + $0xc40] sm:$0xff]  ;;  %v1642_v5 = vld [vmem:[%s11112_s26 + $0xc50] sm:$0xff]  ;;  %1639 = vst [vmem:[%s11117_s27 + $0x618] sm:$0xff] %v1638_v3 }
  0x7f   : > { %1641 = vst [vmem:[%s11117_s27 + $0x620] sm:$0xff] %v1640_v4  ;;  %1643 = vst [vmem:[%s11117_s27 + $0x628] sm:$0xff] %v1642_v5  ;;  %v1644_v6 = vld [vmem:[%s11112_s26 + $0xc60] sm:$0xff]  ;;  %v1646_v7 = vld [vmem:[%s11112_s26 + $0xc70] sm:$0xff] }
  0x80   : > { %v1648_v8 = vld [vmem:[%s11112_s26 + $0xc80] sm:$0xff]  ;;  %1645 = vst [vmem:[%s11117_s27 + $0x630] sm:$0xff] %v1644_v6  ;;  %1647 = vst [vmem:[%s11117_s27 + $0x638] sm:$0xff] %v1646_v7  ;;  %v1650_v9 = vld [vmem:[%s11112_s26 + $0xc90] sm:$0xff] }
  0x81   : > { %1649 = vst [vmem:[%s11117_s27 + $0x640] sm:$0xff] %v1648_v8  ;;  %v1652_v10 = vld [vmem:[%s11112_s26 + $0xca0] sm:$0xff]  ;;  %v1654_v11 = vld [vmem:[%s11112_s26 + $0xcb0] sm:$0xff]  ;;  %1651 = vst [vmem:[%s11117_s27 + $0x648] sm:$0xff] %v1650_v9 }
  0x82   : > { %1653 = vst [vmem:[%s11117_s27 + $0x650] sm:$0xff] %v1652_v10  ;;  %1655 = vst [vmem:[%s11117_s27 + $0x658] sm:$0xff] %v1654_v11  ;;  %v1656_v12 = vld [vmem:[%s11112_s26 + $0xcc0] sm:$0xff]  ;;  %v1658_v13 = vld [vmem:[%s11112_s26 + $0xcd0] sm:$0xff] }
  0x83   : > { %v1660_v14 = vld [vmem:[%s11112_s26 + $0xce0] sm:$0xff]  ;;  %1657 = vst [vmem:[%s11117_s27 + $0x660] sm:$0xff] %v1656_v12  ;;  %1659 = vst [vmem:[%s11117_s27 + $0x668] sm:$0xff] %v1658_v13  ;;  %v1662_v15 = vld [vmem:[%s11112_s26 + $0xcf0] sm:$0xff] }
  0x84   : > { %1661 = vst [vmem:[%s11117_s27 + $0x670] sm:$0xff] %v1660_v14  ;;  %v1664_v16 = vld [vmem:[%s11112_s26 + $0xd00] sm:$0xff]  ;;  %v1666_v17 = vld [vmem:[%s11112_s26 + $0xd10] sm:$0xff]  ;;  %1663 = vst [vmem:[%s11117_s27 + $0x678] sm:$0xff] %v1662_v15 }
  0x85   : > { %1665 = vst [vmem:[%s11117_s27 + $0x680] sm:$0xff] %v1664_v16  ;;  %1667 = vst [vmem:[%s11117_s27 + $0x688] sm:$0xff] %v1666_v17  ;;  %v1668_v18 = vld [vmem:[%s11112_s26 + $0xd20] sm:$0xff]  ;;  %v1670_v19 = vld [vmem:[%s11112_s26 + $0xd30] sm:$0xff] }
  0x86   : > { %v1672_v20 = vld [vmem:[%s11112_s26 + $0xd40] sm:$0xff]  ;;  %1669 = vst [vmem:[%s11117_s27 + $0x690] sm:$0xff] %v1668_v18  ;;  %1671 = vst [vmem:[%s11117_s27 + $0x698] sm:$0xff] %v1670_v19  ;;  %v1674_v21 = vld [vmem:[%s11112_s26 + $0xd50] sm:$0xff] }
  0x87   : > { %1673 = vst [vmem:[%s11117_s27 + $0x6a0] sm:$0xff] %v1672_v20  ;;  %v1676_v22 = vld [vmem:[%s11112_s26 + $0xd60] sm:$0xff]  ;;  %v1678_v23 = vld [vmem:[%s11112_s26 + $0xd70] sm:$0xff]  ;;  %1675 = vst [vmem:[%s11117_s27 + $0x6a8] sm:$0xff] %v1674_v21 }
  0x88   : > { %1677 = vst [vmem:[%s11117_s27 + $0x6b0] sm:$0xff] %v1676_v22  ;;  %1679 = vst [vmem:[%s11117_s27 + $0x6b8] sm:$0xff] %v1678_v23  ;;  %v1680_v24 = vld [vmem:[%s11112_s26 + $0xd80] sm:$0xff]  ;;  %v1682_v25 = vld [vmem:[%s11112_s26 + $0xd90] sm:$0xff] }
  0x89   : > { %v1684_v26 = vld [vmem:[%s11112_s26 + $0xda0] sm:$0xff]  ;;  %1681 = vst [vmem:[%s11117_s27 + $0x6c0] sm:$0xff] %v1680_v24  ;;  %1683 = vst [vmem:[%s11117_s27 + $0x6c8] sm:$0xff] %v1682_v25  ;;  %v1686_v27 = vld [vmem:[%s11112_s26 + $0xdb0] sm:$0xff] }
  0x8a   : > { %1685 = vst [vmem:[%s11117_s27 + $0x6d0] sm:$0xff] %v1684_v26  ;;  %v1688_v28 = vld [vmem:[%s11112_s26 + $0xdc0] sm:$0xff]  ;;  %v1690_v29 = vld [vmem:[%s11112_s26 + $0xdd0] sm:$0xff]  ;;  %1687 = vst [vmem:[%s11117_s27 + $0x6d8] sm:$0xff] %v1686_v27 }
  0x8b   : > { %1689 = vst [vmem:[%s11117_s27 + $0x6e0] sm:$0xff] %v1688_v28  ;;  %1691 = vst [vmem:[%s11117_s27 + $0x6e8] sm:$0xff] %v1690_v29  ;;  %v1692_v30 = vld [vmem:[%s11112_s26 + $0xde0] sm:$0xff]  ;;  %v1694_v31 = vld [vmem:[%s11112_s26 + $0xdf0] sm:$0xff] }
  0x8c   : > { %v1696_v32 = vld [vmem:[%s11112_s26 + $0xe00] sm:$0xff]  ;;  %1693 = vst [vmem:[%s11117_s27 + $0x6f0] sm:$0xff] %v1692_v30  ;;  %1695 = vst [vmem:[%s11117_s27 + $0x6f8] sm:$0xff] %v1694_v31  ;;  %v1698_v33 = vld [vmem:[%s11112_s26 + $0xe10] sm:$0xff] }
  0x8d   : > { %1697 = vst [vmem:[%s11117_s27 + $0x700] sm:$0xff] %v1696_v32  ;;  %v1700_v34 = vld [vmem:[%s11112_s26 + $0xe20] sm:$0xff]  ;;  %v1702_v35 = vld [vmem:[%s11112_s26 + $0xe30] sm:$0xff]  ;;  %1699 = vst [vmem:[%s11117_s27 + $0x708] sm:$0xff] %v1698_v33 }
  0x8e   : > { %1701 = vst [vmem:[%s11117_s27 + $0x710] sm:$0xff] %v1700_v34  ;;  %1703 = vst [vmem:[%s11117_s27 + $0x718] sm:$0xff] %v1702_v35  ;;  %v1704_v36 = vld [vmem:[%s11112_s26 + $0xe40] sm:$0xff]  ;;  %v1706_v37 = vld [vmem:[%s11112_s26 + $0xe50] sm:$0xff] }
  0x8f   : > { %v1708_v38 = vld [vmem:[%s11112_s26 + $0xe60] sm:$0xff]  ;;  %1705 = vst [vmem:[%s11117_s27 + $0x720] sm:$0xff] %v1704_v36  ;;  %1707 = vst [vmem:[%s11117_s27 + $0x728] sm:$0xff] %v1706_v37  ;;  %v1710_v39 = vld [vmem:[%s11112_s26 + $0xe70] sm:$0xff] }
  0x90   : > { %1709 = vst [vmem:[%s11117_s27 + $0x730] sm:$0xff] %v1708_v38  ;;  %v1712_v40 = vld [vmem:[%s11112_s26 + $0xe80] sm:$0xff]  ;;  %v1714_v41 = vld [vmem:[%s11112_s26 + $0xe90] sm:$0xff]  ;;  %1711 = vst [vmem:[%s11117_s27 + $0x738] sm:$0xff] %v1710_v39 }
  0x91   : > { %1713 = vst [vmem:[%s11117_s27 + $0x740] sm:$0xff] %v1712_v40  ;;  %1715 = vst [vmem:[%s11117_s27 + $0x748] sm:$0xff] %v1714_v41  ;;  %v1716_v42 = vld [vmem:[%s11112_s26 + $0xea0] sm:$0xff]  ;;  %v1718_v43 = vld [vmem:[%s11112_s26 + $0xeb0] sm:$0xff] }
  0x92   : > { %v1720_v44 = vld [vmem:[%s11112_s26 + $0xec0] sm:$0xff]  ;;  %1717 = vst [vmem:[%s11117_s27 + $0x750] sm:$0xff] %v1716_v42  ;;  %1719 = vst [vmem:[%s11117_s27 + $0x758] sm:$0xff] %v1718_v43  ;;  %v1722_v45 = vld [vmem:[%s11112_s26 + $0xed0] sm:$0xff] }
  0x93   : > { %1721 = vst [vmem:[%s11117_s27 + $0x760] sm:$0xff] %v1720_v44  ;;  %v1724_v46 = vld [vmem:[%s11112_s26 + $0xee0] sm:$0xff]  ;;  %v1726_v47 = vld [vmem:[%s11112_s26 + $0xef0] sm:$0xff]  ;;  %1723 = vst [vmem:[%s11117_s27 + $0x768] sm:$0xff] %v1722_v45 }
  0x94   : > { %1725 = vst [vmem:[%s11117_s27 + $0x770] sm:$0xff] %v1724_v46  ;;  %1727 = vst [vmem:[%s11117_s27 + $0x778] sm:$0xff] %v1726_v47  ;;  %v1728_v48 = vld [vmem:[%s11112_s26 + $0xf00] sm:$0xff]  ;;  %v1730_v49 = vld [vmem:[%s11112_s26 + $0xf10] sm:$0xff] }
  0x95   : > { %v1732_v50 = vld [vmem:[%s11112_s26 + $0xf20] sm:$0xff]  ;;  %1729 = vst [vmem:[%s11117_s27 + $0x780] sm:$0xff] %v1728_v48  ;;  %1731 = vst [vmem:[%s11117_s27 + $0x788] sm:$0xff] %v1730_v49  ;;  %v1734_v51 = vld [vmem:[%s11112_s26 + $0xf30] sm:$0xff] }
  0x96   : > { %1733 = vst [vmem:[%s11117_s27 + $0x790] sm:$0xff] %v1732_v50  ;;  %v1736_v52 = vld [vmem:[%s11112_s26 + $0xf40] sm:$0xff]  ;;  %v1738_v53 = vld [vmem:[%s11112_s26 + $0xf50] sm:$0xff]  ;;  %1735 = vst [vmem:[%s11117_s27 + $0x798] sm:$0xff] %v1734_v51 }
  0x97   : > { %1737 = vst [vmem:[%s11117_s27 + $0x7a0] sm:$0xff] %v1736_v52  ;;  %1739 = vst [vmem:[%s11117_s27 + $0x7a8] sm:$0xff] %v1738_v53  ;;  %v1740_v54 = vld [vmem:[%s11112_s26 + $0xf60] sm:$0xff]  ;;  %v1742_v55 = vld [vmem:[%s11112_s26 + $0xf70] sm:$0xff] }
  0x98   : > { %v1744_v56 = vld [vmem:[%s11112_s26 + $0xf80] sm:$0xff]  ;;  %1741 = vst [vmem:[%s11117_s27 + $0x7b0] sm:$0xff] %v1740_v54  ;;  %1743 = vst [vmem:[%s11117_s27 + $0x7b8] sm:$0xff] %v1742_v55  ;;  %v1746_v57 = vld [vmem:[%s11112_s26 + $0xf90] sm:$0xff] }
  0x99   : > { %1745 = vst [vmem:[%s11117_s27 + $0x7c0] sm:$0xff] %v1744_v56  ;;  %v1748_v58 = vld [vmem:[%s11112_s26 + $0xfa0] sm:$0xff]  ;;  %v1750_v59 = vld [vmem:[%s11112_s26 + $0xfb0] sm:$0xff]  ;;  %1747 = vst [vmem:[%s11117_s27 + $0x7c8] sm:$0xff] %v1746_v57 }
  0x9a   : > { %1749 = vst [vmem:[%s11117_s27 + $0x7d0] sm:$0xff] %v1748_v58  ;;  %1751 = vst [vmem:[%s11117_s27 + $0x7d8] sm:$0xff] %v1750_v59  ;;  %v1752_v60 = vld [vmem:[%s11112_s26 + $0xfc0] sm:$0xff]  ;;  %v1754_v61 = vld [vmem:[%s11112_s26 + $0xfd0] sm:$0xff] }
  0x9b   : > { %v1756_v62 = vld [vmem:[%s11112_s26 + $0xfe0] sm:$0xff]  ;;  %1753 = vst [vmem:[%s11117_s27 + $0x7e0] sm:$0xff] %v1752_v60  ;;  %1755 = vst [vmem:[%s11117_s27 + $0x7e8] sm:$0xff] %v1754_v61  ;;  %v1758_v63 = vld [vmem:[%s11112_s26 + $0xff0] sm:$0xff] }
  0x9c   : > { %1757 = vst [vmem:[%s11117_s27 + $0x7f0] sm:$0xff] %v1756_v62  ;;  %v1760_v0 = vld [vmem:[%s11112_s26 + $0x1000] sm:$0xff]  ;;  %v1762_v1 = vld [vmem:[%s11112_s26 + $0x1010] sm:$0xff]  ;;  %1759 = vst [vmem:[%s11117_s27 + $0x7f8] sm:$0xff] %v1758_v63 }
  0x9d   : > { %1761 = vst [vmem:[%s11117_s27 + $0x800] sm:$0xff] %v1760_v0  ;;  %1763 = vst [vmem:[%s11117_s27 + $0x808] sm:$0xff] %v1762_v1  ;;  %v1764_v2 = vld [vmem:[%s11112_s26 + $0x1020] sm:$0xff]  ;;  %v1766_v3 = vld [vmem:[%s11112_s26 + $0x1030] sm:$0xff] }
  0x9e   : > { %v1768_v4 = vld [vmem:[%s11112_s26 + $0x1040] sm:$0xff]  ;;  %1765 = vst [vmem:[%s11117_s27 + $0x810] sm:$0xff] %v1764_v2  ;;  %1767 = vst [vmem:[%s11117_s27 + $0x818] sm:$0xff] %v1766_v3  ;;  %v1770_v5 = vld [vmem:[%s11112_s26 + $0x1050] sm:$0xff] }
  0x9f   : > { %1769 = vst [vmem:[%s11117_s27 + $0x820] sm:$0xff] %v1768_v4  ;;  %v1772_v6 = vld [vmem:[%s11112_s26 + $0x1060] sm:$0xff]  ;;  %v1774_v7 = vld [vmem:[%s11112_s26 + $0x1070] sm:$0xff]  ;;  %1771 = vst [vmem:[%s11117_s27 + $0x828] sm:$0xff] %v1770_v5 }
  0xa0   : > { %1773 = vst [vmem:[%s11117_s27 + $0x830] sm:$0xff] %v1772_v6  ;;  %1775 = vst [vmem:[%s11117_s27 + $0x838] sm:$0xff] %v1774_v7  ;;  %v1776_v8 = vld [vmem:[%s11112_s26 + $0x1080] sm:$0xff]  ;;  %v1778_v9 = vld [vmem:[%s11112_s26 + $0x1090] sm:$0xff] }
  0xa1   : > { %v1780_v10 = vld [vmem:[%s11112_s26 + $0x10a0] sm:$0xff]  ;;  %1777 = vst [vmem:[%s11117_s27 + $0x840] sm:$0xff] %v1776_v8  ;;  %1779 = vst [vmem:[%s11117_s27 + $0x848] sm:$0xff] %v1778_v9  ;;  %v1782_v11 = vld [vmem:[%s11112_s26 + $0x10b0] sm:$0xff] }
  0xa2   : > { %1781 = vst [vmem:[%s11117_s27 + $0x850] sm:$0xff] %v1780_v10  ;;  %v1784_v12 = vld [vmem:[%s11112_s26 + $0x10c0] sm:$0xff]  ;;  %v1786_v13 = vld [vmem:[%s11112_s26 + $0x10d0] sm:$0xff]  ;;  %1783 = vst [vmem:[%s11117_s27 + $0x858] sm:$0xff] %v1782_v11 }
  0xa3   : > { %1785 = vst [vmem:[%s11117_s27 + $0x860] sm:$0xff] %v1784_v12  ;;  %1787 = vst [vmem:[%s11117_s27 + $0x868] sm:$0xff] %v1786_v13  ;;  %v1788_v14 = vld [vmem:[%s11112_s26 + $0x10e0] sm:$0xff]  ;;  %v1790_v15 = vld [vmem:[%s11112_s26 + $0x10f0] sm:$0xff] }
  0xa4   : > { %v1792_v16 = vld [vmem:[%s11112_s26 + $0x1100] sm:$0xff]  ;;  %1789 = vst [vmem:[%s11117_s27 + $0x870] sm:$0xff] %v1788_v14  ;;  %1791 = vst [vmem:[%s11117_s27 + $0x878] sm:$0xff] %v1790_v15  ;;  %v1794_v17 = vld [vmem:[%s11112_s26 + $0x1110] sm:$0xff] }
  0xa5   : > { %1793 = vst [vmem:[%s11117_s27 + $0x880] sm:$0xff] %v1792_v16  ;;  %v1796_v18 = vld [vmem:[%s11112_s26 + $0x1120] sm:$0xff]  ;;  %v1798_v19 = vld [vmem:[%s11112_s26 + $0x1130] sm:$0xff]  ;;  %1795 = vst [vmem:[%s11117_s27 + $0x888] sm:$0xff] %v1794_v17 }
  0xa6   : > { %1797 = vst [vmem:[%s11117_s27 + $0x890] sm:$0xff] %v1796_v18  ;;  %1799 = vst [vmem:[%s11117_s27 + $0x898] sm:$0xff] %v1798_v19  ;;  %v1800_v20 = vld [vmem:[%s11112_s26 + $0x1140] sm:$0xff]  ;;  %v1802_v21 = vld [vmem:[%s11112_s26 + $0x1150] sm:$0xff] }
  0xa7   : > { %v1804_v22 = vld [vmem:[%s11112_s26 + $0x1160] sm:$0xff]  ;;  %1801 = vst [vmem:[%s11117_s27 + $0x8a0] sm:$0xff] %v1800_v20  ;;  %1803 = vst [vmem:[%s11117_s27 + $0x8a8] sm:$0xff] %v1802_v21  ;;  %v1806_v23 = vld [vmem:[%s11112_s26 + $0x1170] sm:$0xff] }
  0xa8   : > { %1805 = vst [vmem:[%s11117_s27 + $0x8b0] sm:$0xff] %v1804_v22  ;;  %v1808_v24 = vld [vmem:[%s11112_s26 + $0x1180] sm:$0xff]  ;;  %v1810_v25 = vld [vmem:[%s11112_s26 + $0x1190] sm:$0xff]  ;;  %1807 = vst [vmem:[%s11117_s27 + $0x8b8] sm:$0xff] %v1806_v23 }
  0xa9   : > { %1809 = vst [vmem:[%s11117_s27 + $0x8c0] sm:$0xff] %v1808_v24  ;;  %1811 = vst [vmem:[%s11117_s27 + $0x8c8] sm:$0xff] %v1810_v25  ;;  %v1812_v26 = vld [vmem:[%s11112_s26 + $0x11a0] sm:$0xff]  ;;  %v1814_v27 = vld [vmem:[%s11112_s26 + $0x11b0] sm:$0xff] }
  0xaa   : > { %v1816_v28 = vld [vmem:[%s11112_s26 + $0x11c0] sm:$0xff]  ;;  %1813 = vst [vmem:[%s11117_s27 + $0x8d0] sm:$0xff] %v1812_v26  ;;  %1815 = vst [vmem:[%s11117_s27 + $0x8d8] sm:$0xff] %v1814_v27  ;;  %v1818_v29 = vld [vmem:[%s11112_s26 + $0x11d0] sm:$0xff] }
  0xab   : > { %1817 = vst [vmem:[%s11117_s27 + $0x8e0] sm:$0xff] %v1816_v28  ;;  %v1820_v30 = vld [vmem:[%s11112_s26 + $0x11e0] sm:$0xff]  ;;  %v1822_v31 = vld [vmem:[%s11112_s26 + $0x11f0] sm:$0xff]  ;;  %1819 = vst [vmem:[%s11117_s27 + $0x8e8] sm:$0xff] %v1818_v29 }
  0xac   : > { %1821 = vst [vmem:[%s11117_s27 + $0x8f0] sm:$0xff] %v1820_v30  ;;  %1823 = vst [vmem:[%s11117_s27 + $0x8f8] sm:$0xff] %v1822_v31  ;;  %v1824_v32 = vld [vmem:[%s11112_s26 + $0x1200] sm:$0xff]  ;;  %v1826_v33 = vld [vmem:[%s11112_s26 + $0x1210] sm:$0xff] }
  0xad   : > { %v1828_v34 = vld [vmem:[%s11112_s26 + $0x1220] sm:$0xff]  ;;  %1825 = vst [vmem:[%s11117_s27 + $0x900] sm:$0xff] %v1824_v32  ;;  %1827 = vst [vmem:[%s11117_s27 + $0x908] sm:$0xff] %v1826_v33  ;;  %v1830_v35 = vld [vmem:[%s11112_s26 + $0x1230] sm:$0xff] }
  0xae   : > { %1829 = vst [vmem:[%s11117_s27 + $0x910] sm:$0xff] %v1828_v34  ;;  %v1832_v36 = vld [vmem:[%s11112_s26 + $0x1240] sm:$0xff]  ;;  %v1834_v37 = vld [vmem:[%s11112_s26 + $0x1250] sm:$0xff]  ;;  %1831 = vst [vmem:[%s11117_s27 + $0x918] sm:$0xff] %v1830_v35 }
  0xaf   : > { %1833 = vst [vmem:[%s11117_s27 + $0x920] sm:$0xff] %v1832_v36  ;;  %1835 = vst [vmem:[%s11117_s27 + $0x928] sm:$0xff] %v1834_v37  ;;  %v1836_v38 = vld [vmem:[%s11112_s26 + $0x1260] sm:$0xff]  ;;  %v1838_v39 = vld [vmem:[%s11112_s26 + $0x1270] sm:$0xff] }
  0xb0   : > { %v1840_v40 = vld [vmem:[%s11112_s26 + $0x1280] sm:$0xff]  ;;  %1837 = vst [vmem:[%s11117_s27 + $0x930] sm:$0xff] %v1836_v38  ;;  %1839 = vst [vmem:[%s11117_s27 + $0x938] sm:$0xff] %v1838_v39  ;;  %v1842_v41 = vld [vmem:[%s11112_s26 + $0x1290] sm:$0xff] }
  0xb1   : > { %1841 = vst [vmem:[%s11117_s27 + $0x940] sm:$0xff] %v1840_v40  ;;  %v1844_v42 = vld [vmem:[%s11112_s26 + $0x12a0] sm:$0xff]  ;;  %v1846_v43 = vld [vmem:[%s11112_s26 + $0x12b0] sm:$0xff]  ;;  %1843 = vst [vmem:[%s11117_s27 + $0x948] sm:$0xff] %v1842_v41 }
  0xb2   : > { %1845 = vst [vmem:[%s11117_s27 + $0x950] sm:$0xff] %v1844_v42  ;;  %1847 = vst [vmem:[%s11117_s27 + $0x958] sm:$0xff] %v1846_v43  ;;  %v1848_v44 = vld [vmem:[%s11112_s26 + $0x12c0] sm:$0xff]  ;;  %v1850_v45 = vld [vmem:[%s11112_s26 + $0x12d0] sm:$0xff] }
  0xb3   : > { %v1852_v46 = vld [vmem:[%s11112_s26 + $0x12e0] sm:$0xff]  ;;  %1849 = vst [vmem:[%s11117_s27 + $0x960] sm:$0xff] %v1848_v44  ;;  %1851 = vst [vmem:[%s11117_s27 + $0x968] sm:$0xff] %v1850_v45  ;;  %v1854_v47 = vld [vmem:[%s11112_s26 + $0x12f0] sm:$0xff] }
  0xb4   : > { %1853 = vst [vmem:[%s11117_s27 + $0x970] sm:$0xff] %v1852_v46  ;;  %v1856_v48 = vld [vmem:[%s11112_s26 + $0x1300] sm:$0xff]  ;;  %v1858_v49 = vld [vmem:[%s11112_s26 + $0x1310] sm:$0xff]  ;;  %1855 = vst [vmem:[%s11117_s27 + $0x978] sm:$0xff] %v1854_v47 }
  0xb5   : > { %1857 = vst [vmem:[%s11117_s27 + $0x980] sm:$0xff] %v1856_v48  ;;  %1859 = vst [vmem:[%s11117_s27 + $0x988] sm:$0xff] %v1858_v49  ;;  %v1860_v50 = vld [vmem:[%s11112_s26 + $0x1320] sm:$0xff]  ;;  %v1862_v51 = vld [vmem:[%s11112_s26 + $0x1330] sm:$0xff] }
  0xb6   : > { %v1864_v52 = vld [vmem:[%s11112_s26 + $0x1340] sm:$0xff]  ;;  %1861 = vst [vmem:[%s11117_s27 + $0x990] sm:$0xff] %v1860_v50  ;;  %1863 = vst [vmem:[%s11117_s27 + $0x998] sm:$0xff] %v1862_v51  ;;  %v1866_v53 = vld [vmem:[%s11112_s26 + $0x1350] sm:$0xff] }
  0xb7   : > { %1865 = vst [vmem:[%s11117_s27 + $0x9a0] sm:$0xff] %v1864_v52  ;;  %v1868_v54 = vld [vmem:[%s11112_s26 + $0x1360] sm:$0xff]  ;;  %v1870_v55 = vld [vmem:[%s11112_s26 + $0x1370] sm:$0xff]  ;;  %1867 = vst [vmem:[%s11117_s27 + $0x9a8] sm:$0xff] %v1866_v53 }
  0xb8   : > { %1869 = vst [vmem:[%s11117_s27 + $0x9b0] sm:$0xff] %v1868_v54  ;;  %1871 = vst [vmem:[%s11117_s27 + $0x9b8] sm:$0xff] %v1870_v55  ;;  %v1872_v56 = vld [vmem:[%s11112_s26 + $0x1380] sm:$0xff]  ;;  %v1874_v57 = vld [vmem:[%s11112_s26 + $0x1390] sm:$0xff] }
  0xb9   : > { %v1876_v58 = vld [vmem:[%s11112_s26 + $0x13a0] sm:$0xff]  ;;  %1873 = vst [vmem:[%s11117_s27 + $0x9c0] sm:$0xff] %v1872_v56  ;;  %1875 = vst [vmem:[%s11117_s27 + $0x9c8] sm:$0xff] %v1874_v57  ;;  %v1878_v59 = vld [vmem:[%s11112_s26 + $0x13b0] sm:$0xff] }
  0xba   : > { %1877 = vst [vmem:[%s11117_s27 + $0x9d0] sm:$0xff] %v1876_v58  ;;  %v1880_v60 = vld [vmem:[%s11112_s26 + $0x13c0] sm:$0xff]  ;;  %v1882_v61 = vld [vmem:[%s11112_s26 + $0x13d0] sm:$0xff]  ;;  %1879 = vst [vmem:[%s11117_s27 + $0x9d8] sm:$0xff] %v1878_v59 }
  0xbb   : > { %1881 = vst [vmem:[%s11117_s27 + $0x9e0] sm:$0xff] %v1880_v60  ;;  %1883 = vst [vmem:[%s11117_s27 + $0x9e8] sm:$0xff] %v1882_v61  ;;  %v1884_v62 = vld [vmem:[%s11112_s26 + $0x13e0] sm:$0xff]  ;;  %v1886_v63 = vld [vmem:[%s11112_s26 + $0x13f0] sm:$0xff] }
  0xbc   : > { %v1888_v0 = vld [vmem:[%s11112_s26 + $0x1400] sm:$0xff]  ;;  %1885 = vst [vmem:[%s11117_s27 + $0x9f0] sm:$0xff] %v1884_v62  ;;  %1887 = vst [vmem:[%s11117_s27 + $0x9f8] sm:$0xff] %v1886_v63  ;;  %v1890_v1 = vld [vmem:[%s11112_s26 + $0x1410] sm:$0xff] }
  0xbd   : > { %1889 = vst [vmem:[%s11117_s27 + $0xa00] sm:$0xff] %v1888_v0  ;;  %v1892_v2 = vld [vmem:[%s11112_s26 + $0x1420] sm:$0xff]  ;;  %v1894_v3 = vld [vmem:[%s11112_s26 + $0x1430] sm:$0xff]  ;;  %1891 = vst [vmem:[%s11117_s27 + $0xa08] sm:$0xff] %v1890_v1 }
  0xbe   : > { %1893 = vst [vmem:[%s11117_s27 + $0xa10] sm:$0xff] %v1892_v2  ;;  %1895 = vst [vmem:[%s11117_s27 + $0xa18] sm:$0xff] %v1894_v3  ;;  %v1896_v4 = vld [vmem:[%s11112_s26 + $0x1440] sm:$0xff]  ;;  %v1898_v5 = vld [vmem:[%s11112_s26 + $0x1450] sm:$0xff] }
  0xbf   : > { %v1900_v6 = vld [vmem:[%s11112_s26 + $0x1460] sm:$0xff]  ;;  %1897 = vst [vmem:[%s11117_s27 + $0xa20] sm:$0xff] %v1896_v4  ;;  %1899 = vst [vmem:[%s11117_s27 + $0xa28] sm:$0xff] %v1898_v5  ;;  %v1902_v7 = vld [vmem:[%s11112_s26 + $0x1470] sm:$0xff] }
  0xc0   : > { %1901 = vst [vmem:[%s11117_s27 + $0xa30] sm:$0xff] %v1900_v6  ;;  %v1904_v8 = vld [vmem:[%s11112_s26 + $0x1480] sm:$0xff]  ;;  %v1906_v9 = vld [vmem:[%s11112_s26 + $0x1490] sm:$0xff]  ;;  %1903 = vst [vmem:[%s11117_s27 + $0xa38] sm:$0xff] %v1902_v7 }
  0xc1   : > { %1905 = vst [vmem:[%s11117_s27 + $0xa40] sm:$0xff] %v1904_v8  ;;  %1907 = vst [vmem:[%s11117_s27 + $0xa48] sm:$0xff] %v1906_v9  ;;  %v1908_v10 = vld [vmem:[%s11112_s26 + $0x14a0] sm:$0xff]  ;;  %v1910_v11 = vld [vmem:[%s11112_s26 + $0x14b0] sm:$0xff] }
  0xc2   : > { %v1912_v12 = vld [vmem:[%s11112_s26 + $0x14c0] sm:$0xff]  ;;  %1909 = vst [vmem:[%s11117_s27 + $0xa50] sm:$0xff] %v1908_v10  ;;  %1911 = vst [vmem:[%s11117_s27 + $0xa58] sm:$0xff] %v1910_v11  ;;  %v1914_v13 = vld [vmem:[%s11112_s26 + $0x14d0] sm:$0xff] }
  0xc3   : > { %1913 = vst [vmem:[%s11117_s27 + $0xa60] sm:$0xff] %v1912_v12  ;;  %v1916_v14 = vld [vmem:[%s11112_s26 + $0x14e0] sm:$0xff]  ;;  %v1918_v15 = vld [vmem:[%s11112_s26 + $0x14f0] sm:$0xff]  ;;  %1915 = vst [vmem:[%s11117_s27 + $0xa68] sm:$0xff] %v1914_v13 }
  0xc4   : > { %1917 = vst [vmem:[%s11117_s27 + $0xa70] sm:$0xff] %v1916_v14  ;;  %1919 = vst [vmem:[%s11117_s27 + $0xa78] sm:$0xff] %v1918_v15  ;;  %v1920_v16 = vld [vmem:[%s11112_s26 + $0x1500] sm:$0xff]  ;;  %v1922_v17 = vld [vmem:[%s11112_s26 + $0x1510] sm:$0xff] }
  0xc5   : > { %v1924_v18 = vld [vmem:[%s11112_s26 + $0x1520] sm:$0xff]  ;;  %1921 = vst [vmem:[%s11117_s27 + $0xa80] sm:$0xff] %v1920_v16  ;;  %1923 = vst [vmem:[%s11117_s27 + $0xa88] sm:$0xff] %v1922_v17  ;;  %v1926_v19 = vld [vmem:[%s11112_s26 + $0x1530] sm:$0xff] }
  0xc6   : > { %1925 = vst [vmem:[%s11117_s27 + $0xa90] sm:$0xff] %v1924_v18  ;;  %v1928_v20 = vld [vmem:[%s11112_s26 + $0x1540] sm:$0xff]  ;;  %v1930_v21 = vld [vmem:[%s11112_s26 + $0x1550] sm:$0xff]  ;;  %1927 = vst [vmem:[%s11117_s27 + $0xa98] sm:$0xff] %v1926_v19 }
  0xc7   : > { %1929 = vst [vmem:[%s11117_s27 + $0xaa0] sm:$0xff] %v1928_v20  ;;  %1931 = vst [vmem:[%s11117_s27 + $0xaa8] sm:$0xff] %v1930_v21  ;;  %v1932_v22 = vld [vmem:[%s11112_s26 + $0x1560] sm:$0xff]  ;;  %v1934_v23 = vld [vmem:[%s11112_s26 + $0x1570] sm:$0xff] }
  0xc8   : > { %v1936_v24 = vld [vmem:[%s11112_s26 + $0x1580] sm:$0xff]  ;;  %1933 = vst [vmem:[%s11117_s27 + $0xab0] sm:$0xff] %v1932_v22  ;;  %1935 = vst [vmem:[%s11117_s27 + $0xab8] sm:$0xff] %v1934_v23  ;;  %v1938_v25 = vld [vmem:[%s11112_s26 + $0x1590] sm:$0xff] }
  0xc9   : > { %1937 = vst [vmem:[%s11117_s27 + $0xac0] sm:$0xff] %v1936_v24  ;;  %v1940_v26 = vld [vmem:[%s11112_s26 + $0x15a0] sm:$0xff]  ;;  %v1942_v27 = vld [vmem:[%s11112_s26 + $0x15b0] sm:$0xff]  ;;  %1939 = vst [vmem:[%s11117_s27 + $0xac8] sm:$0xff] %v1938_v25 }
  0xca   : > { %1941 = vst [vmem:[%s11117_s27 + $0xad0] sm:$0xff] %v1940_v26  ;;  %1943 = vst [vmem:[%s11117_s27 + $0xad8] sm:$0xff] %v1942_v27  ;;  %v1944_v28 = vld [vmem:[%s11112_s26 + $0x15c0] sm:$0xff]  ;;  %v1946_v29 = vld [vmem:[%s11112_s26 + $0x15d0] sm:$0xff] }
  0xcb   : > { %v1948_v30 = vld [vmem:[%s11112_s26 + $0x15e0] sm:$0xff]  ;;  %1945 = vst [vmem:[%s11117_s27 + $0xae0] sm:$0xff] %v1944_v28  ;;  %1947 = vst [vmem:[%s11117_s27 + $0xae8] sm:$0xff] %v1946_v29  ;;  %v1950_v31 = vld [vmem:[%s11112_s26 + $0x15f0] sm:$0xff] }
  0xcc   : > { %1949 = vst [vmem:[%s11117_s27 + $0xaf0] sm:$0xff] %v1948_v30  ;;  %v1952_v32 = vld [vmem:[%s11112_s26 + $0x1600] sm:$0xff]  ;;  %v1954_v33 = vld [vmem:[%s11112_s26 + $0x1610] sm:$0xff]  ;;  %1951 = vst [vmem:[%s11117_s27 + $0xaf8] sm:$0xff] %v1950_v31 }
  0xcd   : > { %1953 = vst [vmem:[%s11117_s27 + $0xb00] sm:$0xff] %v1952_v32  ;;  %1955 = vst [vmem:[%s11117_s27 + $0xb08] sm:$0xff] %v1954_v33  ;;  %v1956_v34 = vld [vmem:[%s11112_s26 + $0x1620] sm:$0xff]  ;;  %v1958_v35 = vld [vmem:[%s11112_s26 + $0x1630] sm:$0xff] }
  0xce   : > { %v1960_v36 = vld [vmem:[%s11112_s26 + $0x1640] sm:$0xff]  ;;  %1957 = vst [vmem:[%s11117_s27 + $0xb10] sm:$0xff] %v1956_v34  ;;  %1959 = vst [vmem:[%s11117_s27 + $0xb18] sm:$0xff] %v1958_v35  ;;  %v1962_v37 = vld [vmem:[%s11112_s26 + $0x1650] sm:$0xff] }
  0xcf   : > { %1961 = vst [vmem:[%s11117_s27 + $0xb20] sm:$0xff] %v1960_v36  ;;  %v1964_v38 = vld [vmem:[%s11112_s26 + $0x1660] sm:$0xff]  ;;  %v1966_v39 = vld [vmem:[%s11112_s26 + $0x1670] sm:$0xff]  ;;  %1963 = vst [vmem:[%s11117_s27 + $0xb28] sm:$0xff] %v1962_v37 }
  0xd0   : > { %1965 = vst [vmem:[%s11117_s27 + $0xb30] sm:$0xff] %v1964_v38  ;;  %1967 = vst [vmem:[%s11117_s27 + $0xb38] sm:$0xff] %v1966_v39  ;;  %v1968_v40 = vld [vmem:[%s11112_s26 + $0x1680] sm:$0xff]  ;;  %v1970_v41 = vld [vmem:[%s11112_s26 + $0x1690] sm:$0xff] }
  0xd1   : > { %v1972_v42 = vld [vmem:[%s11112_s26 + $0x16a0] sm:$0xff]  ;;  %1969 = vst [vmem:[%s11117_s27 + $0xb40] sm:$0xff] %v1968_v40  ;;  %1971 = vst [vmem:[%s11117_s27 + $0xb48] sm:$0xff] %v1970_v41  ;;  %v1974_v43 = vld [vmem:[%s11112_s26 + $0x16b0] sm:$0xff] }
  0xd2   : > { %1973 = vst [vmem:[%s11117_s27 + $0xb50] sm:$0xff] %v1972_v42  ;;  %v1976_v44 = vld [vmem:[%s11112_s26 + $0x16c0] sm:$0xff]  ;;  %v1978_v45 = vld [vmem:[%s11112_s26 + $0x16d0] sm:$0xff]  ;;  %1975 = vst [vmem:[%s11117_s27 + $0xb58] sm:$0xff] %v1974_v43 }
  0xd3   : > { %1977 = vst [vmem:[%s11117_s27 + $0xb60] sm:$0xff] %v1976_v44  ;;  %1979 = vst [vmem:[%s11117_s27 + $0xb68] sm:$0xff] %v1978_v45  ;;  %v1980_v46 = vld [vmem:[%s11112_s26 + $0x16e0] sm:$0xff]  ;;  %v1982_v47 = vld [vmem:[%s11112_s26 + $0x16f0] sm:$0xff] }
  0xd4   : > { %v1984_v48 = vld [vmem:[%s11112_s26 + $0x1700] sm:$0xff]  ;;  %1981 = vst [vmem:[%s11117_s27 + $0xb70] sm:$0xff] %v1980_v46  ;;  %1983 = vst [vmem:[%s11117_s27 + $0xb78] sm:$0xff] %v1982_v47  ;;  %v1986_v49 = vld [vmem:[%s11112_s26 + $0x1710] sm:$0xff] }
  0xd5   : > { %1985 = vst [vmem:[%s11117_s27 + $0xb80] sm:$0xff] %v1984_v48  ;;  %v1988_v50 = vld [vmem:[%s11112_s26 + $0x1720] sm:$0xff]  ;;  %v1990_v51 = vld [vmem:[%s11112_s26 + $0x1730] sm:$0xff]  ;;  %1987 = vst [vmem:[%s11117_s27 + $0xb88] sm:$0xff] %v1986_v49 }
  0xd6   : > { %1989 = vst [vmem:[%s11117_s27 + $0xb90] sm:$0xff] %v1988_v50  ;;  %1991 = vst [vmem:[%s11117_s27 + $0xb98] sm:$0xff] %v1990_v51  ;;  %v1992_v52 = vld [vmem:[%s11112_s26 + $0x1740] sm:$0xff]  ;;  %v1994_v53 = vld [vmem:[%s11112_s26 + $0x1750] sm:$0xff] }
  0xd7   : > { %v1996_v54 = vld [vmem:[%s11112_s26 + $0x1760] sm:$0xff]  ;;  %1993 = vst [vmem:[%s11117_s27 + $0xba0] sm:$0xff] %v1992_v52  ;;  %1995 = vst [vmem:[%s11117_s27 + $0xba8] sm:$0xff] %v1994_v53  ;;  %v1998_v55 = vld [vmem:[%s11112_s26 + $0x1770] sm:$0xff] }
  0xd8   : > { %1997 = vst [vmem:[%s11117_s27 + $0xbb0] sm:$0xff] %v1996_v54  ;;  %v2000_v56 = vld [vmem:[%s11112_s26 + $0x1780] sm:$0xff]  ;;  %v2002_v57 = vld [vmem:[%s11112_s26 + $0x1790] sm:$0xff]  ;;  %1999 = vst [vmem:[%s11117_s27 + $0xbb8] sm:$0xff] %v1998_v55 }
  0xd9   : > { %2001 = vst [vmem:[%s11117_s27 + $0xbc0] sm:$0xff] %v2000_v56  ;;  %2003 = vst [vmem:[%s11117_s27 + $0xbc8] sm:$0xff] %v2002_v57  ;;  %v2004_v58 = vld [vmem:[%s11112_s26 + $0x17a0] sm:$0xff]  ;;  %v2006_v59 = vld [vmem:[%s11112_s26 + $0x17b0] sm:$0xff] }
  0xda   : > { %v2008_v60 = vld [vmem:[%s11112_s26 + $0x17c0] sm:$0xff]  ;;  %2005 = vst [vmem:[%s11117_s27 + $0xbd0] sm:$0xff] %v2004_v58  ;;  %2007 = vst [vmem:[%s11117_s27 + $0xbd8] sm:$0xff] %v2006_v59  ;;  %v2010_v61 = vld [vmem:[%s11112_s26 + $0x17d0] sm:$0xff] }
  0xdb   : > { %2009 = vst [vmem:[%s11117_s27 + $0xbe0] sm:$0xff] %v2008_v60  ;;  %v2012_v62 = vld [vmem:[%s11112_s26 + $0x17e0] sm:$0xff]  ;;  %v2014_v63 = vld [vmem:[%s11112_s26 + $0x17f0] sm:$0xff]  ;;  %2011 = vst [vmem:[%s11117_s27 + $0xbe8] sm:$0xff] %v2010_v61 }
  0xdc   : > { %2013 = vst [vmem:[%s11117_s27 + $0xbf0] sm:$0xff] %v2012_v62  ;;  %2015 = vst [vmem:[%s11117_s27 + $0xbf8] sm:$0xff] %v2014_v63  ;;  %v2016_v0 = vld [vmem:[%s11112_s26 + $0x1800] sm:$0xff]  ;;  %v2018_v1 = vld [vmem:[%s11112_s26 + $0x1810] sm:$0xff] }
  0xdd   : > { %v2020_v2 = vld [vmem:[%s11112_s26 + $0x1820] sm:$0xff]  ;;  %2017 = vst [vmem:[%s11117_s27 + $0xc00] sm:$0xff] %v2016_v0  ;;  %2019 = vst [vmem:[%s11117_s27 + $0xc08] sm:$0xff] %v2018_v1  ;;  %v2022_v3 = vld [vmem:[%s11112_s26 + $0x1830] sm:$0xff] }
  0xde   : > { %2021 = vst [vmem:[%s11117_s27 + $0xc10] sm:$0xff] %v2020_v2  ;;  %v2024_v4 = vld [vmem:[%s11112_s26 + $0x1840] sm:$0xff]  ;;  %v2026_v5 = vld [vmem:[%s11112_s26 + $0x1850] sm:$0xff]  ;;  %2023 = vst [vmem:[%s11117_s27 + $0xc18] sm:$0xff] %v2022_v3 }
  0xdf   : > { %2025 = vst [vmem:[%s11117_s27 + $0xc20] sm:$0xff] %v2024_v4  ;;  %2027 = vst [vmem:[%s11117_s27 + $0xc28] sm:$0xff] %v2026_v5  ;;  %v2028_v6 = vld [vmem:[%s11112_s26 + $0x1860] sm:$0xff]  ;;  %v2030_v7 = vld [vmem:[%s11112_s26 + $0x1870] sm:$0xff] }
  0xe0   : > { %v2032_v8 = vld [vmem:[%s11112_s26 + $0x1880] sm:$0xff]  ;;  %2029 = vst [vmem:[%s11117_s27 + $0xc30] sm:$0xff] %v2028_v6  ;;  %2031 = vst [vmem:[%s11117_s27 + $0xc38] sm:$0xff] %v2030_v7  ;;  %v2034_v9 = vld [vmem:[%s11112_s26 + $0x1890] sm:$0xff] }
  0xe1   : > { %2033 = vst [vmem:[%s11117_s27 + $0xc40] sm:$0xff] %v2032_v8  ;;  %v2036_v10 = vld [vmem:[%s11112_s26 + $0x18a0] sm:$0xff]  ;;  %v2038_v11 = vld [vmem:[%s11112_s26 + $0x18b0] sm:$0xff]  ;;  %2035 = vst [vmem:[%s11117_s27 + $0xc48] sm:$0xff] %v2034_v9 }
  0xe2   : > { %2037 = vst [vmem:[%s11117_s27 + $0xc50] sm:$0xff] %v2036_v10  ;;  %2039 = vst [vmem:[%s11117_s27 + $0xc58] sm:$0xff] %v2038_v11  ;;  %v2040_v12 = vld [vmem:[%s11112_s26 + $0x18c0] sm:$0xff]  ;;  %v2042_v13 = vld [vmem:[%s11112_s26 + $0x18d0] sm:$0xff] }
  0xe3   : > { %v2044_v14 = vld [vmem:[%s11112_s26 + $0x18e0] sm:$0xff]  ;;  %2041 = vst [vmem:[%s11117_s27 + $0xc60] sm:$0xff] %v2040_v12  ;;  %2043 = vst [vmem:[%s11117_s27 + $0xc68] sm:$0xff] %v2042_v13  ;;  %v2046_v15 = vld [vmem:[%s11112_s26 + $0x18f0] sm:$0xff] }
  0xe4   : > { %2045 = vst [vmem:[%s11117_s27 + $0xc70] sm:$0xff] %v2044_v14  ;;  %v2048_v16 = vld [vmem:[%s11112_s26 + $0x1900] sm:$0xff]  ;;  %v2050_v17 = vld [vmem:[%s11112_s26 + $0x1910] sm:$0xff]  ;;  %2047 = vst [vmem:[%s11117_s27 + $0xc78] sm:$0xff] %v2046_v15 }
  0xe5   : > { %2049 = vst [vmem:[%s11117_s27 + $0xc80] sm:$0xff] %v2048_v16  ;;  %2051 = vst [vmem:[%s11117_s27 + $0xc88] sm:$0xff] %v2050_v17  ;;  %v2052_v18 = vld [vmem:[%s11112_s26 + $0x1920] sm:$0xff]  ;;  %v2054_v19 = vld [vmem:[%s11112_s26 + $0x1930] sm:$0xff] }
  0xe6   : > { %v2056_v20 = vld [vmem:[%s11112_s26 + $0x1940] sm:$0xff]  ;;  %2053 = vst [vmem:[%s11117_s27 + $0xc90] sm:$0xff] %v2052_v18  ;;  %2055 = vst [vmem:[%s11117_s27 + $0xc98] sm:$0xff] %v2054_v19  ;;  %v2058_v21 = vld [vmem:[%s11112_s26 + $0x1950] sm:$0xff] }
  0xe7   : > { %2057 = vst [vmem:[%s11117_s27 + $0xca0] sm:$0xff] %v2056_v20  ;;  %v2060_v22 = vld [vmem:[%s11112_s26 + $0x1960] sm:$0xff]  ;;  %v2062_v23 = vld [vmem:[%s11112_s26 + $0x1970] sm:$0xff]  ;;  %2059 = vst [vmem:[%s11117_s27 + $0xca8] sm:$0xff] %v2058_v21 }
  0xe8   : > { %2061 = vst [vmem:[%s11117_s27 + $0xcb0] sm:$0xff] %v2060_v22  ;;  %2063 = vst [vmem:[%s11117_s27 + $0xcb8] sm:$0xff] %v2062_v23  ;;  %v2064_v24 = vld [vmem:[%s11112_s26 + $0x1980] sm:$0xff]  ;;  %v2066_v25 = vld [vmem:[%s11112_s26 + $0x1990] sm:$0xff] }
  0xe9   : > { %v2068_v26 = vld [vmem:[%s11112_s26 + $0x19a0] sm:$0xff]  ;;  %2065 = vst [vmem:[%s11117_s27 + $0xcc0] sm:$0xff] %v2064_v24  ;;  %2067 = vst [vmem:[%s11117_s27 + $0xcc8] sm:$0xff] %v2066_v25  ;;  %v2070_v27 = vld [vmem:[%s11112_s26 + $0x19b0] sm:$0xff] }
  0xea   : > { %2069 = vst [vmem:[%s11117_s27 + $0xcd0] sm:$0xff] %v2068_v26  ;;  %v2072_v28 = vld [vmem:[%s11112_s26 + $0x19c0] sm:$0xff]  ;;  %v2074_v29 = vld [vmem:[%s11112_s26 + $0x19d0] sm:$0xff]  ;;  %2071 = vst [vmem:[%s11117_s27 + $0xcd8] sm:$0xff] %v2070_v27 }
  0xeb   : > { %2073 = vst [vmem:[%s11117_s27 + $0xce0] sm:$0xff] %v2072_v28  ;;  %2075 = vst [vmem:[%s11117_s27 + $0xce8] sm:$0xff] %v2074_v29  ;;  %v2076_v30 = vld [vmem:[%s11112_s26 + $0x19e0] sm:$0xff]  ;;  %v2078_v31 = vld [vmem:[%s11112_s26 + $0x19f0] sm:$0xff] }
  0xec   : > { %v2080_v32 = vld [vmem:[%s11112_s26 + $0x1a00] sm:$0xff]  ;;  %2077 = vst [vmem:[%s11117_s27 + $0xcf0] sm:$0xff] %v2076_v30  ;;  %2079 = vst [vmem:[%s11117_s27 + $0xcf8] sm:$0xff] %v2078_v31  ;;  %v2082_v33 = vld [vmem:[%s11112_s26 + $0x1a10] sm:$0xff] }
  0xed   : > { %2081 = vst [vmem:[%s11117_s27 + $0xd00] sm:$0xff] %v2080_v32  ;;  %v2084_v34 = vld [vmem:[%s11112_s26 + $0x1a20] sm:$0xff]  ;;  %v2086_v35 = vld [vmem:[%s11112_s26 + $0x1a30] sm:$0xff]  ;;  %2083 = vst [vmem:[%s11117_s27 + $0xd08] sm:$0xff] %v2082_v33 }
  0xee   : > { %2085 = vst [vmem:[%s11117_s27 + $0xd10] sm:$0xff] %v2084_v34  ;;  %2087 = vst [vmem:[%s11117_s27 + $0xd18] sm:$0xff] %v2086_v35  ;;  %v2088_v36 = vld [vmem:[%s11112_s26 + $0x1a40] sm:$0xff]  ;;  %v2090_v37 = vld [vmem:[%s11112_s26 + $0x1a50] sm:$0xff] }
  0xef   : > { %v2092_v38 = vld [vmem:[%s11112_s26 + $0x1a60] sm:$0xff]  ;;  %2089 = vst [vmem:[%s11117_s27 + $0xd20] sm:$0xff] %v2088_v36  ;;  %2091 = vst [vmem:[%s11117_s27 + $0xd28] sm:$0xff] %v2090_v37  ;;  %v2094_v39 = vld [vmem:[%s11112_s26 + $0x1a70] sm:$0xff] }
  0xf0   : > { %2093 = vst [vmem:[%s11117_s27 + $0xd30] sm:$0xff] %v2092_v38  ;;  %v2096_v40 = vld [vmem:[%s11112_s26 + $0x1a80] sm:$0xff]  ;;  %v2098_v41 = vld [vmem:[%s11112_s26 + $0x1a90] sm:$0xff]  ;;  %2095 = vst [vmem:[%s11117_s27 + $0xd38] sm:$0xff] %v2094_v39 }
  0xf1   : > { %2097 = vst [vmem:[%s11117_s27 + $0xd40] sm:$0xff] %v2096_v40  ;;  %2099 = vst [vmem:[%s11117_s27 + $0xd48] sm:$0xff] %v2098_v41  ;;  %v2100_v42 = vld [vmem:[%s11112_s26 + $0x1aa0] sm:$0xff]  ;;  %v2102_v43 = vld [vmem:[%s11112_s26 + $0x1ab0] sm:$0xff] }
  0xf2   : > { %v2104_v44 = vld [vmem:[%s11112_s26 + $0x1ac0] sm:$0xff]  ;;  %2101 = vst [vmem:[%s11117_s27 + $0xd50] sm:$0xff] %v2100_v42  ;;  %2103 = vst [vmem:[%s11117_s27 + $0xd58] sm:$0xff] %v2102_v43  ;;  %v2106_v45 = vld [vmem:[%s11112_s26 + $0x1ad0] sm:$0xff] }
  0xf3   : > { %2105 = vst [vmem:[%s11117_s27 + $0xd60] sm:$0xff] %v2104_v44  ;;  %v2108_v46 = vld [vmem:[%s11112_s26 + $0x1ae0] sm:$0xff]  ;;  %v2110_v47 = vld [vmem:[%s11112_s26 + $0x1af0] sm:$0xff]  ;;  %2107 = vst [vmem:[%s11117_s27 + $0xd68] sm:$0xff] %v2106_v45 }
  0xf4   : > { %2109 = vst [vmem:[%s11117_s27 + $0xd70] sm:$0xff] %v2108_v46  ;;  %2111 = vst [vmem:[%s11117_s27 + $0xd78] sm:$0xff] %v2110_v47  ;;  %v2112_v48 = vld [vmem:[%s11112_s26 + $0x1b00] sm:$0xff]  ;;  %v2114_v49 = vld [vmem:[%s11112_s26 + $0x1b10] sm:$0xff] }
  0xf5   : > { %v2116_v50 = vld [vmem:[%s11112_s26 + $0x1b20] sm:$0xff]  ;;  %2113 = vst [vmem:[%s11117_s27 + $0xd80] sm:$0xff] %v2112_v48  ;;  %2115 = vst [vmem:[%s11117_s27 + $0xd88] sm:$0xff] %v2114_v49  ;;  %v2118_v51 = vld [vmem:[%s11112_s26 + $0x1b30] sm:$0xff] }
  0xf6   : > { %2117 = vst [vmem:[%s11117_s27 + $0xd90] sm:$0xff] %v2116_v50  ;;  %v2120_v52 = vld [vmem:[%s11112_s26 + $0x1b40] sm:$0xff]  ;;  %v2122_v53 = vld [vmem:[%s11112_s26 + $0x1b50] sm:$0xff]  ;;  %2119 = vst [vmem:[%s11117_s27 + $0xd98] sm:$0xff] %v2118_v51 }
  0xf7   : > { %2121 = vst [vmem:[%s11117_s27 + $0xda0] sm:$0xff] %v2120_v52  ;;  %2123 = vst [vmem:[%s11117_s27 + $0xda8] sm:$0xff] %v2122_v53  ;;  %v2124_v54 = vld [vmem:[%s11112_s26 + $0x1b60] sm:$0xff]  ;;  %v2126_v55 = vld [vmem:[%s11112_s26 + $0x1b70] sm:$0xff] }
  0xf8   : > { %v2128_v56 = vld [vmem:[%s11112_s26 + $0x1b80] sm:$0xff]  ;;  %2125 = vst [vmem:[%s11117_s27 + $0xdb0] sm:$0xff] %v2124_v54  ;;  %2127 = vst [vmem:[%s11117_s27 + $0xdb8] sm:$0xff] %v2126_v55  ;;  %v2130_v57 = vld [vmem:[%s11112_s26 + $0x1b90] sm:$0xff] }
  0xf9   : > { %2129 = vst [vmem:[%s11117_s27 + $0xdc0] sm:$0xff] %v2128_v56  ;;  %v2132_v58 = vld [vmem:[%s11112_s26 + $0x1ba0] sm:$0xff]  ;;  %v2134_v59 = vld [vmem:[%s11112_s26 + $0x1bb0] sm:$0xff]  ;;  %2131 = vst [vmem:[%s11117_s27 + $0xdc8] sm:$0xff] %v2130_v57 }
  0xfa   : > { %2133 = vst [vmem:[%s11117_s27 + $0xdd0] sm:$0xff] %v2132_v58  ;;  %2135 = vst [vmem:[%s11117_s27 + $0xdd8] sm:$0xff] %v2134_v59  ;;  %v2136_v60 = vld [vmem:[%s11112_s26 + $0x1bc0] sm:$0xff]  ;;  %v2138_v61 = vld [vmem:[%s11112_s26 + $0x1bd0] sm:$0xff] }
  0xfb   : > { %v2140_v62 = vld [vmem:[%s11112_s26 + $0x1be0] sm:$0xff]  ;;  %2137 = vst [vmem:[%s11117_s27 + $0xde0] sm:$0xff] %v2136_v60  ;;  %2139 = vst [vmem:[%s11117_s27 + $0xde8] sm:$0xff] %v2138_v61  ;;  %v2142_v63 = vld [vmem:[%s11112_s26 + $0x1bf0] sm:$0xff] }
  0xfc   : > { %2141 = vst [vmem:[%s11117_s27 + $0xdf0] sm:$0xff] %v2140_v62  ;;  %v2144_v0 = vld [vmem:[%s11112_s26 + $0x1c00] sm:$0xff]  ;;  %v2146_v1 = vld [vmem:[%s11112_s26 + $0x1c10] sm:$0xff]  ;;  %2143 = vst [vmem:[%s11117_s27 + $0xdf8] sm:$0xff] %v2142_v63 }
  0xfd   : > { %2145 = vst [vmem:[%s11117_s27 + $0xe00] sm:$0xff] %v2144_v0  ;;  %2147 = vst [vmem:[%s11117_s27 + $0xe08] sm:$0xff] %v2146_v1  ;;  %v2148_v2 = vld [vmem:[%s11112_s26 + $0x1c20] sm:$0xff]  ;;  %v2150_v3 = vld [vmem:[%s11112_s26 + $0x1c30] sm:$0xff] }
  0xfe   : > { %v2152_v4 = vld [vmem:[%s11112_s26 + $0x1c40] sm:$0xff]  ;;  %2149 = vst [vmem:[%s11117_s27 + $0xe10] sm:$0xff] %v2148_v2  ;;  %2151 = vst [vmem:[%s11117_s27 + $0xe18] sm:$0xff] %v2150_v3  ;;  %v2154_v5 = vld [vmem:[%s11112_s26 + $0x1c50] sm:$0xff] }
  0xff   : > { %2153 = vst [vmem:[%s11117_s27 + $0xe20] sm:$0xff] %v2152_v4  ;;  %v2156_v6 = vld [vmem:[%s11112_s26 + $0x1c60] sm:$0xff]  ;;  %v2158_v7 = vld [vmem:[%s11112_s26 + $0x1c70] sm:$0xff]  ;;  %2155 = vst [vmem:[%s11117_s27 + $0xe28] sm:$0xff] %v2154_v5 }
 0x100   : > { %2157 = vst [vmem:[%s11117_s27 + $0xe30] sm:$0xff] %v2156_v6  ;;  %2159 = vst [vmem:[%s11117_s27 + $0xe38] sm:$0xff] %v2158_v7  ;;  %v2160_v8 = vld [vmem:[%s11112_s26 + $0x1c80] sm:$0xff]  ;;  %v2162_v9 = vld [vmem:[%s11112_s26 + $0x1c90] sm:$0xff] }
 0x101   : > { %v2164_v10 = vld [vmem:[%s11112_s26 + $0x1ca0] sm:$0xff]  ;;  %2161 = vst [vmem:[%s11117_s27 + $0xe40] sm:$0xff] %v2160_v8  ;;  %2163 = vst [vmem:[%s11117_s27 + $0xe48] sm:$0xff] %v2162_v9  ;;  %v2166_v11 = vld [vmem:[%s11112_s26 + $0x1cb0] sm:$0xff] }
 0x102   : > { %2165 = vst [vmem:[%s11117_s27 + $0xe50] sm:$0xff] %v2164_v10  ;;  %v2168_v12 = vld [vmem:[%s11112_s26 + $0x1cc0] sm:$0xff]  ;;  %v2170_v13 = vld [vmem:[%s11112_s26 + $0x1cd0] sm:$0xff]  ;;  %2167 = vst [vmem:[%s11117_s27 + $0xe58] sm:$0xff] %v2166_v11 }
 0x103   : > { %2169 = vst [vmem:[%s11117_s27 + $0xe60] sm:$0xff] %v2168_v12  ;;  %2171 = vst [vmem:[%s11117_s27 + $0xe68] sm:$0xff] %v2170_v13  ;;  %v2172_v14 = vld [vmem:[%s11112_s26 + $0x1ce0] sm:$0xff]  ;;  %v2174_v15 = vld [vmem:[%s11112_s26 + $0x1cf0] sm:$0xff] }
 0x104   : > { %v2176_v16 = vld [vmem:[%s11112_s26 + $0x1d00] sm:$0xff]  ;;  %2173 = vst [vmem:[%s11117_s27 + $0xe70] sm:$0xff] %v2172_v14  ;;  %2175 = vst [vmem:[%s11117_s27 + $0xe78] sm:$0xff] %v2174_v15  ;;  %v2178_v17 = vld [vmem:[%s11112_s26 + $0x1d10] sm:$0xff] }
 0x105   : > { %2177 = vst [vmem:[%s11117_s27 + $0xe80] sm:$0xff] %v2176_v16  ;;  %v2180_v18 = vld [vmem:[%s11112_s26 + $0x1d20] sm:$0xff]  ;;  %v2182_v19 = vld [vmem:[%s11112_s26 + $0x1d30] sm:$0xff]  ;;  %2179 = vst [vmem:[%s11117_s27 + $0xe88] sm:$0xff] %v2178_v17 }
 0x106   : > { %2181 = vst [vmem:[%s11117_s27 + $0xe90] sm:$0xff] %v2180_v18  ;;  %2183 = vst [vmem:[%s11117_s27 + $0xe98] sm:$0xff] %v2182_v19  ;;  %v2184_v20 = vld [vmem:[%s11112_s26 + $0x1d40] sm:$0xff]  ;;  %v2186_v21 = vld [vmem:[%s11112_s26 + $0x1d50] sm:$0xff] }
 0x107   : > { %v2188_v22 = vld [vmem:[%s11112_s26 + $0x1d60] sm:$0xff]  ;;  %2185 = vst [vmem:[%s11117_s27 + $0xea0] sm:$0xff] %v2184_v20  ;;  %2187 = vst [vmem:[%s11117_s27 + $0xea8] sm:$0xff] %v2186_v21  ;;  %v2190_v23 = vld [vmem:[%s11112_s26 + $0x1d70] sm:$0xff] }
 0x108   : > { %2189 = vst [vmem:[%s11117_s27 + $0xeb0] sm:$0xff] %v2188_v22  ;;  %v2192_v24 = vld [vmem:[%s11112_s26 + $0x1d80] sm:$0xff]  ;;  %v2194_v25 = vld [vmem:[%s11112_s26 + $0x1d90] sm:$0xff]  ;;  %2191 = vst [vmem:[%s11117_s27 + $0xeb8] sm:$0xff] %v2190_v23 }
 0x109   : > { %2193 = vst [vmem:[%s11117_s27 + $0xec0] sm:$0xff] %v2192_v24  ;;  %2195 = vst [vmem:[%s11117_s27 + $0xec8] sm:$0xff] %v2194_v25  ;;  %v2196_v26 = vld [vmem:[%s11112_s26 + $0x1da0] sm:$0xff]  ;;  %v2198_v27 = vld [vmem:[%s11112_s26 + $0x1db0] sm:$0xff] }
 0x10a   : > { %v2200_v28 = vld [vmem:[%s11112_s26 + $0x1dc0] sm:$0xff]  ;;  %2197 = vst [vmem:[%s11117_s27 + $0xed0] sm:$0xff] %v2196_v26  ;;  %2199 = vst [vmem:[%s11117_s27 + $0xed8] sm:$0xff] %v2198_v27  ;;  %v2202_v29 = vld [vmem:[%s11112_s26 + $0x1dd0] sm:$0xff] }
 0x10b   : > { %2201 = vst [vmem:[%s11117_s27 + $0xee0] sm:$0xff] %v2200_v28  ;;  %v2204_v30 = vld [vmem:[%s11112_s26 + $0x1de0] sm:$0xff]  ;;  %v2206_v31 = vld [vmem:[%s11112_s26 + $0x1df0] sm:$0xff]  ;;  %2203 = vst [vmem:[%s11117_s27 + $0xee8] sm:$0xff] %v2202_v29 }
 0x10c   : > { %2205 = vst [vmem:[%s11117_s27 + $0xef0] sm:$0xff] %v2204_v30  ;;  %2207 = vst [vmem:[%s11117_s27 + $0xef8] sm:$0xff] %v2206_v31  ;;  %v2208_v32 = vld [vmem:[%s11112_s26 + $0x1e00] sm:$0xff]  ;;  %v2210_v33 = vld [vmem:[%s11112_s26 + $0x1e10] sm:$0xff] }
 0x10d   : > { %v2212_v34 = vld [vmem:[%s11112_s26 + $0x1e20] sm:$0xff]  ;;  %2209 = vst [vmem:[%s11117_s27 + $0xf00] sm:$0xff] %v2208_v32  ;;  %2211 = vst [vmem:[%s11117_s27 + $0xf08] sm:$0xff] %v2210_v33  ;;  %v2214_v35 = vld [vmem:[%s11112_s26 + $0x1e30] sm:$0xff] }
 0x10e   : > { %2213 = vst [vmem:[%s11117_s27 + $0xf10] sm:$0xff] %v2212_v34  ;;  %v2216_v36 = vld [vmem:[%s11112_s26 + $0x1e40] sm:$0xff]  ;;  %v2218_v37 = vld [vmem:[%s11112_s26 + $0x1e50] sm:$0xff]  ;;  %2215 = vst [vmem:[%s11117_s27 + $0xf18] sm:$0xff] %v2214_v35 }
 0x10f   : > { %2217 = vst [vmem:[%s11117_s27 + $0xf20] sm:$0xff] %v2216_v36  ;;  %2219 = vst [vmem:[%s11117_s27 + $0xf28] sm:$0xff] %v2218_v37  ;;  %v2220_v38 = vld [vmem:[%s11112_s26 + $0x1e60] sm:$0xff]  ;;  %v2222_v39 = vld [vmem:[%s11112_s26 + $0x1e70] sm:$0xff] }
 0x110   : > { %v2224_v40 = vld [vmem:[%s11112_s26 + $0x1e80] sm:$0xff]  ;;  %2221 = vst [vmem:[%s11117_s27 + $0xf30] sm:$0xff] %v2220_v38  ;;  %2223 = vst [vmem:[%s11117_s27 + $0xf38] sm:$0xff] %v2222_v39  ;;  %v2226_v41 = vld [vmem:[%s11112_s26 + $0x1e90] sm:$0xff] }
 0x111   : > { %2225 = vst [vmem:[%s11117_s27 + $0xf40] sm:$0xff] %v2224_v40  ;;  %v2228_v42 = vld [vmem:[%s11112_s26 + $0x1ea0] sm:$0xff]  ;;  %v2230_v43 = vld [vmem:[%s11112_s26 + $0x1eb0] sm:$0xff]  ;;  %2227 = vst [vmem:[%s11117_s27 + $0xf48] sm:$0xff] %v2226_v41 }
 0x112   : > { %2229 = vst [vmem:[%s11117_s27 + $0xf50] sm:$0xff] %v2228_v42  ;;  %2231 = vst [vmem:[%s11117_s27 + $0xf58] sm:$0xff] %v2230_v43  ;;  %v2232_v44 = vld [vmem:[%s11112_s26 + $0x1ec0] sm:$0xff]  ;;  %v2234_v45 = vld [vmem:[%s11112_s26 + $0x1ed0] sm:$0xff] }
 0x113   : > { %v2236_v46 = vld [vmem:[%s11112_s26 + $0x1ee0] sm:$0xff]  ;;  %2233 = vst [vmem:[%s11117_s27 + $0xf60] sm:$0xff] %v2232_v44  ;;  %2235 = vst [vmem:[%s11117_s27 + $0xf68] sm:$0xff] %v2234_v45  ;;  %v2238_v47 = vld [vmem:[%s11112_s26 + $0x1ef0] sm:$0xff] }
 0x114   : > { %2237 = vst [vmem:[%s11117_s27 + $0xf70] sm:$0xff] %v2236_v46  ;;  %v2240_v48 = vld [vmem:[%s11112_s26 + $0x1f00] sm:$0xff]  ;;  %v2242_v49 = vld [vmem:[%s11112_s26 + $0x1f10] sm:$0xff]  ;;  %2239 = vst [vmem:[%s11117_s27 + $0xf78] sm:$0xff] %v2238_v47 }
 0x115   : > { %2241 = vst [vmem:[%s11117_s27 + $0xf80] sm:$0xff] %v2240_v48  ;;  %2243 = vst [vmem:[%s11117_s27 + $0xf88] sm:$0xff] %v2242_v49  ;;  %v2244_v50 = vld [vmem:[%s11112_s26 + $0x1f20] sm:$0xff]  ;;  %v2246_v51 = vld [vmem:[%s11112_s26 + $0x1f30] sm:$0xff] }
 0x116   : > { %v2248_v52 = vld [vmem:[%s11112_s26 + $0x1f40] sm:$0xff]  ;;  %2245 = vst [vmem:[%s11117_s27 + $0xf90] sm:$0xff] %v2244_v50  ;;  %2247 = vst [vmem:[%s11117_s27 + $0xf98] sm:$0xff] %v2246_v51  ;;  %v2250_v53 = vld [vmem:[%s11112_s26 + $0x1f50] sm:$0xff] }
 0x117   : > { %2249 = vst [vmem:[%s11117_s27 + $0xfa0] sm:$0xff] %v2248_v52  ;;  %v2252_v54 = vld [vmem:[%s11112_s26 + $0x1f60] sm:$0xff]  ;;  %v2254_v55 = vld [vmem:[%s11112_s26 + $0x1f70] sm:$0xff]  ;;  %2251 = vst [vmem:[%s11117_s27 + $0xfa8] sm:$0xff] %v2250_v53 }
 0x118   : > { %2253 = vst [vmem:[%s11117_s27 + $0xfb0] sm:$0xff] %v2252_v54  ;;  %2255 = vst [vmem:[%s11117_s27 + $0xfb8] sm:$0xff] %v2254_v55  ;;  %v2256_v56 = vld [vmem:[%s11112_s26 + $0x1f80] sm:$0xff]  ;;  %v2258_v57 = vld [vmem:[%s11112_s26 + $0x1f90] sm:$0xff] }
 0x119   : > { %v2260_v58 = vld [vmem:[%s11112_s26 + $0x1fa0] sm:$0xff]  ;;  %2257 = vst [vmem:[%s11117_s27 + $0xfc0] sm:$0xff] %v2256_v56  ;;  %2259 = vst [vmem:[%s11117_s27 + $0xfc8] sm:$0xff] %v2258_v57  ;;  %v2262_v59 = vld [vmem:[%s11112_s26 + $0x1fb0] sm:$0xff] }
 0x11a   : > { %2261 = vst [vmem:[%s11117_s27 + $0xfd0] sm:$0xff] %v2260_v58  ;;  %v2264_v60 = vld [vmem:[%s11112_s26 + $0x1fc0] sm:$0xff]  ;;  %v2266_v61 = vld [vmem:[%s11112_s26 + $0x1fd0] sm:$0xff]  ;;  %2263 = vst [vmem:[%s11117_s27 + $0xfd8] sm:$0xff] %v2262_v59 }
 0x11b   : > { %2265 = vst [vmem:[%s11117_s27 + $0xfe0] sm:$0xff] %v2264_v60  ;;  %2267 = vst [vmem:[%s11117_s27 + $0xfe8] sm:$0xff] %v2266_v61  ;;  %v2268_v62 = vld [vmem:[%s11112_s26 + $0x1fe0] sm:$0xff]  ;;  %v2270_v63 = vld [vmem:[%s11112_s26 + $0x1ff0] sm:$0xff] }
 0x11c   : > { %2269 = vst [vmem:[%s11117_s27 + $0xff0] sm:$0xff] %v2268_v62  ;;  %2271 = vst [vmem:[%s11117_s27 + $0xff8] sm:$0xff] %v2270_v63 }
 0x11d PF: > { %p8948_p11 = scmp.ge.s32.totalorder %s10999_s23, 1  ;;  %p4360_p12 = scmp.lt.s32.totalorder %s10999_s23, 5 }
 0x11f   : > { %p4361_p13 = pnand %p8948_p11, %p4360_p12 }
 0x120   : > { %s4367_s28 = sand.u32 (!%p4361_p13), 1, %s10975_s17   ;;  %p4414_p0 = scmp.lt.s32.totalorder (!%p4361_p13), %s10983_s19, 1 }
 0x121   : > { %4364 = sbr.rel (%p4361_p13) target bundleno = 1045 (0x415), region = 76  ;;  %s8949_s29 = sshll.u32 (!%p4361_p13), %s4367_s28, 12 }
 0x122   : > { %s12143_s30 = scalar_lea.vmem (!%p4361_p13), [#allocation2], %s8949_s29  ;;  %s4389_s12 = sand.u32 (!%p4361_p13), 1, %s10967_s15  }
 0x123   : > { %v10121_v0 = vld [vmem:[%s12143_s30 + $0x404] ss:$8 sps:$4 sm:$0xff] (!%p4361_p13)   ;;  %v10125_v2 = vld [vmem:[%s12143_s30 + $0x400] ss:$8 sps:$4 sm:$0xff] (!%p4361_p13)   ;;  %v10127_v4 = vld [vmem:[%s12143_s30 + $0x414] ss:$8 sps:$4 sm:$0xff] (!%p4361_p13)  }
 0x124   : > { %v10123_v1 = vld [vmem:[%s12143_s30 + $0x804] ss:$8 sps:$4 sm:$0xff] (!%p4361_p13)   ;;  %5422 = vmatprep.subr.bf16.mxu1 (!%p4361_p13), %v10121_v0  ;;  %v10126_v3 = vld [vmem:[%s12143_s30 + $0x800] ss:$8 sps:$4 sm:$0xff] (!%p4361_p13)   ;;  %v10129_v5 = vld [vmem:[%s12143_s30 + $0x814] ss:$8 sps:$4 sm:$0xff] (!%p4361_p13)  }
 0x125   : > { %7363 = vmatprep.subr.bf16.mxu0 (!%p4361_p13), %v10123_v1  ;;  %5423 = vmatpush1.bf16.msra.mxu1 (!%p4361_p13), %v10125_v2  ;;  %v10131_v6 = vld [vmem:[%s12143_s30 + $0x410] ss:$8 sps:$4 sm:$0xff] (!%p4361_p13)   ;;  %v10133_v8 = vld [vmem:[%s12143_s30 + $0x424] ss:$8 sps:$4 sm:$0xff] (!%p4361_p13)   ;;  %v10137_v10 = vld [vmem:[%s12143_s30 + $0x420] ss:$8 sps:$4 sm:$0xff] (!%p4361_p13)  }
 0x126   : > { %7364 = vmatpush1.bf16.msra.mxu0 (!%p4361_p13), %v10126_v3  ;;  %5424 = vmatprep.subr.bf16.mxu1 (!%p4361_p13), %v10127_v4  ;;  %v10132_v7 = vld [vmem:[%s12143_s30 + $0x810] ss:$8 sps:$4 sm:$0xff] (!%p4361_p13)   ;;  %v10135_v9 = vld [vmem:[%s12143_s30 + $0x824] ss:$8 sps:$4 sm:$0xff] (!%p4361_p13)   ;;  %v10138_v11 = vld [vmem:[%s12143_s30 + $0x820] ss:$8 sps:$4 sm:$0xff] (!%p4361_p13)  }
 0x127   : > { %7365 = vmatprep.subr.bf16.mxu0 (!%p4361_p13), %v10129_v5  ;;  %v10139_v12 = vld [vmem:[%s12143_s30 + $0x434] ss:$8 sps:$4 sm:$0xff] (!%p4361_p13)   ;;  %v10143_v14 = vld [vmem:[%s12143_s30 + $0x430] ss:$8 sps:$4 sm:$0xff] (!%p4361_p13)   ;;  %v10145_v16 = vld [vmem:[%s12143_s30 + $0x444] ss:$8 sps:$4 sm:$0xff] (!%p4361_p13)  }
 0x128   : > { %v10141_v13 = vld [vmem:[%s12143_s30 + $0x834] ss:$8 sps:$4 sm:$0xff]   ;;  %v10144_v15 = vld [vmem:[%s12143_s30 + $0x830] ss:$8 sps:$4 sm:$0xff]   ;;  %v10147_v17 = vld [vmem:[%s12143_s30 + $0x844] ss:$8 sps:$4 sm:$0xff]  }
 0x129   : > { %5425 = vmatpush1.bf16.msra.mxu1 %v10131_v6  ;;  %v10149_v18 = vld [vmem:[%s12143_s30 + $0x440] ss:$8 sps:$4 sm:$0xff]   ;;  %v10151_v20 = vld [vmem:[%s12143_s30 + $0x454] ss:$8 sps:$4 sm:$0xff]   ;;  %v10155_v22 = vld [vmem:[%s12143_s30 + $0x450] ss:$8 sps:$4 sm:$0xff]  }
 0x12a   : > { %7366 = vmatpush1.bf16.msra.mxu0 %v10132_v7  ;;  %5426 = vmatprep.subr.bf16.mxu1 %v10133_v8  ;;  %v10150_v19 = vld [vmem:[%s12143_s30 + $0x840] ss:$8 sps:$4 sm:$0xff]   ;;  %v10153_v21 = vld [vmem:[%s12143_s30 + $0x854] ss:$8 sps:$4 sm:$0xff]   ;;  %v10156_v23 = vld [vmem:[%s12143_s30 + $0x850] ss:$8 sps:$4 sm:$0xff]  }
 0x12b   : > { %7367 = vmatprep.subr.bf16.mxu0 %v10135_v9  ;;  %v10157_v24 = vld [vmem:[%s12143_s30 + $0x464] ss:$8 sps:$4 sm:$0xff]   ;;  %v10161_v26 = vld [vmem:[%s12143_s30 + $0x460] ss:$8 sps:$4 sm:$0xff]   ;;  %v10163_v28 = vld [vmem:[%s12143_s30 + $0x474] ss:$8 sps:$4 sm:$0xff]  }
 0x12c   : > { %v10159_v25 = vld [vmem:[%s12143_s30 + $0x864] ss:$8 sps:$4 sm:$0xff]   ;;  %v10162_v27 = vld [vmem:[%s12143_s30 + $0x860] ss:$8 sps:$4 sm:$0xff]   ;;  %v10165_v29 = vld [vmem:[%s12143_s30 + $0x874] ss:$8 sps:$4 sm:$0xff]  }
 0x12d   : > { %5427 = vmatpush1.bf16.msra.mxu1 %v10137_v10  ;;  %v10167_v30 = vld [vmem:[%s12143_s30 + $0x470] ss:$8 sps:$4 sm:$0xff]   ;;  %v10169_v32 = vld [vmem:[%s12143_s30 + $0x484] ss:$8 sps:$4 sm:$0xff]   ;;  %v10173_v34 = vld [vmem:[%s12143_s30 + $0x480] ss:$8 sps:$4 sm:$0xff]  }
 0x12e   : > { %7368 = vmatpush1.bf16.msra.mxu0 %v10138_v11  ;;  %5428 = vmatprep.subr.bf16.mxu1 %v10139_v12  ;;  %v10168_v31 = vld [vmem:[%s12143_s30 + $0x870] ss:$8 sps:$4 sm:$0xff]   ;;  %v10171_v33 = vld [vmem:[%s12143_s30 + $0x884] ss:$8 sps:$4 sm:$0xff]   ;;  %v10174_v35 = vld [vmem:[%s12143_s30 + $0x880] ss:$8 sps:$4 sm:$0xff]  }
 0x12f   : > { %7369 = vmatprep.subr.bf16.mxu0 %v10141_v13  ;;  %s12183_s17 = scalar_select %p4414_p0, %s10983_s19, 1  ;;  %v10175_v36 = vld [vmem:[%s12143_s30 + $0x494] ss:$8 sps:$4 sm:$0xff]   ;;  %v10179_v38 = vld [vmem:[%s12143_s30 + $0x490] ss:$8 sps:$4 sm:$0xff]  }
 0x130   : > { %v10177_v37 = vld [vmem:[%s12143_s30 + $0x894] ss:$8 sps:$4 sm:$0xff]   ;;  %v10180_v39 = vld [vmem:[%s12143_s30 + $0x890] ss:$8 sps:$4 sm:$0xff]   ;;  %v10181_v40 = vld [vmem:[%s12143_s30 + $0x4a4] ss:$8 sps:$4 sm:$0xff]  }
 0x131   : > { %5429 = vmatpush1.bf16.msra.mxu1 %v10143_v14  ;;  %s10047_s5 = smul.u32 192, %s12183_s17  ;;  %v10183_v41 = vld [vmem:[%s12143_s30 + $0x8a4] ss:$8 sps:$4 sm:$0xff]   ;;  %v10185_v42 = vld [vmem:[%s12143_s30 + $0x4a0] ss:$8 sps:$4 sm:$0xff]   ;;  %s12835_s14 = sshll.u32 %s10987_s20, 1 }
 0x132   : > { %7370 = vmatpush1.bf16.msra.mxu0 %v10144_v15  ;;  %5430 = vmatprep.subr.bf16.mxu1 %v10145_v16  ;;  %v10186_v43 = vld [vmem:[%s12143_s30 + $0x8a0] ss:$8 sps:$4 sm:$0xff]   ;;  %v10187_v44 = vld [vmem:[%s12143_s30 + $0x4b4] ss:$8 sps:$4 sm:$0xff]   ;;  %v10191_v46 = vld [vmem:[%s12143_s30 + $0x4b0] ss:$8 sps:$4 sm:$0xff]  }
 0x133   : > { %7371 = vmatprep.subr.bf16.mxu0 %v10147_v17  ;;  %s12197_s11 = scalar_lea.vmem %s12888_s0, %s10047_s5  ;;  %v10189_v45 = vld [vmem:[%s12143_s30 + $0x8b4] ss:$8 sps:$4 sm:$0xff]   ;;  %v10192_v49 = vld [vmem:[%s12143_s30 + $0x8b0] ss:$8 sps:$4 sm:$0xff]   ;;  %v10193_v50 = vld [vmem:[%s12143_s30 + $0x4c4] ss:$8 sps:$4 sm:$0xff]  }
 0x134   : > { %v4445_v47 = vld [vmem:[%s12197_s11 + $0x20] sm:$0xff]  ;;  %v10199_v57 = vld [vmem:[%s12143_s30 + $0x4d4] ss:$8 sps:$4 sm:$0xff]   ;;  %v10203_v59 = vld [vmem:[%s12143_s30 + $0x4d0] ss:$8 sps:$4 sm:$0xff]   ;;  %s10046_s13 = smul.u32 24, %s4389_s12 }
 0x135   : > { %5431 = vmatpush1.bf16.msra.mxu1 %v10149_v18  ;;  %v4449_v48 = vld [vmem:[%s12197_s11 + $0x40] sm:$0xff]  ;;  %v10201_v58 = vld [vmem:[%s12143_s30 + $0x8d4] ss:$8 sps:$4 sm:$0xff]   ;;  %v10204_v60 = vld [vmem:[%s12143_s30 + $0x8d0] ss:$8 sps:$4 sm:$0xff]   ;;  %p4424_p1 = scmp.lt.s32.totalorder %s12835_s14, 3 }
 0x136   : > { %7372 = vmatpush1.bf16.msra.mxu0 %v10150_v19  ;;  %5432 = vmatprep.subr.bf16.mxu1 %v10151_v20  ;;  %v9086_v51 = vcombine.high %v4445_v47, %v4449_v48  ;;  %v12207_v52 = vld [vmem:[%s12197_s11 + $0x60] sm:$0xff]  ;;  %v10211_v1 = vld [vmem:[%s12143_s30 + $0x4f4] ss:$8 sps:$4 sm:$0xff]   ;;  %v10215_v3 = vld [vmem:[%s12143_s30 + $0x4f0] ss:$8 sps:$4 sm:$0xff]   ;;  %v9085_v9 = vcombine.low %v4445_v47, %v4449_v48  ;;  %s12837_s15 = scalar_lea.vmem [#allocation3], %s10046_s13 }
 0x137   : > { %7373 = vmatprep.subr.bf16.mxu0 %v10153_v21  ;;  %v10195_v53 = vld [vmem:[%s12143_s30 + $0x8c4] ss:$8 sps:$4 sm:$0xff]   ;;  %v9502_v54 = vcombine.high %v4449_v48, %v12207_v52  ;;  %v10197_v55 = vld [vmem:[%s12143_s30 + $0x4c0] ss:$8 sps:$4 sm:$0xff]   ;;  %v10213_v2 = vld [vmem:[%s12143_s30 + $0x8f4] ss:$8 sps:$4 sm:$0xff]   ;;  %v9501_v8 = vcombine.low %v4449_v48, %v12207_v52  ;;  %v9094_v13 = vcombine.high %v12207_v52, %v12207_v52  ;;  %v9093_v19 = vcombine.low %v12207_v52, %v12207_v52 }
 0x138   : > { %5454 = vmatprep.mubr.bf16.mxu1 %v9086_v51  ;;  %v10198_v56 = vld [vmem:[%s12143_s30 + $0x8c0] ss:$8 sps:$4 sm:$0xff]   ;;  %v10205_v61 = vld [vmem:[%s12143_s30 + $0x4e4] ss:$8 sps:$4 sm:$0xff]   ;;  %v10216_v4 = vld [vmem:[%s12143_s30 + $0x8f0] ss:$8 sps:$4 sm:$0xff]  }
 0x139   : > { %5433 = vmatpush1.bf16.msra.mxu1 %v10155_v22  ;;  %7395 = vmatprep.mubr.bf16.mxu0 %v9502_v54  ;;  %v10207_v62 = vld [vmem:[%s12143_s30 + $0x8e4] ss:$8 sps:$4 sm:$0xff]   ;;  %v10209_v63 = vld [vmem:[%s12143_s30 + $0x4e0] ss:$8 sps:$4 sm:$0xff]   ;;  %v10225_v11 = vld [vmem:[%s12143_s30 + $0x514] ss:$8 sps:$4 sm:$0xff]  }
 0x13a   : > { %7374 = vmatpush1.bf16.msra.mxu0 %v10156_v23  ;;  %5434 = vmatprep.subr.bf16.mxu1 %v10157_v24  ;;  %v10210_v0 = vld [vmem:[%s12143_s30 + $0x8e0] ss:$8 sps:$4 sm:$0xff]   ;;  %v10219_v5 = vld [vmem:[%s12143_s30 + $0x504] ss:$8 sps:$4 sm:$0xff]   ;;  %v10228_v12 = vld [vmem:[%s12143_s30 + $0x914] ss:$8 sps:$4 sm:$0xff]  }
 0x13b   : > { %7375 = vmatprep.subr.bf16.mxu0 %v10159_v25  ;;  %v10222_v6 = vld [vmem:[%s12143_s30 + $0x904] ss:$8 sps:$4 sm:$0xff]   ;;  %v10217_v7 = vld [vmem:[%s12143_s30 + $0x500] ss:$8 sps:$4 sm:$0xff]   ;;  %v10223_v14 = vld [vmem:[%s12143_s30 + $0x510] ss:$8 sps:$4 sm:$0xff]  }
 0x13c   : > { %v10220_v10 = vld [vmem:[%s12143_s30 + $0x900] ss:$8 sps:$4 sm:$0xff]   ;;  %v10226_v15 = vld [vmem:[%s12143_s30 + $0x910] ss:$8 sps:$4 sm:$0xff]   ;;  %v10231_v16 = vld [vmem:[%s12143_s30 + $0x524] ss:$8 sps:$4 sm:$0xff]  }
 0x13d   : > { %5435 = vmatpush1.bf16.msra.mxu1 %v10161_v26  ;;  %v10234_v17 = vld [vmem:[%s12143_s30 + $0x924] ss:$8 sps:$4 sm:$0xff]   ;;  %v10229_v18 = vld [vmem:[%s12143_s30 + $0x520] ss:$8 sps:$4 sm:$0xff]   ;;  %v10237_v21 = vld [vmem:[%s12143_s30 + $0x534] ss:$8 sps:$4 sm:$0xff]  }
 0x13e   : > { %7376 = vmatpush1.bf16.msra.mxu0 %v10162_v27  ;;  %5436 = vmatprep.subr.bf16.mxu1 %v10163_v28  ;;  %v10232_v20 = vld [vmem:[%s12143_s30 + $0x920] ss:$8 sps:$4 sm:$0xff]   ;;  %v10240_v22 = vld [vmem:[%s12143_s30 + $0x934] ss:$8 sps:$4 sm:$0xff]   ;;  %v10235_v23 = vld [vmem:[%s12143_s30 + $0x530] ss:$8 sps:$4 sm:$0xff]  }
 0x13f   : > { %7377 = vmatprep.subr.bf16.mxu0 %v10165_v29  ;;  %v10238_v24 = vld [vmem:[%s12143_s30 + $0x930] ss:$8 sps:$4 sm:$0xff]   ;;  %v10243_v25 = vld [vmem:[%s12143_s30 + $0x544] ss:$8 sps:$4 sm:$0xff]   ;;  %v10241_v27 = vld [vmem:[%s12143_s30 + $0x540] ss:$8 sps:$4 sm:$0xff]  }
 0x140   : > { %v10246_v26 = vld [vmem:[%s12143_s30 + $0x944] ss:$8 sps:$4 sm:$0xff]   ;;  %v10244_v28 = vld [vmem:[%s12143_s30 + $0x940] ss:$8 sps:$4 sm:$0xff]   ;;  %v10249_v29 = vld [vmem:[%s12143_s30 + $0x554] ss:$8 sps:$4 sm:$0xff]  }
 0x141   : > { %5437 = vmatpush1.bf16.msra.mxu1 %v10167_v30  ;;  %v10252_v30 = vld [vmem:[%s12143_s30 + $0x954] ss:$8 sps:$4 sm:$0xff]   ;;  %v10259_v47 = vld [vmem:[%s12143_s30 + $0x570] ss:$8 sps:$4 sm:$0xff]   ;;  %v10265_v51 = vld [vmem:[%s12143_s30 + $0x580] ss:$8 sps:$4 sm:$0xff]  }
 0x142   : > { %7378 = vmatpush1.bf16.msra.mxu0 %v10168_v31  ;;  %5438 = vmatprep.subr.bf16.mxu1 %v10169_v32  ;;  %v6522_v31 = vld [vmem:[%s12197_s11 + $0x80] sm:$0xff]  ;;  %v10247_v32 = vld [vmem:[%s12143_s30 + $0x550] ss:$8 sps:$4 sm:$0xff]   ;;  %v10276_v54 = vld [vmem:[%s12143_s30 + $0x994] ss:$8 sps:$4 sm:$0xff]   ;;  %s4425_s20 = scalar_select %p4424_p1, %s12835_s14, 3 }
 0x143   : > { %7379 = vmatprep.subr.bf16.mxu0 %v10171_v33  ;;  %v10250_v33 = vld [vmem:[%s12143_s30 + $0x950] ss:$8 sps:$4 sm:$0xff]   ;;  %v10268_v52 = vld [vmem:[%s12143_s30 + $0x980] ss:$8 sps:$4 sm:$0xff]   ;;  %s8952_s26 = sshll.u32 %s12183_s17, 2 }
 0x144   : > { %v10262_v48 = vld [vmem:[%s12143_s30 + $0x970] ss:$8 sps:$4 sm:$0xff]   ;;  %s4427_s27 = sadd.s32 %s8952_s26, %s4425_s20 }
 0x145   : > { %5439 = vmatpush1.bf16.msra.mxu1 %v10173_v34  ;;  %v9510_v34 = vcombine.high %v6522_v31, %v6522_v31  ;;  %s8953_s28 = sshll.u32 %s4427_s27, 3 }
 0x146   : > { %7380 = vmatpush1.bf16.msra.mxu0 %v10174_v35  ;;  %5440 = vmatprep.subr.bf16.mxu1 %v10175_v36  ;;  %v9509_v35 = vcombine.low %v6522_v31, %v6522_v31  ;;  %v10255_v36 = vld [vmem:[%s12143_s30 + $0x564] ss:$8 sps:$4 sm:$0xff]   ;;  %s4429_s17 = scalar_lea.vmem %s12891_s3, %s8953_s28  ;;  %s4439_s10 = scalar_lea.vmem %s12892_s4, %s8953_s28 }
 0x147   : > { %7381 = vmatprep.subr.bf16.mxu0 %v10177_v37  ;;  %v10258_v37 = vld [vmem:[%s12143_s30 + $0x964] ss:$8 sps:$4 sm:$0xff]  }
 0x148   : > { %v10334_v31 = vld [vmem:[%s12143_s30 + $0xa24] ss:$8 sps:$4 sm:$0xff]  }
 0x149   : > { %5441 = vmatpush1.bf16.msra.mxu1 %v10179_v38  ;;  %v10253_v38 = vld [vmem:[%s12143_s30 + $0x560] ss:$8 sps:$4 sm:$0xff]  }
 0x14a   : > { %7382 = vmatpush1.bf16.msra.mxu0 %v10180_v39  ;;  %5442 = vmatprep.subr.bf16.mxu1 %v10181_v40  ;;  %v12259_v39 = vld [vmem:[%s12197_s11 + $0x28] sm:$0xff] }
 0x14b   : > { %7383 = vmatprep.subr.bf16.mxu0 %v10183_v41  ;;  %v12262_v40 = vld [vmem:[%s12197_s11 + $0x48] sm:$0xff] }
 0x14c   : > { %v10256_v41 = vld [vmem:[%s12143_s30 + $0x960] ss:$8 sps:$4 sm:$0xff]  }
 0x14d   : > { %5443 = vmatpush1.bf16.msra.mxu1 %v10185_v42  ;;  %v10261_v42 = vld [vmem:[%s12143_s30 + $0x574] ss:$8 sps:$4 sm:$0xff]  }
 0x14e   : > { %7384 = vmatpush1.bf16.msra.mxu0 %v10186_v43  ;;  %5444 = vmatprep.subr.bf16.mxu1 %v10187_v44  ;;  %v9088_v43 = vcombine.high %v12259_v39, %v12262_v40  ;;  %v12269_v44 = vld [vmem:[%s12197_s11 + $0x68] sm:$0xff] }
 0x14f   : > { %7385 = vmatprep.subr.bf16.mxu0 %v10189_v45  ;;  %v10264_v45 = vld [vmem:[%s12143_s30 + $0x974] ss:$8 sps:$4 sm:$0xff]  }
 0x151   : > { %5445 = vmatpush1.bf16.msra.mxu1 %v10191_v46  ;;  %v9504_v46 = vcombine.high %v12262_v40, %v12269_v44 }
 0x152   : > { %7386 = vmatpush1.bf16.msra.mxu0 %v10192_v49  ;;  %5446 = vmatprep.subr.bf16.mxu1 %v10193_v50  ;;  %v10267_v49 = vld [vmem:[%s12143_s30 + $0x584] ss:$8 sps:$4 sm:$0xff]  }
 0x153   : > { %7387 = vmatprep.subr.bf16.mxu0 %v10195_v53  ;;  %v10270_v50 = vld [vmem:[%s12143_s30 + $0x984] ss:$8 sps:$4 sm:$0xff]   ;;  %v10273_v53 = vld [vmem:[%s12143_s30 + $0x594] ss:$8 sps:$4 sm:$0xff]  }
 0x155   : > { %5447 = vmatpush1.bf16.msra.mxu1 %v10197_v55  ;;  %v10271_v55 = vld [vmem:[%s12143_s30 + $0x590] ss:$8 sps:$4 sm:$0xff]  }
 0x156   : > { %7388 = vmatpush1.bf16.msra.mxu0 %v10198_v56  ;;  %5448 = vmatprep.subr.bf16.mxu1 %v10199_v57  ;;  %v10274_v56 = vld [vmem:[%s12143_s30 + $0x990] ss:$8 sps:$4 sm:$0xff]   ;;  %v10279_v57 = vld [vmem:[%s12143_s30 + $0x5a4] ss:$8 sps:$4 sm:$0xff]  }
 0x157   : > { %7389 = vmatprep.subr.bf16.mxu0 %v10201_v58  ;;  %v10282_v58 = vld [vmem:[%s12143_s30 + $0x9a4] ss:$8 sps:$4 sm:$0xff]  }
 0x159   : > { %5449 = vmatpush1.bf16.msra.mxu1 %v10203_v59  ;;  %v10277_v59 = vld [vmem:[%s12143_s30 + $0x5a0] ss:$8 sps:$4 sm:$0xff]  }
 0x15a   : > { %7390 = vmatpush1.bf16.msra.mxu0 %v10204_v60  ;;  %5450 = vmatprep.subr.bf16.mxu1 %v10205_v61  ;;  %v10280_v60 = vld [vmem:[%s12143_s30 + $0x9a0] ss:$8 sps:$4 sm:$0xff]   ;;  %v10285_v61 = vld [vmem:[%s12143_s30 + $0x5b4] ss:$8 sps:$4 sm:$0xff]  }
 0x15b   : > { %7391 = vmatprep.subr.bf16.mxu0 %v10207_v62  ;;  %v10288_v62 = vld [vmem:[%s12143_s30 + $0x9b4] ss:$8 sps:$4 sm:$0xff]  }
 0x15d   : > { %5451 = vmatpush1.bf16.msra.mxu1 %v10209_v63  ;;  %v10283_v63 = vld [vmem:[%s12143_s30 + $0x5b0] ss:$8 sps:$4 sm:$0xff]  }
 0x15e   : > { %7392 = vmatpush1.bf16.msra.mxu0 %v10210_v0  ;;  %5452 = vmatprep.subr.bf16.mxu1 %v10211_v1  ;;  %v10286_v0 = vld [vmem:[%s12143_s30 + $0x9b0] ss:$8 sps:$4 sm:$0xff]   ;;  %v10291_v1 = vld [vmem:[%s12143_s30 + $0x5c4] ss:$8 sps:$4 sm:$0xff]  }
 0x15f   : > { %7393 = vmatprep.subr.bf16.mxu0 %v10213_v2  ;;  %v10294_v2 = vld [vmem:[%s12143_s30 + $0x9c4] ss:$8 sps:$4 sm:$0xff]  }
 0x161   : > { %5453 = vmatpush1.bf16.msra.mxu1 %v10215_v3  ;;  %v10289_v3 = vld [vmem:[%s12143_s30 + $0x5c0] ss:$8 sps:$4 sm:$0xff]  }
 0x162   : > { %7394 = vmatpush1.bf16.msra.mxu0 %v10216_v4  ;;  %5473 = vmatprep.subr.bf16.mxu1 %v10219_v5  ;;  %v10292_v4 = vld [vmem:[%s12143_s30 + $0x9c0] ss:$8 sps:$4 sm:$0xff]   ;;  %v10297_v5 = vld [vmem:[%s12143_s30 + $0x5d4] ss:$8 sps:$4 sm:$0xff]  }
 0x163   : > { %7414 = vmatprep.subr.bf16.mxu0 %v10222_v6  ;;  %v10300_v6 = vld [vmem:[%s12143_s30 + $0x9d4] ss:$8 sps:$4 sm:$0xff]  }
 0x164   : > { %5455 = vmatmul.mubr.bf16.vlgmr.msra.gmra.mrb[0].mxu1 %v9085_v9  ;;  %v10304_v9 = vld [vmem:[%s12143_s30 + $0x5e4] ss:$8 sps:$4 sm:$0xff]  }
 0x165   : > { %7396 = vmatmul.mubr.bf16.vlgmr.msra.gmra.mrb[0].mxu0 %v9501_v8  ;;  %5474 = vmatpush1.bf16.msra.mxu1 %v10217_v7  ;;  %v10295_v7 = vld [vmem:[%s12143_s30 + $0x5d0] ss:$8 sps:$4 sm:$0xff]  }
 0x166   : > { %7415 = vmatpush1.bf16.msra.mxu0 %v10220_v10  ;;  %5475 = vmatprep.subr.bf16.mxu1 %v10225_v11  ;;  %v10298_v8 = vld [vmem:[%s12143_s30 + $0x9d0] ss:$8 sps:$4 sm:$0xff]   ;;  %v10308_v10 = vld [vmem:[%s12143_s30 + $0x9e4] ss:$8 sps:$4 sm:$0xff]   ;;  %v10302_v11 = vld [vmem:[%s12143_s30 + $0x5e0] ss:$8 sps:$4 sm:$0xff]  }
 0x167   : > { %7416 = vmatprep.subr.bf16.mxu0 %v10228_v12  ;;  %5464 = vmatprep.mubr.bf16.mxu1 %v9094_v13  ;;  %v10306_v12 = vld [vmem:[%s12143_s30 + $0x9e0] ss:$8 sps:$4 sm:$0xff]   ;;  %v10313_v13 = vld [vmem:[%s12143_s30 + $0x5f4] ss:$8 sps:$4 sm:$0xff]  }
 0x168   : > { %7405 = vmatprep.mubr.bf16.mxu0 %v9510_v34  ;;  %v9095_v34 = vcombine.low %v12269_v44, %v12269_v44 }
 0x169   : > { %5476 = vmatpush1.bf16.msra.mxu1 %v10223_v14  ;;  %v10316_v14 = vld [vmem:[%s12143_s30 + $0x9f4] ss:$8 sps:$4 sm:$0xff]  }
 0x16a   : > { %7417 = vmatpush1.bf16.msra.mxu0 %v10226_v15  ;;  %5477 = vmatprep.subr.bf16.mxu1 %v10231_v16  ;;  %v10311_v15 = vld [vmem:[%s12143_s30 + $0x5f0] ss:$8 sps:$4 sm:$0xff]  }
 0x16b   : > { %7418 = vmatprep.subr.bf16.mxu0 %v10234_v17  ;;  %v10314_v16 = vld [vmem:[%s12143_s30 + $0x9f0] ss:$8 sps:$4 sm:$0xff]   ;;  %v10319_v17 = vld [vmem:[%s12143_s30 + $0x604] ss:$8 sps:$4 sm:$0xff]  }
 0x16c   : > { %5465 = vmatmul.mubr.bf16.gmra.mrb[4].mxu1 %v9093_v19  ;;  %v10317_v19 = vld [vmem:[%s12143_s30 + $0x600] ss:$8 sps:$4 sm:$0xff]  }
 0x16d   : > { %5478 = vmatpush1.bf16.msra.mxu1 %v10229_v18  ;;  %7406 = vmatmul.mubr.bf16.gmra.mrb[4].mxu0 %v9509_v35  ;;  %v10322_v18 = vld [vmem:[%s12143_s30 + $0xa04] ss:$8 sps:$4 sm:$0xff]  }
 0x16e   : > { %7419 = vmatpush1.bf16.msra.mxu0 %v10232_v20  ;;  %5479 = vmatprep.subr.bf16.mxu1 %v10237_v21  ;;  %v9503_v20 = vcombine.low %v12262_v40, %v12269_v44  ;;  %v10320_v21 = vld [vmem:[%s12143_s30 + $0xa00] ss:$8 sps:$4 sm:$0xff]  }
 0x16f   : > { %7420 = vmatprep.subr.bf16.mxu0 %v10240_v22  ;;  %5505 = vmatprep.mubr.bf16.mxu1 %v9088_v43  ;;  %v9087_v22 = vcombine.low %v12259_v39, %v12262_v40  ;;  %v10337_v39 = vld [vmem:[%s12143_s30 + $0x634] ss:$8 sps:$4 sm:$0xff]   ;;  %v10335_v43 = vld [vmem:[%s12143_s30 + $0x630] ss:$8 sps:$4 sm:$0xff]  }
 0x170   : > { %7446 = vmatprep.mubr.bf16.mxu0 %v9504_v46  ;;  %v10340_v40 = vld [vmem:[%s12143_s30 + $0xa34] ss:$8 sps:$4 sm:$0xff]   ;;  %v10346_v46 = vld [vmem:[%s12143_s30 + $0xa44] ss:$8 sps:$4 sm:$0xff]  }
 0x171   : > { %5480 = vmatpush1.bf16.msra.mxu1 %v10235_v23  ;;  %v6523_v23 = vld [vmem:[%s12197_s11 + $0x88] sm:$0xff] }
 0x172   : > { %7421 = vmatpush1.bf16.msra.mxu0 %v10238_v24  ;;  %5481 = vmatprep.subr.bf16.mxu1 %v10243_v25  ;;  %v10325_v24 = vld [vmem:[%s12143_s30 + $0x614] ss:$8 sps:$4 sm:$0xff]   ;;  %v9511_v35 = vcombine.low %v6523_v23, %v6523_v23 }
 0x173   : > { %7422 = vmatprep.subr.bf16.mxu0 %v10246_v26  ;;  %v10328_v25 = vld [vmem:[%s12143_s30 + $0xa14] ss:$8 sps:$4 sm:$0xff]   ;;  %v9096_v26 = vcombine.high %v12269_v44, %v12269_v44  ;;  %v10338_v44 = vld [vmem:[%s12143_s30 + $0xa30] ss:$8 sps:$4 sm:$0xff]  }
 0x175   : > { %5482 = vmatpush1.bf16.msra.mxu1 %v10241_v27  ;;  %v9512_v27 = vcombine.high %v6523_v23, %v6523_v23  ;;  %v10402_v23 = vld [vmem:[%s12143_s30 + $0x6e0] ss:$8 sps:$4 sm:$0xff]  }
 0x176   : > { %7423 = vmatpush1.bf16.msra.mxu0 %v10244_v28  ;;  %5483 = vmatprep.subr.bf16.mxu1 %v10249_v29  ;;  %v10323_v28 = vld [vmem:[%s12143_s30 + $0x610] ss:$8 sps:$4 sm:$0xff]  }
 0x177   : > { %7424 = vmatprep.subr.bf16.mxu0 %v10252_v30  ;;  %v10326_v29 = vld [vmem:[%s12143_s30 + $0xa10] ss:$8 sps:$4 sm:$0xff]   ;;  %v10331_v30 = vld [vmem:[%s12143_s30 + $0x624] ss:$8 sps:$4 sm:$0xff]  }
 0x179   : > { %5484 = vmatpush1.bf16.msra.mxu1 %v10247_v32  ;;  %v10329_v32 = vld [vmem:[%s12143_s30 + $0x620] ss:$8 sps:$4 sm:$0xff]  }
 0x17a   : > { %7425 = vmatpush1.bf16.msra.mxu0 %v10250_v33  ;;  %5485 = vmatprep.subr.bf16.mxu1 %v10255_v36  ;;  %v12327_v33 = vld [vmem:[%s12197_s11 + $0x30] sm:$0xff] }
 0x17b   : > { %7426 = vmatprep.subr.bf16.mxu0 %v10258_v37  ;;  %v12332_v36 = vld [vmem:[%s12197_s11 + $0x50] sm:$0xff] }
 0x17c   : > { %v12335_v37 = vld [vmem:[%s12197_s11 + $0x70] sm:$0xff] }
 0x17d   : > { %5486 = vmatpush1.bf16.msra.mxu1 %v10253_v38  ;;  %v10332_v38 = vld [vmem:[%s12143_s30 + $0xa20] ss:$8 sps:$4 sm:$0xff]  }
 0x17e   : > { %7427 = vmatpush1.bf16.msra.mxu0 %v10256_v41  ;;  %5487 = vmatprep.subr.bf16.mxu1 %v10261_v42  ;;  %v9090_v41 = vcombine.high %v12327_v33, %v12332_v36  ;;  %v9506_v42 = vcombine.high %v12332_v36, %v12335_v37 }
 0x17f   : > { %7428 = vmatprep.subr.bf16.mxu0 %v10264_v45  ;;  %v10343_v45 = vld [vmem:[%s12143_s30 + $0x644] ss:$8 sps:$4 sm:$0xff]  }
 0x181   : > { %5488 = vmatpush1.bf16.msra.mxu1 %v10259_v47  ;;  %v10341_v47 = vld [vmem:[%s12143_s30 + $0x640] ss:$8 sps:$4 sm:$0xff]  }
 0x182   : > { %7429 = vmatpush1.bf16.msra.mxu0 %v10262_v48  ;;  %5489 = vmatprep.subr.bf16.mxu1 %v10267_v49  ;;  %v10344_v48 = vld [vmem:[%s12143_s30 + $0xa40] ss:$8 sps:$4 sm:$0xff]   ;;  %v10349_v49 = vld [vmem:[%s12143_s30 + $0x654] ss:$8 sps:$4 sm:$0xff]  }
 0x183   : > { %7430 = vmatprep.subr.bf16.mxu0 %v10270_v50  ;;  %v10352_v50 = vld [vmem:[%s12143_s30 + $0xa54] ss:$8 sps:$4 sm:$0xff]  }
 0x185   : > { %5490 = vmatpush1.bf16.msra.mxu1 %v10265_v51  ;;  %v10347_v51 = vld [vmem:[%s12143_s30 + $0x650] ss:$8 sps:$4 sm:$0xff]  }
 0x186   : > { %7431 = vmatpush1.bf16.msra.mxu0 %v10268_v52  ;;  %5491 = vmatprep.subr.bf16.mxu1 %v10273_v53  ;;  %v10350_v52 = vld [vmem:[%s12143_s30 + $0xa50] ss:$8 sps:$4 sm:$0xff]   ;;  %v10355_v53 = vld [vmem:[%s12143_s30 + $0x664] ss:$8 sps:$4 sm:$0xff]  }
 0x187   : > { %7432 = vmatprep.subr.bf16.mxu0 %v10276_v54  ;;  %v10358_v54 = vld [vmem:[%s12143_s30 + $0xa64] ss:$8 sps:$4 sm:$0xff]  }
 0x189   : > { %5492 = vmatpush1.bf16.msra.mxu1 %v10271_v55  ;;  %v10353_v55 = vld [vmem:[%s12143_s30 + $0x660] ss:$8 sps:$4 sm:$0xff]  }
 0x18a   : > { %7433 = vmatpush1.bf16.msra.mxu0 %v10274_v56  ;;  %5493 = vmatprep.subr.bf16.mxu1 %v10279_v57  ;;  %v10356_v56 = vld [vmem:[%s12143_s30 + $0xa60] ss:$8 sps:$4 sm:$0xff]   ;;  %v10361_v57 = vld [vmem:[%s12143_s30 + $0x674] ss:$8 sps:$4 sm:$0xff]  }
 0x18b   : > { %7434 = vmatprep.subr.bf16.mxu0 %v10282_v58  ;;  %v10364_v58 = vld [vmem:[%s12143_s30 + $0xa74] ss:$8 sps:$4 sm:$0xff]  }
 0x18d   : > { %5494 = vmatpush1.bf16.msra.mxu1 %v10277_v59  ;;  %v10359_v59 = vld [vmem:[%s12143_s30 + $0x670] ss:$8 sps:$4 sm:$0xff]  }
 0x18e   : > { %7435 = vmatpush1.bf16.msra.mxu0 %v10280_v60  ;;  %5495 = vmatprep.subr.bf16.mxu1 %v10285_v61  ;;  %v10362_v60 = vld [vmem:[%s12143_s30 + $0xa70] ss:$8 sps:$4 sm:$0xff]   ;;  %v10367_v61 = vld [vmem:[%s12143_s30 + $0x684] ss:$8 sps:$4 sm:$0xff]  }
 0x18f   : > { %7436 = vmatprep.subr.bf16.mxu0 %v10288_v62  ;;  %v10370_v62 = vld [vmem:[%s12143_s30 + $0xa84] ss:$8 sps:$4 sm:$0xff]  }
 0x191   : > { %5496 = vmatpush1.bf16.msra.mxu1 %v10283_v63  ;;  %v10365_v63 = vld [vmem:[%s12143_s30 + $0x680] ss:$8 sps:$4 sm:$0xff]  }
 0x192   : > { %7437 = vmatpush1.bf16.msra.mxu0 %v10286_v0  ;;  %5497 = vmatprep.subr.bf16.mxu1 %v10291_v1  ;;  %v10368_v0 = vld [vmem:[%s12143_s30 + $0xa80] ss:$8 sps:$4 sm:$0xff]   ;;  %v10373_v1 = vld [vmem:[%s12143_s30 + $0x694] ss:$8 sps:$4 sm:$0xff]  }
 0x193   : > { %7438 = vmatprep.subr.bf16.mxu0 %v10294_v2  ;;  %v10376_v2 = vld [vmem:[%s12143_s30 + $0xa94] ss:$8 sps:$4 sm:$0xff]  }
 0x195   : > { %5498 = vmatpush1.bf16.msra.mxu1 %v10289_v3  ;;  %v10371_v3 = vld [vmem:[%s12143_s30 + $0x690] ss:$8 sps:$4 sm:$0xff]  }
 0x196   : > { %7439 = vmatpush1.bf16.msra.mxu0 %v10292_v4  ;;  %5499 = vmatprep.subr.bf16.mxu1 %v10297_v5  ;;  %v10374_v4 = vld [vmem:[%s12143_s30 + $0xa90] ss:$8 sps:$4 sm:$0xff]   ;;  %v10379_v5 = vld [vmem:[%s12143_s30 + $0x6a4] ss:$8 sps:$4 sm:$0xff]  }
 0x197   : > { %7440 = vmatprep.subr.bf16.mxu0 %v10300_v6  ;;  %v10382_v6 = vld [vmem:[%s12143_s30 + $0xaa4] ss:$8 sps:$4 sm:$0xff]  }
 0x199   : > { %5500 = vmatpush1.bf16.msra.mxu1 %v10295_v7  ;;  %v10377_v7 = vld [vmem:[%s12143_s30 + $0x6a0] ss:$8 sps:$4 sm:$0xff]  }
 0x19a   : > { %7441 = vmatpush1.bf16.msra.mxu0 %v10298_v8  ;;  %5501 = vmatprep.subr.bf16.mxu1 %v10304_v9  ;;  %v10380_v8 = vld [vmem:[%s12143_s30 + $0xaa0] ss:$8 sps:$4 sm:$0xff]   ;;  %v10385_v9 = vld [vmem:[%s12143_s30 + $0x6b4] ss:$8 sps:$4 sm:$0xff]  }
 0x19b   : > { %7442 = vmatprep.subr.bf16.mxu0 %v10308_v10  ;;  %v10388_v10 = vld [vmem:[%s12143_s30 + $0xab4] ss:$8 sps:$4 sm:$0xff]  }
 0x19d   : > { %5502 = vmatpush1.bf16.msra.mxu1 %v10302_v11  ;;  %v10383_v11 = vld [vmem:[%s12143_s30 + $0x6b0] ss:$8 sps:$4 sm:$0xff]  }
 0x19e   : > { %7443 = vmatpush1.bf16.msra.mxu0 %v10306_v12  ;;  %5503 = vmatprep.subr.bf16.mxu1 %v10313_v13  ;;  %v10386_v12 = vld [vmem:[%s12143_s30 + $0xab0] ss:$8 sps:$4 sm:$0xff]   ;;  %v10391_v13 = vld [vmem:[%s12143_s30 + $0x6c4] ss:$8 sps:$4 sm:$0xff]  }
 0x19f   : > { %7444 = vmatprep.subr.bf16.mxu0 %v10316_v14  ;;  %v10394_v14 = vld [vmem:[%s12143_s30 + $0xac4] ss:$8 sps:$4 sm:$0xff]  }
 0x1a1   : > { %5504 = vmatpush1.bf16.msra.mxu1 %v10311_v15  ;;  %v10389_v15 = vld [vmem:[%s12143_s30 + $0x6c0] ss:$8 sps:$4 sm:$0xff]  }
 0x1a2   : > { %7445 = vmatpush1.bf16.msra.mxu0 %v10314_v16  ;;  %5524 = vmatprep.subr.bf16.mxu1 %v10319_v17  ;;  %v10392_v16 = vld [vmem:[%s12143_s30 + $0xac0] ss:$8 sps:$4 sm:$0xff]   ;;  %v10397_v17 = vld [vmem:[%s12143_s30 + $0x6d4] ss:$8 sps:$4 sm:$0xff]  }
 0x1a3   : > { %7465 = vmatprep.subr.bf16.mxu0 %v10322_v18  ;;  %v10400_v18 = vld [vmem:[%s12143_s30 + $0xad4] ss:$8 sps:$4 sm:$0xff]  }
 0x1a4   : > { %5506 = vmatmul.mubr.bf16.vlgmr.msra.gmra.mrb[0].mxu1 %v9087_v22  ;;  %v10408_v22 = vld [vmem:[%s12143_s30 + $0xae4] ss:$8 sps:$4 sm:$0xff]  }
 0x1a5   : > { %7447 = vmatmul.mubr.bf16.vlgmr.msra.gmra.mrb[0].mxu0 %v9503_v20  ;;  %5525 = vmatpush1.bf16.msra.mxu1 %v10317_v19  ;;  %v10395_v19 = vld [vmem:[%s12143_s30 + $0x6d0] ss:$8 sps:$4 sm:$0xff]  }
 0x1a6   : > { %7466 = vmatpush1.bf16.msra.mxu0 %v10320_v21  ;;  %5526 = vmatprep.subr.bf16.mxu1 %v10325_v24  ;;  %v10398_v20 = vld [vmem:[%s12143_s30 + $0xad0] ss:$8 sps:$4 sm:$0xff]   ;;  %v10404_v21 = vld [vmem:[%s12143_s30 + $0x6e4] ss:$8 sps:$4 sm:$0xff]   ;;  %v10406_v24 = vld [vmem:[%s12143_s30 + $0xae0] ss:$8 sps:$4 sm:$0xff]  }
 0x1a7   : > { %7467 = vmatprep.subr.bf16.mxu0 %v10328_v25  ;;  %5515 = vmatprep.mubr.bf16.mxu1 %v9096_v26  ;;  %v10413_v25 = vld [vmem:[%s12143_s30 + $0x6f4] ss:$8 sps:$4 sm:$0xff]  }
 0x1a8   : > { %7456 = vmatprep.mubr.bf16.mxu0 %v9512_v27  ;;  %v10416_v26 = vld [vmem:[%s12143_s30 + $0xaf4] ss:$8 sps:$4 sm:$0xff]   ;;  %v10411_v27 = vld [vmem:[%s12143_s30 + $0x6f0] ss:$8 sps:$4 sm:$0xff]  }
 0x1a9   : > { %5527 = vmatpush1.bf16.msra.mxu1 %v10323_v28  ;;  %v10414_v28 = vld [vmem:[%s12143_s30 + $0xaf0] ss:$8 sps:$4 sm:$0xff]  }
 0x1aa   : > { %7468 = vmatpush1.bf16.msra.mxu0 %v10326_v29  ;;  %5528 = vmatprep.subr.bf16.mxu1 %v10331_v30  ;;  %v10419_v29 = vld [vmem:[%s12143_s30 + $0x704] ss:$8 sps:$4 sm:$0xff]  }
 0x1ab   : > { %7469 = vmatprep.subr.bf16.mxu0 %v10334_v31  ;;  %v10422_v30 = vld [vmem:[%s12143_s30 + $0xb04] ss:$8 sps:$4 sm:$0xff]   ;;  %v10417_v31 = vld [vmem:[%s12143_s30 + $0x700] ss:$8 sps:$4 sm:$0xff]  }
 0x1ac   : > { %5516 = vmatmul.mubr.bf16.gmra.mrb[4].mxu1 %v9095_v34  ;;  %v9089_v34 = vcombine.low %v12327_v33, %v12332_v36  ;;  %v10423_v33 = vld [vmem:[%s12143_s30 + $0x710] ss:$8 sps:$4 sm:$0xff]  }
 0x1ad   : > { %7457 = vmatmul.mubr.bf16.gmra.mrb[4].mxu0 %v9511_v35  ;;  %5529 = vmatpush1.bf16.msra.mxu1 %v10329_v32  ;;  %v9505_v32 = vcombine.low %v12332_v36, %v12335_v37  ;;  %v6524_v35 = vld [vmem:[%s12197_s11 + $0x90] sm:$0xff] }
 0x1ae   : > { %7470 = vmatpush1.bf16.msra.mxu0 %v10332_v38  ;;  %5530 = vmatprep.subr.bf16.mxu1 %v10337_v39  ;;  %v10420_v38 = vld [vmem:[%s12143_s30 + $0xb00] ss:$8 sps:$4 sm:$0xff]   ;;  %v10425_v39 = vld [vmem:[%s12143_s30 + $0x714] ss:$8 sps:$4 sm:$0xff]   ;;  %v10426_v36 = vld [vmem:[%s12143_s30 + $0xb10] ss:$8 sps:$4 sm:$0xff]  }
 0x1af   : > { %7471 = vmatprep.subr.bf16.mxu0 %v10340_v40  ;;  %5556 = vmatprep.mubr.bf16.mxu1 %v9090_v41  ;;  %v10428_v40 = vld [vmem:[%s12143_s30 + $0xb14] ss:$8 sps:$4 sm:$0xff]   ;;  %v9098_v41 = vcombine.high %v12335_v37, %v12335_v37 }
 0x1b0   : > { %7497 = vmatprep.mubr.bf16.mxu0 %v9506_v42  ;;  %v9514_v42 = vcombine.high %v6524_v35, %v6524_v35 }
 0x1b1   : > { %5531 = vmatpush1.bf16.msra.mxu1 %v10335_v43  ;;  %v10431_v43 = vld [vmem:[%s12143_s30 + $0x724] ss:$8 sps:$4 sm:$0xff]  }
 0x1b2   : > { %7472 = vmatpush1.bf16.msra.mxu0 %v10338_v44  ;;  %5532 = vmatprep.subr.bf16.mxu1 %v10343_v45  ;;  %v10434_v44 = vld [vmem:[%s12143_s30 + $0xb24] ss:$8 sps:$4 sm:$0xff]   ;;  %v10429_v45 = vld [vmem:[%s12143_s30 + $0x720] ss:$8 sps:$4 sm:$0xff]  }
 0x1b3   : > { %7473 = vmatprep.subr.bf16.mxu0 %v10346_v46  ;;  %v12413_v46 = vld [vmem:[%s12197_s11 + $0x38] sm:$0xff] }
 0x1b5   : > { %5533 = vmatpush1.bf16.msra.mxu1 %v10341_v47  ;;  %v9097_v47 = vcombine.low %v12335_v37, %v12335_v37 }
 0x1b6   : > { %7474 = vmatpush1.bf16.msra.mxu0 %v10344_v48  ;;  %5534 = vmatprep.subr.bf16.mxu1 %v10349_v49  ;;  %v9513_v48 = vcombine.low %v6524_v35, %v6524_v35  ;;  %v12418_v49 = vld [vmem:[%s12197_s11 + $0x58] sm:$0xff]  ;;  %v10508_v35 = vld [vmem:[%s12143_s30 + $0xbe4] ss:$8 sps:$4 sm:$0xff]  }
 0x1b7   : > { %7475 = vmatprep.subr.bf16.mxu0 %v10352_v50  ;;  %v12421_v50 = vld [vmem:[%s12197_s11 + $0x78] sm:$0xff] }
 0x1b8   : > { %v9508_v37 = vcombine.high %v12418_v49, %v12421_v50 }
 0x1b9   : > { %5535 = vmatpush1.bf16.msra.mxu1 %v10347_v51  ;;  %v10432_v51 = vld [vmem:[%s12143_s30 + $0xb20] ss:$8 sps:$4 sm:$0xff]  }
 0x1ba   : > { %7476 = vmatpush1.bf16.msra.mxu0 %v10350_v52  ;;  %5536 = vmatprep.subr.bf16.mxu1 %v10355_v53  ;;  %v10437_v52 = vld [vmem:[%s12143_s30 + $0x734] ss:$8 sps:$4 sm:$0xff]  }
 0x1bb   : > { %7477 = vmatprep.subr.bf16.mxu0 %v10358_v54  ;;  %v10440_v53 = vld [vmem:[%s12143_s30 + $0xb34] ss:$8 sps:$4 sm:$0xff]   ;;  %v9092_v54 = vcombine.high %v12413_v46, %v12418_v49 }
 0x1bd   : > { %5537 = vmatpush1.bf16.msra.mxu1 %v10353_v55  ;;  %v10435_v55 = vld [vmem:[%s12143_s30 + $0x730] ss:$8 sps:$4 sm:$0xff]  }
 0x1be   : > { %7478 = vmatpush1.bf16.msra.mxu0 %v10356_v56  ;;  %5538 = vmatprep.subr.bf16.mxu1 %v10361_v57  ;;  %v10438_v56 = vld [vmem:[%s12143_s30 + $0xb30] ss:$8 sps:$4 sm:$0xff]   ;;  %v10443_v57 = vld [vmem:[%s12143_s30 + $0x744] ss:$8 sps:$4 sm:$0xff]  }
 0x1bf   : > { %7479 = vmatprep.subr.bf16.mxu0 %v10364_v58  ;;  %v10446_v58 = vld [vmem:[%s12143_s30 + $0xb44] ss:$8 sps:$4 sm:$0xff]  }
 0x1c1   : > { %5539 = vmatpush1.bf16.msra.mxu1 %v10359_v59  ;;  %v10441_v59 = vld [vmem:[%s12143_s30 + $0x740] ss:$8 sps:$4 sm:$0xff]  }
 0x1c2   : > { %7480 = vmatpush1.bf16.msra.mxu0 %v10362_v60  ;;  %5540 = vmatprep.subr.bf16.mxu1 %v10367_v61  ;;  %v10444_v60 = vld [vmem:[%s12143_s30 + $0xb40] ss:$8 sps:$4 sm:$0xff]   ;;  %v10449_v61 = vld [vmem:[%s12143_s30 + $0x754] ss:$8 sps:$4 sm:$0xff]  }
 0x1c3   : > { %7481 = vmatprep.subr.bf16.mxu0 %v10370_v62  ;;  %v10452_v62 = vld [vmem:[%s12143_s30 + $0xb54] ss:$8 sps:$4 sm:$0xff]  }
 0x1c5   : > { %5541 = vmatpush1.bf16.msra.mxu1 %v10365_v63  ;;  %v10447_v63 = vld [vmem:[%s12143_s30 + $0x750] ss:$8 sps:$4 sm:$0xff]  }
 0x1c6   : > { %7482 = vmatpush1.bf16.msra.mxu0 %v10368_v0  ;;  %5542 = vmatprep.subr.bf16.mxu1 %v10373_v1  ;;  %v10450_v0 = vld [vmem:[%s12143_s30 + $0xb50] ss:$8 sps:$4 sm:$0xff]   ;;  %v10455_v1 = vld [vmem:[%s12143_s30 + $0x764] ss:$8 sps:$4 sm:$0xff]  }
 0x1c7   : > { %7483 = vmatprep.subr.bf16.mxu0 %v10376_v2  ;;  %v10458_v2 = vld [vmem:[%s12143_s30 + $0xb64] ss:$8 sps:$4 sm:$0xff]  }
 0x1c9   : > { %5543 = vmatpush1.bf16.msra.mxu1 %v10371_v3  ;;  %v10453_v3 = vld [vmem:[%s12143_s30 + $0x760] ss:$8 sps:$4 sm:$0xff]  }
 0x1ca   : > { %7484 = vmatpush1.bf16.msra.mxu0 %v10374_v4  ;;  %5544 = vmatprep.subr.bf16.mxu1 %v10379_v5  ;;  %v10456_v4 = vld [vmem:[%s12143_s30 + $0xb60] ss:$8 sps:$4 sm:$0xff]   ;;  %v10461_v5 = vld [vmem:[%s12143_s30 + $0x774] ss:$8 sps:$4 sm:$0xff]  }
 0x1cb   : > { %7485 = vmatprep.subr.bf16.mxu0 %v10382_v6  ;;  %v10464_v6 = vld [vmem:[%s12143_s30 + $0xb74] ss:$8 sps:$4 sm:$0xff]  }
 0x1cd   : > { %5545 = vmatpush1.bf16.msra.mxu1 %v10377_v7  ;;  %v10459_v7 = vld [vmem:[%s12143_s30 + $0x770] ss:$8 sps:$4 sm:$0xff]  }
 0x1ce   : > { %7486 = vmatpush1.bf16.msra.mxu0 %v10380_v8  ;;  %5546 = vmatprep.subr.bf16.mxu1 %v10385_v9  ;;  %v10462_v8 = vld [vmem:[%s12143_s30 + $0xb70] ss:$8 sps:$4 sm:$0xff]   ;;  %v10467_v9 = vld [vmem:[%s12143_s30 + $0x784] ss:$8 sps:$4 sm:$0xff]  }
 0x1cf   : > { %7487 = vmatprep.subr.bf16.mxu0 %v10388_v10  ;;  %v10470_v10 = vld [vmem:[%s12143_s30 + $0xb84] ss:$8 sps:$4 sm:$0xff]  }
 0x1d1   : > { %5547 = vmatpush1.bf16.msra.mxu1 %v10383_v11  ;;  %v10465_v11 = vld [vmem:[%s12143_s30 + $0x780] ss:$8 sps:$4 sm:$0xff]  }
 0x1d2   : > { %7488 = vmatpush1.bf16.msra.mxu0 %v10386_v12  ;;  %5548 = vmatprep.subr.bf16.mxu1 %v10391_v13  ;;  %v10468_v12 = vld [vmem:[%s12143_s30 + $0xb80] ss:$8 sps:$4 sm:$0xff]   ;;  %v10473_v13 = vld [vmem:[%s12143_s30 + $0x794] ss:$8 sps:$4 sm:$0xff]  }
 0x1d3   : > { %7489 = vmatprep.subr.bf16.mxu0 %v10394_v14  ;;  %v10476_v14 = vld [vmem:[%s12143_s30 + $0xb94] ss:$8 sps:$4 sm:$0xff]  }
 0x1d5   : > { %5549 = vmatpush1.bf16.msra.mxu1 %v10389_v15  ;;  %v10471_v15 = vld [vmem:[%s12143_s30 + $0x790] ss:$8 sps:$4 sm:$0xff]  }
 0x1d6   : > { %7490 = vmatpush1.bf16.msra.mxu0 %v10392_v16  ;;  %5550 = vmatprep.subr.bf16.mxu1 %v10397_v17  ;;  %v10474_v16 = vld [vmem:[%s12143_s30 + $0xb90] ss:$8 sps:$4 sm:$0xff]   ;;  %v10479_v17 = vld [vmem:[%s12143_s30 + $0x7a4] ss:$8 sps:$4 sm:$0xff]  }
 0x1d7   : > { %7491 = vmatprep.subr.bf16.mxu0 %v10400_v18  ;;  %v10482_v18 = vld [vmem:[%s12143_s30 + $0xba4] ss:$8 sps:$4 sm:$0xff]  }
 0x1d9   : > { %5551 = vmatpush1.bf16.msra.mxu1 %v10395_v19  ;;  %v10477_v19 = vld [vmem:[%s12143_s30 + $0x7a0] ss:$8 sps:$4 sm:$0xff]  }
 0x1da   : > { %7492 = vmatpush1.bf16.msra.mxu0 %v10398_v20  ;;  %5552 = vmatprep.subr.bf16.mxu1 %v10404_v21  ;;  %v10480_v20 = vld [vmem:[%s12143_s30 + $0xba0] ss:$8 sps:$4 sm:$0xff]   ;;  %v10485_v21 = vld [vmem:[%s12143_s30 + $0x7b4] ss:$8 sps:$4 sm:$0xff]  }
 0x1db   : > { %7493 = vmatprep.subr.bf16.mxu0 %v10408_v22  ;;  %v10488_v22 = vld [vmem:[%s12143_s30 + $0xbb4] ss:$8 sps:$4 sm:$0xff]  }
 0x1dd   : > { %5553 = vmatpush1.bf16.msra.mxu1 %v10402_v23  ;;  %v10483_v23 = vld [vmem:[%s12143_s30 + $0x7b0] ss:$8 sps:$4 sm:$0xff]  }
 0x1de   : > { %7494 = vmatpush1.bf16.msra.mxu0 %v10406_v24  ;;  %5554 = vmatprep.subr.bf16.mxu1 %v10413_v25  ;;  %v10486_v24 = vld [vmem:[%s12143_s30 + $0xbb0] ss:$8 sps:$4 sm:$0xff]   ;;  %v10491_v25 = vld [vmem:[%s12143_s30 + $0x7c4] ss:$8 sps:$4 sm:$0xff]  }
 0x1df   : > { %7495 = vmatprep.subr.bf16.mxu0 %v10416_v26  ;;  %v10494_v26 = vld [vmem:[%s12143_s30 + $0xbc4] ss:$8 sps:$4 sm:$0xff]  }
 0x1e1   : > { %5555 = vmatpush1.bf16.msra.mxu1 %v10411_v27  ;;  %v10489_v27 = vld [vmem:[%s12143_s30 + $0x7c0] ss:$8 sps:$4 sm:$0xff]  }
 0x1e2   : > { %7496 = vmatpush1.bf16.msra.mxu0 %v10414_v28  ;;  %5575 = vmatprep.subr.bf16.mxu1 %v10419_v29  ;;  %v10492_v28 = vld [vmem:[%s12143_s30 + $0xbc0] ss:$8 sps:$4 sm:$0xff]   ;;  %v10497_v29 = vld [vmem:[%s12143_s30 + $0x7d4] ss:$8 sps:$4 sm:$0xff]  }
 0x1e3   : > { %7516 = vmatprep.subr.bf16.mxu0 %v10422_v30  ;;  %v10500_v30 = vld [vmem:[%s12143_s30 + $0xbd4] ss:$8 sps:$4 sm:$0xff]  }
 0x1e4   : > { %5557 = vmatmul.mubr.bf16.vlgmr.msra.gmra.mrb[0].mxu1 %v9089_v34  ;;  %v10504_v34 = vld [vmem:[%s12143_s30 + $0x7e4] ss:$8 sps:$4 sm:$0xff]  }
 0x1e5   : > { %7498 = vmatmul.mubr.bf16.vlgmr.msra.gmra.mrb[0].mxu0 %v9505_v32  ;;  %5576 = vmatpush1.bf16.msra.mxu1 %v10417_v31  ;;  %v10495_v31 = vld [vmem:[%s12143_s30 + $0x7d0] ss:$8 sps:$4 sm:$0xff]  }
 0x1e6   : > { %7517 = vmatpush1.bf16.msra.mxu0 %v10420_v38  ;;  %5577 = vmatprep.subr.bf16.mxu1 %v10425_v39  ;;  %v10498_v32 = vld [vmem:[%s12143_s30 + $0xbd0] ss:$8 sps:$4 sm:$0xff]   ;;  %v10502_v38 = vld [vmem:[%s12143_s30 + $0x7e0] ss:$8 sps:$4 sm:$0xff]  }
 0x1e7   : > { %7518 = vmatprep.subr.bf16.mxu0 %v10428_v40  ;;  %5566 = vmatprep.mubr.bf16.mxu1 %v9098_v41  ;;  %v10506_v39 = vld [vmem:[%s12143_s30 + $0xbe0] ss:$8 sps:$4 sm:$0xff]   ;;  %v10513_v40 = vld [vmem:[%s12143_s30 + $0x7f4] ss:$8 sps:$4 sm:$0xff]  }
 0x1e8   : > { %7507 = vmatprep.mubr.bf16.mxu0 %v9514_v42  ;;  %v10516_v41 = vld [vmem:[%s12143_s30 + $0xbf4] ss:$8 sps:$4 sm:$0xff]   ;;  %v10511_v42 = vld [vmem:[%s12143_s30 + $0x7f0] ss:$8 sps:$4 sm:$0xff]  }
 0x1e9   : > { %5578 = vmatpush1.bf16.msra.mxu1 %v10423_v33  ;;  %v10514_v33 = vld [vmem:[%s12143_s30 + $0xbf0] ss:$8 sps:$4 sm:$0xff]  }
 0x1ea   : > { %7519 = vmatpush1.bf16.msra.mxu0 %v10426_v36  ;;  %5579 = vmatprep.subr.bf16.mxu1 %v10431_v43  ;;  %v10519_v36 = vld [vmem:[%s12143_s30 + $0x4] ss:$8 sps:$4 sm:$0xff]  }
 0x1eb   : > { %7520 = vmatprep.subr.bf16.mxu0 %v10434_v44  ;;  %v10522_v43 = vld [vmem:[%s12143_s30 + $0xc04] ss:$8 sps:$4 sm:$0xff]   ;;  %v10517_v44 = vld [vmem:[%s12143_s30] ss:$8 sps:$4 sm:$0xff]  }
 0x1ec   : > { %5567 = vmatmul.mubr.bf16.gmra.mrb[4].mxu1 %v9097_v47  ;;  %v9091_v47 = vcombine.low %v12413_v46, %v12418_v49  ;;  %v10523_v46 = vld [vmem:[%s12143_s30 + $0x10] ss:$8 sps:$4 sm:$0xff]  }
 0x1ed   : > { %7508 = vmatmul.mubr.bf16.gmra.mrb[4].mxu0 %v9513_v48  ;;  %5580 = vmatpush1.bf16.msra.mxu1 %v10429_v45  ;;  %v9507_v45 = vcombine.low %v12418_v49, %v12421_v50  ;;  %v6525_v48 = vld [vmem:[%s12197_s11 + $0x98] sm:$0xff] }
 0x1ee   : > { %7521 = vmatpush1.bf16.msra.mxu0 %v10432_v51  ;;  %5581 = vmatprep.subr.bf16.mxu1 %v10437_v52  ;;  %v10520_v51 = vld [vmem:[%s12143_s30 + $0xc00] ss:$8 sps:$4 sm:$0xff]   ;;  %v10525_v52 = vld [vmem:[%s12143_s30 + $0x14] ss:$8 sps:$4 sm:$0xff]   ;;  %v10526_v49 = vld [vmem:[%s12143_s30 + $0xc10] ss:$8 sps:$4 sm:$0xff]  }
 0x1ef   : > { %7522 = vmatprep.subr.bf16.mxu0 %v10440_v53  ;;  %5607 = vmatprep.mubr.bf16.mxu1 %v9092_v54  ;;  %v10528_v53 = vld [vmem:[%s12143_s30 + $0xc14] ss:$8 sps:$4 sm:$0xff]   ;;  %v9100_v54 = vcombine.high %v12421_v50, %v12421_v50 }
 0x1f0   : > { %7548 = vmatprep.mubr.bf16.mxu0 %v9508_v37  ;;  %v9516_v37 = vcombine.high %v6525_v48, %v6525_v48 }
 0x1f1   : > { %5582 = vmatpush1.bf16.msra.mxu1 %v10435_v55  ;;  %v10531_v55 = vld [vmem:[%s12143_s30 + $0x24] ss:$8 sps:$4 sm:$0xff]  }
 0x1f2   : > { %7523 = vmatpush1.bf16.msra.mxu0 %v10438_v56  ;;  %5583 = vmatprep.subr.bf16.mxu1 %v10443_v57  ;;  %v10534_v56 = vld [vmem:[%s12143_s30 + $0xc24] ss:$8 sps:$4 sm:$0xff]  }
 0x1f3   : > { %7524 = vmatprep.subr.bf16.mxu0 %v10446_v58  ;;  %v12498_v57 = vld [vmem:[%s12197_s11] sm:$0xff] }
 0x1f4   : > { %v12501_v58 = vld [vmem:[%s12197_s11 + $0x60] sm:$0xff] }
 0x1f5   : > { %5584 = vmatpush1.bf16.msra.mxu1 %v10441_v59  ;;  %v9099_v59 = vcombine.low %v12421_v50, %v12421_v50 }
 0x1f6   : > { %7525 = vmatpush1.bf16.msra.mxu0 %v10444_v60  ;;  %5585 = vmatprep.subr.bf16.mxu1 %v10449_v61  ;;  %v9515_v60 = vcombine.low %v6525_v48, %v6525_v48  ;;  %v12506_v61 = vld [vmem:[%s12197_s11 + $0x80] sm:$0xff] }
 0x1f7   : > { %7526 = vmatprep.subr.bf16.mxu0 %v10452_v62  ;;  %v10529_v62 = vld [vmem:[%s12143_s30 + $0x20] ss:$8 sps:$4 sm:$0xff]   ;;  %v10604_v48 = vld [vmem:[%s12143_s30 + $0xe4] ss:$8 sps:$4 sm:$0xff]  }
 0x1f9   : > { %5586 = vmatpush1.bf16.msra.mxu1 %v10447_v63  ;;  %v10532_v63 = vld [vmem:[%s12143_s30 + $0xc20] ss:$8 sps:$4 sm:$0xff]  }
 0x1fa   : > { %7527 = vmatpush1.bf16.msra.mxu0 %v10450_v0  ;;  %5587 = vmatprep.subr.bf16.mxu1 %v10455_v1  ;;  %v10537_v0 = vld [vmem:[%s12143_s30 + $0x34] ss:$8 sps:$4 sm:$0xff]  }
 0x1fb   : > { %7528 = vmatprep.subr.bf16.mxu0 %v10458_v2  ;;  %v10540_v1 = vld [vmem:[%s12143_s30 + $0xc34] ss:$8 sps:$4 sm:$0xff]   ;;  %v12513_v2 = vld [vmem:[%s12197_s11 + $0x20] sm:$0xff] }
 0x1fc   : > { %v9230_v50 = vcombine.high %v12498_v57, %v12513_v2 }
 0x1fd   : > { %5588 = vmatpush1.bf16.msra.mxu1 %v10453_v3  ;;  %v9774_v3 = vcombine.high %v12501_v58, %v12506_v61 }
 0x1fe   : > { %7529 = vmatpush1.bf16.msra.mxu0 %v10456_v4  ;;  %5589 = vmatprep.subr.bf16.mxu1 %v10461_v5  ;;  %v10535_v4 = vld [vmem:[%s12143_s30 + $0x30] ss:$8 sps:$4 sm:$0xff]  }
 0x1ff   : > { %7530 = vmatprep.subr.bf16.mxu0 %v10464_v6  ;;  %v10538_v5 = vld [vmem:[%s12143_s30 + $0xc30] ss:$8 sps:$4 sm:$0xff]   ;;  %v10543_v6 = vld [vmem:[%s12143_s30 + $0x44] ss:$8 sps:$4 sm:$0xff]  }
 0x201   : > { %5590 = vmatpush1.bf16.msra.mxu1 %v10459_v7  ;;  %v10546_v7 = vld [vmem:[%s12143_s30 + $0xc44] ss:$8 sps:$4 sm:$0xff]  }
 0x202   : > { %7531 = vmatpush1.bf16.msra.mxu0 %v10462_v8  ;;  %5591 = vmatprep.subr.bf16.mxu1 %v10467_v9  ;;  %v10541_v8 = vld [vmem:[%s12143_s30 + $0x40] ss:$8 sps:$4 sm:$0xff]  }
 0x203   : > { %7532 = vmatprep.subr.bf16.mxu0 %v10470_v10  ;;  %v10544_v9 = vld [vmem:[%s12143_s30 + $0xc40] ss:$8 sps:$4 sm:$0xff]   ;;  %v10549_v10 = vld [vmem:[%s12143_s30 + $0x54] ss:$8 sps:$4 sm:$0xff]  }
 0x205   : > { %5592 = vmatpush1.bf16.msra.mxu1 %v10465_v11  ;;  %v10552_v11 = vld [vmem:[%s12143_s30 + $0xc54] ss:$8 sps:$4 sm:$0xff]  }
 0x206   : > { %7533 = vmatpush1.bf16.msra.mxu0 %v10468_v12  ;;  %5593 = vmatprep.subr.bf16.mxu1 %v10473_v13  ;;  %v10547_v12 = vld [vmem:[%s12143_s30 + $0x50] ss:$8 sps:$4 sm:$0xff]  }
 0x207   : > { %7534 = vmatprep.subr.bf16.mxu0 %v10476_v14  ;;  %v10550_v13 = vld [vmem:[%s12143_s30 + $0xc50] ss:$8 sps:$4 sm:$0xff]   ;;  %v10555_v14 = vld [vmem:[%s12143_s30 + $0x64] ss:$8 sps:$4 sm:$0xff]  }
 0x209   : > { %5594 = vmatpush1.bf16.msra.mxu1 %v10471_v15  ;;  %v10558_v15 = vld [vmem:[%s12143_s30 + $0xc64] ss:$8 sps:$4 sm:$0xff]  }
 0x20a   : > { %7535 = vmatpush1.bf16.msra.mxu0 %v10474_v16  ;;  %5595 = vmatprep.subr.bf16.mxu1 %v10479_v17  ;;  %v10553_v16 = vld [vmem:[%s12143_s30 + $0x60] ss:$8 sps:$4 sm:$0xff]  }
 0x20b   : > { %7536 = vmatprep.subr.bf16.mxu0 %v10482_v18  ;;  %v10556_v17 = vld [vmem:[%s12143_s30 + $0xc60] ss:$8 sps:$4 sm:$0xff]   ;;  %v10561_v18 = vld [vmem:[%s12143_s30 + $0x74] ss:$8 sps:$4 sm:$0xff]  }
 0x20d   : > { %5596 = vmatpush1.bf16.msra.mxu1 %v10477_v19  ;;  %v10564_v19 = vld [vmem:[%s12143_s30 + $0xc74] ss:$8 sps:$4 sm:$0xff]  }
 0x20e   : > { %7537 = vmatpush1.bf16.msra.mxu0 %v10480_v20  ;;  %5597 = vmatprep.subr.bf16.mxu1 %v10485_v21  ;;  %v10559_v20 = vld [vmem:[%s12143_s30 + $0x70] ss:$8 sps:$4 sm:$0xff]  }
 0x20f   : > { %7538 = vmatprep.subr.bf16.mxu0 %v10488_v22  ;;  %v10562_v21 = vld [vmem:[%s12143_s30 + $0xc70] ss:$8 sps:$4 sm:$0xff]   ;;  %v10567_v22 = vld [vmem:[%s12143_s30 + $0x84] ss:$8 sps:$4 sm:$0xff]  }
 0x211   : > { %5598 = vmatpush1.bf16.msra.mxu1 %v10483_v23  ;;  %v10570_v23 = vld [vmem:[%s12143_s30 + $0xc84] ss:$8 sps:$4 sm:$0xff]  }
 0x212   : > { %7539 = vmatpush1.bf16.msra.mxu0 %v10486_v24  ;;  %5599 = vmatprep.subr.bf16.mxu1 %v10491_v25  ;;  %v10565_v24 = vld [vmem:[%s12143_s30 + $0x80] ss:$8 sps:$4 sm:$0xff]  }
 0x213   : > { %7540 = vmatprep.subr.bf16.mxu0 %v10494_v26  ;;  %v10568_v25 = vld [vmem:[%s12143_s30 + $0xc80] ss:$8 sps:$4 sm:$0xff]   ;;  %v10573_v26 = vld [vmem:[%s12143_s30 + $0x94] ss:$8 sps:$4 sm:$0xff]  }
 0x215   : > { %5600 = vmatpush1.bf16.msra.mxu1 %v10489_v27  ;;  %v10576_v27 = vld [vmem:[%s12143_s30 + $0xc94] ss:$8 sps:$4 sm:$0xff]  }
 0x216   : > { %7541 = vmatpush1.bf16.msra.mxu0 %v10492_v28  ;;  %5601 = vmatprep.subr.bf16.mxu1 %v10497_v29  ;;  %v10571_v28 = vld [vmem:[%s12143_s30 + $0x90] ss:$8 sps:$4 sm:$0xff]  }
 0x217   : > { %7542 = vmatprep.subr.bf16.mxu0 %v10500_v30  ;;  %v10574_v29 = vld [vmem:[%s12143_s30 + $0xc90] ss:$8 sps:$4 sm:$0xff]   ;;  %v10579_v30 = vld [vmem:[%s12143_s30 + $0xa4] ss:$8 sps:$4 sm:$0xff]  }
 0x219   : > { %5602 = vmatpush1.bf16.msra.mxu1 %v10495_v31  ;;  %v10582_v31 = vld [vmem:[%s12143_s30 + $0xca4] ss:$8 sps:$4 sm:$0xff]  }
 0x21a   : > { %7543 = vmatpush1.bf16.msra.mxu0 %v10498_v32  ;;  %5603 = vmatprep.subr.bf16.mxu1 %v10504_v34  ;;  %v10577_v32 = vld [vmem:[%s12143_s30 + $0xa0] ss:$8 sps:$4 sm:$0xff]  }
 0x21b   : > { %7544 = vmatprep.subr.bf16.mxu0 %v10508_v35  ;;  %v10580_v34 = vld [vmem:[%s12143_s30 + $0xca0] ss:$8 sps:$4 sm:$0xff]   ;;  %v10585_v35 = vld [vmem:[%s12143_s30 + $0xb4] ss:$8 sps:$4 sm:$0xff]  }
 0x21d   : > { %5604 = vmatpush1.bf16.msra.mxu1 %v10502_v38  ;;  %v10588_v38 = vld [vmem:[%s12143_s30 + $0xcb4] ss:$8 sps:$4 sm:$0xff]  }
 0x21e   : > { %7545 = vmatpush1.bf16.msra.mxu0 %v10506_v39  ;;  %5605 = vmatprep.subr.bf16.mxu1 %v10513_v40  ;;  %v10583_v39 = vld [vmem:[%s12143_s30 + $0xb0] ss:$8 sps:$4 sm:$0xff]  }
 0x21f   : > { %7546 = vmatprep.subr.bf16.mxu0 %v10516_v41  ;;  %v10586_v40 = vld [vmem:[%s12143_s30 + $0xcb0] ss:$8 sps:$4 sm:$0xff]   ;;  %v10591_v41 = vld [vmem:[%s12143_s30 + $0xc4] ss:$8 sps:$4 sm:$0xff]  }
 0x221   : > { %5606 = vmatpush1.bf16.msra.mxu1 %v10511_v42  ;;  %v10594_v42 = vld [vmem:[%s12143_s30 + $0xcc4] ss:$8 sps:$4 sm:$0xff]  }
 0x222   : > { %7547 = vmatpush1.bf16.msra.mxu0 %v10514_v33  ;;  %6310 = vmatprep.subr.bf16.mxu1 %v10519_v36  ;;  %v10589_v33 = vld [vmem:[%s12143_s30 + $0xc0] ss:$8 sps:$4 sm:$0xff]  }
 0x223   : > { %8422 = vmatprep.subr.bf16.mxu0 %v10522_v43  ;;  %v10592_v36 = vld [vmem:[%s12143_s30 + $0xcc0] ss:$8 sps:$4 sm:$0xff]   ;;  %v10597_v43 = vld [vmem:[%s12143_s30 + $0xd4] ss:$8 sps:$4 sm:$0xff]  }
 0x224   : > { %5608 = vmatmul.mubr.bf16.vlgmr.msra.gmra.mrb[0].mxu1 %v9091_v47  ;;  %v10598_v47 = vld [vmem:[%s12143_s30 + $0xcd0] ss:$8 sps:$4 sm:$0xff]  }
 0x225   : > { %7549 = vmatmul.mubr.bf16.vlgmr.msra.gmra.mrb[0].mxu0 %v9507_v45  ;;  %6311 = vmatpush1.bf16.msra.mxu1 %v10517_v44  ;;  %v10600_v44 = vld [vmem:[%s12143_s30 + $0xcd4] ss:$8 sps:$4 sm:$0xff]   ;;  %v10595_v45 = vld [vmem:[%s12143_s30 + $0xd0] ss:$8 sps:$4 sm:$0xff]  }
 0x226   : > { %8423 = vmatpush1.bf16.msra.mxu0 %v10520_v51  ;;  %6312 = vmatprep.subr.bf16.mxu1 %v10525_v52  ;;  %v10608_v51 = vld [vmem:[%s12143_s30 + $0xce4] ss:$8 sps:$4 sm:$0xff]   ;;  %v10602_v52 = vld [vmem:[%s12143_s30 + $0xe0] ss:$8 sps:$4 sm:$0xff]  }
 0x227   : > { %8424 = vmatprep.subr.bf16.mxu0 %v10528_v53  ;;  %5617 = vmatprep.mubr.bf16.mxu1 %v9100_v54  ;;  %v10606_v53 = vld [vmem:[%s12143_s30 + $0xce0] ss:$8 sps:$4 sm:$0xff]   ;;  %v10613_v54 = vld [vmem:[%s12143_s30 + $0xf4] ss:$8 sps:$4 sm:$0xff]  }
 0x228   : > { %7558 = vmatprep.mubr.bf16.mxu0 %v9516_v37  ;;  %v10616_v37 = vld [vmem:[%s12143_s30 + $0xcf4] ss:$8 sps:$4 sm:$0xff]  }
 0x229   : > { %6313 = vmatpush1.bf16.msra.mxu1 %v10523_v46  ;;  %v10611_v46 = vld [vmem:[%s12143_s30 + $0xf0] ss:$8 sps:$4 sm:$0xff]  }
 0x22a   : > { %8425 = vmatpush1.bf16.msra.mxu0 %v10526_v49  ;;  %6314 = vmatprep.subr.bf16.mxu1 %v10531_v55  ;;  %v10614_v49 = vld [vmem:[%s12143_s30 + $0xcf0] ss:$8 sps:$4 sm:$0xff]   ;;  %v10619_v55 = vld [vmem:[%s12143_s30 + $0x104] ss:$8 sps:$4 sm:$0xff]  }
 0x22b   : > { %8426 = vmatprep.subr.bf16.mxu0 %v10534_v56  ;;  %v10622_v56 = vld [vmem:[%s12143_s30 + $0xd04] ss:$8 sps:$4 sm:$0xff]  }
 0x22c   : > { %5618 = vmatmul.mubr.bf16.gmra.mrb[4].mxu1 %v9099_v59  ;;  %v7581_v59 = vld [vmem:[%s12197_s11 + $0xa0] sm:$0xff] }
 0x22d   : > { %7559 = vmatmul.mubr.bf16.gmra.mrb[4].mxu0 %v9515_v60  ;;  %6315 = vmatpush1.bf16.msra.mxu1 %v10529_v62  ;;  %v9229_v60 = vcombine.low %v12498_v57, %v12513_v2  ;;  %v9773_v62 = vcombine.low %v12501_v58, %v12506_v61  ;;  %v9782_v2 = vcombine.high %v7581_v59, %v7581_v59  ;;  %v10631_v58 = vld [vmem:[%s12143_s30 + $0x124] ss:$8 sps:$4 sm:$0xff]  }
 0x22e   : > { %8427 = vmatpush1.bf16.msra.mxu0 %v10532_v63  ;;  %6316 = vmatprep.subr.bf16.mxu1 %v10537_v0  ;;  %v10617_v63 = vld [vmem:[%s12143_s30 + $0x100] ss:$8 sps:$4 sm:$0xff]   ;;  %v10634_v61 = vld [vmem:[%s12143_s30 + $0xd24] ss:$8 sps:$4 sm:$0xff]  }
 0x22f   : > { %8428 = vmatprep.subr.bf16.mxu0 %v10540_v1  ;;  %6342 = vmatprep.mubr.bf16.mxu1 %v9230_v50  ;;  %v10620_v0 = vld [vmem:[%s12143_s30 + $0xd00] ss:$8 sps:$4 sm:$0xff]   ;;  %v10625_v1 = vld [vmem:[%s12143_s30 + $0x114] ss:$8 sps:$4 sm:$0xff]  }
 0x230   : > { %8454 = vmatprep.mubr.bf16.mxu0 %v9774_v3  ;;  %v10628_v50 = vld [vmem:[%s12143_s30 + $0xd14] ss:$8 sps:$4 sm:$0xff]   ;;  %v10623_v3 = vld [vmem:[%s12143_s30 + $0x110] ss:$8 sps:$4 sm:$0xff]  }
 0x231   : > { %6317 = vmatpush1.bf16.msra.mxu1 %v10535_v4  ;;  %v10626_v4 = vld [vmem:[%s12143_s30 + $0xd10] ss:$8 sps:$4 sm:$0xff]  }
 0x232   : > { %8429 = vmatpush1.bf16.msra.mxu0 %v10538_v5  ;;  %6318 = vmatprep.subr.bf16.mxu1 %v10543_v6  ;;  %v10922_v5 = vld [vmem:[%s12197_s11 + $0x40] sm:$0xff]  ;;  %v12586_v6 = vld [vmem:[%s12197_s11 + $0x8] sm:$0xff] }
 0x233   : > { %8430 = vmatprep.subr.bf16.mxu0 %v10546_v7  ;;  %v9238_v57 = vcombine.high %v10922_v5, %v10922_v5  ;;  %v12589_v7 = vld [vmem:[%s12197_s11 + $0x68] sm:$0xff] }
 0x235   : > { %6319 = vmatpush1.bf16.msra.mxu1 %v10541_v8  ;;  %v12592_v8 = vld [vmem:[%s12197_s11 + $0x88] sm:$0xff] }
 0x236   : > { %8431 = vmatpush1.bf16.msra.mxu0 %v10544_v9  ;;  %6320 = vmatprep.subr.bf16.mxu1 %v10549_v10  ;;  %v9237_v9 = vcombine.low %v10922_v5, %v10922_v5  ;;  %v9781_v10 = vcombine.low %v7581_v59, %v7581_v59  ;;  %v10697_v59 = vld [vmem:[%s12143_s30 + $0x1d4] ss:$8 sps:$4 sm:$0xff]  }
 0x237   : > { %8432 = vmatprep.subr.bf16.mxu0 %v10552_v11  ;;  %v10629_v11 = vld [vmem:[%s12143_s30 + $0x120] ss:$8 sps:$4 sm:$0xff]   ;;  %v10716_v5 = vld [vmem:[%s12143_s30 + $0xdf4] ss:$8 sps:$4 sm:$0xff]  }
 0x239   : > { %6321 = vmatpush1.bf16.msra.mxu1 %v10547_v12  ;;  %v10632_v12 = vld [vmem:[%s12143_s30 + $0xd20] ss:$8 sps:$4 sm:$0xff]  }
 0x23a   : > { %8433 = vmatpush1.bf16.msra.mxu0 %v10550_v13  ;;  %6322 = vmatprep.subr.bf16.mxu1 %v10555_v14  ;;  %v10637_v13 = vld [vmem:[%s12143_s30 + $0x134] ss:$8 sps:$4 sm:$0xff]  }
 0x23b   : > { %8434 = vmatprep.subr.bf16.mxu0 %v10558_v15  ;;  %v10640_v14 = vld [vmem:[%s12143_s30 + $0xd34] ss:$8 sps:$4 sm:$0xff]   ;;  %v12599_v15 = vld [vmem:[%s12197_s11 + $0x28] sm:$0xff] }
 0x23d   : > { %6323 = vmatpush1.bf16.msra.mxu1 %v10553_v16  ;;  %v9232_v16 = vcombine.high %v12586_v6, %v12599_v15 }
 0x23e   : > { %8435 = vmatpush1.bf16.msra.mxu0 %v10556_v17  ;;  %6324 = vmatprep.subr.bf16.mxu1 %v10561_v18  ;;  %v9776_v17 = vcombine.high %v12589_v7, %v12592_v8  ;;  %v10635_v18 = vld [vmem:[%s12143_s30 + $0x130] ss:$8 sps:$4 sm:$0xff]  }
 0x23f   : > { %8436 = vmatprep.subr.bf16.mxu0 %v10564_v19  ;;  %v10638_v19 = vld [vmem:[%s12143_s30 + $0xd30] ss:$8 sps:$4 sm:$0xff]  }
 0x241   : > { %6325 = vmatpush1.bf16.msra.mxu1 %v10559_v20  ;;  %v10643_v20 = vld [vmem:[%s12143_s30 + $0x144] ss:$8 sps:$4 sm:$0xff]  }
 0x242   : > { %8437 = vmatpush1.bf16.msra.mxu0 %v10562_v21  ;;  %6326 = vmatprep.subr.bf16.mxu1 %v10567_v22  ;;  %v10646_v21 = vld [vmem:[%s12143_s30 + $0xd44] ss:$8 sps:$4 sm:$0xff]   ;;  %v10641_v22 = vld [vmem:[%s12143_s30 + $0x140] ss:$8 sps:$4 sm:$0xff]  }
 0x243   : > { %8438 = vmatprep.subr.bf16.mxu0 %v10570_v23  ;;  %v10644_v23 = vld [vmem:[%s12143_s30 + $0xd40] ss:$8 sps:$4 sm:$0xff]  }
 0x245   : > { %6327 = vmatpush1.bf16.msra.mxu1 %v10565_v24  ;;  %v10649_v24 = vld [vmem:[%s12143_s30 + $0x154] ss:$8 sps:$4 sm:$0xff]  }
 0x246   : > { %8439 = vmatpush1.bf16.msra.mxu0 %v10568_v25  ;;  %6328 = vmatprep.subr.bf16.mxu1 %v10573_v26  ;;  %v10652_v25 = vld [vmem:[%s12143_s30 + $0xd54] ss:$8 sps:$4 sm:$0xff]   ;;  %v10647_v26 = vld [vmem:[%s12143_s30 + $0x150] ss:$8 sps:$4 sm:$0xff]  }
 0x247   : > { %8440 = vmatprep.subr.bf16.mxu0 %v10576_v27  ;;  %v10650_v27 = vld [vmem:[%s12143_s30 + $0xd50] ss:$8 sps:$4 sm:$0xff]  }
 0x249   : > { %6329 = vmatpush1.bf16.msra.mxu1 %v10571_v28  ;;  %v10655_v28 = vld [vmem:[%s12143_s30 + $0x164] ss:$8 sps:$4 sm:$0xff]  }
 0x24a   : > { %8441 = vmatpush1.bf16.msra.mxu0 %v10574_v29  ;;  %6330 = vmatprep.subr.bf16.mxu1 %v10579_v30  ;;  %v10658_v29 = vld [vmem:[%s12143_s30 + $0xd64] ss:$8 sps:$4 sm:$0xff]   ;;  %v10653_v30 = vld [vmem:[%s12143_s30 + $0x160] ss:$8 sps:$4 sm:$0xff]  }
 0x24b   : > { %8442 = vmatprep.subr.bf16.mxu0 %v10582_v31  ;;  %v10656_v31 = vld [vmem:[%s12143_s30 + $0xd60] ss:$8 sps:$4 sm:$0xff]  }
 0x24d   : > { %6331 = vmatpush1.bf16.msra.mxu1 %v10577_v32  ;;  %v10661_v32 = vld [vmem:[%s12143_s30 + $0x174] ss:$8 sps:$4 sm:$0xff]  }
 0x24e   : > { %8443 = vmatpush1.bf16.msra.mxu0 %v10580_v34  ;;  %6332 = vmatprep.subr.bf16.mxu1 %v10585_v35  ;;  %v10664_v34 = vld [vmem:[%s12143_s30 + $0xd74] ss:$8 sps:$4 sm:$0xff]   ;;  %v10659_v35 = vld [vmem:[%s12143_s30 + $0x170] ss:$8 sps:$4 sm:$0xff]  }
 0x24f   : > { %8444 = vmatprep.subr.bf16.mxu0 %v10588_v38  ;;  %v10662_v38 = vld [vmem:[%s12143_s30 + $0xd70] ss:$8 sps:$4 sm:$0xff]  }
 0x251   : > { %6333 = vmatpush1.bf16.msra.mxu1 %v10583_v39  ;;  %v10667_v39 = vld [vmem:[%s12143_s30 + $0x184] ss:$8 sps:$4 sm:$0xff]  }
 0x252   : > { %8445 = vmatpush1.bf16.msra.mxu0 %v10586_v40  ;;  %6334 = vmatprep.subr.bf16.mxu1 %v10591_v41  ;;  %v10670_v40 = vld [vmem:[%s12143_s30 + $0xd84] ss:$8 sps:$4 sm:$0xff]   ;;  %v10665_v41 = vld [vmem:[%s12143_s30 + $0x180] ss:$8 sps:$4 sm:$0xff]  }
 0x253   : > { %8446 = vmatprep.subr.bf16.mxu0 %v10594_v42  ;;  %v10668_v42 = vld [vmem:[%s12143_s30 + $0xd80] ss:$8 sps:$4 sm:$0xff]  }
 0x255   : > { %6335 = vmatpush1.bf16.msra.mxu1 %v10589_v33  ;;  %v10673_v33 = vld [vmem:[%s12143_s30 + $0x194] ss:$8 sps:$4 sm:$0xff]  }
 0x256   : > { %8447 = vmatpush1.bf16.msra.mxu0 %v10592_v36  ;;  %6336 = vmatprep.subr.bf16.mxu1 %v10597_v43  ;;  %v10676_v36 = vld [vmem:[%s12143_s30 + $0xd94] ss:$8 sps:$4 sm:$0xff]   ;;  %v10671_v43 = vld [vmem:[%s12143_s30 + $0x190] ss:$8 sps:$4 sm:$0xff]  }
 0x257   : > { %8448 = vmatprep.subr.bf16.mxu0 %v10600_v44  ;;  %v10674_v44 = vld [vmem:[%s12143_s30 + $0xd90] ss:$8 sps:$4 sm:$0xff]  }
 0x259   : > { %6337 = vmatpush1.bf16.msra.mxu1 %v10595_v45  ;;  %v10679_v45 = vld [vmem:[%s12143_s30 + $0x1a4] ss:$8 sps:$4 sm:$0xff]  }
 0x25a   : > { %8449 = vmatpush1.bf16.msra.mxu0 %v10598_v47  ;;  %6338 = vmatprep.subr.bf16.mxu1 %v10604_v48  ;;  %v10682_v47 = vld [vmem:[%s12143_s30 + $0xda4] ss:$8 sps:$4 sm:$0xff]   ;;  %v10677_v48 = vld [vmem:[%s12143_s30 + $0x1a0] ss:$8 sps:$4 sm:$0xff]  }
 0x25b   : > { %8450 = vmatprep.subr.bf16.mxu0 %v10608_v51  ;;  %v10680_v51 = vld [vmem:[%s12143_s30 + $0xda0] ss:$8 sps:$4 sm:$0xff]  }
 0x25d   : > { %6339 = vmatpush1.bf16.msra.mxu1 %v10602_v52  ;;  %v10685_v52 = vld [vmem:[%s12143_s30 + $0x1b4] ss:$8 sps:$4 sm:$0xff]  }
 0x25e   : > { %8451 = vmatpush1.bf16.msra.mxu0 %v10606_v53  ;;  %6340 = vmatprep.subr.bf16.mxu1 %v10613_v54  ;;  %v10688_v53 = vld [vmem:[%s12143_s30 + $0xdb4] ss:$8 sps:$4 sm:$0xff]   ;;  %v10683_v54 = vld [vmem:[%s12143_s30 + $0x1b0] ss:$8 sps:$4 sm:$0xff]  }
 0x25f   : > { %8452 = vmatprep.subr.bf16.mxu0 %v10616_v37  ;;  %v10686_v37 = vld [vmem:[%s12143_s30 + $0xdb0] ss:$8 sps:$4 sm:$0xff]  }
 0x261   : > { %6341 = vmatpush1.bf16.msra.mxu1 %v10611_v46  ;;  %v10691_v46 = vld [vmem:[%s12143_s30 + $0x1c4] ss:$8 sps:$4 sm:$0xff]  }
 0x262   : > { %8453 = vmatpush1.bf16.msra.mxu0 %v10614_v49  ;;  %6361 = vmatprep.subr.bf16.mxu1 %v10619_v55  ;;  %v10694_v49 = vld [vmem:[%s12143_s30 + $0xdc4] ss:$8 sps:$4 sm:$0xff]   ;;  %v10689_v55 = vld [vmem:[%s12143_s30 + $0x1c0] ss:$8 sps:$4 sm:$0xff]  }
 0x263   : > { %8473 = vmatprep.subr.bf16.mxu0 %v10622_v56  ;;  %v10692_v56 = vld [vmem:[%s12143_s30 + $0xdc0] ss:$8 sps:$4 sm:$0xff]  }
 0x264   : > { %6343 = vmatmul.mubr.bf16.vlgmr.msra.gmra.mrb[0].mxu1 %v9229_v60  ;;  %v10700_v60 = vld [vmem:[%s12143_s30 + $0xdd4] ss:$8 sps:$4 sm:$0xff]  }
 0x265   : > { %8455 = vmatmul.mubr.bf16.vlgmr.msra.gmra.mrb[0].mxu0 %v9773_v62  ;;  %6362 = vmatpush1.bf16.msra.mxu1 %v10617_v63  ;;  %v10695_v62 = vld [vmem:[%s12143_s30 + $0x1d0] ss:$8 sps:$4 sm:$0xff]  }
 0x266   : > { %8474 = vmatpush1.bf16.msra.mxu0 %v10620_v0  ;;  %6363 = vmatprep.subr.bf16.mxu1 %v10625_v1  ;;  %v10698_v63 = vld [vmem:[%s12143_s30 + $0xdd0] ss:$8 sps:$4 sm:$0xff]   ;;  %v10704_v0 = vld [vmem:[%s12143_s30 + $0x1e4] ss:$8 sps:$4 sm:$0xff]  }
 0x267   : > { %8475 = vmatprep.subr.bf16.mxu0 %v10628_v50  ;;  %6352 = vmatprep.mubr.bf16.mxu1 %v9238_v57  ;;  %v10708_v1 = vld [vmem:[%s12143_s30 + $0xde4] ss:$8 sps:$4 sm:$0xff]   ;;  %v10702_v50 = vld [vmem:[%s12143_s30 + $0x1e0] ss:$8 sps:$4 sm:$0xff]   ;;  %v10711_v57 = vld [vmem:[%s12143_s30 + $0x1f0] ss:$8 sps:$4 sm:$0xff]  }
 0x268   : > { %8464 = vmatprep.mubr.bf16.mxu0 %v9782_v2  ;;  %v10714_v2 = vld [vmem:[%s12143_s30 + $0xdf0] ss:$8 sps:$4 sm:$0xff]  }
 0x269   : > { %6364 = vmatpush1.bf16.msra.mxu1 %v10623_v3  ;;  %v10706_v3 = vld [vmem:[%s12143_s30 + $0xde0] ss:$8 sps:$4 sm:$0xff]  }
 0x26a   : > { %8476 = vmatpush1.bf16.msra.mxu0 %v10626_v4  ;;  %6365 = vmatprep.subr.bf16.mxu1 %v10631_v58  ;;  %v10713_v4 = vld [vmem:[%s12143_s30 + $0x1f4] ss:$8 sps:$4 sm:$0xff]   ;;  %v10719_v58 = vld [vmem:[%s12143_s30 + $0x204] ss:$8 sps:$4 sm:$0xff]  }
 0x26b   : > { %8477 = vmatprep.subr.bf16.mxu0 %v10634_v61  ;;  %v10722_v61 = vld [vmem:[%s12143_s30 + $0xe04] ss:$8 sps:$4 sm:$0xff]  }
 0x26c   : > { %6353 = vmatmul.mubr.bf16.gmra.mrb[4].mxu1 %v9237_v9  ;;  %v9231_v9 = vcombine.low %v12586_v6, %v12599_v15  ;;  %v10731_v15 = vld [vmem:[%s12143_s30 + $0x224] ss:$8 sps:$4 sm:$0xff]  }
 0x26d   : > { %8465 = vmatmul.mubr.bf16.gmra.mrb[4].mxu0 %v9781_v10  ;;  %6366 = vmatpush1.bf16.msra.mxu1 %v10629_v11  ;;  %v9775_v10 = vcombine.low %v12589_v7, %v12592_v8  ;;  %v7582_v11 = vld [vmem:[%s12197_s11 + $0xa8] sm:$0xff]  ;;  %v10723_v7 = vld [vmem:[%s12143_s30 + $0x210] ss:$8 sps:$4 sm:$0xff]  }
 0x26e   : > { %8478 = vmatpush1.bf16.msra.mxu0 %v10632_v12  ;;  %6367 = vmatprep.subr.bf16.mxu1 %v10637_v13  ;;  %v10717_v12 = vld [vmem:[%s12143_s30 + $0x200] ss:$8 sps:$4 sm:$0xff]   ;;  %v9784_v6 = vcombine.high %v7582_v11, %v7582_v11  ;;  %v10726_v8 = vld [vmem:[%s12143_s30 + $0xe10] ss:$8 sps:$4 sm:$0xff]  }
 0x26f   : > { %8479 = vmatprep.subr.bf16.mxu0 %v10640_v14  ;;  %6393 = vmatprep.mubr.bf16.mxu1 %v9232_v16  ;;  %v10720_v13 = vld [vmem:[%s12143_s30 + $0xe00] ss:$8 sps:$4 sm:$0xff]   ;;  %v10725_v14 = vld [vmem:[%s12143_s30 + $0x214] ss:$8 sps:$4 sm:$0xff]  }
 0x270   : > { %8505 = vmatprep.mubr.bf16.mxu0 %v9776_v17  ;;  %v10728_v16 = vld [vmem:[%s12143_s30 + $0xe14] ss:$8 sps:$4 sm:$0xff]   ;;  %v10924_v17 = vld [vmem:[%s12197_s11 + $0x48] sm:$0xff] }
 0x271   : > { %6368 = vmatpush1.bf16.msra.mxu1 %v10635_v18  ;;  %v9240_v18 = vcombine.high %v10924_v17, %v10924_v17 }
 0x272   : > { %8480 = vmatpush1.bf16.msra.mxu0 %v10638_v19  ;;  %6369 = vmatprep.subr.bf16.mxu1 %v10643_v20  ;;  %v10734_v19 = vld [vmem:[%s12143_s30 + $0xe24] ss:$8 sps:$4 sm:$0xff]   ;;  %v9239_v20 = vcombine.low %v10924_v17, %v10924_v17  ;;  %v10806_v17 = vld [vmem:[%s12143_s30 + $0xee0] ss:$8 sps:$4 sm:$0xff]  }
 0x273   : > { %8481 = vmatprep.subr.bf16.mxu0 %v10646_v21  ;;  %v9783_v21 = vcombine.low %v7582_v11, %v7582_v11  ;;  %v10795_v11 = vld [vmem:[%s12143_s30 + $0x2d0] ss:$8 sps:$4 sm:$0xff]  }
 0x275   : > { %6370 = vmatpush1.bf16.msra.mxu1 %v10641_v22  ;;  %v12672_v22 = vld [vmem:[%s12197_s11 + $0x10] sm:$0xff] }
 0x276   : > { %8482 = vmatpush1.bf16.msra.mxu0 %v10644_v23  ;;  %6371 = vmatprep.subr.bf16.mxu1 %v10649_v24  ;;  %v12675_v23 = vld [vmem:[%s12197_s11 + $0x70] sm:$0xff] }
 0x277   : > { %8483 = vmatprep.subr.bf16.mxu0 %v10652_v25  ;;  %v12678_v24 = vld [vmem:[%s12197_s11 + $0x90] sm:$0xff]  ;;  %v10729_v25 = vld [vmem:[%s12143_s30 + $0x220] ss:$8 sps:$4 sm:$0xff]  }
 0x279   : > { %6372 = vmatpush1.bf16.msra.mxu1 %v10647_v26  ;;  %v10732_v26 = vld [vmem:[%s12143_s30 + $0xe20] ss:$8 sps:$4 sm:$0xff]  }
 0x27a   : > { %8484 = vmatpush1.bf16.msra.mxu0 %v10650_v27  ;;  %6373 = vmatprep.subr.bf16.mxu1 %v10655_v28  ;;  %v10737_v27 = vld [vmem:[%s12143_s30 + $0x234] ss:$8 sps:$4 sm:$0xff]  }
 0x27b   : > { %8485 = vmatprep.subr.bf16.mxu0 %v10658_v29  ;;  %v10740_v28 = vld [vmem:[%s12143_s30 + $0xe34] ss:$8 sps:$4 sm:$0xff]  }
 0x27c   : > { %v12685_v29 = vld [vmem:[%s12197_s11 + $0x30] sm:$0xff] }
 0x27d   : > { %6374 = vmatpush1.bf16.msra.mxu1 %v10653_v30  ;;  %v9234_v30 = vcombine.high %v12672_v22, %v12685_v29 }
 0x27e   : > { %8486 = vmatpush1.bf16.msra.mxu0 %v10656_v31  ;;  %6375 = vmatprep.subr.bf16.mxu1 %v10661_v32  ;;  %v9778_v31 = vcombine.high %v12675_v23, %v12678_v24  ;;  %v10735_v32 = vld [vmem:[%s12143_s30 + $0x230] ss:$8 sps:$4 sm:$0xff]  }
 0x27f   : > { %8487 = vmatprep.subr.bf16.mxu0 %v10664_v34  ;;  %v10738_v34 = vld [vmem:[%s12143_s30 + $0xe30] ss:$8 sps:$4 sm:$0xff]  }
 0x281   : > { %6376 = vmatpush1.bf16.msra.mxu1 %v10659_v35  ;;  %v10743_v35 = vld [vmem:[%s12143_s30 + $0x244] ss:$8 sps:$4 sm:$0xff]  }
 0x282   : > { %8488 = vmatpush1.bf16.msra.mxu0 %v10662_v38  ;;  %6377 = vmatprep.subr.bf16.mxu1 %v10667_v39  ;;  %v10746_v38 = vld [vmem:[%s12143_s30 + $0xe44] ss:$8 sps:$4 sm:$0xff]   ;;  %v10741_v39 = vld [vmem:[%s12143_s30 + $0x240] ss:$8 sps:$4 sm:$0xff]  }
 0x283   : > { %8489 = vmatprep.subr.bf16.mxu0 %v10670_v40  ;;  %v10744_v40 = vld [vmem:[%s12143_s30 + $0xe40] ss:$8 sps:$4 sm:$0xff]  }
 0x285   : > { %6378 = vmatpush1.bf16.msra.mxu1 %v10665_v41  ;;  %v10749_v41 = vld [vmem:[%s12143_s30 + $0x254] ss:$8 sps:$4 sm:$0xff]  }
 0x286   : > { %8490 = vmatpush1.bf16.msra.mxu0 %v10668_v42  ;;  %6379 = vmatprep.subr.bf16.mxu1 %v10673_v33  ;;  %v10752_v42 = vld [vmem:[%s12143_s30 + $0xe54] ss:$8 sps:$4 sm:$0xff]   ;;  %v10747_v33 = vld [vmem:[%s12143_s30 + $0x250] ss:$8 sps:$4 sm:$0xff]  }
 0x287   : > { %8491 = vmatprep.subr.bf16.mxu0 %v10676_v36  ;;  %v10750_v36 = vld [vmem:[%s12143_s30 + $0xe50] ss:$8 sps:$4 sm:$0xff]  }
 0x289   : > { %6380 = vmatpush1.bf16.msra.mxu1 %v10671_v43  ;;  %v10755_v43 = vld [vmem:[%s12143_s30 + $0x264] ss:$8 sps:$4 sm:$0xff]  }
 0x28a   : > { %8492 = vmatpush1.bf16.msra.mxu0 %v10674_v44  ;;  %6381 = vmatprep.subr.bf16.mxu1 %v10679_v45  ;;  %v10758_v44 = vld [vmem:[%s12143_s30 + $0xe64] ss:$8 sps:$4 sm:$0xff]   ;;  %v10753_v45 = vld [vmem:[%s12143_s30 + $0x260] ss:$8 sps:$4 sm:$0xff]  }
 0x28b   : > { %8493 = vmatprep.subr.bf16.mxu0 %v10682_v47  ;;  %v10756_v47 = vld [vmem:[%s12143_s30 + $0xe60] ss:$8 sps:$4 sm:$0xff]  }
 0x28d   : > { %6382 = vmatpush1.bf16.msra.mxu1 %v10677_v48  ;;  %v10761_v48 = vld [vmem:[%s12143_s30 + $0x274] ss:$8 sps:$4 sm:$0xff]  }
 0x28e   : > { %8494 = vmatpush1.bf16.msra.mxu0 %v10680_v51  ;;  %6383 = vmatprep.subr.bf16.mxu1 %v10685_v52  ;;  %v10764_v51 = vld [vmem:[%s12143_s30 + $0xe74] ss:$8 sps:$4 sm:$0xff]   ;;  %v10759_v52 = vld [vmem:[%s12143_s30 + $0x270] ss:$8 sps:$4 sm:$0xff]  }
 0x28f   : > { %8495 = vmatprep.subr.bf16.mxu0 %v10688_v53  ;;  %v10762_v53 = vld [vmem:[%s12143_s30 + $0xe70] ss:$8 sps:$4 sm:$0xff]  }
 0x291   : > { %6384 = vmatpush1.bf16.msra.mxu1 %v10683_v54  ;;  %v10767_v54 = vld [vmem:[%s12143_s30 + $0x284] ss:$8 sps:$4 sm:$0xff]  }
 0x292   : > { %8496 = vmatpush1.bf16.msra.mxu0 %v10686_v37  ;;  %6385 = vmatprep.subr.bf16.mxu1 %v10691_v46  ;;  %v10770_v37 = vld [vmem:[%s12143_s30 + $0xe84] ss:$8 sps:$4 sm:$0xff]   ;;  %v10765_v46 = vld [vmem:[%s12143_s30 + $0x280] ss:$8 sps:$4 sm:$0xff]  }
 0x293   : > { %8497 = vmatprep.subr.bf16.mxu0 %v10694_v49  ;;  %v10768_v49 = vld [vmem:[%s12143_s30 + $0xe80] ss:$8 sps:$4 sm:$0xff]  }
 0x295   : > { %6386 = vmatpush1.bf16.msra.mxu1 %v10689_v55  ;;  %v10773_v55 = vld [vmem:[%s12143_s30 + $0x294] ss:$8 sps:$4 sm:$0xff]  }
 0x296   : > { %8498 = vmatpush1.bf16.msra.mxu0 %v10692_v56  ;;  %6387 = vmatprep.subr.bf16.mxu1 %v10697_v59  ;;  %v10776_v56 = vld [vmem:[%s12143_s30 + $0xe94] ss:$8 sps:$4 sm:$0xff]   ;;  %v10771_v59 = vld [vmem:[%s12143_s30 + $0x290] ss:$8 sps:$4 sm:$0xff]  }
 0x297   : > { %8499 = vmatprep.subr.bf16.mxu0 %v10700_v60  ;;  %v10774_v60 = vld [vmem:[%s12143_s30 + $0xe90] ss:$8 sps:$4 sm:$0xff]  }
 0x299   : > { %6388 = vmatpush1.bf16.msra.mxu1 %v10695_v62  ;;  %v10779_v62 = vld [vmem:[%s12143_s30 + $0x2a4] ss:$8 sps:$4 sm:$0xff]  }
 0x29a   : > { %8500 = vmatpush1.bf16.msra.mxu0 %v10698_v63  ;;  %6389 = vmatprep.subr.bf16.mxu1 %v10704_v0  ;;  %v10782_v63 = vld [vmem:[%s12143_s30 + $0xea4] ss:$8 sps:$4 sm:$0xff]   ;;  %v10777_v0 = vld [vmem:[%s12143_s30 + $0x2a0] ss:$8 sps:$4 sm:$0xff]  }
 0x29b   : > { %8501 = vmatprep.subr.bf16.mxu0 %v10708_v1  ;;  %v10780_v1 = vld [vmem:[%s12143_s30 + $0xea0] ss:$8 sps:$4 sm:$0xff]  }
 0x29d   : > { %6390 = vmatpush1.bf16.msra.mxu1 %v10702_v50  ;;  %v10785_v50 = vld [vmem:[%s12143_s30 + $0x2b4] ss:$8 sps:$4 sm:$0xff]  }
 0x29e   : > { %8502 = vmatpush1.bf16.msra.mxu0 %v10706_v3  ;;  %6391 = vmatprep.subr.bf16.mxu1 %v10713_v4  ;;  %v10788_v3 = vld [vmem:[%s12143_s30 + $0xeb4] ss:$8 sps:$4 sm:$0xff]   ;;  %v10783_v4 = vld [vmem:[%s12143_s30 + $0x2b0] ss:$8 sps:$4 sm:$0xff]  }
 0x29f   : > { %8503 = vmatprep.subr.bf16.mxu0 %v10716_v5  ;;  %v10786_v5 = vld [vmem:[%s12143_s30 + $0xeb0] ss:$8 sps:$4 sm:$0xff]  }
 0x2a1   : > { %6392 = vmatpush1.bf16.msra.mxu1 %v10711_v57  ;;  %v10791_v57 = vld [vmem:[%s12143_s30 + $0x2c4] ss:$8 sps:$4 sm:$0xff]  }
 0x2a2   : > { %8504 = vmatpush1.bf16.msra.mxu0 %v10714_v2  ;;  %6412 = vmatprep.subr.bf16.mxu1 %v10719_v58  ;;  %v10794_v2 = vld [vmem:[%s12143_s30 + $0xec4] ss:$8 sps:$4 sm:$0xff]   ;;  %v10789_v58 = vld [vmem:[%s12143_s30 + $0x2c0] ss:$8 sps:$4 sm:$0xff]  }
 0x2a3   : > { %8524 = vmatprep.subr.bf16.mxu0 %v10722_v61  ;;  %v10792_v61 = vld [vmem:[%s12143_s30 + $0xec0] ss:$8 sps:$4 sm:$0xff]  }
 0x2a4   : > { %6394 = vmatmul.mubr.bf16.vlgmr.msra.gmra.mrb[0].mxu1 %v9231_v9  ;;  %v10797_v9 = vld [vmem:[%s12143_s30 + $0x2d4] ss:$8 sps:$4 sm:$0xff]  }
 0x2a5   : > { %8506 = vmatmul.mubr.bf16.vlgmr.msra.gmra.mrb[0].mxu0 %v9775_v10  ;;  %6413 = vmatpush1.bf16.msra.mxu1 %v10717_v12  ;;  %v10800_v10 = vld [vmem:[%s12143_s30 + $0xed4] ss:$8 sps:$4 sm:$0xff]   ;;  %v10798_v12 = vld [vmem:[%s12143_s30 + $0xed0] ss:$8 sps:$4 sm:$0xff]  }
 0x2a6   : > { %8525 = vmatpush1.bf16.msra.mxu0 %v10720_v13  ;;  %6414 = vmatprep.subr.bf16.mxu1 %v10725_v14  ;;  %v10804_v13 = vld [vmem:[%s12143_s30 + $0x2e4] ss:$8 sps:$4 sm:$0xff]  }
 0x2a7   : > { %8526 = vmatprep.subr.bf16.mxu0 %v10728_v16  ;;  %6403 = vmatprep.mubr.bf16.mxu1 %v9240_v18  ;;  %v10808_v14 = vld [vmem:[%s12143_s30 + $0xee4] ss:$8 sps:$4 sm:$0xff]   ;;  %v10802_v16 = vld [vmem:[%s12143_s30 + $0x2e0] ss:$8 sps:$4 sm:$0xff]   ;;  %v10813_v18 = vld [vmem:[%s12143_s30 + $0x2f4] ss:$8 sps:$4 sm:$0xff]  }
 0x2a8   : > { %8515 = vmatprep.mubr.bf16.mxu0 %v9784_v6  ;;  %v10816_v6 = vld [vmem:[%s12143_s30 + $0xef4] ss:$8 sps:$4 sm:$0xff]  }
 0x2a9   : > { %6415 = vmatpush1.bf16.msra.mxu1 %v10723_v7  ;;  %v10811_v7 = vld [vmem:[%s12143_s30 + $0x2f0] ss:$8 sps:$4 sm:$0xff]  }
 0x2aa   : > { %8527 = vmatpush1.bf16.msra.mxu0 %v10726_v8  ;;  %6416 = vmatprep.subr.bf16.mxu1 %v10731_v15  ;;  %v10814_v8 = vld [vmem:[%s12143_s30 + $0xef0] ss:$8 sps:$4 sm:$0xff]   ;;  %v10819_v15 = vld [vmem:[%s12143_s30 + $0x304] ss:$8 sps:$4 sm:$0xff]  }
 0x2ab   : > { %8528 = vmatprep.subr.bf16.mxu0 %v10734_v19  ;;  %v10822_v19 = vld [vmem:[%s12143_s30 + $0xf04] ss:$8 sps:$4 sm:$0xff]  }
 0x2ac   : > { %6404 = vmatmul.mubr.bf16.gmra.mrb[4].mxu1 %v9239_v20  ;;  %v9233_v20 = vcombine.low %v12672_v22, %v12685_v29  ;;  %v10831_v29 = vld [vmem:[%s12143_s30 + $0x324] ss:$8 sps:$4 sm:$0xff]  }
 0x2ad   : > { %8516 = vmatmul.mubr.bf16.gmra.mrb[4].mxu0 %v9783_v21  ;;  %6417 = vmatpush1.bf16.msra.mxu1 %v10729_v25  ;;  %v9777_v21 = vcombine.low %v12675_v23, %v12678_v24  ;;  %v7583_v25 = vld [vmem:[%s12197_s11 + $0xb0] sm:$0xff] }
 0x2ae   : > { %8529 = vmatpush1.bf16.msra.mxu0 %v10732_v26  ;;  %6418 = vmatprep.subr.bf16.mxu1 %v10737_v27  ;;  %v10817_v26 = vld [vmem:[%s12143_s30 + $0x300] ss:$8 sps:$4 sm:$0xff]   ;;  %v9786_v22 = vcombine.high %v7583_v25, %v7583_v25  ;;  %v10823_v23 = vld [vmem:[%s12143_s30 + $0x310] ss:$8 sps:$4 sm:$0xff]  }
 0x2af   : > { %8530 = vmatprep.subr.bf16.mxu0 %v10740_v28  ;;  %6444 = vmatprep.mubr.bf16.mxu1 %v9234_v30  ;;  %v10820_v27 = vld [vmem:[%s12143_s30 + $0xf00] ss:$8 sps:$4 sm:$0xff]   ;;  %v10825_v28 = vld [vmem:[%s12143_s30 + $0x314] ss:$8 sps:$4 sm:$0xff]   ;;  %v10826_v24 = vld [vmem:[%s12143_s30 + $0xf10] ss:$8 sps:$4 sm:$0xff]  }
 0x2b0   : > { %8556 = vmatprep.mubr.bf16.mxu0 %v9778_v31  ;;  %v10828_v30 = vld [vmem:[%s12143_s30 + $0xf14] ss:$8 sps:$4 sm:$0xff]  }
 0x2b1   : > { %6419 = vmatpush1.bf16.msra.mxu1 %v10735_v32  ;;  %v10926_v31 = vld [vmem:[%s12197_s11 + $0x50] sm:$0xff] }
 0x2b2   : > { %8531 = vmatpush1.bf16.msra.mxu0 %v10738_v34  ;;  %6420 = vmatprep.subr.bf16.mxu1 %v10743_v35  ;;  %v9242_v32 = vcombine.high %v10926_v31, %v10926_v31  ;;  %v10834_v34 = vld [vmem:[%s12143_s30 + $0xf24] ss:$8 sps:$4 sm:$0xff]   ;;  %v9241_v35 = vcombine.low %v10926_v31, %v10926_v31  ;;  %v10908_v31 = vld [vmem:[%s12143_s30 + $0xfe0] ss:$8 sps:$4 sm:$0xff]  }
 0x2b3   : > { %8532 = vmatprep.subr.bf16.mxu0 %v10746_v38  ;;  %v9785_v38 = vcombine.low %v7583_v25, %v7583_v25  ;;  %v10895_v25 = vld [vmem:[%s12143_s30 + $0x3d0] ss:$8 sps:$4 sm:$0xff]  }
 0x2b5   : > { %6421 = vmatpush1.bf16.msra.mxu1 %v10741_v39  ;;  %v12758_v39 = vld [vmem:[%s12197_s11 + $0x18] sm:$0xff] }
 0x2b6   : > { %8533 = vmatpush1.bf16.msra.mxu0 %v10744_v40  ;;  %6422 = vmatprep.subr.bf16.mxu1 %v10749_v41  ;;  %v12761_v40 = vld [vmem:[%s12197_s11 + $0x78] sm:$0xff] }
 0x2b7   : > { %8534 = vmatprep.subr.bf16.mxu0 %v10752_v42  ;;  %v12764_v41 = vld [vmem:[%s12197_s11 + $0x98] sm:$0xff]  ;;  %v10829_v42 = vld [vmem:[%s12143_s30 + $0x320] ss:$8 sps:$4 sm:$0xff]  }
 0x2b9   : > { %6423 = vmatpush1.bf16.msra.mxu1 %v10747_v33  ;;  %v10832_v33 = vld [vmem:[%s12143_s30 + $0xf20] ss:$8 sps:$4 sm:$0xff]  }
 0x2ba   : > { %8535 = vmatpush1.bf16.msra.mxu0 %v10750_v36  ;;  %6424 = vmatprep.subr.bf16.mxu1 %v10755_v43  ;;  %v10837_v36 = vld [vmem:[%s12143_s30 + $0x334] ss:$8 sps:$4 sm:$0xff]  }
 0x2bb   : > { %8536 = vmatprep.subr.bf16.mxu0 %v10758_v44  ;;  %v10840_v43 = vld [vmem:[%s12143_s30 + $0xf34] ss:$8 sps:$4 sm:$0xff]  }
 0x2bc   : > { %v12771_v44 = vld [vmem:[%s12197_s11 + $0x38] sm:$0xff] }
 0x2bd   : > { %6425 = vmatpush1.bf16.msra.mxu1 %v10753_v45  ;;  %v9236_v45 = vcombine.high %v12758_v39, %v12771_v44 }
 0x2be   : > { %8537 = vmatpush1.bf16.msra.mxu0 %v10756_v47  ;;  %6426 = vmatprep.subr.bf16.mxu1 %v10761_v48  ;;  %v9780_v47 = vcombine.high %v12761_v40, %v12764_v41  ;;  %v10835_v48 = vld [vmem:[%s12143_s30 + $0x330] ss:$8 sps:$4 sm:$0xff]  }
 0x2bf   : > { %8538 = vmatprep.subr.bf16.mxu0 %v10764_v51  ;;  %v10838_v51 = vld [vmem:[%s12143_s30 + $0xf30] ss:$8 sps:$4 sm:$0xff]  }
 0x2c1   : > { %6427 = vmatpush1.bf16.msra.mxu1 %v10759_v52  ;;  %v10843_v52 = vld [vmem:[%s12143_s30 + $0x344] ss:$8 sps:$4 sm:$0xff]  }
 0x2c2   : > { %8539 = vmatpush1.bf16.msra.mxu0 %v10762_v53  ;;  %6428 = vmatprep.subr.bf16.mxu1 %v10767_v54  ;;  %v10846_v53 = vld [vmem:[%s12143_s30 + $0xf44] ss:$8 sps:$4 sm:$0xff]   ;;  %v10841_v54 = vld [vmem:[%s12143_s30 + $0x340] ss:$8 sps:$4 sm:$0xff]  }
 0x2c3   : > { %8540 = vmatprep.subr.bf16.mxu0 %v10770_v37  ;;  %v10844_v37 = vld [vmem:[%s12143_s30 + $0xf40] ss:$8 sps:$4 sm:$0xff]  }
 0x2c5   : > { %6429 = vmatpush1.bf16.msra.mxu1 %v10765_v46  ;;  %v10849_v46 = vld [vmem:[%s12143_s30 + $0x354] ss:$8 sps:$4 sm:$0xff]  }
 0x2c6   : > { %8541 = vmatpush1.bf16.msra.mxu0 %v10768_v49  ;;  %6430 = vmatprep.subr.bf16.mxu1 %v10773_v55  ;;  %v10852_v49 = vld [vmem:[%s12143_s30 + $0xf54] ss:$8 sps:$4 sm:$0xff]   ;;  %v10847_v55 = vld [vmem:[%s12143_s30 + $0x350] ss:$8 sps:$4 sm:$0xff]  }
 0x2c7   : > { %8542 = vmatprep.subr.bf16.mxu0 %v10776_v56  ;;  %v10850_v56 = vld [vmem:[%s12143_s30 + $0xf50] ss:$8 sps:$4 sm:$0xff]  }
 0x2c9   : > { %6431 = vmatpush1.bf16.msra.mxu1 %v10771_v59  ;;  %v10855_v59 = vld [vmem:[%s12143_s30 + $0x364] ss:$8 sps:$4 sm:$0xff]  }
 0x2ca   : > { %8543 = vmatpush1.bf16.msra.mxu0 %v10774_v60  ;;  %6432 = vmatprep.subr.bf16.mxu1 %v10779_v62  ;;  %v10858_v60 = vld [vmem:[%s12143_s30 + $0xf64] ss:$8 sps:$4 sm:$0xff]   ;;  %v10853_v62 = vld [vmem:[%s12143_s30 + $0x360] ss:$8 sps:$4 sm:$0xff]  }
 0x2cb   : > { %8544 = vmatprep.subr.bf16.mxu0 %v10782_v63  ;;  %v10856_v63 = vld [vmem:[%s12143_s30 + $0xf60] ss:$8 sps:$4 sm:$0xff]  }
 0x2cd   : > { %6433 = vmatpush1.bf16.msra.mxu1 %v10777_v0  ;;  %v10861_v0 = vld [vmem:[%s12143_s30 + $0x374] ss:$8 sps:$4 sm:$0xff]  }
 0x2ce   : > { %8545 = vmatpush1.bf16.msra.mxu0 %v10780_v1  ;;  %6434 = vmatprep.subr.bf16.mxu1 %v10785_v50  ;;  %v10864_v1 = vld [vmem:[%s12143_s30 + $0xf74] ss:$8 sps:$4 sm:$0xff]   ;;  %v10859_v50 = vld [vmem:[%s12143_s30 + $0x370] ss:$8 sps:$4 sm:$0xff]  }
 0x2cf   : > { %8546 = vmatprep.subr.bf16.mxu0 %v10788_v3  ;;  %v10862_v3 = vld [vmem:[%s12143_s30 + $0xf70] ss:$8 sps:$4 sm:$0xff]  }
 0x2d1   : > { %6435 = vmatpush1.bf16.msra.mxu1 %v10783_v4  ;;  %v10867_v4 = vld [vmem:[%s12143_s30 + $0x384] ss:$8 sps:$4 sm:$0xff]  }
 0x2d2   : > { %8547 = vmatpush1.bf16.msra.mxu0 %v10786_v5  ;;  %6436 = vmatprep.subr.bf16.mxu1 %v10791_v57  ;;  %v10870_v5 = vld [vmem:[%s12143_s30 + $0xf84] ss:$8 sps:$4 sm:$0xff]   ;;  %v10865_v57 = vld [vmem:[%s12143_s30 + $0x380] ss:$8 sps:$4 sm:$0xff]  }
 0x2d3   : > { %8548 = vmatprep.subr.bf16.mxu0 %v10794_v2  ;;  %v10868_v2 = vld [vmem:[%s12143_s30 + $0xf80] ss:$8 sps:$4 sm:$0xff]  }
 0x2d5   : > { %6437 = vmatpush1.bf16.msra.mxu1 %v10789_v58  ;;  %v10873_v58 = vld [vmem:[%s12143_s30 + $0x394] ss:$8 sps:$4 sm:$0xff]  }
 0x2d6   : > { %8549 = vmatpush1.bf16.msra.mxu0 %v10792_v61  ;;  %6438 = vmatprep.subr.bf16.mxu1 %v10797_v9  ;;  %v10876_v61 = vld [vmem:[%s12143_s30 + $0xf94] ss:$8 sps:$4 sm:$0xff]   ;;  %v10871_v9 = vld [vmem:[%s12143_s30 + $0x390] ss:$8 sps:$4 sm:$0xff]  }
 0x2d7   : > { %8550 = vmatprep.subr.bf16.mxu0 %v10800_v10  ;;  %v10874_v10 = vld [vmem:[%s12143_s30 + $0xf90] ss:$8 sps:$4 sm:$0xff]  }
 0x2d9   : > { %6439 = vmatpush1.bf16.msra.mxu1 %v10795_v11  ;;  %v10879_v11 = vld [vmem:[%s12143_s30 + $0x3a4] ss:$8 sps:$4 sm:$0xff]  }
 0x2da   : > { %8551 = vmatpush1.bf16.msra.mxu0 %v10798_v12  ;;  %6440 = vmatprep.subr.bf16.mxu1 %v10804_v13  ;;  %v10882_v12 = vld [vmem:[%s12143_s30 + $0xfa4] ss:$8 sps:$4 sm:$0xff]   ;;  %v10877_v13 = vld [vmem:[%s12143_s30 + $0x3a0] ss:$8 sps:$4 sm:$0xff]  }
 0x2db   : > { %8552 = vmatprep.subr.bf16.mxu0 %v10808_v14  ;;  %v10880_v14 = vld [vmem:[%s12143_s30 + $0xfa0] ss:$8 sps:$4 sm:$0xff]  }
 0x2dd   : > { %6441 = vmatpush1.bf16.msra.mxu1 %v10802_v16  ;;  %v10885_v16 = vld [vmem:[%s12143_s30 + $0x3b4] ss:$8 sps:$4 sm:$0xff]  }
 0x2de   : > { %8553 = vmatpush1.bf16.msra.mxu0 %v10806_v17  ;;  %6442 = vmatprep.subr.bf16.mxu1 %v10813_v18  ;;  %v10888_v17 = vld [vmem:[%s12143_s30 + $0xfb4] ss:$8 sps:$4 sm:$0xff]   ;;  %v10883_v18 = vld [vmem:[%s12143_s30 + $0x3b0] ss:$8 sps:$4 sm:$0xff]  }
 0x2df   : > { %8554 = vmatprep.subr.bf16.mxu0 %v10816_v6  ;;  %v10886_v6 = vld [vmem:[%s12143_s30 + $0xfb0] ss:$8 sps:$4 sm:$0xff]  }
 0x2e1   : > { %6443 = vmatpush1.bf16.msra.mxu1 %v10811_v7  ;;  %v10891_v7 = vld [vmem:[%s12143_s30 + $0x3c4] ss:$8 sps:$4 sm:$0xff]  }
 0x2e2   : > { %8555 = vmatpush1.bf16.msra.mxu0 %v10814_v8  ;;  %6463 = vmatprep.subr.bf16.mxu1 %v10819_v15  ;;  %v10894_v8 = vld [vmem:[%s12143_s30 + $0xfc4] ss:$8 sps:$4 sm:$0xff]   ;;  %v10889_v15 = vld [vmem:[%s12143_s30 + $0x3c0] ss:$8 sps:$4 sm:$0xff]  }
 0x2e3   : > { %8575 = vmatprep.subr.bf16.mxu0 %v10822_v19  ;;  %v10892_v19 = vld [vmem:[%s12143_s30 + $0xfc0] ss:$8 sps:$4 sm:$0xff]  }
 0x2e4   : > { %6445 = vmatmul.mubr.bf16.vlgmr.msra.gmra.mrb[0].mxu1 %v9233_v20  ;;  %v10897_v20 = vld [vmem:[%s12143_s30 + $0x3d4] ss:$8 sps:$4 sm:$0xff]  }
 0x2e5   : > { %8557 = vmatmul.mubr.bf16.vlgmr.msra.gmra.mrb[0].mxu0 %v9777_v21  ;;  %6464 = vmatpush1.bf16.msra.mxu1 %v10817_v26  ;;  %v10900_v21 = vld [vmem:[%s12143_s30 + $0xfd4] ss:$8 sps:$4 sm:$0xff]   ;;  %v10898_v26 = vld [vmem:[%s12143_s30 + $0xfd0] ss:$8 sps:$4 sm:$0xff]  }
 0x2e6   : > { %8576 = vmatpush1.bf16.msra.mxu0 %v10820_v27  ;;  %6465 = vmatprep.subr.bf16.mxu1 %v10825_v28  ;;  %v10906_v27 = vld [vmem:[%s12143_s30 + $0x3e4] ss:$8 sps:$4 sm:$0xff]  }
 0x2e7   : > { %8577 = vmatprep.subr.bf16.mxu0 %v10828_v30  ;;  %6454 = vmatprep.mubr.bf16.mxu1 %v9242_v32  ;;  %v10910_v28 = vld [vmem:[%s12143_s30 + $0xfe4] ss:$8 sps:$4 sm:$0xff]   ;;  %v10904_v30 = vld [vmem:[%s12143_s30 + $0x3e0] ss:$8 sps:$4 sm:$0xff]   ;;  %v10913_v32 = vld [vmem:[%s12143_s30 + $0x3f4] ss:$8 sps:$4 sm:$0xff]  }
 0x2e8   : > { %8566 = vmatprep.mubr.bf16.mxu0 %v9786_v22  ;;  %v10916_v22 = vld [vmem:[%s12143_s30 + $0xff4] ss:$8 sps:$4 sm:$0xff]  }
 0x2e9   : > { %6466 = vmatpush1.bf16.msra.mxu1 %v10823_v23  ;;  %v10911_v23 = vld [vmem:[%s12143_s30 + $0x3f0] ss:$8 sps:$4 sm:$0xff]  }
 0x2ea   : > { %8578 = vmatpush1.bf16.msra.mxu0 %v10826_v24  ;;  %6467 = vmatprep.subr.bf16.mxu1 %v10831_v29  ;;  %v10914_v24 = vld [vmem:[%s12143_s30 + $0xff0] ss:$8 sps:$4 sm:$0xff]  }
 0x2eb   : > { %8579 = vmatprep.subr.bf16.mxu0 %v10834_v34  ;;  %v7584_v29 = vld [vmem:[%s12197_s11 + $0xb8] sm:$0xff]  ;;  %v9235_v34 = vcombine.low %v12758_v39, %v12771_v44 }
 0x2ec   : > { %6455 = vmatmul.mubr.bf16.gmra.mrb[4].mxu1 %v9241_v35  ;;  %v9779_v35 = vcombine.low %v12761_v40, %v12764_v41 }
 0x2ed   : > { %8567 = vmatmul.mubr.bf16.gmra.mrb[4].mxu0 %v9785_v38  ;;  %6468 = vmatpush1.bf16.msra.mxu1 %v10829_v42  ;;  %v10928_v38 = vld [vmem:[%s12197_s11 + $0x58] sm:$0xff]  ;;  %s10048_s11 = smul.u32 (%p11094_p9), 12, %s10983_s19 }
 0x2ee   : > { %8580 = vmatpush1.bf16.msra.mxu0 %v10832_v33  ;;  %6469 = vmatprep.subr.bf16.mxu1 %v10837_v36  ;;  %v9244_v42 = vcombine.high %v10928_v38, %v10928_v38  ;;  %v9788_v33 = vcombine.high %v7584_v29, %v7584_v29  ;;  %v9243_v36 = vcombine.low %v10928_v38, %v10928_v38 }
 0x2ef   : > { %8581 = vmatprep.subr.bf16.mxu0 %v10840_v43  ;;  %6495 = vmatprep.mubr.bf16.mxu1 %v9236_v45  ;;  %v9787_v43 = vcombine.low %v7584_v29, %v7584_v29  ;;  %s8724_s12 = sadd.s32 (%p11094_p9), %s10048_s11, %s12835_s14 }
 0x2f0   : > { %8607 = vmatprep.mubr.bf16.mxu0 %v9780_v47  ;;  %s9921_s13 = sshll.u32 (%p11094_p9), %s8724_s12, 2 }
 0x2f1   : > { %6470 = vmatpush1.bf16.msra.mxu1 %v10835_v48  ;;  %s8726_s27 = scalar_lea.vmem (%p11094_p9), %s12890_s2, %s9921_s13 }
 0x2f2   : > { %8582 = vmatpush1.bf16.msra.mxu0 %v10838_v51  ;;  %6471 = vmatprep.subr.bf16.mxu1 %v10843_v52 }
 0x2f3   : > { %8583 = vmatprep.subr.bf16.mxu0 %v10846_v53 }
 0x2f5   : > { %6472 = vmatpush1.bf16.msra.mxu1 %v10841_v54 }
 0x2f6   : > { %8584 = vmatpush1.bf16.msra.mxu0 %v10844_v37  ;;  %6473 = vmatprep.subr.bf16.mxu1 %v10849_v46 }
 0x2f7   : > { %8585 = vmatprep.subr.bf16.mxu0 %v10852_v49 }
 0x2f9   : > { %6474 = vmatpush1.bf16.msra.mxu1 %v10847_v55 }
 0x2fa   : > { %8586 = vmatpush1.bf16.msra.mxu0 %v10850_v56  ;;  %6475 = vmatprep.subr.bf16.mxu1 %v10855_v59 }
 0x2fb   : > { %8587 = vmatprep.subr.bf16.mxu0 %v10858_v60 }
 0x2fd   : > { %6476 = vmatpush1.bf16.msra.mxu1 %v10853_v62 }
 0x2fe   : > { %8588 = vmatpush1.bf16.msra.mxu0 %v10856_v63  ;;  %6477 = vmatprep.subr.bf16.mxu1 %v10861_v0 }
 0x2ff   : > { %8589 = vmatprep.subr.bf16.mxu0 %v10864_v1 }
 0x301   : > { %6478 = vmatpush1.bf16.msra.mxu1 %v10859_v50 }
 0x302   : > { %8590 = vmatpush1.bf16.msra.mxu0 %v10862_v3  ;;  %6479 = vmatprep.subr.bf16.mxu1 %v10867_v4 }
 0x303   : > { %8591 = vmatprep.subr.bf16.mxu0 %v10870_v5 }
 0x305   : > { %6480 = vmatpush1.bf16.msra.mxu1 %v10865_v57 }
 0x306   : > { %8592 = vmatpush1.bf16.msra.mxu0 %v10868_v2  ;;  %6481 = vmatprep.subr.bf16.mxu1 %v10873_v58 }
 0x307   : > { %8593 = vmatprep.subr.bf16.mxu0 %v10876_v61 }
 0x309   : > { %6482 = vmatpush1.bf16.msra.mxu1 %v10871_v9 }
 0x30a   : > { %8594 = vmatpush1.bf16.msra.mxu0 %v10874_v10  ;;  %6483 = vmatprep.subr.bf16.mxu1 %v10879_v11 }
 0x30b   : > { %8595 = vmatprep.subr.bf16.mxu0 %v10882_v12 }
 0x30d   : > { %6484 = vmatpush1.bf16.msra.mxu1 %v10877_v13 }
 0x30e   : > { %8596 = vmatpush1.bf16.msra.mxu0 %v10880_v14  ;;  %6485 = vmatprep.subr.bf16.mxu1 %v10885_v16 }
 0x30f   : > { %8597 = vmatprep.subr.bf16.mxu0 %v10888_v17 }
 0x311   : > { %6486 = vmatpush1.bf16.msra.mxu1 %v10883_v18 }
 0x312   : > { %8598 = vmatpush1.bf16.msra.mxu0 %v10886_v6  ;;  %6487 = vmatprep.subr.bf16.mxu1 %v10891_v7 }
 0x313   : > { %8599 = vmatprep.subr.bf16.mxu0 %v10894_v8 }
 0x315   : > { %6488 = vmatpush1.bf16.msra.mxu1 %v10889_v15 }
 0x316   : > { %8600 = vmatpush1.bf16.msra.mxu0 %v10892_v19  ;;  %6489 = vmatprep.subr.bf16.mxu1 %v10897_v20 }
 0x317   : > { %8601 = vmatprep.subr.bf16.mxu0 %v10900_v21 }
 0x319   : > { %6490 = vmatpush1.bf16.msra.mxu1 %v10895_v25 }
 0x31a   : > { %8602 = vmatpush1.bf16.msra.mxu0 %v10898_v26  ;;  %6491 = vmatprep.subr.bf16.mxu1 %v10906_v27 }
 0x31b   : > { %8603 = vmatprep.subr.bf16.mxu0 %v10910_v28 }
 0x31d   : > { %6492 = vmatpush1.bf16.msra.mxu1 %v10904_v30 }
 0x31e   : > { %8604 = vmatpush1.bf16.msra.mxu0 %v10908_v31  ;;  %6493 = vmatprep.subr.bf16.mxu1 %v10913_v32 }
 0x31f   : > { %8605 = vmatprep.subr.bf16.mxu0 %v10916_v22 }
 0x321   : > { %6494 = vmatpush1.bf16.msra.mxu1 %v10911_v23 }
 0x322   : > { %8606 = vmatpush1.bf16.msra.mxu0 %v10914_v24 }
 0x324   : > { %6496 = vmatmul.mubr.bf16.vlgmr.msra.gmra.mrb[0].mxu1 %v9235_v34 }
 0x325   : > { %8608 = vmatmul.mubr.bf16.vlgmr.msra.gmra.mrb[0].mxu0 %v9779_v35  ;;  %6505 = vmatprep.mubr.bf16.mxu1 %v9244_v42 }
 0x326   : > { %8617 = vmatprep.mubr.bf16.mxu0 %v9788_v33 }
 0x32c   : > { %6506 = vmatmul.mubr.bf16.gmra.mrb[4].mxu1 %v9243_v36 }
 0x32d   : > { %8618 = vmatmul.mubr.bf16.gmra.mrb[4].mxu0 %v9787_v43 }
 0x3f7   : > { %v6497_v45 = vpop.f32.mrb[0].mxu1 }
 0x3f8   : > { %v8609_v39 = vpop.f32.mrb[0].mxu0  ;;  %v6499_v40 = vpop.f32.mrb[1].mxu1 }
 0x3f9   : > { %v9928_v44 = vadd.f32 %v8609_v39, %v6497_v45  ;;  %v8611_v41 = vpop.f32.mrb[1].mxu0  ;;  %v6501_v48 = vpop.f32.mrb[2].mxu1 }
 0x3fa   : > { %v9929_v47 = vadd.f32 %v8611_v41, %v6499_v40  ;;  %v8613_v51 = vpop.f32.mrb[2].mxu0  ;;  %v6503_v53 = vpop.f32.mrb[3].mxu1 }
 0x3fb   : > { %v9930_v52 = vadd.f32 %v8613_v51, %v6501_v48  ;;  %v8615_v54 = vpop.f32.mrb[3].mxu0  ;;  %v8648_v49 = vmul.f32 %v9928_v44, %v9928_v44 }
 0x3fc   : > { %v9925_v37 = vpack.c.bf16 %v9929_v47, %v9928_v44  ;;  %v9931_v46 = vadd.f32 %v8615_v54, %v6503_v53  ;;  %v8649_v59 = vmul.f32 %v9929_v47, %v9929_v47 }
 0x3fd   : > { %v8632_v55 = vadd.f32 %v9930_v52, %v9928_v44  ;;  %v8650_v56 = vmul.f32 %v9930_v52, %v9930_v52 }
 0x3fe   : > { %8694 = vst [vmem:[%s12837_s15] sm:$0xff] %v9925_v37  ;;  %v8640_v60 = vadd.f32 %v9931_v46, %v9929_v47  ;;  %v8651_v62 = vmul.f32 %v9931_v46, %v9931_v46  ;;  %v9926_v63 = vpack.c.bf16 %v9931_v46, %v9930_v52 }
 0x3ff   : > { %v8654_v0 = vadd.f32 %v8650_v56, %v8648_v49  ;;  %v6507_v50 = vpop.f32.mrb[4].mxu1 }
 0x400   : > { %v8662_v1 = vadd.f32 %v8651_v62, %v8649_v59  ;;  %8695 = vst [vmem:[%s12837_s15 + $0x8] sm:$0xff] %v9926_v63  ;;  %v8619_v3 = vpop.f32.mrb[4].mxu0  ;;  %v6509_v5 = vpop.f32.mrb[5].mxu1 }
 0x401   : > { %v9932_v4 = vadd.f32 %v8619_v3, %v6507_v50  ;;  %v8621_v57 = vpop.f32.mrb[5].mxu0  ;;  %v6511_v58 = vpop.f32.mrb[6].mxu1 }
 0x402   : > { %v9933_v2 = vadd.f32 %v8621_v57, %v6509_v5  ;;  %v8623_v61 = vpop.f32.mrb[6].mxu0  ;;  %v6512_v11 = vpop.f32.mrb[7].mxu1 }
 0x403   : > { %v8633_v9 = vadd.f32 %v9932_v4, %v8632_v55  ;;  %v8652_v10 = vmul.f32 %v9932_v4, %v9932_v4  ;;  %v8624_v12 = vpop.f32.mrb[7].mxu0 }
 0x404   : > { %v8641_v13 = vadd.f32 %v9933_v2, %v8640_v60  ;;  %v8653_v14 = vmul.f32 %v9933_v2, %v9933_v2  ;;  %v9927_v16 = vpack.c.bf16 %v9933_v2, %v9932_v4 }
 0x405   : > { %v8634_v17 = vrot.slane %v8633_v9, 4  ;;  %v8655_v18 = vadd.f32 %v8654_v0, %v8652_v10  ;;  %v8758_v43 = vld [vmem:[%s12837_s15] sm:$0xff] (%p11094_p9) }
 0x406   : > { %v8642_v6 = vrot.slane %v8641_v13, 4  ;;  %v8663_v7 = vadd.f32 %v8662_v1, %v8653_v14  ;;  %8696 = vst [vmem:[%s12837_s15 + $0x10] sm:$0xff] %v9927_v16  ;;  %8759 = vst [vmem:[%s8726_s27] sm:$0xff] (%p11094_p9), %v8758_v43 }
 0x407   : > { %v8635_v8 = vadd.f32 %v8634_v17, %v8633_v9  ;;  %v8656_v15 = vrot.slane %v8655_v18, 4  ;;  %v8760_v45 = vld [vmem:[%s12837_s15 + $0x8] sm:$0xff] (%p11094_p9) }
 0x408   : > { %v8643_v19 = vadd.f32 %v8642_v6, %v8641_v13  ;;  %v8664_v20 = vrot.slane %v8663_v7, 4  ;;  %8761 = vst [vmem:[%s8726_s27 + $0x10] sm:$0xff] (%p11094_p9), %v8760_v45 }
 0x409   : > { %v8636_v21 = vrot.slane %v8635_v8, 2  ;;  %v8657_v25 = vadd.f32 %v8656_v15, %v8655_v18 }
 0x40a   : > { %v8644_v26 = vrot.slane %v8643_v19, 2  ;;  %v8665_v27 = vadd.f32 %v8664_v20, %v8663_v7 }
 0x40b   : > { %v8637_v28 = vadd.f32 %v8636_v21, %v8635_v8  ;;  %v8658_v30 = vrot.slane %v8657_v25, 2 }
 0x40c   : > { %v8645_v31 = vadd.f32 %v8644_v26, %v8643_v19  ;;  %v8666_v32 = vrot.slane %v8665_v27, 2 }
 0x40d   : > { %v8638_v22 = vrot.slane %v8637_v28, 1  ;;  %v8659_v23 = vadd.f32 %v8658_v30, %v8657_v25  ;;  %v8762_v39 = vld [vmem:[%s12837_s15 + $0x10] sm:$0xff] (%p11094_p9) }
 0x40e   : > { %v8646_v24 = vrot.slane %v8645_v31, 1  ;;  %v8667_v29 = vadd.f32 %v8666_v32, %v8665_v27  ;;  %8721 = sbr.rel (!%p11094_p9) target bundleno = 1045 (0x415), region = 84  ;;  %8763 = vst [vmem:[%s8726_s27 + $0x20] sm:$0xff] (%p11094_p9), %v8762_v39 }
 0x40f   : > { %v8639_v34 = vadd.f32 %v8638_v22, %v8637_v28  ;;  %v8660_v35 = vrot.slane %v8659_v23, 1 }
 0x410   : > { %v8647_v38 = vadd.f32 %v8646_v24, %v8645_v31  ;;  %v8668_v42 = vrot.slane %v8667_v29, 1 }
 0x411   : > { %v8661_v33 = vadd.f32 %v8660_v35, %v8659_v23  ;;  %8670 = vst [vmem:[%s4429_s17] sm:$0xff] %v8639_v34 }
 0x412   : > { %v8669_v36 = vadd.f32 %v8668_v42, %v8667_v29  ;;  %8671 = vst [vmem:[%s4429_s17 + $0x8] sm:$0xff] %v8647_v38 }
 0x413   : > { %8672 = vst [vmem:[%s4439_s10] sm:$0xff] %v8661_v33 }
 0x414   : > { %8673 = vst [vmem:[%s4439_s10 + $0x8] sm:$0xff] %v8669_v36 }
 0x415 PF: > { %s15_s23 = sadd.s32 1, %s10999_s23   ;;  %s12895_s15 = smov %s10971_s16 }
 0x416   : > { %p12_p2 = scmp.ge.s32.totalorder %s15_s23, 6   ;;  %s12896_s16 = smov %s11102_s9 }
 0x417   : > { %s12897_s17 = smov %s10979_s18  ;;  %s12898_s18 = smov %s11099_s8 }
 0x418   : > { %s12899_s19 = smov %s10991_s21  ;;  %s12900_s20 = smov %s10995_s22 }
 0x419   : > { %s12901_s21 = smov %s12904_s24  ;;  %s12902_s22 = smov %s12908_s25 }
 0x41a   :  { %14 = sbr.rel (!%p12_p2) target bundleno = 5 (0x5), region = 189 }

// kernel: discriminator_forward.9
= control target key start
LH: loop header
LB: loop body
LE: loop exit
PB: predicated region body
PF: predicated region fallthrough
CT: control target
= control target key end

     0   :  { %s8777_s12 = smov 0   ;;  %s8779_s13 = smov 0   ;;  %s10477_s0 = inlined_call_operand.vmem [shape: bf16[2,1,40,2048], index: 0, kind: input, shape index: {}]   ;;  %s10478_s1 = inlined_call_operand.vmem [shape: bf16[4,2048,128], index: 1, kind: input, shape index: {}]   ;;  %s10479_s2 = inlined_call_operand.vmem [shape: f32[1,128], index: 2, kind: input, shape index: {}]   ;;  %s10480_s3 = inlined_call_operand.vmem [shape: f32[2,16,128], index: 3, kind: output, shape index: {}]  }
   0x1   :  { %s8781_s14 = smov 0  }
   0x2 LB: > { %s22_s15 = sadd.s32 1, %s8751_s13  ;;  %p6124_p0 = scmp.ge.s32.totalorder %s8755_s14, 1  ;;  %s8755_s14 = sphi %s8781_s14, %s13_s14   ;;  %s8751_s13 = sphi %s8779_s13, %s10482_s13   ;;  %s8747_s12 = sphi %s8777_s12, %s10481_s12  }
   0x3   : > { %p23_p1 = scmp.ge.s32.totalorder %s22_s15, 2  ;;  %p168_p2 = scmp.lt.s32.totalorder %s8755_s14, 3 }
   0x5   : > { %s10484_s15 = smov (%p23_p1, %s22_s15), 0  ;;  %p169_p3 = pnand %p6124_p0, %p168_p2 }
   0x6   : > { %v8205_v0 = vld [vmem:[%s10478_s1 + $0x440] sm:$0xff] (!%p169_p3)   ;;  %v8209_v4 = vld [vmem:[%s10478_s1 + $0x448] sm:$0xff] (!%p169_p3)   ;;  %v8213_v8 = vld [vmem:[%s10478_s1 + $0x450] sm:$0xff] (!%p169_p3)   ;;  %p202_p4 = scmp.lt.s32.totalorder (!%p169_p3), %s8747_s12, 1 }
   0x7   : > { %172 = sbr.rel (%p169_p3) target bundleno = 774 (0x306), region = 32  ;;  %v8206_v1 = vld [vmem:[%s10478_s1 + $0x4c0] sm:$0xff] (!%p169_p3)   ;;  %7476 = vmatprep.subr.bf16.mxu0 (!%p169_p3), %v8205_v0  ;;  %v8210_v5 = vld [vmem:[%s10478_s1 + $0x4c8] sm:$0xff] (!%p169_p3)   ;;  %v8214_v9 = vld [vmem:[%s10478_s1 + $0x4d0] sm:$0xff] (!%p169_p3)  }
   0x8   : > { %v8207_v2 = vld [vmem:[%s10478_s1 + $0x400] sm:$0xff] (!%p169_p3)   ;;  %7498 = vmatprep.subr.bf16.mxu1 (!%p169_p3), %v8206_v1  ;;  %v8211_v6 = vld [vmem:[%s10478_s1 + $0x408] sm:$0xff] (!%p169_p3)   ;;  %v8215_v10 = vld [vmem:[%s10478_s1 + $0x410] sm:$0xff] (!%p169_p3)  }
   0x9   : > { %v8208_v3 = vld [vmem:[%s10478_s1 + $0x480] sm:$0xff] (!%p169_p3)   ;;  %7477 = vmatpush3.bf16.msra.mxu0 (!%p169_p3), %v8207_v2  ;;  %v8212_v7 = vld [vmem:[%s10478_s1 + $0x488] sm:$0xff] (!%p169_p3)   ;;  %v8216_v11 = vld [vmem:[%s10478_s1 + $0x490] sm:$0xff] (!%p169_p3)  }
   0xa   : > { %7499 = vmatpush3.bf16.msra.mxu1 (!%p169_p3), %v8208_v3  ;;  %7478 = vmatprep.subr.bf16.mxu0 (!%p169_p3), %v8209_v4  ;;  %v8217_v12 = vld [vmem:[%s10478_s1 + $0x458] sm:$0xff] (!%p169_p3)   ;;  %v8221_v16 = vld [vmem:[%s10478_s1 + $0x460] sm:$0xff] (!%p169_p3)   ;;  %v8225_v20 = vld [vmem:[%s10478_s1 + $0x468] sm:$0xff] (!%p169_p3)  }
   0xb   : > { %7500 = vmatprep.subr.bf16.mxu1 (!%p169_p3), %v8210_v5  ;;  %v8218_v13 = vld [vmem:[%s10478_s1 + $0x4d8] sm:$0xff] (!%p169_p3)   ;;  %v8222_v17 = vld [vmem:[%s10478_s1 + $0x4e0] sm:$0xff] (!%p169_p3)   ;;  %v8226_v21 = vld [vmem:[%s10478_s1 + $0x4e8] sm:$0xff] (!%p169_p3)  }
   0xc   : > { %v8219_v14 = vld [vmem:[%s10478_s1 + $0x418] sm:$0xff] (!%p169_p3)   ;;  %v8223_v18 = vld [vmem:[%s10478_s1 + $0x420] sm:$0xff] (!%p169_p3)   ;;  %v8227_v22 = vld [vmem:[%s10478_s1 + $0x428] sm:$0xff] (!%p169_p3)  }
   0xd   : > { %7479 = vmatpush3.bf16.msra.mxu0 (!%p169_p3), %v8211_v6  ;;  %v8220_v15 = vld [vmem:[%s10478_s1 + $0x498] sm:$0xff] (!%p169_p3)   ;;  %v8224_v19 = vld [vmem:[%s10478_s1 + $0x4a0] sm:$0xff] (!%p169_p3)   ;;  %v8228_v23 = vld [vmem:[%s10478_s1 + $0x4a8] sm:$0xff] (!%p169_p3)  }
   0xe   : > { %7501 = vmatpush3.bf16.msra.mxu1 %v8212_v7  ;;  %7480 = vmatprep.subr.bf16.mxu0 %v8213_v8  ;;  %s10486_s12 = smov (!%p202_p4, %s8747_s12), 1  ;;  %v8229_v24 = vld [vmem:[%s10478_s1 + $0x470] sm:$0xff]   ;;  %v8233_v28 = vld [vmem:[%s10478_s1 + $0x478] sm:$0xff]   ;;  %v8237_v40 = vld [vmem:[%s10478_s1 + $0x540] sm:$0xff]  }
   0xf   : > { %7502 = vmatprep.subr.bf16.mxu1 %v8214_v9  ;;  %v8230_v25 = vld [vmem:[%s10478_s1 + $0x4f0] sm:$0xff]   ;;  %s8180_s22 = smul.u32 320, %s10486_s12  ;;  %v8234_v29 = vld [vmem:[%s10478_s1 + $0x4f8] sm:$0xff]   ;;  %v8238_v41 = vld [vmem:[%s10478_s1 + $0x5c0] sm:$0xff]   ;;  %s7475_s30 = sshll.u32 %s10486_s12, 4 }
  0x10   : > { %v8231_v26 = vld [vmem:[%s10478_s1 + $0x430] sm:$0xff]   ;;  %v8235_v30 = vld [vmem:[%s10478_s1 + $0x438] sm:$0xff]   ;;  %v8239_v42 = vld [vmem:[%s10478_s1 + $0x500] sm:$0xff]   ;;  %s221_s7 = scalar_lea.vmem %s10480_s3, %s7475_s30 }
  0x11   : > { %7481 = vmatpush3.bf16.msra.mxu0 %v8215_v10  ;;  %v8232_v27 = vld [vmem:[%s10478_s1 + $0x4b0] sm:$0xff]   ;;  %s8895_s6 = scalar_lea.vmem %s10477_s0, %s8180_s22  ;;  %v8236_v31 = vld [vmem:[%s10478_s1 + $0x4b8] sm:$0xff]   ;;  %v8240_v43 = vld [vmem:[%s10478_s1 + $0x580] sm:$0xff]  }
  0x12   : > { %7503 = vmatpush3.bf16.msra.mxu1 %v8216_v11  ;;  %7482 = vmatprep.subr.bf16.mxu0 %v8217_v12  ;;  %v231_v32 = vld [vmem:[%s8895_s6 + $0x40] sm:$0xff]  ;;  %v232_v34 = vld [vmem:[%s8895_s6 + $0x48] sm:$0xff]  ;;  %v8245_v48 = vld [vmem:[%s10478_s1 + $0x550] sm:$0xff]  }
  0x13   : > { %7504 = vmatprep.subr.bf16.mxu1 %v8218_v13  ;;  %v495_v33 = vld [vmem:[%s8895_s6 + $0x80] sm:$0xff]  ;;  %v496_v37 = vld [vmem:[%s8895_s6 + $0x88] sm:$0xff]  ;;  %v8246_v49 = vld [vmem:[%s10478_s1 + $0x5d0] sm:$0xff]  }
  0x14   : > { %v6384_v35 = vcombine.low %v231_v32, %v495_v33  ;;  %v6385_v36 = vcombine.high %v231_v32, %v495_v33  ;;  %v6386_v38 = vcombine.low %v232_v34, %v496_v37  ;;  %v6387_v39 = vcombine.high %v232_v34, %v496_v37  ;;  %v8241_v44 = vld [vmem:[%s10478_s1 + $0x548] sm:$0xff]   ;;  %v8247_v50 = vld [vmem:[%s10478_s1 + $0x510] sm:$0xff]   ;;  %v8249_v52 = vld [vmem:[%s10478_s1 + $0x558] sm:$0xff]  }
  0x15   : > { %7483 = vmatpush3.bf16.msra.mxu0 %v8219_v14  ;;  %v8242_v45 = vld [vmem:[%s10478_s1 + $0x5c8] sm:$0xff]   ;;  %v8248_v51 = vld [vmem:[%s10478_s1 + $0x590] sm:$0xff]   ;;  %v8250_v53 = vld [vmem:[%s10478_s1 + $0x5d8] sm:$0xff]  }
  0x16   : > { %7505 = vmatpush3.bf16.msra.mxu1 %v8220_v15  ;;  %7484 = vmatprep.subr.bf16.mxu0 %v8221_v16  ;;  %v8243_v46 = vld [vmem:[%s10478_s1 + $0x508] sm:$0xff]   ;;  %v8251_v54 = vld [vmem:[%s10478_s1 + $0x518] sm:$0xff]   ;;  %v8253_v56 = vld [vmem:[%s10478_s1 + $0x560] sm:$0xff]  }
  0x17   : > { %7506 = vmatprep.subr.bf16.mxu1 %v8222_v17  ;;  %1640 = vmatprep.mubr.bf16.mxu0 %v6385_v36  ;;  %v8244_v47 = vld [vmem:[%s10478_s1 + $0x588] sm:$0xff]   ;;  %v8252_v55 = vld [vmem:[%s10478_s1 + $0x598] sm:$0xff]   ;;  %v8254_v57 = vld [vmem:[%s10478_s1 + $0x5e0] sm:$0xff]  }
  0x18   : > { %1681 = vmatprep.mubr.bf16.mxu1 %v6387_v39  ;;  %v8255_v58 = vld [vmem:[%s10478_s1 + $0x520] sm:$0xff]   ;;  %v8257_v60 = vld [vmem:[%s10478_s1 + $0x568] sm:$0xff]   ;;  %v8261_v0 = vld [vmem:[%s10478_s1 + $0x570] sm:$0xff]  }
  0x19   : > { %7485 = vmatpush3.bf16.msra.mxu0 %v8223_v18  ;;  %v8256_v59 = vld [vmem:[%s10478_s1 + $0x5a0] sm:$0xff]   ;;  %v8258_v61 = vld [vmem:[%s10478_s1 + $0x5e8] sm:$0xff]   ;;  %v8262_v1 = vld [vmem:[%s10478_s1 + $0x5f0] sm:$0xff]  }
  0x1a   : > { %7507 = vmatpush3.bf16.msra.mxu1 %v8224_v19  ;;  %7486 = vmatprep.subr.bf16.mxu0 %v8225_v20  ;;  %v8259_v62 = vld [vmem:[%s10478_s1 + $0x528] sm:$0xff]   ;;  %v8263_v2 = vld [vmem:[%s10478_s1 + $0x530] sm:$0xff]   ;;  %v8265_v4 = vld [vmem:[%s10478_s1 + $0x578] sm:$0xff]  }
  0x1b   : > { %7508 = vmatprep.subr.bf16.mxu1 %v8226_v21  ;;  %v8260_v63 = vld [vmem:[%s10478_s1 + $0x5a8] sm:$0xff]   ;;  %v8264_v3 = vld [vmem:[%s10478_s1 + $0x5b0] sm:$0xff]   ;;  %v8266_v5 = vld [vmem:[%s10478_s1 + $0x5f8] sm:$0xff]  }
  0x1c   : > { %v8267_v6 = vld [vmem:[%s10478_s1 + $0x538] sm:$0xff]   ;;  %v233_v8 = vld [vmem:[%s8895_s6 + $0x50] sm:$0xff]  ;;  %v8269_v16 = vld [vmem:[%s10478_s1 + $0x640] sm:$0xff]  }
  0x1d   : > { %7487 = vmatpush3.bf16.msra.mxu0 %v8227_v22  ;;  %v8268_v7 = vld [vmem:[%s10478_s1 + $0x5b8] sm:$0xff]   ;;  %v497_v9 = vld [vmem:[%s8895_s6 + $0x90] sm:$0xff]  ;;  %v8270_v17 = vld [vmem:[%s10478_s1 + $0x6c0] sm:$0xff]  }
  0x1e   : > { %7509 = vmatpush3.bf16.msra.mxu1 %v8228_v23  ;;  %7488 = vmatprep.subr.bf16.mxu0 %v8229_v24  ;;  %v6388_v10 = vcombine.low %v233_v8, %v497_v9  ;;  %v6389_v11 = vcombine.high %v233_v8, %v497_v9  ;;  %v234_v12 = vld [vmem:[%s8895_s6 + $0x58] sm:$0xff]  ;;  %v8271_v18 = vld [vmem:[%s10478_s1 + $0x600] sm:$0xff]   ;;  %v8273_v20 = vld [vmem:[%s10478_s1 + $0x648] sm:$0xff]  }
  0x1f   : > { %7510 = vmatprep.subr.bf16.mxu1 %v8230_v25  ;;  %v498_v13 = vld [vmem:[%s8895_s6 + $0x98] sm:$0xff]  ;;  %v8272_v19 = vld [vmem:[%s10478_s1 + $0x680] sm:$0xff]   ;;  %v8274_v21 = vld [vmem:[%s10478_s1 + $0x6c8] sm:$0xff]  }
  0x20   : > { %v6390_v14 = vcombine.low %v234_v12, %v498_v13  ;;  %v6391_v15 = vcombine.high %v234_v12, %v498_v13  ;;  %v8275_v22 = vld [vmem:[%s10478_s1 + $0x608] sm:$0xff]   ;;  %v8277_v24 = vld [vmem:[%s10478_s1 + $0x650] sm:$0xff]   ;;  %v8285_v32 = vld [vmem:[%s10478_s1 + $0x660] sm:$0xff]  }
  0x21   : > { %7489 = vmatpush3.bf16.msra.mxu0 %v8231_v26  ;;  %v8276_v23 = vld [vmem:[%s10478_s1 + $0x688] sm:$0xff]   ;;  %v8278_v25 = vld [vmem:[%s10478_s1 + $0x6d0] sm:$0xff]   ;;  %v8286_v33 = vld [vmem:[%s10478_s1 + $0x6e0] sm:$0xff]  }
  0x22   : > { %7511 = vmatpush3.bf16.msra.mxu1 %v8232_v27  ;;  %7490 = vmatprep.subr.bf16.mxu0 %v8233_v28  ;;  %v8279_v26 = vld [vmem:[%s10478_s1 + $0x610] sm:$0xff]   ;;  %v8281_v28 = vld [vmem:[%s10478_s1 + $0x658] sm:$0xff]   ;;  %v8287_v34 = vld [vmem:[%s10478_s1 + $0x620] sm:$0xff]  }
  0x23   : > { %7512 = vmatprep.subr.bf16.mxu1 %v8234_v29  ;;  %v8280_v27 = vld [vmem:[%s10478_s1 + $0x690] sm:$0xff]   ;;  %v8282_v29 = vld [vmem:[%s10478_s1 + $0x6d8] sm:$0xff]   ;;  %v8289_v36 = vld [vmem:[%s10478_s1 + $0x668] sm:$0xff]  }
  0x24   : > { %v8290_v37 = vld [vmem:[%s10478_s1 + $0x6e8] sm:$0xff]   ;;  %v8317_v8 = vld [vmem:[%s10478_s1 + $0x760] sm:$0xff]  }
  0x25   : > { %7491 = vmatpush3.bf16.msra.mxu0 %v8235_v30  ;;  %v8283_v30 = vld [vmem:[%s10478_s1 + $0x618] sm:$0xff]   ;;  %v8292_v39 = vld [vmem:[%s10478_s1 + $0x6a8] sm:$0xff]   ;;  %v8318_v9 = vld [vmem:[%s10478_s1 + $0x7e0] sm:$0xff]  }
  0x26   : > { %7513 = vmatpush3.bf16.msra.mxu1 %v8236_v31  ;;  %7520 = vmatprep.subr.bf16.mxu0 %v8237_v40  ;;  %v8284_v31 = vld [vmem:[%s10478_s1 + $0x698] sm:$0xff]   ;;  %v8293_v40 = vld [vmem:[%s10478_s1 + $0x670] sm:$0xff]   ;;  %v8321_v12 = vld [vmem:[%s10478_s1 + $0x768] sm:$0xff]  }
  0x27   : > { %7542 = vmatprep.subr.bf16.mxu1 %v8238_v41  ;;  %v8294_v41 = vld [vmem:[%s10478_s1 + $0x6f0] sm:$0xff]   ;;  %v8322_v13 = vld [vmem:[%s10478_s1 + $0x7e8] sm:$0xff]  }
  0x28   : > { %1641 = vmatmul.mubr.bf16.vlgmr.msra.gmra.mrb[0].mxu0 %v6384_v35  ;;  %v8288_v35 = vld [vmem:[%s10478_s1 + $0x6a0] sm:$0xff]  }
  0x29   : > { %1682 = vmatmul.mubr.bf16.vlgmr.msra.gmra.mrb[0].mxu1 %v6386_v38  ;;  %7521 = vmatpush3.bf16.msra.mxu0 %v8239_v42  ;;  %v8291_v38 = vld [vmem:[%s10478_s1 + $0x628] sm:$0xff]   ;;  %v8295_v42 = vld [vmem:[%s10478_s1 + $0x630] sm:$0xff]  }
  0x2a   : > { %7543 = vmatpush3.bf16.msra.mxu1 %v8240_v43  ;;  %7522 = vmatprep.subr.bf16.mxu0 %v8241_v44  ;;  %v8296_v43 = vld [vmem:[%s10478_s1 + $0x6b0] sm:$0xff]   ;;  %v8297_v44 = vld [vmem:[%s10478_s1 + $0x678] sm:$0xff]  }
  0x2b   : > { %7544 = vmatprep.subr.bf16.mxu1 %v8242_v45  ;;  %1722 = vmatprep.mubr.bf16.mxu0 %v6389_v11  ;;  %v8298_v45 = vld [vmem:[%s10478_s1 + $0x6f8] sm:$0xff]   ;;  %v8320_v11 = vld [vmem:[%s10478_s1 + $0x7a0] sm:$0xff]  }
  0x2c   : > { %1763 = vmatprep.mubr.bf16.mxu1 %v6391_v15  ;;  %v8324_v15 = vld [vmem:[%s10478_s1 + $0x7a8] sm:$0xff]  }
  0x2d   : > { %7523 = vmatpush3.bf16.msra.mxu0 %v8243_v46  ;;  %v8299_v46 = vld [vmem:[%s10478_s1 + $0x638] sm:$0xff]  }
  0x2e   : > { %7545 = vmatpush3.bf16.msra.mxu1 %v8244_v47  ;;  %7524 = vmatprep.subr.bf16.mxu0 %v8245_v48  ;;  %v8300_v47 = vld [vmem:[%s10478_s1 + $0x6b8] sm:$0xff]   ;;  %v235_v48 = vld [vmem:[%s8895_s6 + $0x60] sm:$0xff] }
  0x2f   : > { %7546 = vmatprep.subr.bf16.mxu1 %v8246_v49  ;;  %v499_v49 = vld [vmem:[%s8895_s6 + $0xa0] sm:$0xff] }
  0x31   : > { %7525 = vmatpush3.bf16.msra.mxu0 %v8247_v50  ;;  %v236_v50 = vld [vmem:[%s8895_s6 + $0x68] sm:$0xff] }
  0x32   : > { %7547 = vmatpush3.bf16.msra.mxu1 %v8248_v51  ;;  %7526 = vmatprep.subr.bf16.mxu0 %v8249_v52  ;;  %v500_v51 = vld [vmem:[%s8895_s6 + $0xa8] sm:$0xff]  ;;  %v6392_v52 = vcombine.low %v235_v48, %v499_v49 }
  0x33   : > { %7548 = vmatprep.subr.bf16.mxu1 %v8250_v53  ;;  %v6393_v53 = vcombine.high %v235_v48, %v499_v49  ;;  %v8349_v48 = vld [vmem:[%s10478_s1 + $0x60] sm:$0xff]  }
  0x34   : > { %v8350_v49 = vld [vmem:[%s10478_s1 + $0xe0] sm:$0xff]  }
  0x35   : > { %7527 = vmatpush3.bf16.msra.mxu0 %v8251_v54  ;;  %v6394_v54 = vcombine.low %v236_v50, %v500_v51 }
  0x36   : > { %7549 = vmatpush3.bf16.msra.mxu1 %v8252_v55  ;;  %7528 = vmatprep.subr.bf16.mxu0 %v8253_v56  ;;  %v6395_v55 = vcombine.high %v236_v50, %v500_v51  ;;  %v8301_v56 = vld [vmem:[%s10478_s1 + $0x740] sm:$0xff]  }
  0x37   : > { %7550 = vmatprep.subr.bf16.mxu1 %v8254_v57  ;;  %v8302_v57 = vld [vmem:[%s10478_s1 + $0x7c0] sm:$0xff]  }
  0x38   : > { %v8351_v50 = vld [vmem:[%s10478_s1 + $0x20] sm:$0xff]  }
  0x39   : > { %7529 = vmatpush3.bf16.msra.mxu0 %v8255_v58  ;;  %v8303_v58 = vld [vmem:[%s10478_s1 + $0x700] sm:$0xff]  }
  0x3a   : > { %7551 = vmatpush3.bf16.msra.mxu1 %v8256_v59  ;;  %7530 = vmatprep.subr.bf16.mxu0 %v8257_v60  ;;  %v8304_v59 = vld [vmem:[%s10478_s1 + $0x780] sm:$0xff]   ;;  %v8305_v60 = vld [vmem:[%s10478_s1 + $0x748] sm:$0xff]  }
  0x3b   : > { %7552 = vmatprep.subr.bf16.mxu1 %v8258_v61  ;;  %v8306_v61 = vld [vmem:[%s10478_s1 + $0x7c8] sm:$0xff]   ;;  %v8352_v51 = vld [vmem:[%s10478_s1 + $0xa0] sm:$0xff]  }
  0x3d   : > { %7531 = vmatpush3.bf16.msra.mxu0 %v8259_v62  ;;  %v8307_v62 = vld [vmem:[%s10478_s1 + $0x708] sm:$0xff]  }
  0x3e   : > { %7553 = vmatpush3.bf16.msra.mxu1 %v8260_v63  ;;  %7532 = vmatprep.subr.bf16.mxu0 %v8261_v0  ;;  %v8308_v63 = vld [vmem:[%s10478_s1 + $0x788] sm:$0xff]   ;;  %v8309_v0 = vld [vmem:[%s10478_s1 + $0x750] sm:$0xff]  }
  0x3f   : > { %7554 = vmatprep.subr.bf16.mxu1 %v8262_v1  ;;  %v8310_v1 = vld [vmem:[%s10478_s1 + $0x7d0] sm:$0xff]  }
  0x41   : > { %7533 = vmatpush3.bf16.msra.mxu0 %v8263_v2  ;;  %v8311_v2 = vld [vmem:[%s10478_s1 + $0x710] sm:$0xff]  }
  0x42   : > { %7555 = vmatpush3.bf16.msra.mxu1 %v8264_v3  ;;  %7534 = vmatprep.subr.bf16.mxu0 %v8265_v4  ;;  %v8312_v3 = vld [vmem:[%s10478_s1 + $0x790] sm:$0xff]   ;;  %v8313_v4 = vld [vmem:[%s10478_s1 + $0x758] sm:$0xff]  }
  0x43   : > { %7556 = vmatprep.subr.bf16.mxu1 %v8266_v5  ;;  %v8314_v5 = vld [vmem:[%s10478_s1 + $0x7d8] sm:$0xff]  }
  0x45   : > { %7535 = vmatpush3.bf16.msra.mxu0 %v8267_v6  ;;  %v8315_v6 = vld [vmem:[%s10478_s1 + $0x718] sm:$0xff]  }
  0x46   : > { %7557 = vmatpush3.bf16.msra.mxu1 %v8268_v7  ;;  %7564 = vmatprep.subr.bf16.mxu0 %v8269_v16  ;;  %v8316_v7 = vld [vmem:[%s10478_s1 + $0x798] sm:$0xff]   ;;  %v8325_v16 = vld [vmem:[%s10478_s1 + $0x770] sm:$0xff]  }
  0x47   : > { %7586 = vmatprep.subr.bf16.mxu1 %v8270_v17  ;;  %v8326_v17 = vld [vmem:[%s10478_s1 + $0x7f0] sm:$0xff]  }
  0x48   : > { %1723 = vmatmul.mubr.bf16.vlgmr.msra.gmra.mrb[4].mxu0 %v6388_v10  ;;  %v8319_v10 = vld [vmem:[%s10478_s1 + $0x720] sm:$0xff]  }
  0x49   : > { %1764 = vmatmul.mubr.bf16.vlgmr.msra.gmra.mrb[4].mxu1 %v6390_v14  ;;  %7565 = vmatpush3.bf16.msra.mxu0 %v8271_v18  ;;  %v8323_v14 = vld [vmem:[%s10478_s1 + $0x728] sm:$0xff]   ;;  %v8327_v18 = vld [vmem:[%s10478_s1 + $0x730] sm:$0xff]  }
  0x4a   : > { %7587 = vmatpush3.bf16.msra.mxu1 %v8272_v19  ;;  %7566 = vmatprep.subr.bf16.mxu0 %v8273_v20  ;;  %v8328_v19 = vld [vmem:[%s10478_s1 + $0x7b0] sm:$0xff]   ;;  %v8329_v20 = vld [vmem:[%s10478_s1 + $0x778] sm:$0xff]  }
  0x4b   : > { %7588 = vmatprep.subr.bf16.mxu1 %v8274_v21  ;;  %1804 = vmatprep.mubr.bf16.mxu0 %v6393_v53  ;;  %v8330_v21 = vld [vmem:[%s10478_s1 + $0x7f8] sm:$0xff]   ;;  %v8354_v53 = vld [vmem:[%s10478_s1 + $0xe8] sm:$0xff]  }
  0x4c   : > { %1845 = vmatprep.mubr.bf16.mxu1 %v6395_v55  ;;  %v8356_v55 = vld [vmem:[%s10478_s1 + $0xa8] sm:$0xff]  }
  0x4d   : > { %7567 = vmatpush3.bf16.msra.mxu0 %v8275_v22  ;;  %v8331_v22 = vld [vmem:[%s10478_s1 + $0x738] sm:$0xff]  }
  0x4e   : > { %7589 = vmatpush3.bf16.msra.mxu1 %v8276_v23  ;;  %7568 = vmatprep.subr.bf16.mxu0 %v8277_v24  ;;  %v8332_v23 = vld [vmem:[%s10478_s1 + $0x7b8] sm:$0xff]   ;;  %v237_v24 = vld [vmem:[%s8895_s6 + $0x70] sm:$0xff] }
  0x4f   : > { %7590 = vmatprep.subr.bf16.mxu1 %v8278_v25  ;;  %v501_v25 = vld [vmem:[%s8895_s6 + $0xb0] sm:$0xff] }
  0x51   : > { %7569 = vmatpush3.bf16.msra.mxu0 %v8279_v26  ;;  %v238_v26 = vld [vmem:[%s8895_s6 + $0x78] sm:$0xff] }
  0x52   : > { %7591 = vmatpush3.bf16.msra.mxu1 %v8280_v27  ;;  %7570 = vmatprep.subr.bf16.mxu0 %v8281_v28  ;;  %v6396_v27 = vcombine.low %v237_v24, %v501_v25  ;;  %v6397_v28 = vcombine.high %v237_v24, %v501_v25  ;;  %v8381_v24 = vld [vmem:[%s10478_s1 + $0x160] sm:$0xff]  }
  0x53   : > { %7592 = vmatprep.subr.bf16.mxu1 %v8282_v29  ;;  %v502_v29 = vld [vmem:[%s8895_s6 + $0xb8] sm:$0xff]  ;;  %v8382_v25 = vld [vmem:[%s10478_s1 + $0x1e0] sm:$0xff]  }
  0x55   : > { %7571 = vmatpush3.bf16.msra.mxu0 %v8283_v30  ;;  %v6398_v30 = vcombine.low %v238_v26, %v502_v29 }
  0x56   : > { %7593 = vmatpush3.bf16.msra.mxu1 %v8284_v31  ;;  %7572 = vmatprep.subr.bf16.mxu0 %v8285_v32  ;;  %v6399_v31 = vcombine.high %v238_v26, %v502_v29  ;;  %v8333_v32 = vld [vmem:[%s10478_s1 + $0x40] sm:$0xff]   ;;  %v8386_v29 = vld [vmem:[%s10478_s1 + $0x1e8] sm:$0xff]  }
  0x57   : > { %7594 = vmatprep.subr.bf16.mxu1 %v8286_v33  ;;  %v8334_v33 = vld [vmem:[%s10478_s1 + $0xc0] sm:$0xff]  }
  0x58   : > { %v8383_v26 = vld [vmem:[%s10478_s1 + $0x120] sm:$0xff]  }
  0x59   : > { %7573 = vmatpush3.bf16.msra.mxu0 %v8287_v34  ;;  %v8335_v34 = vld [vmem:[%s10478_s1] sm:$0xff]  }
  0x5a   : > { %7595 = vmatpush3.bf16.msra.mxu1 %v8288_v35  ;;  %7574 = vmatprep.subr.bf16.mxu0 %v8289_v36  ;;  %v8336_v35 = vld [vmem:[%s10478_s1 + $0x80] sm:$0xff]   ;;  %v8337_v36 = vld [vmem:[%s10478_s1 + $0x48] sm:$0xff]  }
  0x5b   : > { %7596 = vmatprep.subr.bf16.mxu1 %v8290_v37  ;;  %v8338_v37 = vld [vmem:[%s10478_s1 + $0xc8] sm:$0xff]  }
  0x5d   : > { %7575 = vmatpush3.bf16.msra.mxu0 %v8291_v38  ;;  %v8339_v38 = vld [vmem:[%s10478_s1 + $0x8] sm:$0xff]  }
  0x5e   : > { %7597 = vmatpush3.bf16.msra.mxu1 %v8292_v39  ;;  %7576 = vmatprep.subr.bf16.mxu0 %v8293_v40  ;;  %v8340_v39 = vld [vmem:[%s10478_s1 + $0x88] sm:$0xff]   ;;  %v8341_v40 = vld [vmem:[%s10478_s1 + $0x50] sm:$0xff]  }
  0x5f   : > { %7598 = vmatprep.subr.bf16.mxu1 %v8294_v41  ;;  %v8342_v41 = vld [vmem:[%s10478_s1 + $0xd0] sm:$0xff]  }
  0x61   : > { %7577 = vmatpush3.bf16.msra.mxu0 %v8295_v42  ;;  %v8343_v42 = vld [vmem:[%s10478_s1 + $0x10] sm:$0xff]  }
  0x62   : > { %7599 = vmatpush3.bf16.msra.mxu1 %v8296_v43  ;;  %7578 = vmatprep.subr.bf16.mxu0 %v8297_v44  ;;  %v8344_v43 = vld [vmem:[%s10478_s1 + $0x90] sm:$0xff]   ;;  %v8345_v44 = vld [vmem:[%s10478_s1 + $0x58] sm:$0xff]  }
  0x63   : > { %7600 = vmatprep.subr.bf16.mxu1 %v8298_v45  ;;  %v8346_v45 = vld [vmem:[%s10478_s1 + $0xd8] sm:$0xff]  }
  0x65   : > { %7579 = vmatpush3.bf16.msra.mxu0 %v8299_v46  ;;  %v8347_v46 = vld [vmem:[%s10478_s1 + $0x18] sm:$0xff]  }
  0x66   : > { %7601 = vmatpush3.bf16.msra.mxu1 %v8300_v47  ;;  %7608 = vmatprep.subr.bf16.mxu0 %v8301_v56  ;;  %v8348_v47 = vld [vmem:[%s10478_s1 + $0x98] sm:$0xff]   ;;  %v8357_v56 = vld [vmem:[%s10478_s1 + $0x70] sm:$0xff]  }
  0x67   : > { %7630 = vmatprep.subr.bf16.mxu1 %v8302_v57  ;;  %v8358_v57 = vld [vmem:[%s10478_s1 + $0xf0] sm:$0xff]  }
  0x68   : > { %1805 = vmatmul.mubr.bf16.vlgmr.msra.gmra.mrb[8].mxu0 %v6392_v52  ;;  %v8353_v52 = vld [vmem:[%s10478_s1 + $0x68] sm:$0xff]  }
  0x69   : > { %1846 = vmatmul.mubr.bf16.vlgmr.msra.gmra.mrb[8].mxu1 %v6394_v54  ;;  %7609 = vmatpush3.bf16.msra.mxu0 %v8303_v58  ;;  %v8355_v54 = vld [vmem:[%s10478_s1 + $0x28] sm:$0xff]   ;;  %v8359_v58 = vld [vmem:[%s10478_s1 + $0x30] sm:$0xff]  }
  0x6a   : > { %7631 = vmatpush3.bf16.msra.mxu1 %v8304_v59  ;;  %7610 = vmatprep.subr.bf16.mxu0 %v8305_v60  ;;  %v8360_v59 = vld [vmem:[%s10478_s1 + $0xb0] sm:$0xff]   ;;  %v8361_v60 = vld [vmem:[%s10478_s1 + $0x78] sm:$0xff]  }
  0x6b   : > { %7632 = vmatprep.subr.bf16.mxu1 %v8306_v61  ;;  %1886 = vmatprep.mubr.bf16.mxu0 %v6397_v28  ;;  %v8362_v61 = vld [vmem:[%s10478_s1 + $0xf8] sm:$0xff]   ;;  %v8385_v28 = vld [vmem:[%s10478_s1 + $0x168] sm:$0xff]  }
  0x6c   : > { %1927 = vmatprep.mubr.bf16.mxu1 %v6399_v31  ;;  %v8388_v31 = vld [vmem:[%s10478_s1 + $0x1a8] sm:$0xff]  }
  0x6d   : > { %7611 = vmatpush3.bf16.msra.mxu0 %v8307_v62  ;;  %v8363_v62 = vld [vmem:[%s10478_s1 + $0x38] sm:$0xff]  }
  0x6e   : > { %7633 = vmatpush3.bf16.msra.mxu1 %v8308_v63  ;;  %7612 = vmatprep.subr.bf16.mxu0 %v8309_v0  ;;  %v8364_v63 = vld [vmem:[%s10478_s1 + $0xb8] sm:$0xff]   ;;  %v223_v0 = vld [vmem:[%s8895_s6] sm:$0xff] }
  0x6f   : > { %7634 = vmatprep.subr.bf16.mxu1 %v8310_v1  ;;  %v224_v1 = vld [vmem:[%s8895_s6 + $0x8] sm:$0xff] }
  0x71   : > { %7613 = vmatpush3.bf16.msra.mxu0 %v8311_v2  ;;  %v8725_v2 = vld [vmem:[%s8895_s6 + $0x40] sm:$0xff] }
  0x72   : > { %7635 = vmatpush3.bf16.msra.mxu1 %v8312_v3  ;;  %7614 = vmatprep.subr.bf16.mxu0 %v8313_v4  ;;  %v6528_v3 = vcombine.low %v223_v0, %v8725_v2  ;;  %v6529_v4 = vcombine.high %v223_v0, %v8725_v2  ;;  %v8413_v0 = vld [vmem:[%s10478_s1 + $0x260] sm:$0xff]  }
  0x73   : > { %7636 = vmatprep.subr.bf16.mxu1 %v8314_v5  ;;  %v8726_v5 = vld [vmem:[%s8895_s6 + $0x48] sm:$0xff]  ;;  %v8415_v2 = vld [vmem:[%s10478_s1 + $0x220] sm:$0xff]  }
  0x75   : > { %7615 = vmatpush3.bf16.msra.mxu0 %v8315_v6  ;;  %v6530_v6 = vcombine.low %v224_v1, %v8726_v5 }
  0x76   : > { %7637 = vmatpush3.bf16.msra.mxu1 %v8316_v7  ;;  %7616 = vmatprep.subr.bf16.mxu0 %v8317_v8  ;;  %v6531_v7 = vcombine.high %v224_v1, %v8726_v5  ;;  %v8365_v8 = vld [vmem:[%s10478_s1 + $0x140] sm:$0xff]   ;;  %v8418_v5 = vld [vmem:[%s10478_s1 + $0x2e8] sm:$0xff]  }
  0x77   : > { %7638 = vmatprep.subr.bf16.mxu1 %v8318_v9  ;;  %v8366_v9 = vld [vmem:[%s10478_s1 + $0x1c0] sm:$0xff]  }
  0x78   : > { %v8414_v1 = vld [vmem:[%s10478_s1 + $0x2e0] sm:$0xff]  }
  0x79   : > { %7617 = vmatpush3.bf16.msra.mxu0 %v8319_v10  ;;  %v8367_v10 = vld [vmem:[%s10478_s1 + $0x100] sm:$0xff]  }
  0x7a   : > { %7639 = vmatpush3.bf16.msra.mxu1 %v8320_v11  ;;  %7618 = vmatprep.subr.bf16.mxu0 %v8321_v12  ;;  %v8368_v11 = vld [vmem:[%s10478_s1 + $0x180] sm:$0xff]   ;;  %v8369_v12 = vld [vmem:[%s10478_s1 + $0x148] sm:$0xff]  }
  0x7b   : > { %7640 = vmatprep.subr.bf16.mxu1 %v8322_v13  ;;  %v8370_v13 = vld [vmem:[%s10478_s1 + $0x1c8] sm:$0xff]  }
  0x7d   : > { %7619 = vmatpush3.bf16.msra.mxu0 %v8323_v14  ;;  %v8371_v14 = vld [vmem:[%s10478_s1 + $0x108] sm:$0xff]  }
  0x7e   : > { %7641 = vmatpush3.bf16.msra.mxu1 %v8324_v15  ;;  %7620 = vmatprep.subr.bf16.mxu0 %v8325_v16  ;;  %v8372_v15 = vld [vmem:[%s10478_s1 + $0x188] sm:$0xff]   ;;  %v8373_v16 = vld [vmem:[%s10478_s1 + $0x150] sm:$0xff]  }
  0x7f   : > { %7642 = vmatprep.subr.bf16.mxu1 %v8326_v17  ;;  %v8374_v17 = vld [vmem:[%s10478_s1 + $0x1d0] sm:$0xff]  }
  0x81   : > { %7621 = vmatpush3.bf16.msra.mxu0 %v8327_v18  ;;  %v8375_v18 = vld [vmem:[%s10478_s1 + $0x110] sm:$0xff]  }
  0x82   : > { %7643 = vmatpush3.bf16.msra.mxu1 %v8328_v19  ;;  %7622 = vmatprep.subr.bf16.mxu0 %v8329_v20  ;;  %v8376_v19 = vld [vmem:[%s10478_s1 + $0x190] sm:$0xff]   ;;  %v8377_v20 = vld [vmem:[%s10478_s1 + $0x158] sm:$0xff]  }
  0x83   : > { %7644 = vmatprep.subr.bf16.mxu1 %v8330_v21  ;;  %v8378_v21 = vld [vmem:[%s10478_s1 + $0x1d8] sm:$0xff]  }
  0x85   : > { %7623 = vmatpush3.bf16.msra.mxu0 %v8331_v22  ;;  %v8379_v22 = vld [vmem:[%s10478_s1 + $0x118] sm:$0xff]  }
  0x86   : > { %7645 = vmatpush3.bf16.msra.mxu1 %v8332_v23  ;;  %7652 = vmatprep.subr.bf16.mxu0 %v8333_v32  ;;  %v8380_v23 = vld [vmem:[%s10478_s1 + $0x198] sm:$0xff]   ;;  %v8389_v32 = vld [vmem:[%s10478_s1 + $0x170] sm:$0xff]  }
  0x87   : > { %7674 = vmatprep.subr.bf16.mxu1 %v8334_v33  ;;  %v8390_v33 = vld [vmem:[%s10478_s1 + $0x1f0] sm:$0xff]  }
  0x88   : > { %1887 = vmatmul.mubr.bf16.vlgmr.msra.gmra.mrb[12].mxu0 %v6396_v27  ;;  %v8384_v27 = vld [vmem:[%s10478_s1 + $0x1a0] sm:$0xff]  }
  0x89   : > { %1928 = vmatmul.mubr.bf16.vlgmr.msra.gmra.mrb[12].mxu1 %v6398_v30  ;;  %7653 = vmatpush3.bf16.msra.mxu0 %v8335_v34  ;;  %v8387_v30 = vld [vmem:[%s10478_s1 + $0x128] sm:$0xff]   ;;  %v8391_v34 = vld [vmem:[%s10478_s1 + $0x130] sm:$0xff]  }
  0x8a   : > { %7675 = vmatpush3.bf16.msra.mxu1 %v8336_v35  ;;  %7654 = vmatprep.subr.bf16.mxu0 %v8337_v36  ;;  %v8392_v35 = vld [vmem:[%s10478_s1 + $0x1b0] sm:$0xff]   ;;  %v8393_v36 = vld [vmem:[%s10478_s1 + $0x178] sm:$0xff]  }
  0x8b   : > { %7676 = vmatprep.subr.bf16.mxu1 %v8338_v37  ;;  %2792 = vmatprep.mubr.bf16.mxu0 %v6529_v4  ;;  %v8394_v37 = vld [vmem:[%s10478_s1 + $0x1f8] sm:$0xff]   ;;  %v8417_v4 = vld [vmem:[%s10478_s1 + $0x268] sm:$0xff]  }
  0x8c   : > { %2833 = vmatprep.mubr.bf16.mxu1 %v6531_v7  ;;  %v8420_v7 = vld [vmem:[%s10478_s1 + $0x2a8] sm:$0xff]  }
  0x8d   : > { %7655 = vmatpush3.bf16.msra.mxu0 %v8339_v38  ;;  %v8395_v38 = vld [vmem:[%s10478_s1 + $0x138] sm:$0xff]  }
  0x8e   : > { %7677 = vmatpush3.bf16.msra.mxu1 %v8340_v39  ;;  %7656 = vmatprep.subr.bf16.mxu0 %v8341_v40  ;;  %v8396_v39 = vld [vmem:[%s10478_s1 + $0x1b8] sm:$0xff]   ;;  %v225_v40 = vld [vmem:[%s8895_s6 + $0x10] sm:$0xff] }
  0x8f   : > { %7678 = vmatprep.subr.bf16.mxu1 %v8342_v41  ;;  %v226_v41 = vld [vmem:[%s8895_s6 + $0x18] sm:$0xff] }
  0x91   : > { %7657 = vmatpush3.bf16.msra.mxu0 %v8343_v42  ;;  %v8727_v42 = vld [vmem:[%s8895_s6 + $0x50] sm:$0xff] }
  0x92   : > { %7679 = vmatpush3.bf16.msra.mxu1 %v8344_v43  ;;  %7658 = vmatprep.subr.bf16.mxu0 %v8345_v44  ;;  %v6532_v43 = vcombine.low %v225_v40, %v8727_v42  ;;  %v6533_v44 = vcombine.high %v225_v40, %v8727_v42 }
  0x93   : > { %7680 = vmatprep.subr.bf16.mxu1 %v8346_v45  ;;  %v8728_v45 = vld [vmem:[%s8895_s6 + $0x58] sm:$0xff] }
  0x95   : > { %7659 = vmatpush3.bf16.msra.mxu0 %v8347_v46  ;;  %v6534_v46 = vcombine.low %v226_v41, %v8728_v45 }
  0x96   : > { %7681 = vmatpush3.bf16.msra.mxu1 %v8348_v47  ;;  %7660 = vmatprep.subr.bf16.mxu0 %v8349_v48  ;;  %v8397_v47 = vld [vmem:[%s10478_s1 + $0x240] sm:$0xff]   ;;  %v6535_v48 = vcombine.high %v226_v41, %v8728_v45 }
  0x97   : > { %7682 = vmatprep.subr.bf16.mxu1 %v8350_v49  ;;  %v8398_v49 = vld [vmem:[%s10478_s1 + $0x2c0] sm:$0xff]  }
  0x98   : > { %v8445_v41 = vld [vmem:[%s10478_s1 + $0x360] sm:$0xff]  }
  0x99   : > { %7661 = vmatpush3.bf16.msra.mxu0 %v8351_v50  ;;  %v8399_v50 = vld [vmem:[%s10478_s1 + $0x200] sm:$0xff]  }
  0x9a   : > { %7683 = vmatpush3.bf16.msra.mxu1 %v8352_v51  ;;  %7662 = vmatprep.subr.bf16.mxu0 %v8353_v52  ;;  %v8400_v51 = vld [vmem:[%s10478_s1 + $0x280] sm:$0xff]   ;;  %v8401_v52 = vld [vmem:[%s10478_s1 + $0x248] sm:$0xff]  }
  0x9b   : > { %7684 = vmatprep.subr.bf16.mxu1 %v8354_v53  ;;  %v8402_v53 = vld [vmem:[%s10478_s1 + $0x2c8] sm:$0xff]   ;;  %v8447_v45 = vld [vmem:[%s10478_s1 + $0x320] sm:$0xff]  }
  0x9d   : > { %7663 = vmatpush3.bf16.msra.mxu0 %v8355_v54  ;;  %v8403_v54 = vld [vmem:[%s10478_s1 + $0x208] sm:$0xff]  }
  0x9e   : > { %7685 = vmatpush3.bf16.msra.mxu1 %v8356_v55  ;;  %7664 = vmatprep.subr.bf16.mxu0 %v8357_v56  ;;  %v8404_v55 = vld [vmem:[%s10478_s1 + $0x288] sm:$0xff]   ;;  %v8405_v56 = vld [vmem:[%s10478_s1 + $0x250] sm:$0xff]  }
  0x9f   : > { %7686 = vmatprep.subr.bf16.mxu1 %v8358_v57  ;;  %v8406_v57 = vld [vmem:[%s10478_s1 + $0x2d0] sm:$0xff]  }
  0xa1   : > { %7665 = vmatpush3.bf16.msra.mxu0 %v8359_v58  ;;  %v8407_v58 = vld [vmem:[%s10478_s1 + $0x210] sm:$0xff]  }
  0xa2   : > { %7687 = vmatpush3.bf16.msra.mxu1 %v8360_v59  ;;  %7666 = vmatprep.subr.bf16.mxu0 %v8361_v60  ;;  %v8408_v59 = vld [vmem:[%s10478_s1 + $0x290] sm:$0xff]   ;;  %v8409_v60 = vld [vmem:[%s10478_s1 + $0x258] sm:$0xff]  }
  0xa3   : > { %7688 = vmatprep.subr.bf16.mxu1 %v8362_v61  ;;  %v8410_v61 = vld [vmem:[%s10478_s1 + $0x2d8] sm:$0xff]  }
  0xa5   : > { %7667 = vmatpush3.bf16.msra.mxu0 %v8363_v62  ;;  %v8411_v62 = vld [vmem:[%s10478_s1 + $0x218] sm:$0xff]  }
  0xa6   : > { %7689 = vmatpush3.bf16.msra.mxu1 %v8364_v63  ;;  %7696 = vmatprep.subr.bf16.mxu0 %v8365_v8  ;;  %v8412_v63 = vld [vmem:[%s10478_s1 + $0x298] sm:$0xff]   ;;  %v8421_v8 = vld [vmem:[%s10478_s1 + $0x270] sm:$0xff]  }
  0xa7   : > { %7718 = vmatprep.subr.bf16.mxu1 %v8366_v9  ;;  %v8422_v9 = vld [vmem:[%s10478_s1 + $0x2f0] sm:$0xff]  }
  0xa8   : > { %2793 = vmatmul.mubr.bf16.vlgmr.msra.gmra.mrb[16].mxu0 %v6528_v3  ;;  %v8416_v3 = vld [vmem:[%s10478_s1 + $0x2a0] sm:$0xff]  }
  0xa9   : > { %2834 = vmatmul.mubr.bf16.vlgmr.msra.gmra.mrb[16].mxu1 %v6530_v6  ;;  %7697 = vmatpush3.bf16.msra.mxu0 %v8367_v10  ;;  %v8419_v6 = vld [vmem:[%s10478_s1 + $0x228] sm:$0xff]   ;;  %v8423_v10 = vld [vmem:[%s10478_s1 + $0x230] sm:$0xff]  }
  0xaa   : > { %7719 = vmatpush3.bf16.msra.mxu1 %v8368_v11  ;;  %7698 = vmatprep.subr.bf16.mxu0 %v8369_v12  ;;  %v8424_v11 = vld [vmem:[%s10478_s1 + $0x2b0] sm:$0xff]   ;;  %v8425_v12 = vld [vmem:[%s10478_s1 + $0x278] sm:$0xff]  }
  0xab   : > { %7720 = vmatprep.subr.bf16.mxu1 %v8370_v13  ;;  %2874 = vmatprep.mubr.bf16.mxu0 %v6533_v44  ;;  %v8426_v13 = vld [vmem:[%s10478_s1 + $0x2f8] sm:$0xff]  }
  0xac   : > { %2915 = vmatprep.mubr.bf16.mxu1 %v6535_v48  ;;  %v8448_v48 = vld [vmem:[%s10478_s1 + $0x3a0] sm:$0xff]  }
  0xad   : > { %7699 = vmatpush3.bf16.msra.mxu0 %v8371_v14  ;;  %v8427_v14 = vld [vmem:[%s10478_s1 + $0x238] sm:$0xff]  }
  0xae   : > { %7721 = vmatpush3.bf16.msra.mxu1 %v8372_v15  ;;  %7700 = vmatprep.subr.bf16.mxu0 %v8373_v16  ;;  %v8428_v15 = vld [vmem:[%s10478_s1 + $0x2b8] sm:$0xff]   ;;  %v227_v16 = vld [vmem:[%s8895_s6 + $0x20] sm:$0xff] }
  0xaf   : > { %7722 = vmatprep.subr.bf16.mxu1 %v8374_v17  ;;  %v8729_v17 = vld [vmem:[%s8895_s6 + $0x60] sm:$0xff] }
  0xb1   : > { %7701 = vmatpush3.bf16.msra.mxu0 %v8375_v18  ;;  %v6536_v18 = vcombine.low %v227_v16, %v8729_v17 }
  0xb2   : > { %7723 = vmatpush3.bf16.msra.mxu1 %v8376_v19  ;;  %7702 = vmatprep.subr.bf16.mxu0 %v8377_v20  ;;  %v6537_v19 = vcombine.high %v227_v16, %v8729_v17  ;;  %v228_v20 = vld [vmem:[%s8895_s6 + $0x28] sm:$0xff]  ;;  %v8463_v16 = vld [vmem:[%s10478_s1 + $0x800] sm:$0xff]  }
  0xb3   : > { %7724 = vmatprep.subr.bf16.mxu1 %v8378_v21  ;;  %v8730_v21 = vld [vmem:[%s8895_s6 + $0x68] sm:$0xff]  ;;  %v8464_v17 = vld [vmem:[%s10478_s1 + $0x880] sm:$0xff]  }
  0xb5   : > { %7703 = vmatpush3.bf16.msra.mxu0 %v8379_v22  ;;  %v6538_v22 = vcombine.low %v228_v20, %v8730_v21 }
  0xb6   : > { %7725 = vmatpush3.bf16.msra.mxu1 %v8380_v23  ;;  %7704 = vmatprep.subr.bf16.mxu0 %v8381_v24  ;;  %v6539_v23 = vcombine.high %v228_v20, %v8730_v21  ;;  %v8429_v24 = vld [vmem:[%s10478_s1 + $0x340] sm:$0xff]   ;;  %v8467_v20 = vld [vmem:[%s10478_s1 + $0x808] sm:$0xff]  }
  0xb7   : > { %7726 = vmatprep.subr.bf16.mxu1 %v8382_v25  ;;  %v8430_v25 = vld [vmem:[%s10478_s1 + $0x3c0] sm:$0xff]   ;;  %v8468_v21 = vld [vmem:[%s10478_s1 + $0x888] sm:$0xff]  }
  0xb9   : > { %7705 = vmatpush3.bf16.msra.mxu0 %v8383_v26  ;;  %v8431_v26 = vld [vmem:[%s10478_s1 + $0x300] sm:$0xff]  }
  0xba   : > { %7727 = vmatpush3.bf16.msra.mxu1 %v8384_v27  ;;  %7706 = vmatprep.subr.bf16.mxu0 %v8385_v28  ;;  %v8432_v27 = vld [vmem:[%s10478_s1 + $0x380] sm:$0xff]   ;;  %v8433_v28 = vld [vmem:[%s10478_s1 + $0x348] sm:$0xff]  }
  0xbb   : > { %7728 = vmatprep.subr.bf16.mxu1 %v8386_v29  ;;  %v8434_v29 = vld [vmem:[%s10478_s1 + $0x3c8] sm:$0xff]  }
  0xbd   : > { %7707 = vmatpush3.bf16.msra.mxu0 %v8387_v30  ;;  %v8435_v30 = vld [vmem:[%s10478_s1 + $0x308] sm:$0xff]  }
  0xbe   : > { %7729 = vmatpush3.bf16.msra.mxu1 %v8388_v31  ;;  %7708 = vmatprep.subr.bf16.mxu0 %v8389_v32  ;;  %v8436_v31 = vld [vmem:[%s10478_s1 + $0x388] sm:$0xff]   ;;  %v8437_v32 = vld [vmem:[%s10478_s1 + $0x350] sm:$0xff]  }
  0xbf   : > { %7730 = vmatprep.subr.bf16.mxu1 %v8390_v33  ;;  %v8438_v33 = vld [vmem:[%s10478_s1 + $0x3d0] sm:$0xff]  }
  0xc1   : > { %7709 = vmatpush3.bf16.msra.mxu0 %v8391_v34  ;;  %v8439_v34 = vld [vmem:[%s10478_s1 + $0x310] sm:$0xff]  }
  0xc2   : > { %7731 = vmatpush3.bf16.msra.mxu1 %v8392_v35  ;;  %7710 = vmatprep.subr.bf16.mxu0 %v8393_v36  ;;  %v8440_v35 = vld [vmem:[%s10478_s1 + $0x390] sm:$0xff]   ;;  %v8441_v36 = vld [vmem:[%s10478_s1 + $0x358] sm:$0xff]  }
  0xc3   : > { %7732 = vmatprep.subr.bf16.mxu1 %v8394_v37  ;;  %v8442_v37 = vld [vmem:[%s10478_s1 + $0x3d8] sm:$0xff]  }
  0xc5   : > { %7711 = vmatpush3.bf16.msra.mxu0 %v8395_v38  ;;  %v8443_v38 = vld [vmem:[%s10478_s1 + $0x318] sm:$0xff]  }
  0xc6   : > { %7733 = vmatpush3.bf16.msra.mxu1 %v8396_v39  ;;  %7740 = vmatprep.subr.bf16.mxu0 %v8397_v47  ;;  %v8444_v39 = vld [vmem:[%s10478_s1 + $0x398] sm:$0xff]  }
  0xc7   : > { %7762 = vmatprep.subr.bf16.mxu1 %v8398_v49 }
  0xc8   : > { %2875 = vmatmul.mubr.bf16.vlgmr.msra.gmra.mrb[20].mxu0 %v6532_v43  ;;  %v8446_v43 = vld [vmem:[%s10478_s1 + $0x3e0] sm:$0xff]  }
  0xc9   : > { %2916 = vmatmul.mubr.bf16.vlgmr.msra.gmra.mrb[20].mxu1 %v6534_v46  ;;  %7741 = vmatpush3.bf16.msra.mxu0 %v8399_v50 }
  0xca   : > { %7763 = vmatpush3.bf16.msra.mxu1 %v8400_v51  ;;  %7742 = vmatprep.subr.bf16.mxu0 %v8401_v52  ;;  %v8449_v51 = vld [vmem:[%s10478_s1 + $0x368] sm:$0xff]  }
  0xcb   : > { %7764 = vmatprep.subr.bf16.mxu1 %v8402_v53  ;;  %2956 = vmatprep.mubr.bf16.mxu0 %v6537_v19  ;;  %v8466_v19 = vld [vmem:[%s10478_s1 + $0x8c8] sm:$0xff]  }
  0xcc   : > { %2997 = vmatprep.mubr.bf16.mxu1 %v6539_v23  ;;  %v8470_v23 = vld [vmem:[%s10478_s1 + $0x8d0] sm:$0xff]  }
  0xcd   : > { %7743 = vmatpush3.bf16.msra.mxu0 %v8403_v54  ;;  %v8450_v54 = vld [vmem:[%s10478_s1 + $0x3e8] sm:$0xff]  }
  0xce   : > { %7765 = vmatpush3.bf16.msra.mxu1 %v8404_v55  ;;  %7744 = vmatprep.subr.bf16.mxu0 %v8405_v56  ;;  %v8451_v56 = vld [vmem:[%s10478_s1 + $0x328] sm:$0xff]  }
  0xcf   : > { %7766 = vmatprep.subr.bf16.mxu1 %v8406_v57 }
  0xd1   : > { %7745 = vmatpush3.bf16.msra.mxu0 %v8407_v58 }
  0xd2   : > { %7767 = vmatpush3.bf16.msra.mxu1 %v8408_v59  ;;  %7746 = vmatprep.subr.bf16.mxu0 %v8409_v60  ;;  %v8452_v59 = vld [vmem:[%s10478_s1 + $0x3a8] sm:$0xff]  }
  0xd3   : > { %7768 = vmatprep.subr.bf16.mxu1 %v8410_v61  ;;  %v8453_v61 = vld [vmem:[%s10478_s1 + $0x370] sm:$0xff]  }
  0xd5   : > { %7747 = vmatpush3.bf16.msra.mxu0 %v8411_v62 }
  0xd6   : > { %7769 = vmatpush3.bf16.msra.mxu1 %v8412_v63  ;;  %7748 = vmatprep.subr.bf16.mxu0 %v8413_v0  ;;  %v8454_v63 = vld [vmem:[%s10478_s1 + $0x3f0] sm:$0xff]  }
  0xd7   : > { %7770 = vmatprep.subr.bf16.mxu1 %v8414_v1  ;;  %v8455_v0 = vld [vmem:[%s10478_s1 + $0x330] sm:$0xff]  }
  0xd8   : > { %v8456_v1 = vld [vmem:[%s10478_s1 + $0x3b0] sm:$0xff]  }
  0xd9   : > { %7749 = vmatpush3.bf16.msra.mxu0 %v8415_v2  ;;  %v8457_v2 = vld [vmem:[%s10478_s1 + $0x378] sm:$0xff]  }
  0xda   : > { %7771 = vmatpush3.bf16.msra.mxu1 %v8416_v3  ;;  %7750 = vmatprep.subr.bf16.mxu0 %v8417_v4  ;;  %v8458_v3 = vld [vmem:[%s10478_s1 + $0x3f8] sm:$0xff]  }
  0xdb   : > { %7772 = vmatprep.subr.bf16.mxu1 %v8418_v5  ;;  %v8459_v4 = vld [vmem:[%s10478_s1 + $0x338] sm:$0xff]  }
  0xdc   : > { %v8460_v5 = vld [vmem:[%s10478_s1 + $0x3b8] sm:$0xff]  }
  0xdd   : > { %7751 = vmatpush3.bf16.msra.mxu0 %v8419_v6  ;;  %v229_v6 = vld [vmem:[%s8895_s6 + $0x30] sm:$0xff] }
  0xde   : > { %7773 = vmatpush3.bf16.msra.mxu1 %v8420_v7  ;;  %7752 = vmatprep.subr.bf16.mxu0 %v8421_v8  ;;  %v230_v7 = vld [vmem:[%s8895_s6 + $0x38] sm:$0xff]  ;;  %v8731_v8 = vld [vmem:[%s8895_s6 + $0x70] sm:$0xff] }
  0xdf   : > { %7774 = vmatprep.subr.bf16.mxu1 %v8422_v9  ;;  %v6540_v9 = vcombine.low %v229_v6, %v8731_v8 }
  0xe1   : > { %7753 = vmatpush3.bf16.msra.mxu0 %v8423_v10  ;;  %v6541_v10 = vcombine.high %v229_v6, %v8731_v8  ;;  %v8493_v6 = vld [vmem:[%s10478_s1 + $0x940] sm:$0xff]  }
  0xe2   : > { %7775 = vmatpush3.bf16.msra.mxu1 %v8424_v11  ;;  %7754 = vmatprep.subr.bf16.mxu0 %v8425_v12  ;;  %v8732_v11 = vld [vmem:[%s8895_s6 + $0x78] sm:$0xff]  ;;  %v8495_v8 = vld [vmem:[%s10478_s1 + $0x900] sm:$0xff]  }
  0xe3   : > { %7776 = vmatprep.subr.bf16.mxu1 %v8426_v13  ;;  %v6542_v12 = vcombine.low %v230_v7, %v8732_v11  ;;  %v6543_v13 = vcombine.high %v230_v7, %v8732_v11  ;;  %v8494_v7 = vld [vmem:[%s10478_s1 + $0x9c0] sm:$0xff]   ;;  %v8498_v11 = vld [vmem:[%s10478_s1 + $0x9c8] sm:$0xff]  }
  0xe5   : > { %7755 = vmatpush3.bf16.msra.mxu0 %v8427_v14  ;;  %v8461_v14 = vld [vmem:[%s10478_s1 + $0x840] sm:$0xff]  }
  0xe6   : > { %7777 = vmatpush3.bf16.msra.mxu1 %v8428_v15  ;;  %7784 = vmatprep.subr.bf16.mxu0 %v8429_v24  ;;  %v8462_v15 = vld [vmem:[%s10478_s1 + $0x8c0] sm:$0xff]   ;;  %v8471_v24 = vld [vmem:[%s10478_s1 + $0x810] sm:$0xff]  }
  0xe7   : > { %7806 = vmatprep.subr.bf16.mxu1 %v8430_v25  ;;  %v8472_v25 = vld [vmem:[%s10478_s1 + $0x890] sm:$0xff]  }
  0xe8   : > { %2957 = vmatmul.mubr.bf16.vlgmr.msra.gmra.mrb[24].mxu0 %v6536_v18  ;;  %v8465_v18 = vld [vmem:[%s10478_s1 + $0x848] sm:$0xff]  }
  0xe9   : > { %2998 = vmatmul.mubr.bf16.vlgmr.msra.gmra.mrb[24].mxu1 %v6538_v22  ;;  %7785 = vmatpush3.bf16.msra.mxu0 %v8431_v26  ;;  %v8469_v22 = vld [vmem:[%s10478_s1 + $0x850] sm:$0xff]   ;;  %v8473_v26 = vld [vmem:[%s10478_s1 + $0x858] sm:$0xff]  }
  0xea   : > { %7807 = vmatpush3.bf16.msra.mxu1 %v8432_v27  ;;  %7786 = vmatprep.subr.bf16.mxu0 %v8433_v28  ;;  %v8474_v27 = vld [vmem:[%s10478_s1 + $0x8d8] sm:$0xff]  }
  0xeb   : > { %7808 = vmatprep.subr.bf16.mxu1 %v8434_v29  ;;  %3038 = vmatprep.mubr.bf16.mxu0 %v6541_v10  ;;  %v8475_v28 = vld [vmem:[%s10478_s1 + $0x818] sm:$0xff]   ;;  %v8497_v10 = vld [vmem:[%s10478_s1 + $0x948] sm:$0xff]  }
  0xec   : > { %3079 = vmatprep.mubr.bf16.mxu1 %v6543_v13  ;;  %v8476_v29 = vld [vmem:[%s10478_s1 + $0x898] sm:$0xff]   ;;  %v8500_v13 = vld [vmem:[%s10478_s1 + $0x988] sm:$0xff]  }
  0xed   : > { %7787 = vmatpush3.bf16.msra.mxu0 %v8435_v30  ;;  %v8477_v30 = vld [vmem:[%s10478_s1 + $0x860] sm:$0xff]  }
  0xee   : > { %7809 = vmatpush3.bf16.msra.mxu1 %v8436_v31  ;;  %7788 = vmatprep.subr.bf16.mxu0 %v8437_v32  ;;  %v8478_v32 = vld [vmem:[%s10478_s1 + $0x8e0] sm:$0xff]  }
  0xef   : > { %7810 = vmatprep.subr.bf16.mxu1 %v8438_v33 }
  0xf1   : > { %7789 = vmatpush3.bf16.msra.mxu0 %v8439_v34  ;;  %v8479_v34 = vld [vmem:[%s10478_s1 + $0x820] sm:$0xff]  }
  0xf2   : > { %7811 = vmatpush3.bf16.msra.mxu1 %v8440_v35  ;;  %7790 = vmatprep.subr.bf16.mxu0 %v8441_v36  ;;  %v8480_v36 = vld [vmem:[%s10478_s1 + $0x8a0] sm:$0xff]  }
  0xf3   : > { %7812 = vmatprep.subr.bf16.mxu1 %v8442_v37 }
  0xf5   : > { %7791 = vmatpush3.bf16.msra.mxu0 %v8443_v38 }
  0xf6   : > { %7813 = vmatpush3.bf16.msra.mxu1 %v8444_v39  ;;  %7792 = vmatprep.subr.bf16.mxu0 %v8445_v41 }
  0xf7   : > { %7814 = vmatprep.subr.bf16.mxu1 %v8446_v43  ;;  %v8482_v43 = vld [vmem:[%s10478_s1 + $0x8e8] sm:$0xff]  }
  0xf9   : > { %7793 = vmatpush3.bf16.msra.mxu0 %v8447_v45  ;;  %v8483_v45 = vld [vmem:[%s10478_s1 + $0x828] sm:$0xff]  }
  0xfa   : > { %7815 = vmatpush3.bf16.msra.mxu1 %v8448_v48  ;;  %7794 = vmatprep.subr.bf16.mxu0 %v8449_v51  ;;  %v8484_v48 = vld [vmem:[%s10478_s1 + $0x8a8] sm:$0xff]  }
  0xfb   : > { %v7492_v40 = vpop.f32.mrb[0].mxu0  ;;  %7816 = vmatprep.subr.bf16.mxu1 %v8450_v54  ;;  %v8486_v54 = vld [vmem:[%s10478_s1 + $0x8f0] sm:$0xff]  }
  0xfc   : > { %v7514_v42 = vpop.f32.mrb[0].mxu1  ;;  %v7493_v44 = vpop.f32.mrb[1].mxu0 }
  0xfd   : > { %v7494_v46 = vadd.f32 %v7493_v44, %v7492_v40  ;;  %v7515_v47 = vpop.f32.mrb[1].mxu1  ;;  %v7495_v50 = vpop.f32.mrb[2].mxu0  ;;  %7795 = vmatpush3.bf16.msra.mxu0 %v8451_v56  ;;  %v8481_v40 = vld [vmem:[%s10478_s1 + $0x868] sm:$0xff]  }
  0xfe   : > { %v7516_v49 = vadd.f32 %v7515_v47, %v7514_v42  ;;  %v7517_v52 = vpop.f32.mrb[2].mxu1  ;;  %v7496_v55 = vpop.f32.mrb[3].mxu0  ;;  %7817 = vmatpush3.bf16.msra.mxu1 %v8452_v59  ;;  %7796 = vmatprep.subr.bf16.mxu0 %v8453_v61  ;;  %v8490_v59 = vld [vmem:[%s10478_s1 + $0x8f8] sm:$0xff]  }
  0xff   : > { %v7497_v57 = vadd.f32 %v7496_v55, %v7495_v50  ;;  %v7518_v58 = vpop.f32.mrb[3].mxu1  ;;  %7818 = vmatprep.subr.bf16.mxu1 %v8454_v63  ;;  %v8487_v55 = vld [vmem:[%s10478_s1 + $0x830] sm:$0xff]   ;;  %v8492_v61 = vld [vmem:[%s10478_s1 + $0x8b8] sm:$0xff]   ;;  %v3096_v63 = vld [vmem:[%s8895_s6 + $0xc0] sm:$0xff] }
 0x100   : > { %v9570_v53 = vadd.f32 %v7516_v49, %v7494_v46  ;;  %v7519_v60 = vadd.f32 %v7518_v58, %v7517_v52  ;;  %v8485_v52 = vld [vmem:[%s10478_s1 + $0x870] sm:$0xff]   ;;  %v8489_v58 = vld [vmem:[%s10478_s1 + $0x878] sm:$0xff]  }
 0x101   : > { %7797 = vmatpush3.bf16.msra.mxu0 %v8455_v0  ;;  %v3089_v0 = vld [vmem:[%s8895_s6 + $0x88] sm:$0xff] }
 0x102   : > { %v9584_v62 = vadd.f32 %v7519_v60, %v7497_v57  ;;  %7819 = vmatpush3.bf16.msra.mxu1 %v8456_v1  ;;  %7798 = vmatprep.subr.bf16.mxu0 %v8457_v2  ;;  %v8488_v57 = vld [vmem:[%s10478_s1 + $0x8b0] sm:$0xff]   ;;  %v8491_v60 = vld [vmem:[%s10478_s1 + $0x838] sm:$0xff]  }
 0x103   : > { %7820 = vmatprep.subr.bf16.mxu1 %v8458_v3  ;;  %v3097_v3 = vld [vmem:[%s8895_s6 + $0xc8] sm:$0xff] }
 0x105   : > { %7799 = vmatpush3.bf16.msra.mxu0 %v8459_v4  ;;  %v6930_v4 = vcombine.low %v3089_v0, %v3097_v3 }
 0x106   : > { %7821 = vmatpush3.bf16.msra.mxu1 %v8460_v5  ;;  %7828 = vmatprep.subr.bf16.mxu0 %v8461_v14  ;;  %v6931_v5 = vcombine.high %v3089_v0, %v3097_v3  ;;  %v8501_v14 = vld [vmem:[%s10478_s1 + $0x950] sm:$0xff]   ;;  %v8527_v0 = vld [vmem:[%s10478_s1 + $0xa00] sm:$0xff]   ;;  %v8530_v3 = vld [vmem:[%s10478_s1 + $0xac8] sm:$0xff]  }
 0x107   : > { %7850 = vmatprep.subr.bf16.mxu1 %v8462_v15  ;;  %v8502_v15 = vld [vmem:[%s10478_s1 + $0x9d0] sm:$0xff]  }
 0x108   : > { %3039 = vmatmul.mubr.bf16.vlgmr.msra.gmra.mrb[28].mxu0 %v6540_v9  ;;  %v8496_v9 = vld [vmem:[%s10478_s1 + $0x980] sm:$0xff]  }
 0x109   : > { %3080 = vmatmul.mubr.bf16.vlgmr.msra.gmra.mrb[28].mxu1 %v6542_v12  ;;  %7829 = vmatpush3.bf16.msra.mxu0 %v8463_v16  ;;  %v8499_v12 = vld [vmem:[%s10478_s1 + $0x908] sm:$0xff]   ;;  %v8503_v16 = vld [vmem:[%s10478_s1 + $0x910] sm:$0xff]  }
 0x10a   : > { %7851 = vmatpush3.bf16.msra.mxu1 %v8464_v17  ;;  %7830 = vmatprep.subr.bf16.mxu0 %v8465_v18  ;;  %v8504_v17 = vld [vmem:[%s10478_s1 + $0x990] sm:$0xff]   ;;  %v8505_v18 = vld [vmem:[%s10478_s1 + $0x958] sm:$0xff]  }
 0x10b   : > { %7852 = vmatprep.subr.bf16.mxu1 %v8466_v19  ;;  %4282 = vmatprep.mubr.bf16.mxu1 %v6931_v5  ;;  %v8506_v19 = vld [vmem:[%s10478_s1 + $0x9d8] sm:$0xff]   ;;  %v8532_v5 = vld [vmem:[%s10478_s1 + $0xa88] sm:$0xff]  }
 0x10d   : > { %7831 = vmatpush3.bf16.msra.mxu0 %v8467_v20  ;;  %v8507_v20 = vld [vmem:[%s10478_s1 + $0x918] sm:$0xff]  }
 0x10e   : > { %7853 = vmatpush3.bf16.msra.mxu1 %v8468_v21  ;;  %7832 = vmatprep.subr.bf16.mxu0 %v8469_v22  ;;  %v8508_v21 = vld [vmem:[%s10478_s1 + $0x998] sm:$0xff]   ;;  %v8509_v22 = vld [vmem:[%s10478_s1 + $0x960] sm:$0xff]  }
 0x10f   : > { %7854 = vmatprep.subr.bf16.mxu1 %v8470_v23 }
 0x111   : > { %7833 = vmatpush3.bf16.msra.mxu0 %v8471_v24  ;;  %v8510_v24 = vld [vmem:[%s10478_s1 + $0x9e0] sm:$0xff]  }
 0x112   : > { %7855 = vmatpush3.bf16.msra.mxu1 %v8472_v25  ;;  %7834 = vmatprep.subr.bf16.mxu0 %v8473_v26  ;;  %v8511_v26 = vld [vmem:[%s10478_s1 + $0x920] sm:$0xff]  }
 0x113   : > { %7856 = vmatprep.subr.bf16.mxu1 %v8474_v27 }
 0x115   : > { %7835 = vmatpush3.bf16.msra.mxu0 %v8475_v28  ;;  %v8512_v28 = vld [vmem:[%s10478_s1 + $0x9a0] sm:$0xff]  }
 0x116   : > { %7857 = vmatpush3.bf16.msra.mxu1 %v8476_v29  ;;  %7836 = vmatprep.subr.bf16.mxu0 %v8477_v30 }
 0x117   : > { %7858 = vmatprep.subr.bf16.mxu1 %v8478_v32  ;;  %v8513_v32 = vld [vmem:[%s10478_s1 + $0x968] sm:$0xff]  }
 0x119   : > { %7837 = vmatpush3.bf16.msra.mxu0 %v8479_v34 }
 0x11a   : > { %7859 = vmatpush3.bf16.msra.mxu1 %v8480_v36  ;;  %7838 = vmatprep.subr.bf16.mxu0 %v8481_v40  ;;  %v8516_v40 = vld [vmem:[%s10478_s1 + $0x9a8] sm:$0xff]  }
 0x11b   : > { %v7536_v31 = vpop.f32.mrb[4].mxu0  ;;  %7860 = vmatprep.subr.bf16.mxu1 %v8482_v43 }
 0x11c   : > { %v7558_v33 = vpop.f32.mrb[4].mxu1  ;;  %v7537_v35 = vpop.f32.mrb[5].mxu0 }
 0x11d   : > { %v7538_v37 = vadd.f32 %v7537_v35, %v7536_v31  ;;  %v7559_v38 = vpop.f32.mrb[5].mxu1  ;;  %v7539_v41 = vpop.f32.mrb[6].mxu0  ;;  %7839 = vmatpush3.bf16.msra.mxu0 %v8483_v45  ;;  %v8514_v35 = vld [vmem:[%s10478_s1 + $0x9e8] sm:$0xff]  }
 0x11e   : > { %v7560_v39 = vadd.f32 %v7559_v38, %v7558_v33  ;;  %v7561_v44 = vpop.f32.mrb[6].mxu1  ;;  %v7540_v46 = vpop.f32.mrb[7].mxu0  ;;  %7861 = vmatpush3.bf16.msra.mxu1 %v8484_v48  ;;  %7840 = vmatprep.subr.bf16.mxu0 %v8485_v52  ;;  %v8523_v52 = vld [vmem:[%s10478_s1 + $0x938] sm:$0xff]  }
 0x11f   : > { %v1725_v42 = vadd.f32 %v7538_v37, %v9570_v53  ;;  %v7541_v49 = vadd.f32 %v7540_v46, %v7539_v41  ;;  %v7562_v50 = vpop.f32.mrb[7].mxu1  ;;  %7862 = vmatprep.subr.bf16.mxu1 %v8486_v54  ;;  %v8515_v37 = vld [vmem:[%s10478_s1 + $0x928] sm:$0xff]   ;;  %v8518_v46 = vld [vmem:[%s10478_s1 + $0x9f0] sm:$0xff]  }
 0x120   : > { %v7563_v51 = vadd.f32 %v7562_v50, %v7561_v44  ;;  %v8517_v44 = vld [vmem:[%s10478_s1 + $0x970] sm:$0xff]   ;;  %v8521_v50 = vld [vmem:[%s10478_s1 + $0x978] sm:$0xff]  }
 0x121   : > { %v9681_v47 = vadd.f32 %v7560_v39, %v1725_v42  ;;  %v1728_v53 = vadd.f32 %v7541_v49, %v9584_v62  ;;  %7841 = vmatpush3.bf16.msra.mxu0 %v8487_v55  ;;  %v3088_v62 = vld [vmem:[%s8895_s6 + $0x80] sm:$0xff]  ;;  %v8520_v49 = vld [vmem:[%s10478_s1 + $0x9b0] sm:$0xff]  }
 0x122   : > { %7863 = vmatpush3.bf16.msra.mxu1 %v8488_v57  ;;  %7842 = vmatprep.subr.bf16.mxu0 %v8489_v58  ;;  %v6928_v1 = vcombine.low %v3088_v62, %v3096_v63  ;;  %v6929_v2 = vcombine.high %v3088_v62, %v3096_v63  ;;  %v3090_v54 = vld [vmem:[%s8895_s6 + $0x90] sm:$0xff]  ;;  %v3091_v58 = vld [vmem:[%s8895_s6 + $0x98] sm:$0xff]  ;;  %v8525_v62 = vld [vmem:[%s10478_s1 + $0xa40] sm:$0xff]  }
 0x123   : > { %v9696_v56 = vadd.f32 %v7563_v51, %v1728_v53  ;;  %7864 = vmatprep.subr.bf16.mxu1 %v8490_v59  ;;  %v8522_v51 = vld [vmem:[%s10478_s1 + $0x9f8] sm:$0xff]   ;;  %v3098_v55 = vld [vmem:[%s8895_s6 + $0xd0] sm:$0xff]  ;;  %v8526_v63 = vld [vmem:[%s10478_s1 + $0xac0] sm:$0xff]  }
 0x124   : > { %4241 = vmatprep.mubr.bf16.mxu0 %v6929_v2  ;;  %v8524_v53 = vld [vmem:[%s10478_s1 + $0x9b8] sm:$0xff]   ;;  %v6933_v57 = vcombine.high %v3090_v54, %v3098_v55  ;;  %v8529_v2 = vld [vmem:[%s10478_s1 + $0xa48] sm:$0xff]  }
 0x125   : > { %7843 = vmatpush3.bf16.msra.mxu0 %v8491_v60  ;;  %v3099_v59 = vld [vmem:[%s8895_s6 + $0xd8] sm:$0xff] }
 0x126   : > { %7865 = vmatpush3.bf16.msra.mxu1 %v8492_v61  ;;  %7872 = vmatprep.subr.bf16.mxu0 %v8493_v6  ;;  %v6934_v60 = vcombine.low %v3091_v58, %v3099_v59  ;;  %v6935_v61 = vcombine.high %v3091_v58, %v3099_v59  ;;  %v8533_v6 = vld [vmem:[%s10478_s1 + $0xa50] sm:$0xff]   ;;  %v8561_v58 = vld [vmem:[%s10478_s1 + $0xb48] sm:$0xff]  }
 0x127   : > { %7894 = vmatprep.subr.bf16.mxu1 %v8494_v7  ;;  %v8534_v7 = vld [vmem:[%s10478_s1 + $0xad0] sm:$0xff]   ;;  %v8562_v59 = vld [vmem:[%s10478_s1 + $0xbc8] sm:$0xff]  }
 0x128   : > { %4242 = vmatmul.mubr.bf16.vlgmr.msra.gmra.mrb[32].mxu0 %v6928_v1  ;;  %v8528_v1 = vld [vmem:[%s10478_s1 + $0xa80] sm:$0xff]  }
 0x129   : > { %4283 = vmatmul.mubr.bf16.vlgmr.msra.gmra.mrb[32].mxu1 %v6930_v4  ;;  %7873 = vmatpush3.bf16.msra.mxu0 %v8495_v8  ;;  %v8531_v4 = vld [vmem:[%s10478_s1 + $0xa08] sm:$0xff]   ;;  %v8535_v8 = vld [vmem:[%s10478_s1 + $0xa10] sm:$0xff]  }
 0x12a   : > { %7895 = vmatpush3.bf16.msra.mxu1 %v8496_v9  ;;  %7874 = vmatprep.subr.bf16.mxu0 %v8497_v10  ;;  %v8536_v9 = vld [vmem:[%s10478_s1 + $0xa90] sm:$0xff]   ;;  %v8537_v10 = vld [vmem:[%s10478_s1 + $0xa58] sm:$0xff]  }
 0x12b   : > { %7896 = vmatprep.subr.bf16.mxu1 %v8498_v11  ;;  %4323 = vmatprep.mubr.bf16.mxu0 %v6933_v57  ;;  %v8538_v11 = vld [vmem:[%s10478_s1 + $0xad8] sm:$0xff]   ;;  %v8560_v57 = vld [vmem:[%s10478_s1 + $0xb80] sm:$0xff]  }
 0x12c   : > { %4364 = vmatprep.mubr.bf16.mxu1 %v6935_v61  ;;  %v8564_v61 = vld [vmem:[%s10478_s1 + $0xb88] sm:$0xff]  }
 0x12d   : > { %7875 = vmatpush3.bf16.msra.mxu0 %v8499_v12  ;;  %v8539_v12 = vld [vmem:[%s10478_s1 + $0xa18] sm:$0xff]  }
 0x12e   : > { %7897 = vmatpush3.bf16.msra.mxu1 %v8500_v13  ;;  %7876 = vmatprep.subr.bf16.mxu0 %v8501_v14  ;;  %v8540_v13 = vld [vmem:[%s10478_s1 + $0xa98] sm:$0xff]   ;;  %v8541_v14 = vld [vmem:[%s10478_s1 + $0xa60] sm:$0xff]  }
 0x12f   : > { %7898 = vmatprep.subr.bf16.mxu1 %v8502_v15 }
 0x131   : > { %7877 = vmatpush3.bf16.msra.mxu0 %v8503_v16  ;;  %v8542_v16 = vld [vmem:[%s10478_s1 + $0xae0] sm:$0xff]  }
 0x132   : > { %7899 = vmatpush3.bf16.msra.mxu1 %v8504_v17  ;;  %7878 = vmatprep.subr.bf16.mxu0 %v8505_v18  ;;  %v8543_v18 = vld [vmem:[%s10478_s1 + $0xa20] sm:$0xff]  }
 0x133   : > { %7900 = vmatprep.subr.bf16.mxu1 %v8506_v19 }
 0x135   : > { %7879 = vmatpush3.bf16.msra.mxu0 %v8507_v20  ;;  %v8544_v20 = vld [vmem:[%s10478_s1 + $0xaa0] sm:$0xff]  }
 0x136   : > { %7901 = vmatpush3.bf16.msra.mxu1 %v8508_v21  ;;  %7880 = vmatprep.subr.bf16.mxu0 %v8509_v22 }
 0x137   : > { %7902 = vmatprep.subr.bf16.mxu1 %v8510_v24  ;;  %v8545_v24 = vld [vmem:[%s10478_s1 + $0xa68] sm:$0xff]  }
 0x139   : > { %7881 = vmatpush3.bf16.msra.mxu0 %v8511_v26 }
 0x13a   : > { %7903 = vmatpush3.bf16.msra.mxu1 %v8512_v28  ;;  %7882 = vmatprep.subr.bf16.mxu0 %v8513_v32  ;;  %v8548_v32 = vld [vmem:[%s10478_s1 + $0xaa8] sm:$0xff]  }
 0x13b   : > { %v7580_v23 = vpop.f32.mrb[8].mxu0  ;;  %7904 = vmatprep.subr.bf16.mxu1 %v8514_v35 }
 0x13c   : > { %v7602_v25 = vpop.f32.mrb[8].mxu1  ;;  %v7581_v27 = vpop.f32.mrb[9].mxu0 }
 0x13d   : > { %v7582_v29 = vadd.f32 %v7581_v27, %v7580_v23  ;;  %v7603_v30 = vpop.f32.mrb[9].mxu1  ;;  %v7583_v33 = vpop.f32.mrb[10].mxu0  ;;  %7883 = vmatpush3.bf16.msra.mxu0 %v8515_v37  ;;  %v8546_v27 = vld [vmem:[%s10478_s1 + $0xae8] sm:$0xff]  }
 0x13e   : > { %v7604_v31 = vadd.f32 %v7603_v30, %v7602_v25  ;;  %v7605_v36 = vpop.f32.mrb[10].mxu1  ;;  %v7584_v38 = vpop.f32.mrb[11].mxu0  ;;  %7905 = vmatpush3.bf16.msra.mxu1 %v8516_v40  ;;  %7884 = vmatprep.subr.bf16.mxu0 %v8517_v44  ;;  %v8555_v44 = vld [vmem:[%s10478_s1 + $0xa38] sm:$0xff]  }
 0x13f   : > { %v1807_v34 = vadd.f32 %v7582_v29, %v9681_v47  ;;  %v7585_v41 = vadd.f32 %v7584_v38, %v7583_v33  ;;  %v7606_v42 = vpop.f32.mrb[11].mxu1  ;;  %v8519_v47 = vld [vmem:[%s10478_s1 + $0x930] sm:$0xff]   ;;  %7906 = vmatprep.subr.bf16.mxu1 %v8518_v46  ;;  %v8547_v29 = vld [vmem:[%s10478_s1 + $0xa28] sm:$0xff]   ;;  %v3092_v46 = vld [vmem:[%s8895_s6 + $0xa0] sm:$0xff] }
 0x140   : > { %v7607_v43 = vadd.f32 %v7606_v42, %v7605_v36  ;;  %v8549_v36 = vld [vmem:[%s10478_s1 + $0xa70] sm:$0xff]   ;;  %v8553_v42 = vld [vmem:[%s10478_s1 + $0xa78] sm:$0xff]  }
 0x141   : > { %v9787_v39 = vadd.f32 %v7604_v31, %v1807_v34  ;;  %v1810_v45 = vadd.f32 %v7585_v41, %v9696_v56  ;;  %7885 = vmatpush3.bf16.msra.mxu0 %v8519_v47  ;;  %v6932_v56 = vcombine.low %v3090_v54, %v3098_v55  ;;  %v8550_v38 = vld [vmem:[%s10478_s1 + $0xaf0] sm:$0xff]   ;;  %v3100_v47 = vld [vmem:[%s8895_s6 + $0xe0] sm:$0xff] }
 0x142   : > { %7907 = vmatpush3.bf16.msra.mxu1 %v8520_v49  ;;  %7886 = vmatprep.subr.bf16.mxu0 %v8521_v50  ;;  %v8552_v41 = vld [vmem:[%s10478_s1 + $0xab0] sm:$0xff]   ;;  %v3101_v49 = vld [vmem:[%s8895_s6 + $0xe8] sm:$0xff]  ;;  %v6936_v50 = vcombine.low %v3092_v46, %v3100_v47  ;;  %v8557_v54 = vld [vmem:[%s10478_s1 + $0xb40] sm:$0xff]  }
 0x143   : > { %v9802_v48 = vadd.f32 %v7607_v43, %v1810_v45  ;;  %7908 = vmatprep.subr.bf16.mxu1 %v8522_v51  ;;  %v8554_v43 = vld [vmem:[%s10478_s1 + $0xaf8] sm:$0xff]   ;;  %v6937_v51 = vcombine.high %v3092_v46, %v3100_v47  ;;  %v8558_v55 = vld [vmem:[%s10478_s1 + $0xbc0] sm:$0xff]  }
 0x144   : > { %v8556_v45 = vld [vmem:[%s10478_s1 + $0xab8] sm:$0xff]   ;;  %v8589_v46 = vld [vmem:[%s10478_s1 + $0xc40] sm:$0xff]  }
 0x145   : > { %7887 = vmatpush3.bf16.msra.mxu0 %v8523_v52  ;;  %v8590_v47 = vld [vmem:[%s10478_s1 + $0xcc0] sm:$0xff]  }
 0x146   : > { %7909 = vmatpush3.bf16.msra.mxu1 %v8524_v53  ;;  %7916 = vmatprep.subr.bf16.mxu0 %v8525_v62  ;;  %v8565_v62 = vld [vmem:[%s10478_s1 + $0xb50] sm:$0xff]  }
 0x147   : > { %7938 = vmatprep.subr.bf16.mxu1 %v8526_v63  ;;  %v8566_v63 = vld [vmem:[%s10478_s1 + $0xbd0] sm:$0xff]  }
 0x148   : > { %4324 = vmatmul.mubr.bf16.vlgmr.msra.gmra.mrb[36].mxu0 %v6932_v56  ;;  %v8559_v56 = vld [vmem:[%s10478_s1 + $0xb00] sm:$0xff]  }
 0x149   : > { %4365 = vmatmul.mubr.bf16.vlgmr.msra.gmra.mrb[36].mxu1 %v6934_v60  ;;  %7917 = vmatpush3.bf16.msra.mxu0 %v8527_v0  ;;  %v8563_v60 = vld [vmem:[%s10478_s1 + $0xb08] sm:$0xff]   ;;  %v8567_v0 = vld [vmem:[%s10478_s1 + $0xb10] sm:$0xff]  }
 0x14a   : > { %7939 = vmatpush3.bf16.msra.mxu1 %v8528_v1  ;;  %7918 = vmatprep.subr.bf16.mxu0 %v8529_v2  ;;  %v8568_v1 = vld [vmem:[%s10478_s1 + $0xb90] sm:$0xff]   ;;  %v8569_v2 = vld [vmem:[%s10478_s1 + $0xb58] sm:$0xff]  }
 0x14b   : > { %7940 = vmatprep.subr.bf16.mxu1 %v8530_v3  ;;  %4405 = vmatprep.mubr.bf16.mxu0 %v6937_v51  ;;  %v8570_v3 = vld [vmem:[%s10478_s1 + $0xbd8] sm:$0xff]   ;;  %v8594_v51 = vld [vmem:[%s10478_s1 + $0xcc8] sm:$0xff]  }
 0x14d   : > { %7919 = vmatpush3.bf16.msra.mxu0 %v8531_v4  ;;  %v8571_v4 = vld [vmem:[%s10478_s1 + $0xb18] sm:$0xff]  }
 0x14e   : > { %7941 = vmatpush3.bf16.msra.mxu1 %v8532_v5  ;;  %7920 = vmatprep.subr.bf16.mxu0 %v8533_v6  ;;  %v8572_v5 = vld [vmem:[%s10478_s1 + $0xb98] sm:$0xff]   ;;  %v8573_v6 = vld [vmem:[%s10478_s1 + $0xb60] sm:$0xff]  }
 0x14f   : > { %7942 = vmatprep.subr.bf16.mxu1 %v8534_v7 }
 0x151   : > { %7921 = vmatpush3.bf16.msra.mxu0 %v8535_v8  ;;  %v8574_v8 = vld [vmem:[%s10478_s1 + $0xbe0] sm:$0xff]  }
 0x152   : > { %7943 = vmatpush3.bf16.msra.mxu1 %v8536_v9  ;;  %7922 = vmatprep.subr.bf16.mxu0 %v8537_v10  ;;  %v8575_v10 = vld [vmem:[%s10478_s1 + $0xb20] sm:$0xff]  }
 0x153   : > { %7944 = vmatprep.subr.bf16.mxu1 %v8538_v11 }
 0x155   : > { %7923 = vmatpush3.bf16.msra.mxu0 %v8539_v12  ;;  %v8576_v12 = vld [vmem:[%s10478_s1 + $0xba0] sm:$0xff]  }
 0x156   : > { %7945 = vmatpush3.bf16.msra.mxu1 %v8540_v13  ;;  %7924 = vmatprep.subr.bf16.mxu0 %v8541_v14 }
 0x157   : > { %7946 = vmatprep.subr.bf16.mxu1 %v8542_v16  ;;  %v8577_v16 = vld [vmem:[%s10478_s1 + $0xb68] sm:$0xff]  }
 0x159   : > { %7925 = vmatpush3.bf16.msra.mxu0 %v8543_v18 }
 0x15a   : > { %7947 = vmatpush3.bf16.msra.mxu1 %v8544_v20  ;;  %7926 = vmatprep.subr.bf16.mxu0 %v8545_v24  ;;  %v8580_v24 = vld [vmem:[%s10478_s1 + $0xba8] sm:$0xff]  }
 0x15b   : > { %v7624_v15 = vpop.f32.mrb[12].mxu0  ;;  %7948 = vmatprep.subr.bf16.mxu1 %v8546_v27 }
 0x15c   : > { %v7646_v17 = vpop.f32.mrb[12].mxu1  ;;  %v7625_v19 = vpop.f32.mrb[13].mxu0 }
 0x15d   : > { %v7626_v21 = vadd.f32 %v7625_v19, %v7624_v15  ;;  %v7647_v22 = vpop.f32.mrb[13].mxu1  ;;  %v7627_v25 = vpop.f32.mrb[14].mxu0  ;;  %7927 = vmatpush3.bf16.msra.mxu0 %v8547_v29  ;;  %v8578_v19 = vld [vmem:[%s10478_s1 + $0xbe8] sm:$0xff]  }
 0x15e   : > { %v7648_v23 = vadd.f32 %v7647_v22, %v7646_v17  ;;  %v7649_v28 = vpop.f32.mrb[14].mxu1  ;;  %v7628_v30 = vpop.f32.mrb[15].mxu0  ;;  %7949 = vmatpush3.bf16.msra.mxu1 %v8548_v32  ;;  %7928 = vmatprep.subr.bf16.mxu0 %v8549_v36  ;;  %v8587_v36 = vld [vmem:[%s10478_s1 + $0xb38] sm:$0xff]  }
 0x15f   : > { %v1889_v26 = vadd.f32 %v7626_v21, %v9787_v39  ;;  %v7629_v33 = vadd.f32 %v7628_v30, %v7627_v25  ;;  %v7650_v34 = vpop.f32.mrb[15].mxu1  ;;  %v8551_v39 = vld [vmem:[%s10478_s1 + $0xa30] sm:$0xff]   ;;  %7950 = vmatprep.subr.bf16.mxu1 %v8550_v38  ;;  %v8579_v21 = vld [vmem:[%s10478_s1 + $0xb28] sm:$0xff]  }
 0x160   : > { %v7651_v35 = vadd.f32 %v7650_v34, %v7649_v28  ;;  %v8581_v28 = vld [vmem:[%s10478_s1 + $0xb70] sm:$0xff]   ;;  %v8585_v34 = vld [vmem:[%s10478_s1 + $0xb78] sm:$0xff]  }
 0x161   : > { %v9893_v31 = vadd.f32 %v7648_v23, %v1889_v26  ;;  %v1892_v37 = vadd.f32 %v7629_v33, %v9802_v48  ;;  %7929 = vmatpush3.bf16.msra.mxu0 %v8551_v39  ;;  %v3093_v48 = vld [vmem:[%s8895_s6 + $0xa8] sm:$0xff]  ;;  %v8582_v30 = vld [vmem:[%s10478_s1 + $0xbf0] sm:$0xff]  }
 0x162   : > { %7951 = vmatpush3.bf16.msra.mxu1 %v8552_v41  ;;  %7930 = vmatprep.subr.bf16.mxu0 %v8553_v42  ;;  %v6938_v52 = vcombine.low %v3093_v48, %v3101_v49  ;;  %v6939_v53 = vcombine.high %v3093_v48, %v3101_v49  ;;  %v8584_v33 = vld [vmem:[%s10478_s1 + $0xbb0] sm:$0xff]   ;;  %v8591_v48 = vld [vmem:[%s10478_s1 + $0xc00] sm:$0xff]  }
 0x163   : > { %v9908_v40 = vadd.f32 %v7651_v35, %v1892_v37  ;;  %7952 = vmatprep.subr.bf16.mxu1 %v8554_v43  ;;  %v8586_v35 = vld [vmem:[%s10478_s1 + $0xbf8] sm:$0xff]   ;;  %v3094_v38 = vld [vmem:[%s8895_s6 + $0xb0] sm:$0xff]  ;;  %v8592_v49 = vld [vmem:[%s10478_s1 + $0xc80] sm:$0xff]  }
 0x164   : > { %4446 = vmatprep.mubr.bf16.mxu1 %v6939_v53  ;;  %v8588_v37 = vld [vmem:[%s10478_s1 + $0xbb8] sm:$0xff]   ;;  %v3102_v39 = vld [vmem:[%s8895_s6 + $0xf0] sm:$0xff]  ;;  %v8596_v53 = vld [vmem:[%s10478_s1 + $0xc88] sm:$0xff]  }
 0x165   : > { %7931 = vmatpush3.bf16.msra.mxu0 %v8555_v44  ;;  %v6940_v41 = vcombine.low %v3094_v38, %v3102_v39  ;;  %v6941_v42 = vcombine.high %v3094_v38, %v3102_v39  ;;  %v3103_v43 = vld [vmem:[%s8895_s6 + $0xf8] sm:$0xff]  ;;  %v8621_v38 = vld [vmem:[%s10478_s1 + $0xd40] sm:$0xff]  }
 0x166   : > { %7953 = vmatpush3.bf16.msra.mxu1 %v8556_v45  ;;  %7960 = vmatprep.subr.bf16.mxu0 %v8557_v54  ;;  %v8597_v54 = vld [vmem:[%s10478_s1 + $0xc50] sm:$0xff]   ;;  %v8622_v39 = vld [vmem:[%s10478_s1 + $0xdc0] sm:$0xff]  }
 0x167   : > { %7982 = vmatprep.subr.bf16.mxu1 %v8558_v55  ;;  %v8598_v55 = vld [vmem:[%s10478_s1 + $0xcd0] sm:$0xff]  }
 0x168   : > { %4406 = vmatmul.mubr.bf16.vlgmr.msra.gmra.mrb[40].mxu0 %v6936_v50  ;;  %v8593_v50 = vld [vmem:[%s10478_s1 + $0xc48] sm:$0xff]  }
 0x169   : > { %4447 = vmatmul.mubr.bf16.vlgmr.msra.gmra.mrb[40].mxu1 %v6938_v52  ;;  %7961 = vmatpush3.bf16.msra.mxu0 %v8559_v56  ;;  %v8595_v52 = vld [vmem:[%s10478_s1 + $0xc08] sm:$0xff]   ;;  %v8599_v56 = vld [vmem:[%s10478_s1 + $0xc10] sm:$0xff]  }
 0x16a   : > { %7983 = vmatpush3.bf16.msra.mxu1 %v8560_v57  ;;  %7962 = vmatprep.subr.bf16.mxu0 %v8561_v58  ;;  %v8600_v57 = vld [vmem:[%s10478_s1 + $0xc90] sm:$0xff]   ;;  %v8601_v58 = vld [vmem:[%s10478_s1 + $0xc58] sm:$0xff]  }
 0x16b   : > { %7984 = vmatprep.subr.bf16.mxu1 %v8562_v59  ;;  %4487 = vmatprep.mubr.bf16.mxu0 %v6941_v42  ;;  %v8602_v59 = vld [vmem:[%s10478_s1 + $0xcd8] sm:$0xff]   ;;  %v8625_v42 = vld [vmem:[%s10478_s1 + $0xd48] sm:$0xff]  }
 0x16d   : > { %7963 = vmatpush3.bf16.msra.mxu0 %v8563_v60  ;;  %v8603_v60 = vld [vmem:[%s10478_s1 + $0xc18] sm:$0xff]  }
 0x16e   : > { %7985 = vmatpush3.bf16.msra.mxu1 %v8564_v61  ;;  %7964 = vmatprep.subr.bf16.mxu0 %v8565_v62  ;;  %v8604_v61 = vld [vmem:[%s10478_s1 + $0xc98] sm:$0xff]  }
 0x16f   : > { %7986 = vmatprep.subr.bf16.mxu1 %v8566_v63  ;;  %v8605_v63 = vld [vmem:[%s10478_s1 + $0xc60] sm:$0xff]  }
 0x171   : > { %7965 = vmatpush3.bf16.msra.mxu0 %v8567_v0 }
 0x172   : > { %7987 = vmatpush3.bf16.msra.mxu1 %v8568_v1  ;;  %7966 = vmatprep.subr.bf16.mxu0 %v8569_v2  ;;  %v8606_v1 = vld [vmem:[%s10478_s1 + $0xce0] sm:$0xff]  }
 0x173   : > { %7988 = vmatprep.subr.bf16.mxu1 %v8570_v3  ;;  %v8607_v3 = vld [vmem:[%s10478_s1 + $0xc20] sm:$0xff]  }
 0x175   : > { %7967 = vmatpush3.bf16.msra.mxu0 %v8571_v4 }
 0x176   : > { %7989 = vmatpush3.bf16.msra.mxu1 %v8572_v5  ;;  %7968 = vmatprep.subr.bf16.mxu0 %v8573_v6  ;;  %v8608_v6 = vld [vmem:[%s10478_s1 + $0xca0] sm:$0xff]  }
 0x177   : > { %7990 = vmatprep.subr.bf16.mxu1 %v8574_v8 }
 0x179   : > { %7969 = vmatpush3.bf16.msra.mxu0 %v8575_v10  ;;  %v8609_v10 = vld [vmem:[%s10478_s1 + $0xc68] sm:$0xff]  }
 0x17a   : > { %7991 = vmatpush3.bf16.msra.mxu1 %v8576_v12  ;;  %7970 = vmatprep.subr.bf16.mxu0 %v8577_v16  ;;  %v8610_v12 = vld [vmem:[%s10478_s1 + $0xce8] sm:$0xff]  }
 0x17b   : > { %v7668_v7 = vpop.f32.mrb[16].mxu0  ;;  %7992 = vmatprep.subr.bf16.mxu1 %v8578_v19 }
 0x17c   : > { %v7690_v9 = vpop.f32.mrb[16].mxu1  ;;  %v7669_v11 = vpop.f32.mrb[17].mxu0 }
 0x17d   : > { %v7670_v13 = vadd.f32 %v7669_v11, %v7668_v7  ;;  %v7691_v14 = vpop.f32.mrb[17].mxu1  ;;  %v7671_v17 = vpop.f32.mrb[18].mxu0  ;;  %7971 = vmatpush3.bf16.msra.mxu0 %v8579_v21  ;;  %v8613_v21 = vld [vmem:[%s10478_s1 + $0xc70] sm:$0xff]  }
 0x17e   : > { %v7692_v15 = vadd.f32 %v7691_v14, %v7690_v9  ;;  %v7693_v20 = vpop.f32.mrb[18].mxu1  ;;  %v7672_v22 = vpop.f32.mrb[19].mxu0  ;;  %7993 = vmatpush3.bf16.msra.mxu1 %v8580_v24  ;;  %7972 = vmatprep.subr.bf16.mxu0 %v8581_v28  ;;  %v8615_v24 = vld [vmem:[%s10478_s1 + $0xc30] sm:$0xff]   ;;  %v8619_v28 = vld [vmem:[%s10478_s1 + $0xc38] sm:$0xff]  }
 0x17f   : > { %v2795_v18 = vadd.f32 %v7670_v13, %v9893_v31  ;;  %v7673_v25 = vadd.f32 %v7672_v22, %v7671_v17  ;;  %v7694_v26 = vpop.f32.mrb[19].mxu1  ;;  %v8583_v31 = vld [vmem:[%s10478_s1 + $0xb30] sm:$0xff]   ;;  %7994 = vmatprep.subr.bf16.mxu1 %v8582_v30  ;;  %v4539_v30 = vld [vmem:[%s8895_s6 + $0xc0] sm:$0xff] }
 0x180   : > { %v7695_v27 = vadd.f32 %v7694_v26, %v7693_v20  ;;  %v8614_v22 = vld [vmem:[%s10478_s1 + $0xcf0] sm:$0xff]   ;;  %v8617_v26 = vld [vmem:[%s10478_s1 + $0xc78] sm:$0xff]  }
 0x181   : > { %v9999_v23 = vadd.f32 %v7692_v15, %v2795_v18  ;;  %v2798_v29 = vadd.f32 %v7673_v25, %v9908_v40  ;;  %7973 = vmatpush3.bf16.msra.mxu0 %v8583_v31  ;;  %v3095_v40 = vld [vmem:[%s8895_s6 + $0xb8] sm:$0xff]  ;;  %v8611_v15 = vld [vmem:[%s10478_s1 + $0xc28] sm:$0xff]   ;;  %v8616_v25 = vld [vmem:[%s10478_s1 + $0xcb0] sm:$0xff]  }
 0x182   : > { %7995 = vmatpush3.bf16.msra.mxu1 %v8584_v33  ;;  %7974 = vmatprep.subr.bf16.mxu0 %v8585_v34  ;;  %v6942_v44 = vcombine.low %v3095_v40, %v3103_v43  ;;  %v6943_v45 = vcombine.high %v3095_v40, %v3103_v43  ;;  %v8612_v18 = vld [vmem:[%s10478_s1 + $0xca8] sm:$0xff]   ;;  %v4547_v31 = vld [vmem:[%s8895_s6 + $0x100] sm:$0xff] }
 0x183   : > { %v10014_v32 = vadd.f32 %v7695_v27, %v2798_v29  ;;  %7996 = vmatprep.subr.bf16.mxu1 %v8586_v35  ;;  %v8618_v27 = vld [vmem:[%s10478_s1 + $0xcf8] sm:$0xff]   ;;  %v7329_v33 = vcombine.high %v4539_v30, %v4547_v31  ;;  %v4540_v34 = vld [vmem:[%s8895_s6 + $0xc8] sm:$0xff]  ;;  %v8623_v40 = vld [vmem:[%s10478_s1 + $0xd00] sm:$0xff]  }
 0x184   : > { %4528 = vmatprep.mubr.bf16.mxu1 %v6943_v45  ;;  %v8620_v29 = vld [vmem:[%s10478_s1 + $0xcb8] sm:$0xff]   ;;  %v4548_v35 = vld [vmem:[%s8895_s6 + $0x108] sm:$0xff] }
 0x185   : > { %7975 = vmatpush3.bf16.msra.mxu0 %v8587_v36  ;;  %v7330_v36 = vcombine.low %v4540_v34, %v4548_v35  ;;  %v8626_v43 = vld [vmem:[%s10478_s1 + $0xdc8] sm:$0xff]  }
 0x186   : > { %7997 = vmatpush3.bf16.msra.mxu1 %v8588_v37  ;;  %8004 = vmatprep.subr.bf16.mxu0 %v8589_v46  ;;  %v7331_v37 = vcombine.high %v4540_v34, %v4548_v35  ;;  %v8628_v45 = vld [vmem:[%s10478_s1 + $0xd88] sm:$0xff]   ;;  %v8629_v46 = vld [vmem:[%s10478_s1 + $0xd50] sm:$0xff]  }
 0x187   : > { %8026 = vmatprep.subr.bf16.mxu1 %v8590_v47  ;;  %v8630_v47 = vld [vmem:[%s10478_s1 + $0xdd0] sm:$0xff]   ;;  %v8657_v34 = vld [vmem:[%s10478_s1 + $0xe48] sm:$0xff]  }
 0x188   : > { %4488 = vmatmul.mubr.bf16.vlgmr.msra.gmra.mrb[44].mxu0 %v6940_v41  ;;  %v8624_v41 = vld [vmem:[%s10478_s1 + $0xd80] sm:$0xff]   ;;  %v8658_v35 = vld [vmem:[%s10478_s1 + $0xec8] sm:$0xff]  }
 0x189   : > { %4529 = vmatmul.mubr.bf16.vlgmr.msra.gmra.mrb[44].mxu1 %v6942_v44  ;;  %8005 = vmatpush3.bf16.msra.mxu0 %v8591_v48  ;;  %v8627_v44 = vld [vmem:[%s10478_s1 + $0xd08] sm:$0xff]   ;;  %v8631_v48 = vld [vmem:[%s10478_s1 + $0xd10] sm:$0xff]  }
 0x18a   : > { %8027 = vmatpush3.bf16.msra.mxu1 %v8592_v49  ;;  %8006 = vmatprep.subr.bf16.mxu0 %v8593_v50  ;;  %v8632_v49 = vld [vmem:[%s10478_s1 + $0xd90] sm:$0xff]   ;;  %v8633_v50 = vld [vmem:[%s10478_s1 + $0xd58] sm:$0xff]  }
 0x18b   : > { %8028 = vmatprep.subr.bf16.mxu1 %v8594_v51  ;;  %5692 = vmatprep.mubr.bf16.mxu0 %v7329_v33  ;;  %v8634_v51 = vld [vmem:[%s10478_s1 + $0xdd8] sm:$0xff]   ;;  %v8656_v33 = vld [vmem:[%s10478_s1 + $0xe80] sm:$0xff]  }
 0x18c   : > { %5733 = vmatprep.mubr.bf16.mxu1 %v7331_v37  ;;  %v8660_v37 = vld [vmem:[%s10478_s1 + $0xe88] sm:$0xff]  }
 0x18d   : > { %8007 = vmatpush3.bf16.msra.mxu0 %v8595_v52  ;;  %v8635_v52 = vld [vmem:[%s10478_s1 + $0xd18] sm:$0xff]  }
 0x18e   : > { %8029 = vmatpush3.bf16.msra.mxu1 %v8596_v53  ;;  %8008 = vmatprep.subr.bf16.mxu0 %v8597_v54  ;;  %v8636_v53 = vld [vmem:[%s10478_s1 + $0xd98] sm:$0xff]  }
 0x18f   : > { %8030 = vmatprep.subr.bf16.mxu1 %v8598_v55  ;;  %v8637_v55 = vld [vmem:[%s10478_s1 + $0xd60] sm:$0xff]  }
 0x191   : > { %8009 = vmatpush3.bf16.msra.mxu0 %v8599_v56 }
 0x192   : > { %8031 = vmatpush3.bf16.msra.mxu1 %v8600_v57  ;;  %8010 = vmatprep.subr.bf16.mxu0 %v8601_v58  ;;  %v8638_v57 = vld [vmem:[%s10478_s1 + $0xde0] sm:$0xff]  }
 0x193   : > { %8032 = vmatprep.subr.bf16.mxu1 %v8602_v59  ;;  %v8639_v59 = vld [vmem:[%s10478_s1 + $0xd20] sm:$0xff]  }
 0x195   : > { %8011 = vmatpush3.bf16.msra.mxu0 %v8603_v60 }
 0x196   : > { %8033 = vmatpush3.bf16.msra.mxu1 %v8604_v61  ;;  %8012 = vmatprep.subr.bf16.mxu0 %v8605_v63 }
 0x197   : > { %8034 = vmatprep.subr.bf16.mxu1 %v8606_v1 }
 0x199   : > { %8013 = vmatpush3.bf16.msra.mxu0 %v8607_v3 }
 0x19a   : > { %8035 = vmatpush3.bf16.msra.mxu1 %v8608_v6  ;;  %8014 = vmatprep.subr.bf16.mxu0 %v8609_v10  ;;  %v8644_v10 = vld [vmem:[%s10478_s1 + $0xda8] sm:$0xff]  }
 0x19b   : > { %v7712_v62 = vpop.f32.mrb[20].mxu0  ;;  %8036 = vmatprep.subr.bf16.mxu1 %v8610_v12 }
 0x19c   : > { %v7734_v0 = vpop.f32.mrb[20].mxu1  ;;  %v7713_v2 = vpop.f32.mrb[21].mxu0 }
 0x19d   : > { %v7714_v4 = vadd.f32 %v7713_v2, %v7712_v62  ;;  %v7735_v5 = vpop.f32.mrb[21].mxu1  ;;  %v7715_v8 = vpop.f32.mrb[22].mxu0  ;;  %8015 = vmatpush3.bf16.msra.mxu0 %v8611_v15  ;;  %v8640_v62 = vld [vmem:[%s10478_s1 + $0xda0] sm:$0xff]   ;;  %v8641_v2 = vld [vmem:[%s10478_s1 + $0xd68] sm:$0xff]  }
 0x19e   : > { %v7736_v7 = vadd.f32 %v7735_v5, %v7734_v0  ;;  %v7737_v11 = vpop.f32.mrb[22].mxu1  ;;  %v7716_v13 = vpop.f32.mrb[23].mxu0  ;;  %8037 = vmatpush3.bf16.msra.mxu1 %v8612_v18  ;;  %8016 = vmatprep.subr.bf16.mxu0 %v8613_v21  ;;  %v8649_v18 = vld [vmem:[%s10478_s1 + $0xd78] sm:$0xff]  }
 0x19f   : > { %v2877_v9 = vadd.f32 %v7714_v4, %v9999_v23  ;;  %v7717_v16 = vadd.f32 %v7716_v13, %v7715_v8  ;;  %v7738_v17 = vpop.f32.mrb[23].mxu1  ;;  %8038 = vmatprep.subr.bf16.mxu1 %v8614_v22  ;;  %v8642_v4 = vld [vmem:[%s10478_s1 + $0xde8] sm:$0xff]   ;;  %v8645_v13 = vld [vmem:[%s10478_s1 + $0xd70] sm:$0xff]   ;;  %v8652_v21 = vld [vmem:[%s10478_s1 + $0xdb8] sm:$0xff]  }
 0x1a0   : > { %v7739_v19 = vadd.f32 %v7738_v17, %v7737_v11  ;;  %v8648_v17 = vld [vmem:[%s10478_s1 + $0xdb0] sm:$0xff]  }
 0x1a1   : > { %v10102_v14 = vadd.f32 %v7736_v7, %v2877_v9  ;;  %v2880_v20 = vadd.f32 %v7717_v16, %v10014_v32  ;;  %8017 = vmatpush3.bf16.msra.mxu0 %v8615_v24  ;;  %v7328_v32 = vcombine.low %v4539_v30, %v4547_v31  ;;  %v8643_v7 = vld [vmem:[%s10478_s1 + $0xd28] sm:$0xff]   ;;  %v8647_v16 = vld [vmem:[%s10478_s1 + $0xd30] sm:$0xff]   ;;  %v4542_v24 = vld [vmem:[%s8895_s6 + $0xd8] sm:$0xff] }
 0x1a2   : > { %8039 = vmatpush3.bf16.msra.mxu1 %v8616_v25  ;;  %8018 = vmatprep.subr.bf16.mxu0 %v8617_v26  ;;  %v4541_v22 = vld [vmem:[%s8895_s6 + $0xd0] sm:$0xff]  ;;  %v4550_v25 = vld [vmem:[%s8895_s6 + $0x118] sm:$0xff]  ;;  %v8653_v30 = vld [vmem:[%s10478_s1 + $0xe40] sm:$0xff]  }
 0x1a3   : > { %v10117_v23 = vadd.f32 %v7739_v19, %v2880_v20  ;;  %8040 = vmatprep.subr.bf16.mxu1 %v8618_v27  ;;  %v8650_v19 = vld [vmem:[%s10478_s1 + $0xdf8] sm:$0xff]   ;;  %v8654_v31 = vld [vmem:[%s10478_s1 + $0xec0] sm:$0xff]  }
 0x1a4   : > { %v8651_v20 = vld [vmem:[%s10478_s1 + $0xd38] sm:$0xff]  }
 0x1a5   : > { %8019 = vmatpush3.bf16.msra.mxu0 %v8619_v28  ;;  %v7334_v28 = vcombine.low %v4542_v24, %v4550_v25 }
 0x1a6   : > { %8041 = vmatpush3.bf16.msra.mxu1 %v8620_v29  ;;  %8048 = vmatprep.subr.bf16.mxu0 %v8621_v38  ;;  %v7335_v29 = vcombine.high %v4542_v24, %v4550_v25  ;;  %v8661_v38 = vld [vmem:[%s10478_s1 + $0xe50] sm:$0xff]   ;;  %v8687_v24 = vld [vmem:[%s10478_s1 + $0xf00] sm:$0xff]  }
 0x1a7   : > { %8070 = vmatprep.subr.bf16.mxu1 %v8622_v39  ;;  %v8662_v39 = vld [vmem:[%s10478_s1 + $0xed0] sm:$0xff]   ;;  %v8688_v25 = vld [vmem:[%s10478_s1 + $0xf80] sm:$0xff]  }
 0x1a8   : > { %5693 = vmatmul.mubr.bf16.vlgmr.msra.gmra.mrb[48].mxu0 %v7328_v32  ;;  %v8655_v32 = vld [vmem:[%s10478_s1 + $0xe00] sm:$0xff]  }
 0x1a9   : > { %5734 = vmatmul.mubr.bf16.vlgmr.msra.gmra.mrb[48].mxu1 %v7330_v36  ;;  %8049 = vmatpush3.bf16.msra.mxu0 %v8623_v40  ;;  %v8659_v36 = vld [vmem:[%s10478_s1 + $0xe08] sm:$0xff]   ;;  %v8663_v40 = vld [vmem:[%s10478_s1 + $0xe10] sm:$0xff]  }
 0x1aa   : > { %8071 = vmatpush3.bf16.msra.mxu1 %v8624_v41  ;;  %8050 = vmatprep.subr.bf16.mxu0 %v8625_v42  ;;  %v8664_v41 = vld [vmem:[%s10478_s1 + $0xe90] sm:$0xff]   ;;  %v8665_v42 = vld [vmem:[%s10478_s1 + $0xe58] sm:$0xff]  }
 0x1ab   : > { %8072 = vmatprep.subr.bf16.mxu1 %v8626_v43  ;;  %5815 = vmatprep.mubr.bf16.mxu1 %v7335_v29  ;;  %v8666_v43 = vld [vmem:[%s10478_s1 + $0xed8] sm:$0xff]   ;;  %v8692_v29 = vld [vmem:[%s10478_s1 + $0xf88] sm:$0xff]  }
 0x1ad   : > { %8051 = vmatpush3.bf16.msra.mxu0 %v8627_v44  ;;  %v8667_v44 = vld [vmem:[%s10478_s1 + $0xe18] sm:$0xff]  }
 0x1ae   : > { %8073 = vmatpush3.bf16.msra.mxu1 %v8628_v45  ;;  %8052 = vmatprep.subr.bf16.mxu0 %v8629_v46  ;;  %v8668_v46 = vld [vmem:[%s10478_s1 + $0xe98] sm:$0xff]  }
 0x1af   : > { %8074 = vmatprep.subr.bf16.mxu1 %v8630_v47 }
 0x1b1   : > { %8053 = vmatpush3.bf16.msra.mxu0 %v8631_v48  ;;  %v8669_v48 = vld [vmem:[%s10478_s1 + $0xe60] sm:$0xff]  }
 0x1b2   : > { %8075 = vmatpush3.bf16.msra.mxu1 %v8632_v49  ;;  %8054 = vmatprep.subr.bf16.mxu0 %v8633_v50  ;;  %v8670_v50 = vld [vmem:[%s10478_s1 + $0xee0] sm:$0xff]  }
 0x1b3   : > { %8076 = vmatprep.subr.bf16.mxu1 %v8634_v51 }
 0x1b5   : > { %8055 = vmatpush3.bf16.msra.mxu0 %v8635_v52 }
 0x1b6   : > { %8077 = vmatpush3.bf16.msra.mxu1 %v8636_v53  ;;  %8056 = vmatprep.subr.bf16.mxu0 %v8637_v55  ;;  %v8671_v53 = vld [vmem:[%s10478_s1 + $0xe20] sm:$0xff]  }
 0x1b7   : > { %8078 = vmatprep.subr.bf16.mxu1 %v8638_v57 }
 0x1b9   : > { %8057 = vmatpush3.bf16.msra.mxu0 %v8639_v59  ;;  %v8673_v59 = vld [vmem:[%s10478_s1 + $0xe68] sm:$0xff]  }
 0x1ba   : > { %8079 = vmatpush3.bf16.msra.mxu1 %v8640_v62  ;;  %8058 = vmatprep.subr.bf16.mxu0 %v8641_v2  ;;  %v8674_v62 = vld [vmem:[%s10478_s1 + $0xee8] sm:$0xff]  }
 0x1bb   : > { %v7756_v54 = vpop.f32.mrb[24].mxu0  ;;  %8080 = vmatprep.subr.bf16.mxu1 %v8642_v4 }
 0x1bc   : > { %v7778_v56 = vpop.f32.mrb[24].mxu1  ;;  %v7757_v58 = vpop.f32.mrb[25].mxu0 }
 0x1bd   : > { %v7758_v60 = vadd.f32 %v7757_v58, %v7756_v54  ;;  %v7779_v61 = vpop.f32.mrb[25].mxu1  ;;  %v7759_v0 = vpop.f32.mrb[26].mxu0  ;;  %8059 = vmatpush3.bf16.msra.mxu0 %v8643_v7  ;;  %v8678_v7 = vld [vmem:[%s10478_s1 + $0xef0] sm:$0xff]  }
 0x1be   : > { %v7780_v63 = vadd.f32 %v7779_v61, %v7778_v56  ;;  %v7781_v3 = vpop.f32.mrb[26].mxu1  ;;  %v7760_v5 = vpop.f32.mrb[27].mxu0  ;;  %8081 = vmatpush3.bf16.msra.mxu1 %v8644_v10  ;;  %8060 = vmatprep.subr.bf16.mxu0 %v8645_v13  ;;  %v8672_v56 = vld [vmem:[%s10478_s1 + $0xea0] sm:$0xff]   ;;  %v8681_v10 = vld [vmem:[%s10478_s1 + $0xe78] sm:$0xff]  }
 0x1bf   : > { %v2959_v1 = vadd.f32 %v7758_v60, %v10102_v14  ;;  %v7761_v8 = vadd.f32 %v7760_v5, %v7759_v0  ;;  %v7782_v9 = vpop.f32.mrb[27].mxu1  ;;  %v8646_v14 = vld [vmem:[%s10478_s1 + $0xdf0] sm:$0xff]   ;;  %v8684_v13 = vld [vmem:[%s10478_s1 + $0xeb8] sm:$0xff]  }
 0x1c0   : > { %v7783_v11 = vadd.f32 %v7782_v9, %v7781_v3  ;;  %8082 = vmatprep.subr.bf16.mxu1 %v8646_v14  ;;  %v8676_v3 = vld [vmem:[%s10478_s1 + $0xea8] sm:$0xff]   ;;  %v8677_v5 = vld [vmem:[%s10478_s1 + $0xe70] sm:$0xff]   ;;  %v4543_v14 = vld [vmem:[%s8895_s6 + $0xe0] sm:$0xff] }
 0x1c1   : > { %v10208_v6 = vadd.f32 %v7780_v63, %v2959_v1  ;;  %v2962_v12 = vadd.f32 %v7761_v8, %v10117_v23  ;;  %8061 = vmatpush3.bf16.msra.mxu0 %v8647_v16  ;;  %v4549_v23 = vld [vmem:[%s8895_s6 + $0x110] sm:$0xff]  ;;  %v8675_v1 = vld [vmem:[%s10478_s1 + $0xe28] sm:$0xff]  }
 0x1c2   : > { %8083 = vmatpush3.bf16.msra.mxu1 %v8648_v17  ;;  %8062 = vmatprep.subr.bf16.mxu0 %v8649_v18  ;;  %v7332_v26 = vcombine.low %v4541_v22, %v4549_v23  ;;  %v7333_v27 = vcombine.high %v4541_v22, %v4549_v23  ;;  %v8679_v8 = vld [vmem:[%s10478_s1 + $0xe30] sm:$0xff]   ;;  %v4544_v16 = vld [vmem:[%s8895_s6 + $0xe8] sm:$0xff]  ;;  %v8685_v22 = vld [vmem:[%s10478_s1 + $0xf40] sm:$0xff]  }
 0x1c3   : > { %v10223_v15 = vadd.f32 %v7783_v11, %v2962_v12  ;;  %8084 = vmatprep.subr.bf16.mxu1 %v8650_v19  ;;  %v8680_v9 = vld [vmem:[%s10478_s1 + $0xeb0] sm:$0xff]   ;;  %v8682_v11 = vld [vmem:[%s10478_s1 + $0xef8] sm:$0xff]   ;;  %v4552_v19 = vld [vmem:[%s8895_s6 + $0x128] sm:$0xff] }
 0x1c4   : > { %5774 = vmatprep.mubr.bf16.mxu0 %v7333_v27  ;;  %v8683_v12 = vld [vmem:[%s10478_s1 + $0xe38] sm:$0xff]   ;;  %v8686_v23 = vld [vmem:[%s10478_s1 + $0xfc0] sm:$0xff]   ;;  %v8690_v27 = vld [vmem:[%s10478_s1 + $0xfc8] sm:$0xff]  }
 0x1c5   : > { %8063 = vmatpush3.bf16.msra.mxu0 %v8651_v20  ;;  %v7338_v20 = vcombine.low %v4544_v16, %v4552_v19 }
 0x1c6   : > { %8085 = vmatpush3.bf16.msra.mxu1 %v8652_v21  ;;  %8092 = vmatprep.subr.bf16.mxu0 %v8653_v30  ;;  %v7339_v21 = vcombine.high %v4544_v16, %v4552_v19  ;;  %v8693_v30 = vld [vmem:[%s10478_s1 + $0xf50] sm:$0xff]  }
 0x1c7   : > { %8114 = vmatprep.subr.bf16.mxu1 %v8654_v31  ;;  %v8694_v31 = vld [vmem:[%s10478_s1 + $0xfd0] sm:$0xff]  }
 0x1c8   : > { %5775 = vmatmul.mubr.bf16.vlgmr.msra.gmra.mrb[52].mxu0 %v7332_v26  ;;  %v8689_v26 = vld [vmem:[%s10478_s1 + $0xf48] sm:$0xff]  }
 0x1c9   : > { %5816 = vmatmul.mubr.bf16.vlgmr.msra.gmra.mrb[52].mxu1 %v7334_v28  ;;  %8093 = vmatpush3.bf16.msra.mxu0 %v8655_v32  ;;  %v8691_v28 = vld [vmem:[%s10478_s1 + $0xf08] sm:$0xff]   ;;  %v8695_v32 = vld [vmem:[%s10478_s1 + $0xf10] sm:$0xff]  }
 0x1ca   : > { %8115 = vmatpush3.bf16.msra.mxu1 %v8656_v33  ;;  %8094 = vmatprep.subr.bf16.mxu0 %v8657_v34  ;;  %v8696_v33 = vld [vmem:[%s10478_s1 + $0xf90] sm:$0xff]   ;;  %v8697_v34 = vld [vmem:[%s10478_s1 + $0xf58] sm:$0xff]  }
 0x1cb   : > { %8116 = vmatprep.subr.bf16.mxu1 %v8658_v35  ;;  %5897 = vmatprep.mubr.bf16.mxu1 %v7339_v21  ;;  %v8698_v35 = vld [vmem:[%s10478_s1 + $0xfd8] sm:$0xff]  }
 0x1cd   : > { %8095 = vmatpush3.bf16.msra.mxu0 %v8659_v36 }
 0x1ce   : > { %8117 = vmatpush3.bf16.msra.mxu1 %v8660_v37  ;;  %8096 = vmatprep.subr.bf16.mxu0 %v8661_v38  ;;  %v8699_v37 = vld [vmem:[%s10478_s1 + $0xf18] sm:$0xff]  }
 0x1cf   : > { %8118 = vmatprep.subr.bf16.mxu1 %v8662_v39  ;;  %v8700_v39 = vld [vmem:[%s10478_s1 + $0xf98] sm:$0xff]  }
 0x1d1   : > { %8097 = vmatpush3.bf16.msra.mxu0 %v8663_v40 }
 0x1d2   : > { %8119 = vmatpush3.bf16.msra.mxu1 %v8664_v41  ;;  %8098 = vmatprep.subr.bf16.mxu0 %v8665_v42  ;;  %v8701_v41 = vld [vmem:[%s10478_s1 + $0xf60] sm:$0xff]  }
 0x1d3   : > { %8120 = vmatprep.subr.bf16.mxu1 %v8666_v43 }
 0x1d5   : > { %8099 = vmatpush3.bf16.msra.mxu0 %v8667_v44  ;;  %v8702_v44 = vld [vmem:[%s10478_s1 + $0xfe0] sm:$0xff]  }
 0x1d6   : > { %8121 = vmatpush3.bf16.msra.mxu1 %v8668_v46  ;;  %8100 = vmatprep.subr.bf16.mxu0 %v8669_v48 }
 0x1d7   : > { %8122 = vmatprep.subr.bf16.mxu1 %v8670_v50 }
 0x1d9   : > { %8101 = vmatpush3.bf16.msra.mxu0 %v8671_v53 }
 0x1da   : > { %8123 = vmatpush3.bf16.msra.mxu1 %v8672_v56  ;;  %8102 = vmatprep.subr.bf16.mxu0 %v8673_v59 }
 0x1db   : > { %v7800_v45 = vpop.f32.mrb[28].mxu0  ;;  %8124 = vmatprep.subr.bf16.mxu1 %v8674_v62  ;;  %v8710_v62 = vld [vmem:[%s10478_s1 + $0xff0] sm:$0xff]  }
 0x1dc   : > { %v7822_v47 = vpop.f32.mrb[28].mxu1  ;;  %v7801_v49 = vpop.f32.mrb[29].mxu0 }
 0x1dd   : > { %v7802_v51 = vadd.f32 %v7801_v49, %v7800_v45  ;;  %v7823_v52 = vpop.f32.mrb[29].mxu1  ;;  %v7803_v55 = vpop.f32.mrb[30].mxu0  ;;  %8103 = vmatpush3.bf16.msra.mxu0 %v8675_v1  ;;  %v8704_v49 = vld [vmem:[%s10478_s1 + $0xfa0] sm:$0xff]   ;;  %v8713_v1 = vld [vmem:[%s10478_s1 + $0xf78] sm:$0xff]  }
 0x1de   : > { %v7824_v54 = vadd.f32 %v7823_v52, %v7822_v47  ;;  %v7825_v58 = vpop.f32.mrb[30].mxu1  ;;  %v7804_v60 = vpop.f32.mrb[31].mxu0  ;;  %8125 = vmatpush3.bf16.msra.mxu1 %v8676_v3  ;;  %8104 = vmatprep.subr.bf16.mxu0 %v8677_v5  ;;  %v8703_v47 = vld [vmem:[%s10478_s1 + $0xf20] sm:$0xff]   ;;  %v8705_v52 = vld [vmem:[%s10478_s1 + $0xf68] sm:$0xff]   ;;  %v8715_v3 = vld [vmem:[%s10478_s1 + $0xf38] sm:$0xff]  }
 0x1df   : > { %v3041_v57 = vadd.f32 %v7802_v51, %v10208_v6  ;;  %v7805_v63 = vadd.f32 %v7804_v60, %v7803_v55  ;;  %v7826_v0 = vpop.f32.mrb[31].mxu1  ;;  %8126 = vmatprep.subr.bf16.mxu1 %v8678_v7  ;;  %v8706_v55 = vld [vmem:[%s10478_s1 + $0xfe8] sm:$0xff]   ;;  %v8709_v60 = vld [vmem:[%s10478_s1 + $0xf70] sm:$0xff]  }
 0x1e0   : > { %v7827_v2 = vadd.f32 %v7826_v0, %v7825_v58  ;;  %v8708_v58 = vld [vmem:[%s10478_s1 + $0xfa8] sm:$0xff]   ;;  %v8712_v0 = vld [vmem:[%s10478_s1 + $0xfb0] sm:$0xff]  }
 0x1e1   : > { %v10311_v61 = vadd.f32 %v7824_v54, %v3041_v57  ;;  %v3044_v4 = vadd.f32 %v7805_v63, %v10223_v15  ;;  %8105 = vmatpush3.bf16.msra.mxu0 %v8679_v8  ;;  %v4551_v15 = vld [vmem:[%s8895_s6 + $0x120] sm:$0xff]  ;;  %v8707_v57 = vld [vmem:[%s10478_s1 + $0xf28] sm:$0xff]   ;;  %v8711_v63 = vld [vmem:[%s10478_s1 + $0xf30] sm:$0xff]  }
 0x1e2   : > { %8127 = vmatpush3.bf16.msra.mxu1 %v8680_v9  ;;  %8106 = vmatprep.subr.bf16.mxu0 %v8681_v10  ;;  %v7336_v17 = vcombine.low %v4543_v14, %v4551_v15  ;;  %v7337_v18 = vcombine.high %v4543_v14, %v4551_v15  ;;  %v4545_v5 = vld [vmem:[%s8895_s6 + $0xf0] sm:$0xff]  ;;  %v4546_v10 = vld [vmem:[%s8895_s6 + $0xf8] sm:$0xff] }
 0x1e3   : > { %v10326_v6 = vadd.f32 %v7827_v2, %v3044_v4  ;;  %8128 = vmatprep.subr.bf16.mxu1 %v8682_v11  ;;  %v8714_v2 = vld [vmem:[%s10478_s1 + $0xff8] sm:$0xff]   ;;  %v4553_v7 = vld [vmem:[%s8895_s6 + $0x130] sm:$0xff] }
 0x1e4   : > { %5856 = vmatprep.mubr.bf16.mxu0 %v7337_v18  ;;  %v8716_v4 = vld [vmem:[%s10478_s1 + $0xfb8] sm:$0xff]   ;;  %v7340_v8 = vcombine.low %v4545_v5, %v4553_v7  ;;  %v7341_v9 = vcombine.high %v4545_v5, %v4553_v7 }
 0x1e5   : > { %8107 = vmatpush3.bf16.msra.mxu0 %v8683_v12  ;;  %v4554_v11 = vld [vmem:[%s8895_s6 + $0x138] sm:$0xff] }
 0x1e6   : > { %8129 = vmatpush3.bf16.msra.mxu1 %v8684_v13  ;;  %8136 = vmatprep.subr.bf16.mxu0 %v8685_v22  ;;  %v7342_v12 = vcombine.low %v4546_v10, %v4554_v11  ;;  %v7343_v13 = vcombine.high %v4546_v10, %v4554_v11 }
 0x1e7   : > { %8158 = vmatprep.subr.bf16.mxu1 %v8686_v23 }
 0x1e8   : > { %5857 = vmatmul.mubr.bf16.vlgmr.msra.gmra.mrb[56].mxu0 %v7336_v17 }
 0x1e9   : > { %5898 = vmatmul.mubr.bf16.vlgmr.msra.gmra.mrb[56].mxu1 %v7338_v20  ;;  %8137 = vmatpush3.bf16.msra.mxu0 %v8687_v24 }
 0x1ea   : > { %8159 = vmatpush3.bf16.msra.mxu1 %v8688_v25  ;;  %8138 = vmatprep.subr.bf16.mxu0 %v8689_v26 }
 0x1eb   : > { %8160 = vmatprep.subr.bf16.mxu1 %v8690_v27  ;;  %5938 = vmatprep.mubr.bf16.mxu0 %v7341_v9 }
 0x1ec   : > { %5979 = vmatprep.mubr.bf16.mxu1 %v7343_v13 }
 0x1ed   : > { %8139 = vmatpush3.bf16.msra.mxu0 %v8691_v28 }
 0x1ee   : > { %8161 = vmatpush3.bf16.msra.mxu1 %v8692_v29  ;;  %8140 = vmatprep.subr.bf16.mxu0 %v8693_v30 }
 0x1ef   : > { %8162 = vmatprep.subr.bf16.mxu1 %v8694_v31 }
 0x1f1   : > { %8141 = vmatpush3.bf16.msra.mxu0 %v8695_v32 }
 0x1f2   : > { %8163 = vmatpush3.bf16.msra.mxu1 %v8696_v33  ;;  %8142 = vmatprep.subr.bf16.mxu0 %v8697_v34 }
 0x1f3   : > { %8164 = vmatprep.subr.bf16.mxu1 %v8698_v35 }
 0x1f5   : > { %8143 = vmatpush3.bf16.msra.mxu0 %v8699_v37 }
 0x1f6   : > { %8165 = vmatpush3.bf16.msra.mxu1 %v8700_v39  ;;  %8144 = vmatprep.subr.bf16.mxu0 %v8701_v41 }
 0x1f7   : > { %8166 = vmatprep.subr.bf16.mxu1 %v8702_v44 }
 0x1f9   : > { %8145 = vmatpush3.bf16.msra.mxu0 %v8703_v47 }
 0x1fa   : > { %8167 = vmatpush3.bf16.msra.mxu1 %v8704_v49  ;;  %8146 = vmatprep.subr.bf16.mxu0 %v8705_v52 }
 0x1fb   : > { %v7844_v36 = vpop.f32.mrb[32].mxu0  ;;  %8168 = vmatprep.subr.bf16.mxu1 %v8706_v55 }
 0x1fc   : > { %v7866_v38 = vpop.f32.mrb[32].mxu1  ;;  %v7845_v40 = vpop.f32.mrb[33].mxu0 }
 0x1fd   : > { %v7846_v42 = vadd.f32 %v7845_v40, %v7844_v36  ;;  %v7867_v43 = vpop.f32.mrb[33].mxu1  ;;  %v7847_v46 = vpop.f32.mrb[34].mxu0  ;;  %8147 = vmatpush3.bf16.msra.mxu0 %v8707_v57 }
 0x1fe   : > { %v7868_v45 = vadd.f32 %v7867_v43, %v7866_v38  ;;  %v7869_v48 = vpop.f32.mrb[34].mxu1  ;;  %v7848_v51 = vpop.f32.mrb[35].mxu0  ;;  %8169 = vmatpush3.bf16.msra.mxu1 %v8708_v58  ;;  %8148 = vmatprep.subr.bf16.mxu0 %v8709_v60 }
 0x1ff   : > { %v7849_v53 = vadd.f32 %v7848_v51, %v7847_v46  ;;  %v7870_v54 = vpop.f32.mrb[35].mxu1  ;;  %8170 = vmatprep.subr.bf16.mxu1 %v8710_v62 }
 0x200   : > { %v4285_v50 = vadd.f32 %v7868_v45, %v7846_v42  ;;  %v7871_v56 = vadd.f32 %v7870_v54, %v7869_v48 }
 0x201   : > { %8149 = vmatpush3.bf16.msra.mxu0 %v8711_v63 }
 0x202   : > { %v4288_v59 = vadd.f32 %v7871_v56, %v7849_v53  ;;  %8171 = vmatpush3.bf16.msra.mxu1 %v8712_v0  ;;  %8150 = vmatprep.subr.bf16.mxu0 %v8713_v1 }
 0x203   : > { %8172 = vmatprep.subr.bf16.mxu1 %v8714_v2 }
 0x205   : > { %8151 = vmatpush3.bf16.msra.mxu0 %v8715_v3 }
 0x206   : > { %8173 = vmatpush3.bf16.msra.mxu1 %v8716_v4 }
 0x208   : > { %5939 = vmatmul.mubr.bf16.vlgmr.msra.gmra.mrb[60].mxu0 %v7340_v8 }
 0x209   : > { %5980 = vmatmul.mubr.bf16.vlgmr.msra.gmra.mrb[60].mxu1 %v7342_v12 }
 0x21b   : > { %v7888_v14 = vpop.f32.mrb[36].mxu0 }
 0x21c   : > { %v7910_v15 = vpop.f32.mrb[36].mxu1  ;;  %v7889_v16 = vpop.f32.mrb[37].mxu0 }
 0x21d   : > { %v7890_v17 = vadd.f32 %v7889_v16, %v7888_v14  ;;  %v7911_v18 = vpop.f32.mrb[37].mxu1  ;;  %v7891_v19 = vpop.f32.mrb[38].mxu0 }
 0x21e   : > { %v7912_v20 = vadd.f32 %v7911_v18, %v7910_v15  ;;  %v7913_v21 = vpop.f32.mrb[38].mxu1  ;;  %v7892_v22 = vpop.f32.mrb[39].mxu0 }
 0x21f   : > { %v4326_v23 = vadd.f32 %v7890_v17, %v4285_v50  ;;  %v7893_v24 = vadd.f32 %v7892_v22, %v7891_v19  ;;  %v7914_v25 = vpop.f32.mrb[39].mxu1 }
 0x220   : > { %v7915_v26 = vadd.f32 %v7914_v25, %v7913_v21 }
 0x221   : > { %v4367_v27 = vadd.f32 %v7912_v20, %v4326_v23  ;;  %v4329_v28 = vadd.f32 %v7893_v24, %v4288_v59 }
 0x223   : > { %v4370_v29 = vadd.f32 %v7915_v26, %v4329_v28 }
 0x23b   : > { %v7932_v30 = vpop.f32.mrb[40].mxu0 }
 0x23c   : > { %v7954_v31 = vpop.f32.mrb[40].mxu1  ;;  %v7933_v32 = vpop.f32.mrb[41].mxu0 }
 0x23d   : > { %v7955_v33 = vpop.f32.mrb[41].mxu1  ;;  %v7934_v34 = vadd.f32 %v7933_v32, %v7932_v30  ;;  %v7935_v36 = vpop.f32.mrb[42].mxu0 }
 0x23e   : > { %v7956_v35 = vadd.f32 %v7955_v33, %v7954_v31  ;;  %v7957_v37 = vpop.f32.mrb[42].mxu1  ;;  %v7936_v38 = vpop.f32.mrb[43].mxu0 }
 0x23f   : > { %v7958_v39 = vpop.f32.mrb[43].mxu1  ;;  %v4408_v40 = vadd.f32 %v7934_v34, %v4367_v27  ;;  %v7937_v41 = vadd.f32 %v7936_v38, %v7935_v36 }
 0x240   : > { %v7959_v42 = vadd.f32 %v7958_v39, %v7957_v37 }
 0x241   : > { %v4449_v43 = vadd.f32 %v7956_v35, %v4408_v40  ;;  %v4411_v44 = vadd.f32 %v7937_v41, %v4370_v29 }
 0x243   : > { %v4452_v45 = vadd.f32 %v7959_v42, %v4411_v44 }
 0x25b   : > { %v7976_v46 = vpop.f32.mrb[44].mxu0 }
 0x25c   : > { %v7998_v47 = vpop.f32.mrb[44].mxu1  ;;  %v7977_v48 = vpop.f32.mrb[45].mxu0 }
 0x25d   : > { %v7978_v49 = vadd.f32 %v7977_v48, %v7976_v46  ;;  %v7999_v50 = vpop.f32.mrb[45].mxu1  ;;  %v7979_v51 = vpop.f32.mrb[46].mxu0 }
 0x25e   : > { %v8000_v52 = vadd.f32 %v7999_v50, %v7998_v47  ;;  %v8001_v53 = vpop.f32.mrb[46].mxu1  ;;  %v7980_v54 = vpop.f32.mrb[47].mxu0 }
 0x25f   : > { %v4490_v55 = vadd.f32 %v7978_v49, %v4449_v43  ;;  %v7981_v56 = vadd.f32 %v7980_v54, %v7979_v51  ;;  %v8002_v57 = vpop.f32.mrb[47].mxu1 }
 0x260   : > { %v8003_v58 = vadd.f32 %v8002_v57, %v8001_v53 }
 0x261   : > { %v4531_v59 = vadd.f32 %v8000_v52, %v4490_v55  ;;  %v4493_v60 = vadd.f32 %v7981_v56, %v4452_v45 }
 0x263   : > { %v10454_v62 = vadd.f32 %v4531_v59, %v10311_v61  ;;  %v4534_v63 = vadd.f32 %v8003_v58, %v4493_v60 }
 0x265   : > { %v10457_v0 = vadd.f32 %v4534_v63, %v10326_v6  ;;  %v7472_v63 = vld [vmem:[%s10479_s2] ss:$0 sm:$0xff] }
 0x27b   : > { %v8020_v1 = vpop.f32.mrb[48].mxu0 }
 0x27c   : > { %v8042_v2 = vpop.f32.mrb[48].mxu1  ;;  %v8021_v3 = vpop.f32.mrb[49].mxu0 }
 0x27d   : > { %v8022_v4 = vadd.f32 %v8021_v3, %v8020_v1  ;;  %v8043_v5 = vpop.f32.mrb[49].mxu1  ;;  %v8023_v7 = vpop.f32.mrb[50].mxu0 }
 0x27e   : > { %v8044_v8 = vadd.f32 %v8043_v5, %v8042_v2  ;;  %v8045_v9 = vpop.f32.mrb[50].mxu1  ;;  %v8024_v10 = vpop.f32.mrb[51].mxu0 }
 0x27f   : > { %v8025_v11 = vadd.f32 %v8024_v10, %v8023_v7  ;;  %v8046_v12 = vpop.f32.mrb[51].mxu1 }
 0x280   : > { %v5736_v13 = vadd.f32 %v8044_v8, %v8022_v4  ;;  %v8047_v14 = vadd.f32 %v8046_v12, %v8045_v9 }
 0x282   : > { %v5739_v15 = vadd.f32 %v8047_v14, %v8025_v11 }
 0x29b   : > { %v8064_v61 = vpop.f32.mrb[52].mxu0 }
 0x29c   : > { %v8086_v16 = vpop.f32.mrb[52].mxu1  ;;  %v8065_v17 = vpop.f32.mrb[53].mxu0 }
 0x29d   : > { %v8087_v18 = vpop.f32.mrb[53].mxu1  ;;  %v8066_v6 = vadd.f32 %v8065_v17, %v8064_v61  ;;  %v8067_v20 = vpop.f32.mrb[54].mxu0 }
 0x29e   : > { %v8088_v19 = vadd.f32 %v8087_v18, %v8086_v16  ;;  %v8089_v21 = vpop.f32.mrb[54].mxu1  ;;  %v8068_v22 = vpop.f32.mrb[55].mxu0 }
 0x29f   : > { %v8090_v23 = vpop.f32.mrb[55].mxu1  ;;  %v5777_v24 = vadd.f32 %v8066_v6, %v5736_v13  ;;  %v8069_v25 = vadd.f32 %v8068_v22, %v8067_v20 }
 0x2a0   : > { %v8091_v26 = vadd.f32 %v8090_v23, %v8089_v21 }
 0x2a1   : > { %v5818_v27 = vadd.f32 %v8088_v19, %v5777_v24  ;;  %v5780_v28 = vadd.f32 %v8069_v25, %v5739_v15 }
 0x2a3   : > { %v5821_v29 = vadd.f32 %v8091_v26, %v5780_v28 }
 0x2bb   : > { %v8108_v30 = vpop.f32.mrb[56].mxu0 }
 0x2bc   : > { %v8130_v31 = vpop.f32.mrb[56].mxu1  ;;  %v8109_v32 = vpop.f32.mrb[57].mxu0 }
 0x2bd   : > { %v8110_v33 = vadd.f32 %v8109_v32, %v8108_v30  ;;  %v8131_v34 = vpop.f32.mrb[57].mxu1  ;;  %v8111_v35 = vpop.f32.mrb[58].mxu0 }
 0x2be   : > { %v8132_v36 = vadd.f32 %v8131_v34, %v8130_v31  ;;  %v8133_v37 = vpop.f32.mrb[58].mxu1  ;;  %v8112_v38 = vpop.f32.mrb[59].mxu0 }
 0x2bf   : > { %v5859_v39 = vadd.f32 %v8110_v33, %v5818_v27  ;;  %v8113_v40 = vadd.f32 %v8112_v38, %v8111_v35  ;;  %v8134_v41 = vpop.f32.mrb[59].mxu1 }
 0x2c0   : > { %v8135_v42 = vadd.f32 %v8134_v41, %v8133_v37 }
 0x2c1   : > { %v5900_v43 = vadd.f32 %v8132_v36, %v5859_v39  ;;  %v5862_v44 = vadd.f32 %v8113_v40, %v5821_v29 }
 0x2c3   : > { %v5903_v45 = vadd.f32 %v8135_v42, %v5862_v44 }
 0x2db   : > { %v8152_v46 = vpop.f32.mrb[60].mxu0 }
 0x2dc   : > { %v8174_v47 = vpop.f32.mrb[60].mxu1  ;;  %v8153_v48 = vpop.f32.mrb[61].mxu0 }
 0x2dd   : > { %v8154_v49 = vadd.f32 %v8153_v48, %v8152_v46  ;;  %v8175_v50 = vpop.f32.mrb[61].mxu1  ;;  %v8155_v51 = vpop.f32.mrb[62].mxu0 }
 0x2de   : > { %v8176_v52 = vadd.f32 %v8175_v50, %v8174_v47  ;;  %v8177_v53 = vpop.f32.mrb[62].mxu1  ;;  %v8156_v54 = vpop.f32.mrb[63].mxu0 }
 0x2df   : > { %v5941_v55 = vadd.f32 %v8154_v49, %v5900_v43  ;;  %v8157_v56 = vadd.f32 %v8156_v54, %v8155_v51  ;;  %v8178_v57 = vpop.f32.mrb[63].mxu1 }
 0x2e0   : > { %v8179_v58 = vadd.f32 %v8178_v57, %v8177_v53 }
 0x2e1   : > { %v5982_v59 = vadd.f32 %v8176_v52, %v5941_v55  ;;  %v5944_v60 = vadd.f32 %v8157_v56, %v5903_v45 }
 0x2e3   : > { %v5988_v1 = vadd.f32 %v5982_v59, %v10454_v62  ;;  %v5985_v2 = vadd.f32 %v8179_v58, %v5944_v60 }
 0x2e5   : > { %v5997_v3 = vadd.f32 %v7472_v63, %v5988_v1  ;;  %v5989_v4 = vadd.f32 %v5985_v2, %v10457_v0 }
 0x2e7   : > { %v5999_v5 = vsub.f32 0.0, %v5997_v3  ;;  %v5998_v7 = vadd.f32 %v7472_v63, %v5989_v4 }
 0x2e9   : > { %v6001_v8 = vmul.f32 1.442695, %v5999_v5  ;;  %v6000_v9 = vsub.f32 0.0, %v5998_v7 }
 0x2eb   : > { %8717 = vpow2.f32 %v6001_v8  ;;  %v6003_v10 = vmul.f32 1.442695, %v6000_v9 }
 0x2ed   : > { %8719 = vpow2.f32 %v6003_v10 }
 0x2f5   : > { %v8718_v11 = vpop.eup %8717 }
 0x2f6   : > { %v6005_v12 = vadd.f32 1.0, %v8718_v11 }
 0x2f7   : > { %v8720_v13 = vpop.eup %8719 }
 0x2f8   : > { %8721 = vrcp.f32 %v6005_v12  ;;  %v6006_v14 = vadd.f32 1.0, %v8720_v13 }
 0x2fa   : > { %8723 = vrcp.f32 %v6006_v14 }
 0x302   : > { %v8722_v62 = vpop.eup %8721 }
 0x303   : > { %6011 = vst [vmem:[%s221_s7] sm:$0xff] %v8722_v62 }
 0x304   : > { %v8724_v0 = vpop.eup %8723 }
 0x305   : > { %6012 = vst [vmem:[%s221_s7 + $0x8] sm:$0xff] %v8724_v0 }
 0x306 PF: > { %s13_s14 = sadd.s32 1, %s8755_s14   ;;  %s10481_s12 = smov %s8751_s13 }
 0x307   : > { %p10_p5 = scmp.ge.s32.totalorder %s13_s14, 4   ;;  %s10482_s13 = smov %s10484_s15 }
 0x309   :  { %12 = sbr.rel (!%p10_p5) target bundleno = 2 (0x2), region = 71 }

</bundles_post_ra>
